<compile_context>
chip_gen: v7x
topology: tpu7x:2x2x1
jax: 0.10.0
libtpu: 0.0.40
codegen_flags: <defaults>
</compile_context>

<pallas_src>
import functools
import math

import jax
import jax.numpy as jnp
from jax import lax
from jax.experimental import pallas as pl
from jax.experimental.pallas import tpu as pltpu

HIDDEN = 768           # BERT hidden size from the module's nn.Linear(768, T)
NUM_ASPECT_TAGS = 5    # num_aspect_tags (small, synthetic)
CLS_PAD = 128          # class dim padded to one lane-width
TOK_BLOCK = 1024       # token tile; at production batch sizes keep >=2 blocks
                       # so v7x megacore can shard the 'parallel' grid axis.


# ----------------------------- Pallas kernel ------------------------------- #
def _head_kernel(h_ref, w_ref, b_ref, code_ref, probs_ref, part_ref, *,
                 num_labels):
    # fc: [TOK_BLOCK, HIDDEN](bf16) @ [HIDDEN, CLS_PAD](bf16) -> f32 on the MXU.
    logits = jnp.dot(h_ref[...], w_ref[...], preferred_element_type=jnp.float32)
    logits = logits + b_ref[...]                     # bias (f32); pad lanes are 0

    tn, tc = logits.shape
    cls_idx = lax.broadcasted_iota(jnp.int32, (tn, tc), 1)
    valid_cls = cls_idx < num_labels

    # softmax over the class axis (== torch nn.Softmax(dim=2)), f32 math.
    # Row max is taken over *masked* logits so pad lanes (logit == 0) can never
    # dominate very-negative real logits (robust for real checkpoints).
    neg = jnp.float32(-1e30)
    masked_logits = jnp.where(valid_cls, logits, neg)
    m = jnp.max(masked_logits, axis=-1, keepdims=True)        # finite, per row
    e = jnp.exp(masked_logits - m)                             # pad lanes -> 0
    denom = jnp.sum(e, axis=-1, keepdims=True)                 # >= 1
    inv = pl.reciprocal(denom, approx=True)                    # EUP, off the VALU
    probs_ref[...] = (e * inv).astype(probs_ref.dtype)

    # masked cross-entropy partials, CrossEntropyLoss ignore_index semantics:
    #   loss_i = logsumexp(valid logits_i) - logits_i[target_i]   if mask_i == 1
    # code = mask * (target + 1): 0 => ignored token, t+1 => target class t.
    code = code_ref[...]                             # [tn, 1] int32
    use = (code > 0).astype(jnp.float32)             # [tn, 1]
    lse = m + jnp.log(denom)                         # [tn, 1]
    lse_sum = jnp.sum(lse * use)
    # Selected-logit sum as ONE full-2D reduction (VPU accumulate + single
    # cross-lane reduce) instead of a per-row XLU reduce; masked rows have
    # code-1 == -1 which matches no class lane.
    picked_sum = jnp.sum(jnp.where(cls_idx == (code - 1), logits, 0.0))
    blk_sum = lse_sum - picked_sum                   # per-block partial sum
    blk_cnt = jnp.sum(use)                           # per-block token count

    lane = lax.broadcasted_iota(jnp.int32, (1, tc), 1)
    part_ref[...] = jnp.where(lane == 0, blk_sum,
                              jnp.where(lane == 1, blk_cnt, 0.0))


def _head_call(h, w, b, code):
    n_pad = h.shape[0]
    num_blocks = n_pad // TOK_BLOCK
    probs, parts = pl.pallas_call(
        functools.partial(_head_kernel, num_labels=NUM_ASPECT_TAGS),
        out_shape=(
            jax.ShapeDtypeStruct((n_pad, CLS_PAD), jnp.bfloat16),
            jax.ShapeDtypeStruct((num_blocks, CLS_PAD), jnp.float32),
        ),
        grid_spec=pltpu.PrefetchScalarGridSpec(
            num_scalar_prefetch=0,
            grid=(num_blocks,),
            in_specs=[
                pl.BlockSpec((TOK_BLOCK, HIDDEN), lambda i: (i, 0)),   # hidden (bf16)
                pl.BlockSpec((HIDDEN, CLS_PAD), lambda i: (0, 0)),     # fc weight (bf16)
                pl.BlockSpec((1, CLS_PAD), lambda i: (0, 0)),          # fc bias (f32)
                pl.BlockSpec((TOK_BLOCK, 1), lambda i: (i, 0)),        # packed mask/target
            ],
            out_specs=[
                pl.BlockSpec((TOK_BLOCK, CLS_PAD), lambda i: (i, 0)),  # softmax probs
                pl.BlockSpec((1, CLS_PAD), lambda i: (i, 0)),          # per-block [sum, cnt]
            ],
        ),
        compiler_params=pltpu.CompilerParams(
            dimension_semantics=("parallel",),        # blocks are independent
            vmem_limit_bytes=32 * 1024 * 1024),       # explicit (v5e default is 16 MiB)
    )(h, w, b, code)
    return probs, parts


# ------------------------ plain-JAX glue (encoder stub) --------------------- #
def init_params(key, vocab_size, max_seq):
    ks = jax.random.split(key, 7)
    scale = 0.02
    fc_w = scale * jax.random.normal(ks[3], (HIDDEN, NUM_ASPECT_TAGS), jnp.float32)
    fc_b = scale * jax.random.normal(ks[4], (NUM_ASPECT_TAGS,), jnp.float32)
    # Kernel-layout weight/bias padded once at init (no per-call scatter).
    fc_w_pad = jnp.zeros((HIDDEN, CLS_PAD), jnp.bfloat16).at[:, :NUM_ASPECT_TAGS].set(
        fc_w.astype(jnp.bfloat16))
    fc_b_pad = jnp.zeros((1, CLS_PAD), jnp.float32).at[0, :NUM_ASPECT_TAGS].set(fc_b)
    return {
        "word_emb": scale * jax.random.normal(ks[0], (vocab_size, HIDDEN), jnp.float32),
        "type_emb": scale * jax.random.normal(ks[1], (2, HIDDEN), jnp.float32),
        "pos_emb":  scale * jax.random.normal(ks[2], (max_seq, HIDDEN), jnp.float32),
        "ln_g":     jnp.ones((HIDDEN,), jnp.float32),
        "ln_b":     jnp.zeros((HIDDEN,), jnp.float32),
        "fc_w":     fc_w,
        "fc_b":     fc_b,
        "fc_w_pad": fc_w_pad,
        "fc_b_pad": fc_b_pad,
    }


def encoder_stub(params, input_ids, token_type_ids):
    # Deterministic stand-in for the pretrained BERT: embeddings + LayerNorm.
    s = input_ids.shape[1]
    pos = jnp.minimum(jnp.arange(s), params["pos_emb"].shape[0] - 1)  # clamp for pad rows
    emb = (params["word_emb"][input_ids]
           + params["type_emb"][token_type_ids]
           + params["pos_emb"][pos][None, :, :])
    mu = emb.mean(-1, keepdims=True)
    var = ((emb - mu) ** 2).mean(-1, keepdims=True)
    out = (emb - mu) / jnp.sqrt(var + 1e-12) * params["ln_g"] + params["ln_b"]
    # bf16 cast fused into the LayerNorm epilogue: the f32 [*, 768] activation
    # never makes an extra HBM round-trip before the head kernel.
    return out.astype(jnp.bfloat16)


@jax.jit
def aspect_extraction_forward(params, input_ids, attention_mask, token_type_ids,
                              aspect_tags):
    b, s = input_ids.shape

    # Pad the *tiny int inputs* (free) so b * s_pad is a multiple of TOK_BLOCK:
    # the [*, 768] hidden is then produced already block-aligned and never
    # repadded (no extra HBM pass over the dominant tensor).  Pad rows get
    # attention_mask = 0 (ignored) and aspect_tags = 0 (in-range dummy).
    step = TOK_BLOCK // math.gcd(b, TOK_BLOCK)
    s_pad = pl.cdiv(s, step) * step
    if s_pad != s:
        padw = ((0, 0), (0, s_pad - s))
        input_ids = jnp.pad(input_ids, padw)
        token_type_ids = jnp.pad(token_type_ids, padw)
        attention_mask = jnp.pad(attention_mask, padw)
        aspect_tags = jnp.pad(aspect_tags, padw)
    n_pad = b * s_pad

    hidden = encoder_stub(params, input_ids, token_type_ids)       # [B, S_pad, 768] bf16
    # dropout(p=0.3) -> identity (eval mode)
    h = hidden.reshape(n_pad, HIDDEN)

    # One packed int32 per token: 0 => ignore, t+1 => target class t.
    code = (attention_mask.astype(jnp.int32)
            * (aspect_tags.astype(jnp.int32) + 1)).reshape(n_pad, 1)

    probs_pad, parts = _head_call(h, params["fc_w_pad"], params["fc_b_pad"], code)

    # CrossEntropyLoss(ignore_index) mean; guard the all-masked 0/0 case.
    loss = jnp.sum(parts[:, 0]) / jnp.maximum(jnp.sum(parts[:, 1]), 1.0)

    probs = (probs_pad.reshape(b, s_pad, CLS_PAD)[:, :s, :NUM_ASPECT_TAGS]
             .astype(jnp.float32))                                  # cast after slice (tiny)
    return probs, loss


def reference_forward(params, input_ids, attention_mask, token_type_ids,
                      aspect_tags):
    hidden = encoder_stub(params, input_ids, token_type_ids).astype(jnp.float32)
    logits = hidden @ params["fc_w"] + params["fc_b"]
    probs = jax.nn.softmax(logits, axis=2)
    flat = logits.reshape(-1, NUM_ASPECT_TAGS)
    tgt = aspect_tags.reshape(-1)
    keep = attention_mask.reshape(-1) == 1
    lse = jax.nn.logsumexp(flat, axis=-1)
    picked = jnp.take_along_axis(flat, tgt[:, None], axis=-1)[:, 0]
    tok = lse - picked
    loss = jnp.sum(jnp.where(keep, tok, 0.0)) / jnp.sum(keep)
    return probs, loss


# ---------------------------------- main ----------------------------------- #
if __name__ == "__main__":
    B, S, VOCAB = 2, 128, 100
    key = jax.random.PRNGKey(0)
    k_params, k_ids, k_tags = jax.random.split(key, 3)

    params = init_params(k_params, VOCAB, S)
    input_ids = jax.random.randint(k_ids, (B, S), 0, VOCAB, dtype=jnp.int32)
    token_type_ids = jnp.zeros((B, S), jnp.int32)
    # first 96 tokens of each sequence are real, rest are padding
    attention_mask = (jnp.arange(S)[None, :] < 96).astype(jnp.int32).repeat(B, axis=0)
    aspect_tags = jax.random.randint(k_tags, (B, S), 0, NUM_ASPECT_TAGS, dtype=jnp.int32)

    probs, loss = aspect_extraction_forward(
        params, input_ids, attention_mask, token_type_ids, aspect_tags)
    jax.block_until_ready((probs, loss))

    probs_ref, loss_ref = reference_forward(
        params, input_ids, attention_mask, token_type_ids, aspect_tags)
    assert probs.shape == (B, S, NUM_ASPECT_TAGS)
    # tolerance accounts for bf16 hidden/weight inputs and bf16 probs output
    assert jnp.allclose(probs, probs_ref, rtol=2e-2, atol=2e-2)
    assert jnp.allclose(loss, loss_ref, rtol=2e-2, atol=2e-2)

    print("KERNEL_OK")
</pallas_src>

<mosaic_0001>
module attributes {stable_mosaic.version = 11 : i64} {
  func.func @_head_kernel(%arg0: i32, %arg1: memref<1024x768xbf16, #tpu.memory_space<vmem>>, %arg2: memref<768x128xbf16, #tpu.memory_space<vmem>>, %arg3: memref<1x128xf32, #tpu.memory_space<vmem>>, %arg4: memref<1024x1xi32, #tpu.memory_space<vmem>>, %arg5: memref<1024x128xbf16, #tpu.memory_space<vmem>>, %arg6: memref<1x128xf32, #tpu.memory_space<vmem>>) attributes {dimension_semantics = [#tpu.dimension_semantics<parallel>], iteration_bounds = array<i64: 1>, scalar_prefetch = 0 : i64, scratch_operands = 0 : i64, tpu.core_type = #tpu.core_type<tc>, window_params = [{transform_indices = @transform_0, window_bounds = array<i64: 1024, 768>}, {pipeline_mode = #tpu.pipeline_mode<synchronous>, transform_indices = @transform_1, window_bounds = array<i64: 768, 128>}, {pipeline_mode = #tpu.pipeline_mode<synchronous>, transform_indices = @transform_2, window_bounds = array<i64: 1, 128>}, {transform_indices = @transform_3, window_bounds = array<i64: 1024, 1>}, {transform_indices = @transform_4, window_bounds = array<i64: 1024, 128>}, {transform_indices = @transform_5, window_bounds = array<i64: 1, 128>}]} {
    %c0 = arith.constant 0 : index
    %c0_0 = arith.constant 0 : index
    %0 = vector.load %arg1[%c0, %c0_0] : memref<1024x768xbf16, #tpu.memory_space<vmem>>, vector<1024x768xbf16>
    %c0_1 = arith.constant 0 : index
    %c0_2 = arith.constant 0 : index
    %1 = vector.load %arg2[%c0_1, %c0_2] : memref<768x128xbf16, #tpu.memory_space<vmem>>, vector<768x128xbf16>
    %cst = arith.constant dense<0.000000e+00> : vector<1024x128xf32>
    %2 = tpu.matmul %0, %1, %cst {dimension_numbers = #tpu.dot_dimension_numbers<[1], [0], [0], [1], [0, 0, 1, 1], [], []>} : vector<1024x768xbf16>, vector<768x128xbf16>, vector<1024x128xf32> -> vector<1024x128xf32>
    %c0_3 = arith.constant 0 : index
    %c0_4 = arith.constant 0 : index
    %3 = vector.load %arg3[%c0_3, %c0_4] : memref<1x128xf32, #tpu.memory_space<vmem>>, vector<1x128xf32>
    %4 = vector.broadcast %3 : vector<1x128xf32> to vector<1024x128xf32>
    %5 = arith.addf %2, %4 : vector<1024x128xf32>
    %6 = tpu.iota {dimensions = array<i32: 1>} : vector<1024x128xi32>
    %c5_i32 = arith.constant 5 : i32
    %7 = vector.broadcast %c5_i32 : i32 to vector<1024x128xi32>
    %8 = arith.cmpi slt, %6, %7 : vector<1024x128xi32>
    %cst_5 = arith.constant -1.000000e+30 : f32
    %9 = vector.broadcast %cst_5 : f32 to vector<1024x128xf32>
    %10 = arith.select %8, %5, %9 : vector<1024x128xi1>, vector<1024x128xf32>
    %cst_6 = arith.constant dense<0xFF800000> : vector<1024xf32>
    %11 = vector.multi_reduction <maximumf>, %10, %cst_6 [1] : vector<1024x128xf32> to vector<1024xf32>
    %12 = vector.shape_cast %11 : vector<1024xf32> to vector<1024x1xf32>
    %13 = vector.broadcast %12 : vector<1024x1xf32> to vector<1024x128xf32>
    %14 = arith.subf %10, %13 : vector<1024x128xf32>
    %15 = math.exp %14 : vector<1024x128xf32>
    %cst_7 = arith.constant dense<0.000000e+00> : vector<1024xf32>
    %16 = vector.multi_reduction <add>, %15, %cst_7 [1] : vector<1024x128xf32> to vector<1024xf32>
    %17 = vector.shape_cast %16 : vector<1024xf32> to vector<1024x1xf32>
    %18 = tpu.reciprocal %17 {approx = true} : vector<1024x1xf32> -> vector<1024x1xf32>
    %19 = vector.broadcast %18 : vector<1024x1xf32> to vector<1024x128xf32>
    %20 = arith.mulf %15, %19 : vector<1024x128xf32>
    %21 = arith.truncf %20 : vector<1024x128xf32> to vector<1024x128xbf16>
    %c0_8 = arith.constant 0 : index
    %c0_9 = arith.constant 0 : index
    %22 = vector.load %arg5[%c0_8, %c0_9] : memref<1024x128xbf16, #tpu.memory_space<vmem>>, vector<1024x128xbf16>
    tpu.vector_store %arg5[%c0_8, %c0_9], %21 {strides = array<i32>} : memref<1024x128xbf16, #tpu.memory_space<vmem>>, vector<1024x128xbf16>,
    %c0_10 = arith.constant 0 : index
    %c0_11 = arith.constant 0 : index
    %23 = vector.load %arg4[%c0_10, %c0_11] : memref<1024x1xi32, #tpu.memory_space<vmem>>, vector<1024x1xi32>
    %c0_i32 = arith.constant 0 : i32
    %24 = vector.broadcast %c0_i32 : i32 to vector<1024x1xi32>
    %25 = arith.cmpi sgt, %23, %24 : vector<1024x1xi32>
    %26 = arith.extui %25 : vector<1024x1xi1> to vector<1024x1xi32>
    %27 = arith.sitofp %26 : vector<1024x1xi32> to vector<1024x1xf32>
    %28 = math.log %17 : vector<1024x1xf32>
    %29 = arith.addf %12, %28 : vector<1024x1xf32>
    %30 = arith.mulf %29, %27 : vector<1024x1xf32>
    %31 = vector.shape_cast %30 : vector<1024x1xf32> to vector<1x1024x1xf32>
    %cst_12 = arith.constant dense<0.000000e+00> : vector<1xf32>
    %32 = vector.multi_reduction <add>, %31, %cst_12 [1, 2] : vector<1x1024x1xf32> to vector<1xf32>
    %33 = vector.shape_cast %32 : vector<1xf32> to vector<1x1x1xf32>
    %34 = vector.extract %33[0, 0, 0] : f32 from vector<1x1x1xf32>
    %c1_i32 = arith.constant 1 : i32
    %35 = vector.broadcast %c1_i32 : i32 to vector<1024x1xi32>
    %36 = arith.subi %23, %35 : vector<1024x1xi32>
    %37 = vector.broadcast %36 : vector<1024x1xi32> to vector<1024x128xi32>
    %38 = arith.cmpi eq, %6, %37 : vector<1024x128xi32>
    %cst_13 = arith.constant 0.000000e+00 : f32
    %39 = vector.broadcast %cst_13 : f32 to vector<1024x128xf32>
    %40 = arith.select %38, %5, %39 : vector<1024x128xi1>, vector<1024x128xf32>
    %41 = vector.shape_cast %40 : vector<1024x128xf32> to vector<1x1024x128xf32>
    %cst_14 = arith.constant dense<0.000000e+00> : vector<1xf32>
    %42 = vector.multi_reduction <add>, %41, %cst_14 [1, 2] : vector<1x1024x128xf32> to vector<1xf32>
    %43 = vector.shape_cast %42 : vector<1xf32> to vector<1x1x1xf32>
    %44 = vector.extract %43[0, 0, 0] : f32 from vector<1x1x1xf32>
    %45 = arith.subf %34, %44 : f32
    %46 = vector.shape_cast %27 : vector<1024x1xf32> to vector<1x1024x1xf32>
    %cst_15 = arith.constant dense<0.000000e+00> : vector<1xf32>
    %47 = vector.multi_reduction <add>, %46, %cst_15 [1, 2] : vector<1x1024x1xf32> to vector<1xf32>
    %48 = vector.shape_cast %47 : vector<1xf32> to vector<1x1x1xf32>
    %49 = vector.extract %48[0, 0, 0] : f32 from vector<1x1x1xf32>
    %50 = tpu.iota {dimensions = array<i32: 1>} : vector<1x128xi32>
    %c0_i32_16 = arith.constant 0 : i32
    %51 = vector.broadcast %c0_i32_16 : i32 to vector<1x128xi32>
    %52 = arith.cmpi eq, %50, %51 : vector<1x128xi32>
    %c1_i32_17 = arith.constant 1 : i32
    %53 = vector.broadcast %c1_i32_17 : i32 to vector<1x128xi32>
    %54 = arith.cmpi eq, %50, %53 : vector<1x128xi32>
    %cst_18 = arith.constant 0.000000e+00 : f32
    %55 = vector.broadcast %49 : f32 to vector<1x128xf32>
    %56 = vector.broadcast %cst_18 : f32 to vector<1x128xf32>
    %57 = arith.select %54, %55, %56 : vector<1x128xi1>, vector<1x128xf32>
    %58 = vector.broadcast %45 : f32 to vector<1x128xf32>
    %59 = arith.select %52, %58, %57 : vector<1x128xi1>, vector<1x128xf32>
    %c0_19 = arith.constant 0 : index
    %c0_20 = arith.constant 0 : index
    %60 = vector.load %arg6[%c0_19, %c0_20] : memref<1x128xf32, #tpu.memory_space<vmem>>, vector<1x128xf32>
    tpu.vector_store %arg6[%c0_19, %c0_20], %59 {strides = array<i32>} : memref<1x128xf32, #tpu.memory_space<vmem>>, vector<1x128xf32>,
    return
  }
  func.func @transform_0(%arg0: i32) -> (i32, i32) {
    %c0_i32 = arith.constant 0 : i32
    %c0_i32_0 = arith.constant 0 : i32
    return %arg0, %c0_i32 : i32, i32
  }
  func.func @transform_1(%arg0: i32) -> (i32, i32) {
    %c0_i32 = arith.constant 0 : i32
    %c0_i32_0 = arith.constant 0 : i32
    %c0_i32_1 = arith.constant 0 : i32
    return %c0_i32, %c0_i32_0 : i32, i32
  }
  func.func @transform_2(%arg0: i32) -> (i32, i32) {
    %c0_i32 = arith.constant 0 : i32
    %c0_i32_0 = arith.constant 0 : i32
    %c0_i32_1 = arith.constant 0 : i32
    return %c0_i32, %c0_i32_0 : i32, i32
  }
  func.func @transform_3(%arg0: i32) -> (i32, i32) {
    %c0_i32 = arith.constant 0 : i32
    %c0_i32_0 = arith.constant 0 : i32
    return %arg0, %c0_i32 : i32, i32
  }
  func.func @transform_4(%arg0: i32) -> (i32, i32) {
    %c0_i32 = arith.constant 0 : i32
    %c0_i32_0 = arith.constant 0 : i32
    return %arg0, %c0_i32 : i32, i32
  }
  func.func @transform_5(%arg0: i32) -> (i32, i32) {
    %c0_i32 = arith.constant 0 : i32
    %c0_i32_0 = arith.constant 0 : i32
    return %arg0, %c0_i32 : i32, i32
  }
}

</mosaic_0001>

<bundles_post_ra>
// kernel: aspect_extraction_forward.1
= control target key start
LH: loop header
LB: loop body
LE: loop exit
PB: predicated region body
PF: predicated region fallthrough
CT: control target
= control target key end

     0   :  { %v12151_v0 = vmov 0   ;;  %vm7297_vm7 = vcmask 7168   ;;  %s18428_s3 = inlined_call_operand.vmem [shape: s32[1024,1], index: 3, kind: input, shape index: {}]   ;;  %s18429_s1 = inlined_call_operand.vmem [shape: bf16[768,128], index: 1, kind: input, shape index: {}]   ;;  %s18430_s0 = inlined_call_operand.vmem [shape: bf16[1024,768], index: 0, kind: input, shape index: {}]   ;;  %s18431_s2 = inlined_call_operand.vmem [shape: f32[1,128], index: 2, kind: input, shape index: {}]   ;;  %s18432_s4 = inlined_call_operand.vmem [shape: bf16[1024,128], index: 4, kind: output, shape index: {0}]   ;;  %s18433_s5 = inlined_call_operand.vmem [shape: f32[1,128], index: 5, kind: output, shape index: {1}]  }
   0x1   :  { %10626 = vset.pattern.permute.xlu1 %v12151_v0  ;;  %2715 = vmatprep.subr.bf16.mxu1 %v12151_v0  ;;  %v6273_v1 = vld [vmem:[%s18428_s3] sm:$0xff]  ;;  %v6275_v5 = vld [vmem:[%s18428_s3 + $0x10] sm:$0xff]  ;;  %v10630_v7 = vld [vmem:[%s18429_s1 + $0x8] sm:$0xff]  }
   0x2   :  { %3260 = vmatprep.subr.bf16.mxu0 %v12151_v0  ;;  %v9435_v2 = vadd.s32 4294967295, %v6273_v1  ;;  %v10628_v3 = vld [vmem:[%s18429_s1] sm:$0xff]   ;;  %10627 = vset.pattern.permute.xlu0 %v12151_v0  ;;  %v9437_v6 = vadd.s32 4294967295, %v6275_v5  ;;  %v12209_v8 = vld [vmem:[%s18429_s1 + $0x88] sm:$0xff]   ;;  %v6276_v9 = vld [vmem:[%s18428_s3 + $0x18] sm:$0xff] }
   0x3   :  { %v12195_v4 = vld [vmem:[%s18429_s1 + $0x80] sm:$0xff]   ;;  %2716 = vmatpush1.bf16.msra.mxu1 %v10628_v3  ;;  %v9438_v10 = vadd.s32 4294967295, %v6276_v9  ;;  %v10632_v11 = vld [vmem:[%s18429_s1 + $0x10] sm:$0xff]   ;;  %v10634_v15 = vld [vmem:[%s18429_s1 + $0x18] sm:$0xff]  }
   0x4   :  { %7691 = vperm.xlu1 %10626, %v9435_v2   ;;  %3261 = vmatpush1.bf16.msra.mxu0 %v12195_v4  ;;  %v12223_v12 = vld [vmem:[%s18429_s1 + $0x90] sm:$0xff]   ;;  %v6277_v13 = vld [vmem:[%s18428_s3 + $0x20] sm:$0xff]  ;;  %v12235_v16 = vld [vmem:[%s18429_s1 + $0x98] sm:$0xff]  }
   0x5   :  { %2717 = vmatprep.subr.bf16.mxu1 %v12151_v0  ;;  %3262 = vmatprep.subr.bf16.mxu0 %v12151_v0  ;;  %v9439_v14 = vadd.s32 4294967295, %v6277_v13  ;;  %v6278_v17 = vld [vmem:[%s18428_s3 + $0x28] sm:$0xff]  ;;  %v10636_v19 = vld [vmem:[%s18429_s1 + $0x20] sm:$0xff]   ;;  %v6279_v21 = vld [vmem:[%s18428_s3 + $0x30] sm:$0xff] }
   0x6   :  { %v9440_v18 = vadd.s32 4294967295, %v6278_v17  ;;  %v12251_v20 = vld [vmem:[%s18429_s1 + $0xa0] sm:$0xff]   ;;  %v10638_v22 = vld [vmem:[%s18429_s1 + $0x28] sm:$0xff]   ;;  %v9441_v23 = vadd.s32 4294967295, %v6279_v21  ;;  %v6280_v25 = vld [vmem:[%s18428_s3 + $0x38] sm:$0xff] }
   0x7   :  { %2718 = vmatpush1.bf16.msra.mxu1 %v10630_v7  ;;  %v12263_v24 = vld [vmem:[%s18429_s1 + $0xa8] sm:$0xff]   ;;  %v9442_v26 = vadd.s32 4294967295, %v6280_v25  ;;  %v10640_v27 = vld [vmem:[%s18429_s1 + $0x30] sm:$0xff]   ;;  %v6281_v29 = vld [vmem:[%s18428_s3 + $0x40] sm:$0xff] }
   0x8   :  { %7697 = vperm.xlu1 %10626, %v9437_v6   ;;  %3263 = vmatpush1.bf16.msra.mxu0 %v12209_v8  ;;  %v12277_v28 = vld [vmem:[%s18429_s1 + $0xb0] sm:$0xff]   ;;  %v6274_v30 = vld [vmem:[%s18428_s3 + $0x8] sm:$0xff]  ;;  %v9443_v32 = vadd.s32 4294967295, %v6281_v29  ;;  %v10642_v33 = vld [vmem:[%s18429_s1 + $0x38] sm:$0xff]  }
   0x9   :  { %2719 = vmatprep.subr.bf16.mxu1 %v12151_v0  ;;  %3264 = vmatprep.subr.bf16.mxu0 %v12151_v0  ;;  %v9436_v31 = vadd.s32 4294967295, %v6274_v30  ;;  %v12294_v34 = vld [vmem:[%s18429_s1 + $0xb8] sm:$0xff]   ;;  %v6282_v35 = vld [vmem:[%s18428_s3 + $0x48] sm:$0xff]  ;;  %v6283_v36 = vld [vmem:[%s18428_s3 + $0x50] sm:$0xff] }
   0xa   :  { %v9445_v37 = vadd.s32 4294967295, %v6283_v36  ;;  %v10644_v38 = vld [vmem:[%s18429_s1 + $0x40] sm:$0xff]   ;;  %v9444_v39 = vadd.s32 4294967295, %v6282_v35  ;;  %v6284_v41 = vld [vmem:[%s18428_s3 + $0x58] sm:$0xff]  ;;  %v10646_v45 = vld [vmem:[%s18429_s1 + $0x48] sm:$0xff]  }
   0xb   :  { %2720 = vmatpush1.bf16.msra.mxu1 %v10632_v11  ;;  %7694 = vperm.xlu0 %10627, %v9436_v31   ;;  %v12311_v40 = vld [vmem:[%s18429_s1 + $0xc0] sm:$0xff]   ;;  %v9446_v44 = vadd.s32 4294967295, %v6284_v41  ;;  %v6287_v46 = vld [vmem:[%s18428_s3 + $0x70] sm:$0xff]  ;;  %v12333_v47 = vld [vmem:[%s18429_s1 + $0xc8] sm:$0xff]  }
   0xc   :  { %7700 = vperm.xlu1 %10626, %v9438_v10   ;;  %3265 = vmatpush1.bf16.msra.mxu0 %v12223_v12  ;;  %v6285_v42 = vld [vmem:[%s18428_s3 + $0x60] sm:$0xff]  ;;  %v6286_v48 = vld [vmem:[%s18428_s3 + $0x68] sm:$0xff]  ;;  %v9449_v49 = vadd.s32 4294967295, %v6287_v46  ;;  %v10648_v51 = vld [vmem:[%s18429_s1 + $0x50] sm:$0xff]  }
   0xd   :  { %2721 = vmatprep.subr.bf16.mxu1 %v12151_v0  ;;  %3266 = vmatprep.subr.bf16.mxu0 %v12151_v0  ;;  %v9447_v43 = vadd.s32 4294967295, %v6285_v42  ;;  %v9448_v50 = vadd.s32 4294967295, %v6286_v48  ;;  %v6289_v52 = vld [vmem:[%s18428_s3 + $0x80] sm:$0xff]  ;;  %v12350_v53 = vld [vmem:[%s18429_s1 + $0xd0] sm:$0xff]   ;;  %v6288_v54 = vld [vmem:[%s18428_s3 + $0x78] sm:$0xff] }
   0xe   :  { %v9451_v55 = vadd.s32 4294967295, %v6289_v52  ;;  %v6291_v56 = vld [vmem:[%s18428_s3 + $0x90] sm:$0xff]  ;;  %v9450_v57 = vadd.s32 4294967295, %v6288_v54  ;;  %v10650_v58 = vld [vmem:[%s18429_s1 + $0x58] sm:$0xff]   ;;  %v6290_v60 = vld [vmem:[%s18428_s3 + $0x88] sm:$0xff] }
   0xf   :  { %2722 = vmatpush1.bf16.msra.mxu1 %v10634_v15  ;;  %7721 = vperm.xlu0 %10627, %v9445_v37   ;;  %v12367_v59 = vld [vmem:[%s18429_s1 + $0xd8] sm:$0xff]   ;;  %v10652_v61 = vld [vmem:[%s18429_s1 + $0x60] sm:$0xff]   ;;  %v9453_v62 = vadd.s32 4294967295, %v6291_v56  ;;  %v9452_v1 = vadd.s32 4294967295, %v6290_v60  ;;  %v6295_v9 = vld [vmem:[%s18428_s3 + $0xb0] sm:$0xff] }
  0x10   :  { %7703 = vperm.xlu1 %10626, %v9439_v14   ;;  %3267 = vmatpush1.bf16.msra.mxu0 %v12235_v16  ;;  %v12379_v63 = vld [vmem:[%s18429_s1 + $0xe0] sm:$0xff]   ;;  %v6292_v3 = vld [vmem:[%s18428_s3 + $0x98] sm:$0xff]  ;;  %v10654_v11 = vld [vmem:[%s18429_s1 + $0x68] sm:$0xff]   ;;  %v9457_v15 = vadd.s32 4294967295, %v6295_v9 }
  0x11   :  { %2723 = vmatprep.subr.bf16.mxu1 %v12151_v0  ;;  %3268 = vmatprep.subr.bf16.mxu0 %v12151_v0  ;;  %v10662_v2 = vld [vmem:[%s18430_s0 + $0x4] ss:$24 sps:$4 sm:$0xff]   ;;  %v9454_v10 = vadd.s32 4294967295, %v6292_v3  ;;  %v12407_v13 = vld [vmem:[%s18429_s1 + $0xe8] sm:$0xff]   ;;  %v12424_v21 = vld [vmem:[%s18429_s1 + $0xf0] sm:$0xff]  }
  0x12   :  { %v10665_v5 = vld [vmem:[%s18430_s0 + $0xc] ss:$24 sps:$4 sm:$0xff]   ;;  %2747 = vmatprep.mubr.bf16.mxu1 %v10662_v2  ;;  %v6299_v25 = vld [vmem:[%s18428_s3 + $0xd0] sm:$0xff]  ;;  %v12441_v29 = vld [vmem:[%s18429_s1 + $0xf8] sm:$0xff]  }
  0x13   :  { %2724 = vmatpush1.bf16.msra.mxu1 %v10636_v19  ;;  %7727 = vperm.xlu0 %10627, %v9447_v43   ;;  %v6293_v6 = vld [vmem:[%s18428_s3 + $0xa0] sm:$0xff]  ;;  %v6294_v14 = vld [vmem:[%s18428_s3 + $0xa8] sm:$0xff]  ;;  %v10656_v19 = vld [vmem:[%s18429_s1 + $0x70] sm:$0xff]  }
  0x14   :  { %7706 = vperm.xlu1 %10626, %v9440_v18   ;;  %3269 = vmatpush1.bf16.msra.mxu0 %v12251_v20  ;;  %v9455_v7 = vadd.s32 4294967295, %v6293_v6  ;;  %v6297_v17 = vld [vmem:[%s18428_s3 + $0xc0] sm:$0xff]  ;;  %v9456_v18 = vadd.s32 4294967295, %v6294_v14  ;;  %v6298_v30 = vld [vmem:[%s18428_s3 + $0xc8] sm:$0xff]  ;;  %v10669_v41 = vld [vmem:[%s18430_s0 + $0x3c] ss:$24 sps:$4 sm:$0xff]  }
  0x15   :  { %2725 = vmatprep.subr.bf16.mxu1 %v12151_v0  ;;  %3270 = vmatprep.subr.bf16.mxu0 %v12151_v0  ;;  %v10660_v31 = vld [vmem:[%s18430_s0] ss:$24 sps:$4 sm:$0xff]   ;;  %v9460_v36 = vadd.s32 4294967295, %v6298_v30  ;;  %v10679_v46 = vld [vmem:[%s18429_s1 + $0x108] sm:$0xff]   ;;  %v10673_v54 = vld [vmem:[%s18430_s0 + $0x64] ss:$24 sps:$4 sm:$0xff]  }
  0x16   :  { %3292 = vmatprep.mubr.bf16.mxu0 %v10665_v5  ;;  %v6301_v35 = vld [vmem:[%s18428_s3 + $0xe0] sm:$0xff]  ;;  %v10671_v48 = vld [vmem:[%s18430_s0 + $0x30] ss:$24 sps:$4 sm:$0xff]   ;;  %v10682_v6 = vld [vmem:[%s18430_s0 + $0x9c] ss:$24 sps:$4 sm:$0xff]  }
  0x17   :  { %2726 = vmatpush1.bf16.msra.mxu1 %v10638_v22  ;;  %7733 = vperm.xlu0 %10627, %v9449_v49   ;;  %v6296_v22 = vld [vmem:[%s18428_s3 + $0xb8] sm:$0xff]  ;;  %v10666_v37 = vld [vmem:[%s18429_s1 + $0x100] sm:$0xff]   ;;  %v9463_v42 = vadd.s32 4294967295, %v6301_v35  ;;  %v10692_v56 = vld [vmem:[%s18429_s1 + $0x110] sm:$0xff]  }
  0x18   :  { %7709 = vperm.xlu1 %10626, %v9441_v23   ;;  %3271 = vmatpush1.bf16.msra.mxu0 %v12263_v24  ;;  %v9459_v23 = vadd.s32 4294967295, %v6297_v17  ;;  %v6305_v52 = vld [vmem:[%s18428_s3 + $0x100] sm:$0xff]  ;;  %v6307_v60 = vld [vmem:[%s18428_s3 + $0x110] sm:$0xff] }
  0x19   :  { %2727 = vmatprep.subr.bf16.mxu1 %v12151_v0  ;;  %3272 = vmatprep.subr.bf16.mxu0 %v12151_v0  ;;  %v9469_v2 = vadd.s32 4294967295, %v6307_v60  ;;  %v6309_v5 = vld [vmem:[%s18428_s3 + $0x120] sm:$0xff]  ;;  %v10684_v14 = vld [vmem:[%s18430_s0 + $0x90] ss:$24 sps:$4 sm:$0xff]  }
  0x1b   :  { %2728 = vmatpush1.bf16.msra.mxu1 %v10640_v27  ;;  %7739 = vperm.xlu0 %10627, %v9451_v55   ;;  %v10658_v27 = vld [vmem:[%s18429_s1 + $0x78] sm:$0xff]   ;;  %v10675_v55 = vld [vmem:[%s18430_s0 + $0x6c] ss:$24 sps:$4 sm:$0xff]  }
  0x1c   :  { %7712 = vperm.xlu1 %10626, %v9442_v26   ;;  %3273 = vmatpush1.bf16.msra.mxu0 %v12277_v28  ;;  %v9458_v26 = vadd.s32 4294967295, %v6296_v22  ;;  %v6313_v22 = vld [vmem:[%s18428_s3 + $0x140] sm:$0xff] }
  0x1d   :  { %2729 = vmatprep.subr.bf16.mxu1 %v12151_v0  ;;  %3274 = vmatprep.subr.bf16.mxu0 %v12151_v0 }
  0x1f   :  { %2730 = vmatpush1.bf16.msra.mxu1 %v10642_v33  ;;  %7745 = vperm.xlu0 %10627, %v9453_v62   ;;  %v10663_v33 = vld [vmem:[%s18430_s0 + $0x8] ss:$24 sps:$4 sm:$0xff]  }
  0x20   :  { %7715 = vperm.xlu1 %10626, %v9443_v32   ;;  %3275 = vmatpush1.bf16.msra.mxu0 %v12294_v34  ;;  %v9461_v32 = vadd.s32 4294967295, %v6299_v25  ;;  %v10678_v62 = vld [vmem:[%s18430_s0 + $0x68] ss:$24 sps:$4 sm:$0xff]   ;;  %v10688_v25 = vld [vmem:[%s18430_s0 + $0xcc] ss:$24 sps:$4 sm:$0xff]  }
  0x21   :  { %2731 = vmatprep.subr.bf16.mxu1 %v12151_v0  ;;  %3276 = vmatprep.subr.bf16.mxu0 %v12151_v0 }
  0x23   :  { %2732 = vmatpush1.bf16.msra.mxu1 %v10644_v38  ;;  %7751 = vperm.xlu0 %10627, %v9455_v7   ;;  %v6300_v38 = vld [vmem:[%s18428_s3 + $0xd8] sm:$0xff]  ;;  %v9471_v7 = vadd.s32 4294967295, %v6309_v5  ;;  %v6326_v5 = vld [vmem:[%s18428_s3 + $0x1a8] sm:$0xff] }
  0x24   :  { %7718 = vperm.xlu1 %10626, %v9444_v39   ;;  %3277 = vmatpush1.bf16.msra.mxu0 %v12311_v40  ;;  %v10667_v39 = vld [vmem:[%s18430_s0 + $0x34] ss:$24 sps:$4 sm:$0xff]   ;;  %v9462_v43 = vadd.s32 4294967295, %v6300_v38 }
  0x25   :  { %2733 = vmatprep.subr.bf16.mxu1 %v12151_v0  ;;  %3278 = vmatprep.subr.bf16.mxu0 %v12151_v0  ;;  %v10695_v38 = vld [vmem:[%s18430_s0 + $0xfc] ss:$24 sps:$4 sm:$0xff]  }
  0x27   :  { %2734 = vmatpush1.bf16.msra.mxu1 %v10646_v45  ;;  %7757 = vperm.xlu0 %10627, %v9457_v15   ;;  %v6303_v45 = vld [vmem:[%s18428_s3 + $0xf0] sm:$0xff] }
  0x28   :  { %7724 = vperm.xlu1 %10626, %v9446_v44   ;;  %3279 = vmatpush1.bf16.msra.mxu0 %v12333_v47  ;;  %v6302_v44 = vld [vmem:[%s18428_s3 + $0xe8] sm:$0xff]  ;;  %v9465_v49 = vadd.s32 4294967295, %v6303_v45  ;;  %v10685_v15 = vld [vmem:[%s18430_s0 + $0x98] ss:$24 sps:$4 sm:$0xff]  }
  0x29   :  { %2735 = vmatprep.subr.bf16.mxu1 %v12151_v0  ;;  %3280 = vmatprep.subr.bf16.mxu0 %v12151_v0  ;;  %v10698_v45 = vld [vmem:[%s18430_s0 + $0xf8] ss:$24 sps:$4 sm:$0xff]  }
  0x2b   :  { %2736 = vmatpush1.bf16.msra.mxu1 %v10648_v51  ;;  %7763 = vperm.xlu0 %10627, %v9459_v23   ;;  %v6304_v51 = vld [vmem:[%s18428_s3 + $0xf8] sm:$0xff] }
  0x2c   :  { %7730 = vperm.xlu1 %10626, %v9448_v50   ;;  %3281 = vmatpush1.bf16.msra.mxu0 %v12350_v53  ;;  %v10672_v50 = vld [vmem:[%s18430_s0 + $0x38] ss:$24 sps:$4 sm:$0xff]   ;;  %v10686_v23 = vld [vmem:[%s18430_s0 + $0xc4] ss:$24 sps:$4 sm:$0xff]  }
  0x2d   :  { %2737 = vmatprep.subr.bf16.mxu1 %v12151_v0  ;;  %3282 = vmatprep.subr.bf16.mxu0 %v12151_v0 }
  0x2f   :  { %2738 = vmatpush1.bf16.msra.mxu1 %v10650_v58  ;;  %7769 = vperm.xlu0 %10627, %v9461_v32   ;;  %v9466_v58 = vadd.s32 4294967295, %v6304_v51  ;;  %v10701_v51 = vld [vmem:[%s18430_s0 + $0x12c] ss:$24 sps:$4 sm:$0xff]  }
  0x30   :  { %7736 = vperm.xlu1 %10626, %v9450_v57   ;;  %3283 = vmatpush1.bf16.msra.mxu0 %v12367_v59  ;;  %v9467_v57 = vadd.s32 4294967295, %v6305_v52 }
  0x31   :  { %2739 = vmatprep.subr.bf16.mxu1 %v12151_v0  ;;  %3284 = vmatprep.subr.bf16.mxu0 %v12151_v0 }
  0x33   :  { %2740 = vmatpush1.bf16.msra.mxu1 %v10652_v61  ;;  %7775 = vperm.xlu0 %10627, %v9463_v42   ;;  %v10677_v61 = vld [vmem:[%s18430_s0 + $0x60] ss:$24 sps:$4 sm:$0xff]  }
  0x34   :  { %7742 = vperm.xlu1 %10626, %v9452_v1   ;;  %3285 = vmatpush1.bf16.msra.mxu0 %v12379_v63  ;;  %v6308_v1 = vld [vmem:[%s18428_s3 + $0x118] sm:$0xff] }
  0x35   :  { %2741 = vmatprep.subr.bf16.mxu1 %v12151_v0  ;;  %3286 = vmatprep.subr.bf16.mxu0 %v12151_v0  ;;  %v9470_v9 = vadd.s32 4294967295, %v6308_v1  ;;  %v10708_v1 = vld [vmem:[%s18430_s0 + $0x15c] ss:$24 sps:$4 sm:$0xff]  }
  0x37   :  { %2742 = vmatpush1.bf16.msra.mxu1 %v10654_v11  ;;  %7781 = vperm.xlu0 %10627, %v9465_v49   ;;  %v6310_v11 = vld [vmem:[%s18428_s3 + $0x128] sm:$0xff] }
  0x38   :  { %7748 = vperm.xlu1 %10626, %v9454_v10   ;;  %3287 = vmatpush1.bf16.msra.mxu0 %v12407_v13  ;;  %v6311_v10 = vld [vmem:[%s18428_s3 + $0x130] sm:$0xff] }
  0x39   :  { %2743 = vmatprep.subr.bf16.mxu1 %v12151_v0  ;;  %3288 = vmatprep.subr.bf16.mxu0 %v12151_v0  ;;  %v9473_v17 = vadd.s32 4294967295, %v6311_v10  ;;  %v6328_v10 = vld [vmem:[%s18428_s3 + $0x1b8] sm:$0xff] }
  0x3b   :  { %2744 = vmatpush1.bf16.msra.mxu1 %v10656_v19  ;;  %7787 = vperm.xlu0 %10627, %v9467_v57   ;;  %v6312_v19 = vld [vmem:[%s18428_s3 + $0x138] sm:$0xff] }
  0x3c   :  { %7754 = vperm.xlu1 %10626, %v9456_v18   ;;  %3289 = vmatpush1.bf16.msra.mxu0 %v12424_v21  ;;  %v9472_v18 = vadd.s32 4294967295, %v6310_v11  ;;  %v9474_v30 = vadd.s32 4294967295, %v6312_v19  ;;  %v10703_v57 = vld [vmem:[%s18430_s0 + $0x120] ss:$24 sps:$4 sm:$0xff]   ;;  %v6330_v19 = vld [vmem:[%s18428_s3 + $0x1c8] sm:$0xff] }
  0x3d   :  { %2745 = vmatprep.subr.bf16.mxu1 %v12151_v0  ;;  %3290 = vmatprep.subr.bf16.mxu0 %v12151_v0  ;;  %v6329_v11 = vld [vmem:[%s18428_s3 + $0x1c0] sm:$0xff] }
  0x3f   :  { %2746 = vmatpush1.bf16.msra.mxu1 %v10658_v27  ;;  %7793 = vperm.xlu0 %10627, %v9469_v2   ;;  %v6315_v27 = vld [vmem:[%s18428_s3 + $0x150] sm:$0xff] }
  0x40   :  { %7760 = vperm.xlu1 %10626, %v9458_v26   ;;  %3291 = vmatpush1.bf16.msra.mxu0 %v12441_v29  ;;  %v9475_v26 = vadd.s32 4294967295, %v6313_v22  ;;  %v9477_v32 = vadd.s32 4294967295, %v6315_v27  ;;  %v10716_v22 = vld [vmem:[%s18430_s0 + $0x180] ss:$24 sps:$4 sm:$0xff]   ;;  %v9492_v27 = vadd.s32 4294967295, %v6330_v19  ;;  %v6350_v19 = vld [vmem:[%s18428_s3 + $0x268] sm:$0xff] }
  0x41   :  { %10074 = vmatprep.subr.bf16.mxu1 %v12151_v0  ;;  %3805 = vmatprep.subr.bf16.mxu0 %v12151_v0 }
  0x42   :  { %2748 = vmatmul.mubr.bf16.vlgmr.msra.gmra.mrb[0].mxu1 %v10660_v31  ;;  %v6314_v31 = vld [vmem:[%s18428_s3 + $0x148] sm:$0xff] }
  0x43   :  { %3293 = vmatmul.mubr.bf16.vlgmr.msra.gmra.mrb[0].mxu0 %v10663_v33  ;;  %10090 = vmatpush1.bf16.msra.mxu1 %v12195_v4  ;;  %v9464_v4 = vadd.s32 4294967295, %v6302_v44  ;;  %v10691_v33 = vld [vmem:[%s18430_s0 + $0xc8] ss:$24 sps:$4 sm:$0xff]   ;;  %v9476_v35 = vadd.s32 4294967295, %v6314_v31  ;;  %v10721_v31 = vld [vmem:[%s18430_s0 + $0x1bc] ss:$24 sps:$4 sm:$0xff]  }
  0x44   :  { %7766 = vperm.xlu1 %10626, %v9460_v36   ;;  %3806 = vmatpush1.bf16.msra.mxu0 %v10666_v37  ;;  %v6316_v36 = vld [vmem:[%s18428_s3 + $0x158] sm:$0xff]  ;;  %v10693_v37 = vld [vmem:[%s18430_s0 + $0xf4] ss:$24 sps:$4 sm:$0xff]  }
  0x45   :  { %2755 = vmatprep.mubr.bf16.mxu1 %v10667_v39  ;;  %3300 = vmatprep.mubr.bf16.mxu0 %v10669_v41  ;;  %v10718_v39 = vld [vmem:[%s18429_s1 + $0x120] sm:$0xff]   ;;  %v9478_v42 = vadd.s32 4294967295, %v6316_v36  ;;  %v6318_v44 = vld [vmem:[%s18428_s3 + $0x168] sm:$0xff] }
  0x46   :  { %3807 = vmatprep.subr.bf16.mxu0 %v12151_v0  ;;  %10075 = vmatprep.subr.bf16.mxu1 %v12151_v0  ;;  %v9480_v49 = vadd.s32 4294967295, %v6318_v44  ;;  %v10723_v36 = vld [vmem:[%s18430_s0 + $0x1b0] ss:$24 sps:$4 sm:$0xff]  }
  0x47   :  { %10091 = vmatpush1.bf16.msra.mxu1 %v12209_v8  ;;  %v6306_v8 = vld [vmem:[%s18428_s3 + $0x108] sm:$0xff]  ;;  %7799 = vperm.xlu0 %10627, %v9471_v7  }
  0x48   :  { %7772 = vperm.xlu1 %10626, %v9462_v43   ;;  %3808 = vmatpush1.bf16.msra.mxu0 %v10679_v46  ;;  %v9468_v3 = vadd.s32 4294967295, %v6306_v8  ;;  %v6319_v43 = vld [vmem:[%s18428_s3 + $0x170] sm:$0xff] }
  0x49   :  { %3809 = vmatprep.subr.bf16.mxu0 %v12151_v0  ;;  %10076 = vmatprep.subr.bf16.mxu1 %v12151_v0  ;;  %v9481_v46 = vadd.s32 4294967295, %v6319_v43  ;;  %v10727_v43 = vld [vmem:[%s18430_s0 + $0x1ec] ss:$24 sps:$4 sm:$0xff]  }
  0x4a   :  { %2756 = vmatmul.mubr.bf16.gmra.mrb[4].mxu1 %v10671_v48  ;;  %v6321_v48 = vld [vmem:[%s18428_s3 + $0x180] sm:$0xff] }
  0x4b   :  { %3301 = vmatmul.mubr.bf16.gmra.mrb[4].mxu0 %v10672_v50  ;;  %2763 = vmatprep.mubr.bf16.mxu1 %v10673_v54  ;;  %v6320_v50 = vld [vmem:[%s18428_s3 + $0x178] sm:$0xff]  ;;  %v9483_v52 = vadd.s32 4294967295, %v6321_v48  ;;  %v6323_v54 = vld [vmem:[%s18428_s3 + $0x190] sm:$0xff]  ;;  %v10730_v48 = vld [vmem:[%s18430_s0 + $0x1e8] ss:$24 sps:$4 sm:$0xff]  }
  0x4c   :  { %7778 = vperm.xlu1 %10626, %v9464_v4   ;;  %3308 = vmatprep.mubr.bf16.mxu0 %v10675_v55  ;;  %v10699_v4 = vld [vmem:[%s18430_s0 + $0x124] ss:$24 sps:$4 sm:$0xff]   ;;  %v10731_v55 = vld [vmem:[%s18429_s1 + $0x128] sm:$0xff]   ;;  %v9485_v60 = vadd.s32 4294967295, %v6323_v54 }
  0x4d   :  { %3810 = vmatpush1.bf16.msra.mxu0 %v10692_v56  ;;  %10092 = vmatpush1.bf16.msra.mxu1 %v12223_v12  ;;  %v10680_v12 = vld [vmem:[%s18430_s0 + $0x94] ss:$24 sps:$4 sm:$0xff]  }
  0x4e   :  { %3811 = vmatprep.subr.bf16.mxu0 %v12151_v0  ;;  %10077 = vmatprep.subr.bf16.mxu1 %v12151_v0  ;;  %v6322_v56 = vld [vmem:[%s18428_s3 + $0x188] sm:$0xff] }
  0x4f   :  { %7805 = vperm.xlu0 %10627, %v9473_v17   ;;  %v9484_v8 = vadd.s32 4294967295, %v6322_v56  ;;  %v9490_v17 = vadd.s32 4294967295, %v6328_v10  ;;  %v6343_v56 = vld [vmem:[%s18428_s3 + $0x230] sm:$0xff] }
  0x50   :  { %7784 = vperm.xlu1 %10626, %v9466_v58   ;;  %v10704_v58 = vld [vmem:[%s18430_s0 + $0x128] ss:$24 sps:$4 sm:$0xff]  }
  0x51   :  { %10093 = vmatpush1.bf16.msra.mxu1 %v12235_v16  ;;  %v10705_v16 = vld [vmem:[%s18429_s1 + $0x118] sm:$0xff]  }
  0x52   :  { %2764 = vmatmul.mubr.bf16.gmra.mrb[8].mxu1 %v10677_v61  ;;  %10078 = vmatprep.subr.bf16.mxu1 %v12151_v0  ;;  %v6324_v61 = vld [vmem:[%s18428_s3 + $0x198] sm:$0xff] }
  0x53   :  { %3309 = vmatmul.mubr.bf16.gmra.mrb[8].mxu0 %v10678_v62  ;;  %2771 = vmatprep.mubr.bf16.mxu1 %v10680_v12  ;;  %v6325_v62 = vld [vmem:[%s18428_s3 + $0x1a0] sm:$0xff]  ;;  %v9486_v12 = vadd.s32 4294967295, %v6324_v61 }
  0x54   :  { %7790 = vperm.xlu1 %10626, %v9468_v3   ;;  %3316 = vmatprep.mubr.bf16.mxu0 %v10682_v6  ;;  %v9487_v2 = vadd.s32 4294967295, %v6325_v62  ;;  %v6327_v3 = vld [vmem:[%s18428_s3 + $0x1b0] sm:$0xff]  ;;  %v6345_v62 = vld [vmem:[%s18428_s3 + $0x240] sm:$0xff] }
  0x55   :  { %3812 = vmatpush1.bf16.msra.mxu0 %v10705_v16  ;;  %10094 = vmatpush1.bf16.msra.mxu1 %v12251_v20  ;;  %v10690_v20 = vld [vmem:[%s18430_s0 + $0xc0] ss:$24 sps:$4 sm:$0xff]   ;;  %v9489_v7 = vadd.s32 4294967295, %v6327_v3  ;;  %v10712_v16 = vld [vmem:[%s18430_s0 + $0x184] ss:$24 sps:$4 sm:$0xff]  }
  0x56   :  { %3813 = vmatprep.subr.bf16.mxu0 %v12151_v0  ;;  %10079 = vmatprep.subr.bf16.mxu1 %v12151_v0  ;;  %v10711_v6 = vld [vmem:[%s18430_s0 + $0x158] ss:$24 sps:$4 sm:$0xff]  }
  0x57   :  { %7811 = vperm.xlu0 %10627, %v9475_v26   ;;  %v6333_v26 = vld [vmem:[%s18428_s3 + $0x1e0] sm:$0xff] }
  0x58   :  { %7796 = vperm.xlu1 %10626, %v9470_v9   ;;  %v9488_v9 = vadd.s32 4294967295, %v6326_v5  ;;  %v6346_v5 = vld [vmem:[%s18428_s3 + $0x248] sm:$0xff] }
  0x59   :  { %10095 = vmatpush1.bf16.msra.mxu1 %v12263_v24  ;;  %v6317_v24 = vld [vmem:[%s18428_s3 + $0x160] sm:$0xff]  ;;  %3814 = vmatpush1.bf16.msra.mxu0 %v10718_v39  ;;  %v9508_v10 = vadd.s32 4294967295, %v6346_v5 }
  0x5a   :  { %2772 = vmatmul.mubr.bf16.gmra.mrb[12].mxu1 %v10684_v14  ;;  %10080 = vmatprep.subr.bf16.mxu1 %v12151_v0  ;;  %v9479_v41 = vadd.s32 4294967295, %v6317_v24  ;;  %v10744_v14 = vld [vmem:[%s18429_s1 + $0x130] sm:$0xff]   ;;  %v6337_v39 = vld [vmem:[%s18428_s3 + $0x200] sm:$0xff] }
  0x5b   :  { %3317 = vmatmul.mubr.bf16.gmra.mrb[12].mxu0 %v10685_v15  ;;  %2779 = vmatprep.mubr.bf16.mxu1 %v10686_v23  ;;  %v9491_v15 = vadd.s32 4294967295, %v6329_v11  ;;  %v10717_v23 = vld [vmem:[%s18430_s0 + $0x188] ss:$24 sps:$4 sm:$0xff]   ;;  %v9499_v44 = vadd.s32 4294967295, %v6337_v39 }
  0x5c   :  { %7802 = vperm.xlu1 %10626, %v9472_v18   ;;  %3324 = vmatprep.mubr.bf16.mxu0 %v10688_v25  ;;  %v6331_v18 = vld [vmem:[%s18428_s3 + $0x1d0] sm:$0xff]  ;;  %v6349_v11 = vld [vmem:[%s18428_s3 + $0x260] sm:$0xff] }
  0x5d   :  { %10096 = vmatpush1.bf16.msra.mxu1 %v12277_v28  ;;  %7817 = vperm.xlu0 %10627, %v9477_v32   ;;  %v10697_v28 = vld [vmem:[%s18430_s0 + $0xf0] ss:$24 sps:$4 sm:$0xff]   ;;  %v9493_v25 = vadd.s32 4294967295, %v6331_v18  ;;  %v6365_v5 = vld [vmem:[%s18428_s3 + $0x2e0] sm:$0xff] }
  0x5e   :  { %10081 = vmatprep.subr.bf16.mxu1 %v12151_v0  ;;  %3815 = vmatprep.subr.bf16.mxu0 %v12151_v0  ;;  %v6351_v18 = vld [vmem:[%s18428_s3 + $0x270] sm:$0xff]  ;;  %v10756_v39 = vld [vmem:[%s18430_s0 + $0x2a8] ss:$24 sps:$4 sm:$0xff]  }
  0x5f   :  { %3816 = vmatpush1.bf16.msra.mxu0 %v10731_v55 }
  0x60   :  { %7808 = vperm.xlu1 %10626, %v9474_v30   ;;  %3817 = vmatprep.subr.bf16.mxu0 %v12151_v0  ;;  %v10719_v30 = vld [vmem:[%s18430_s0 + $0x1b4] ss:$24 sps:$4 sm:$0xff]  }
  0x61   :  { %7823 = vperm.xlu0 %10627, %v9479_v41   ;;  %10097 = vmatpush1.bf16.msra.mxu1 %v12294_v34  ;;  %v9482_v34 = vadd.s32 4294967295, %v6320_v50  ;;  %v6336_v41 = vld [vmem:[%s18428_s3 + $0x1f8] sm:$0xff] }
  0x62   :  { %2780 = vmatmul.mubr.bf16.gmra.mrb[16].mxu1 %v10690_v20  ;;  %10082 = vmatprep.subr.bf16.mxu1 %v12151_v0  ;;  %v9495_v20 = vadd.s32 4294967295, %v6333_v26  ;;  %v6352_v26 = vld [vmem:[%s18428_s3 + $0x278] sm:$0xff] }
  0x63   :  { %3325 = vmatmul.mubr.bf16.gmra.mrb[16].mxu0 %v10691_v33  ;;  %2787 = vmatprep.mubr.bf16.mxu1 %v10693_v37  ;;  %v6335_v33 = vld [vmem:[%s18428_s3 + $0x1f0] sm:$0xff] }
  0x64   :  { %7814 = vperm.xlu1 %10626, %v9476_v35   ;;  %3332 = vmatprep.mubr.bf16.mxu0 %v10695_v38  ;;  %v10757_v35 = vld [vmem:[%s18429_s1 + $0x138] sm:$0xff]   ;;  %v9497_v24 = vadd.s32 4294967295, %v6335_v33 }
  0x65   :  { %7829 = vperm.xlu0 %10627, %v9481_v46   ;;  %10098 = vmatpush1.bf16.msra.mxu1 %v12311_v40  ;;  %v10706_v40 = vld [vmem:[%s18430_s0 + $0x154] ss:$24 sps:$4 sm:$0xff]   ;;  %v10724_v37 = vld [vmem:[%s18430_s0 + $0x1b8] ss:$24 sps:$4 sm:$0xff]  }
  0x66   :  { %10083 = vmatprep.subr.bf16.mxu1 %v12151_v0  ;;  %3818 = vmatpush1.bf16.msra.mxu0 %v10744_v14  ;;  %v10729_v46 = vld [vmem:[%s18430_s0 + $0x1e0] ss:$24 sps:$4 sm:$0xff]   ;;  %v10747_v14 = vld [vmem:[%s18430_s0 + $0x27c] ss:$24 sps:$4 sm:$0xff]  }
  0x67   :  { %3819 = vmatprep.subr.bf16.mxu0 %v12151_v0 }
  0x68   :  { %7820 = vperm.xlu1 %10626, %v9478_v42   ;;  %v10725_v42 = vld [vmem:[%s18430_s0 + $0x1e4] ss:$24 sps:$4 sm:$0xff]  }
  0x69   :  { %7835 = vperm.xlu0 %10627, %v9483_v52   ;;  %10099 = vmatpush1.bf16.msra.mxu1 %v12333_v47  ;;  %v10710_v47 = vld [vmem:[%s18430_s0 + $0x150] ss:$24 sps:$4 sm:$0xff]   ;;  %v10732_v52 = vld [vmem:[%s18430_s0 + $0x214] ss:$24 sps:$4 sm:$0xff]  }
  0x6a   :  { %2788 = vmatmul.mubr.bf16.gmra.mrb[20].mxu1 %v10697_v28  ;;  %10084 = vmatprep.subr.bf16.mxu1 %v12151_v0  ;;  %v6339_v28 = vld [vmem:[%s18428_s3 + $0x210] sm:$0xff] }
  0x6b   :  { %3333 = vmatmul.mubr.bf16.gmra.mrb[20].mxu0 %v10698_v45  ;;  %2795 = vmatprep.mubr.bf16.mxu1 %v10699_v4  ;;  %v6338_v45 = vld [vmem:[%s18428_s3 + $0x208] sm:$0xff]  ;;  %v6340_v4 = vld [vmem:[%s18428_s3 + $0x218] sm:$0xff] }
  0x6c   :  { %7826 = vperm.xlu1 %10626, %v9480_v49   ;;  %3340 = vmatprep.mubr.bf16.mxu0 %v10701_v51  ;;  %v9501_v49 = vadd.s32 4294967295, %v6339_v28  ;;  %v9500_v50 = vadd.s32 4294967295, %v6338_v45  ;;  %v10770_v51 = vld [vmem:[%s18429_s1 + $0x140] sm:$0xff]   ;;  %v9502_v55 = vadd.s32 4294967295, %v6340_v4  ;;  %v10762_v4 = vld [vmem:[%s18430_s0 + $0x2d0] ss:$24 sps:$4 sm:$0xff]  }
  0x6d   :  { %7841 = vperm.xlu0 %10627, %v9485_v60   ;;  %10100 = vmatpush1.bf16.msra.mxu1 %v12350_v53  ;;  %v10714_v53 = vld [vmem:[%s18430_s0 + $0x18c] ss:$24 sps:$4 sm:$0xff]   ;;  %v6344_v60 = vld [vmem:[%s18428_s3 + $0x238] sm:$0xff] }
  0x6e   :  { %10085 = vmatprep.subr.bf16.mxu1 %v12151_v0  ;;  %3820 = vmatpush1.bf16.msra.mxu0 %v10757_v35  ;;  %v9506_v3 = vadd.s32 4294967295, %v6344_v60  ;;  %v6363_v60 = vld [vmem:[%s18428_s3 + $0x2d0] sm:$0xff] }
  0x6f   :  { %3821 = vmatprep.subr.bf16.mxu0 %v12151_v0 }
  0x70   :  { %7832 = vperm.xlu1 %10626, %v9482_v34   ;;  %v10734_v34 = vld [vmem:[%s18430_s0 + $0x21c] ss:$24 sps:$4 sm:$0xff]  }
  0x71   :  { %7847 = vperm.xlu0 %10627, %v9487_v2   ;;  %10101 = vmatpush1.bf16.msra.mxu1 %v12367_v59  ;;  %v6332_v59 = vld [vmem:[%s18428_s3 + $0x1d8] sm:$0xff]  ;;  %v9507_v2 = vadd.s32 4294967295, %v6345_v62 }
  0x72   :  { %2796 = vmatmul.mubr.bf16.gmra.mrb[24].mxu1 %v10703_v57  ;;  %10086 = vmatprep.subr.bf16.mxu1 %v12151_v0  ;;  %v9494_v32 = vadd.s32 4294967295, %v6332_v59  ;;  %v6342_v57 = vld [vmem:[%s18428_s3 + $0x228] sm:$0xff]  ;;  %v10796_v59 = vld [vmem:[%s18429_s1 + $0x150] sm:$0xff]  }
  0x73   :  { %3341 = vmatmul.mubr.bf16.gmra.mrb[24].mxu0 %v10704_v58  ;;  %2803 = vmatprep.mubr.bf16.mxu1 %v10706_v40  ;;  %v10737_v58 = vld [vmem:[%s18430_s0 + $0x218] ss:$24 sps:$4 sm:$0xff]   ;;  %v9504_v61 = vadd.s32 4294967295, %v6342_v57  ;;  %v10738_v40 = vld [vmem:[%s18430_s0 + $0x244] ss:$24 sps:$4 sm:$0xff]  }
  0x74   :  { %7838 = vperm.xlu1 %10626, %v9484_v8   ;;  %3348 = vmatprep.mubr.bf16.mxu0 %v10708_v1  ;;  %v9505_v8 = vadd.s32 4294967295, %v6343_v56  ;;  %v10740_v1 = vld [vmem:[%s18430_s0 + $0x24c] ss:$24 sps:$4 sm:$0xff]  }
  0x75   :  { %7853 = vperm.xlu0 %10627, %v9489_v7   ;;  %10102 = vmatpush1.bf16.msra.mxu1 %v12379_v63  ;;  %v6334_v63 = vld [vmem:[%s18428_s3 + $0x1e8] sm:$0xff]  ;;  %v6361_v56 = vld [vmem:[%s18428_s3 + $0x2c0] sm:$0xff] }
  0x76   :  { %10087 = vmatprep.subr.bf16.mxu1 %v12151_v0  ;;  %v9496_v38 = vadd.s32 4294967295, %v6334_v63  ;;  %3822 = vmatpush1.bf16.msra.mxu0 %v10770_v51  ;;  %v9514_v63 = vadd.s32 4294967295, %v6352_v26  ;;  %v6360_v51 = vld [vmem:[%s18428_s3 + $0x2b8] sm:$0xff]  ;;  %v10766_v57 = vld [vmem:[%s18430_s0 + $0x30c] ss:$24 sps:$4 sm:$0xff]  }
  0x77   :  { %3823 = vmatprep.subr.bf16.mxu0 %v12151_v0  ;;  %v10779_v26 = vld [vmem:[%s18430_s0 + $0x36c] ss:$24 sps:$4 sm:$0xff]  }
  0x78   :  { %7844 = vperm.xlu1 %10626, %v9486_v12   ;;  %v6347_v12 = vld [vmem:[%s18428_s3 + $0x250] sm:$0xff] }
  0x79   :  { %7859 = vperm.xlu0 %10627, %v9491_v15   ;;  %10103 = vmatpush1.bf16.msra.mxu1 %v12407_v13  ;;  %v9498_v13 = vadd.s32 4294967295, %v6336_v41  ;;  %v9509_v7 = vadd.s32 4294967295, %v6347_v12  ;;  %v9511_v15 = vadd.s32 4294967295, %v6349_v11  ;;  %v6364_v12 = vld [vmem:[%s18428_s3 + $0x2d8] sm:$0xff]  ;;  %v6366_v11 = vld [vmem:[%s18428_s3 + $0x2e8] sm:$0xff] }
  0x7a   :  { %2804 = vmatmul.mubr.bf16.gmra.mrb[28].mxu1 %v10710_v47  ;;  %10088 = vmatprep.subr.bf16.mxu1 %v12151_v0  ;;  %v10783_v47 = vld [vmem:[%s18429_s1 + $0x148] sm:$0xff]  }
  0x7b   :  { %3349 = vmatmul.mubr.bf16.gmra.mrb[28].mxu0 %v10711_v6  ;;  %2811 = vmatprep.mubr.bf16.mxu1 %v10712_v16  ;;  %v10742_v6 = vld [vmem:[%s18430_s0 + $0x240] ss:$24 sps:$4 sm:$0xff]  }
  0x7c   :  { %7850 = vperm.xlu1 %10626, %v9488_v9   ;;  %3356 = vmatprep.mubr.bf16.mxu0 %v10714_v53  ;;  %v10743_v9 = vld [vmem:[%s18430_s0 + $0x248] ss:$24 sps:$4 sm:$0xff]   ;;  %v6348_v16 = vld [vmem:[%s18428_s3 + $0x258] sm:$0xff]  ;;  %v10745_v53 = vld [vmem:[%s18430_s0 + $0x274] ss:$24 sps:$4 sm:$0xff]  }
  0x7d   :  { %7865 = vperm.xlu0 %10627, %v9493_v25   ;;  %10104 = vmatpush1.bf16.msra.mxu1 %v12424_v21  ;;  %v6341_v21 = vld [vmem:[%s18428_s3 + $0x220] sm:$0xff]  ;;  %v10750_v25 = vld [vmem:[%s18430_s0 + $0x278] ss:$24 sps:$4 sm:$0xff]  }
  0x7e   :  { %10089 = vmatprep.subr.bf16.mxu1 %v12151_v0  ;;  %v9503_v54 = vadd.s32 4294967295, %v6341_v21  ;;  %3824 = vmatpush1.bf16.msra.mxu0 %v10783_v47  ;;  %v10763_v21 = vld [vmem:[%s18430_s0 + $0x2d8] ss:$24 sps:$4 sm:$0xff]   ;;  %v10771_v47 = vld [vmem:[%s18430_s0 + $0x334] ss:$24 sps:$4 sm:$0xff]  }
  0x7f   :  { %3825 = vmatprep.subr.bf16.mxu0 %v12151_v0 }
  0x80   :  { %7856 = vperm.xlu1 %10626, %v9490_v17   ;;  %v9510_v17 = vadd.s32 4294967295, %v6348_v16  ;;  %v6367_v16 = vld [vmem:[%s18428_s3 + $0x2f0] sm:$0xff] }
  0x81   :  { %7871 = vperm.xlu0 %10627, %v9495_v20   ;;  %10105 = vmatpush1.bf16.msra.mxu1 %v12441_v29  ;;  %v10736_v29 = vld [vmem:[%s18430_s0 + $0x210] ss:$24 sps:$4 sm:$0xff]   ;;  %v10751_v20 = vld [vmem:[%s18430_s0 + $0x2a4] ss:$24 sps:$4 sm:$0xff]  }
  0x82   :  { %2812 = vmatmul.mubr.bf16.gmra.mrb[32].mxu1 %v10716_v22  ;;  %3826 = vmatpush1.bf16.msra.mxu0 %v10796_v59 }
  0x83   :  { %3357 = vmatmul.mubr.bf16.gmra.mrb[32].mxu0 %v10717_v23  ;;  %2819 = vmatprep.mubr.bf16.mxu1 %v10719_v30  ;;  %v12833_v22 = vpop.permute.xlu1 %7691  ;;  %v10749_v23 = vld [vmem:[%s18430_s0 + $0x270] ss:$24 sps:$4 sm:$0xff]   ;;  %v9512_v30 = vadd.s32 4294967295, %v6350_v19  ;;  %v9528_v19 = vadd.s32 4294967295, %v6366_v11 }
  0x84   :  { %7862 = vperm.xlu1 %10626, %v9492_v27   ;;  %3364 = vmatprep.mubr.bf16.mxu0 %v10721_v31  ;;  %v9513_v27 = vadd.s32 4294967295, %v6351_v18  ;;  %v6353_v31 = vld [vmem:[%s18428_s3 + $0x280] sm:$0xff]  ;;  %v9529_v18 = vadd.s32 4294967295, %v6367_v16  ;;  %v6382_v16 = vld [vmem:[%s18428_s3 + $0x368] sm:$0xff] }
  0x85   :  { %7877 = vperm.xlu0 %10627, %v9497_v24   ;;  %3827 = vmatprep.subr.bf16.mxu0 %v12151_v0  ;;  %v9515_v33 = vadd.s32 4294967295, %v6353_v31  ;;  %v6354_v24 = vld [vmem:[%s18428_s3 + $0x288] sm:$0xff] }
  0x86   :  { %v9516_v41 = vadd.s32 4294967295, %v6354_v24 }
  0x87   :  { %v12857_v35 = vpop.permute.xlu1 %7697 }
  0x88   :  { %7868 = vperm.xlu1 %10626, %v9494_v32   ;;  %v10753_v32 = vld [vmem:[%s18430_s0 + $0x2ac] ss:$24 sps:$4 sm:$0xff]  }
  0x89   :  { %7883 = vperm.xlu0 %10627, %v9499_v44   ;;  %v10758_v44 = vld [vmem:[%s18430_s0 + $0x2d4] ss:$24 sps:$4 sm:$0xff]  }
  0x8a   :  { %2820 = vmatmul.mubr.bf16.gmra.mrb[36].mxu1 %v10723_v36  ;;  %v6355_v36 = vld [vmem:[%s18428_s3 + $0x290] sm:$0xff] }
  0x8b   :  { %3365 = vmatmul.mubr.bf16.gmra.mrb[36].mxu0 %v10724_v37  ;;  %2827 = vmatprep.mubr.bf16.mxu1 %v10725_v42  ;;  %v10755_v37 = vld [vmem:[%s18430_s0 + $0x2a0] ss:$24 sps:$4 sm:$0xff]   ;;  %v12883_v28 = vpop.permute.xlu1 %7700 }
  0x8c   :  { %7874 = vperm.xlu1 %10626, %v9496_v38   ;;  %3372 = vmatprep.mubr.bf16.mxu0 %v10727_v43  ;;  %v9517_v38 = vadd.s32 4294967295, %v6355_v36  ;;  %v6357_v42 = vld [vmem:[%s18428_s3 + $0x2a0] sm:$0xff]  ;;  %v6356_v43 = vld [vmem:[%s18428_s3 + $0x298] sm:$0xff] }
  0x8d   :  { %7889 = vperm.xlu0 %10627, %v9501_v49   ;;  %v9519_v45 = vadd.s32 4294967295, %v6357_v42  ;;  %v6359_v49 = vld [vmem:[%s18428_s3 + $0x2b0] sm:$0xff]  ;;  %v6372_v36 = vld [vmem:[%s18428_s3 + $0x318] sm:$0xff] }
  0x8e   :  { %v10784_v42 = vld [vmem:[%s18430_s0 + $0x394] ss:$24 sps:$4 sm:$0xff]  }
  0x90   :  { %7880 = vperm.xlu1 %10626, %v9498_v13   ;;  %v10760_v13 = vld [vmem:[%s18430_s0 + $0x2dc] ss:$24 sps:$4 sm:$0xff]  }
  0x91   :  { %7895 = vperm.xlu0 %10627, %v9503_v54   ;;  %v12907_v54 = vpop.permute.xlu1 %7703 }
  0x92   :  { %2828 = vmatmul.mubr.bf16.gmra.mrb[40].mxu1 %v10729_v46  ;;  %v10809_v46 = vld [vmem:[%s18429_s1 + $0x158] sm:$0xff]  }
  0x93   :  { %3373 = vmatmul.mubr.bf16.gmra.mrb[40].mxu0 %v10730_v48  ;;  %2835 = vmatprep.mubr.bf16.mxu1 %v10732_v52  ;;  %v9518_v48 = vadd.s32 4294967295, %v6356_v43  ;;  %v10764_v52 = vld [vmem:[%s18430_s0 + $0x304] ss:$24 sps:$4 sm:$0xff]  }
  0x94   :  { %7886 = vperm.xlu1 %10626, %v9500_v50   ;;  %3380 = vmatprep.mubr.bf16.mxu0 %v10734_v34  ;;  %v6358_v50 = vld [vmem:[%s18428_s3 + $0x2a8] sm:$0xff]  ;;  %v9521_v34 = vadd.s32 4294967295, %v6359_v49  ;;  %v10786_v43 = vld [vmem:[%s18430_s0 + $0x39c] ss:$24 sps:$4 sm:$0xff]  }
  0x95   :  { %7901 = vperm.xlu0 %10627, %v9505_v8   ;;  %3828 = vmatpush1.bf16.msra.mxu0 %v10809_v46  ;;  %v10822_v8 = vld [vmem:[%s18429_s1 + $0x160] sm:$0xff]   ;;  %v12924_v62 = vpop.permute.xlu1 %7706  ;;  %v6374_v46 = vld [vmem:[%s18428_s3 + $0x328] sm:$0xff] }
  0x96   :  { %3829 = vmatprep.subr.bf16.mxu0 %v12151_v0  ;;  %v10788_v49 = vld [vmem:[%s18430_s0 + $0x390] ss:$24 sps:$4 sm:$0xff]  }
  0x98   :  { %7892 = vperm.xlu1 %10626, %v9502_v55   ;;  %v9520_v55 = vadd.s32 4294967295, %v6358_v50 }
  0x99   :  { %7907 = vperm.xlu0 %10627, %v9507_v2   ;;  %3830 = vmatpush1.bf16.msra.mxu0 %v10822_v8  ;;  %v10769_v2 = vld [vmem:[%s18430_s0 + $0x308] ss:$24 sps:$4 sm:$0xff]  }
  0x9a   :  { %2836 = vmatmul.mubr.bf16.gmra.mrb[44].mxu1 %v10736_v29  ;;  %v9523_v29 = vadd.s32 4294967295, %v6361_v56  ;;  %3831 = vmatprep.subr.bf16.mxu0 %v12151_v0  ;;  %v10792_v56 = vld [vmem:[%s18430_s0 + $0x3cc] ss:$24 sps:$4 sm:$0xff]  }
  0x9b   :  { %3381 = vmatmul.mubr.bf16.gmra.mrb[44].mxu0 %v10737_v58  ;;  %2843 = vmatprep.mubr.bf16.mxu1 %v10738_v40  ;;  %v9522_v58 = vadd.s32 4294967295, %v6360_v51  ;;  %v10768_v40 = vld [vmem:[%s18430_s0 + $0x300] ss:$24 sps:$4 sm:$0xff]   ;;  %v10790_v51 = vld [vmem:[%s18430_s0 + $0x3c4] ss:$24 sps:$4 sm:$0xff]  }
  0x9c   :  { %7898 = vperm.xlu1 %10626, %v9504_v61   ;;  %3388 = vmatprep.mubr.bf16.mxu0 %v10740_v1  ;;  %v6362_v61 = vld [vmem:[%s18428_s3 + $0x2c8] sm:$0xff]  ;;  %v9525_v1 = vadd.s32 4294967295, %v6363_v60  ;;  %v6379_v60 = vld [vmem:[%s18428_s3 + $0x350] sm:$0xff] }
  0x9d   :  { %7913 = vperm.xlu0 %10627, %v9509_v7   ;;  %v9527_v7 = vadd.s32 4294967295, %v6365_v5 }
  0xa0   :  { %7904 = vperm.xlu1 %10626, %v9506_v3   ;;  %v9524_v3 = vadd.s32 4294967295, %v6362_v61  ;;  %v6378_v61 = vld [vmem:[%s18428_s3 + $0x348] sm:$0xff] }
  0xa1   :  { %7919 = vperm.xlu0 %10627, %v9511_v15   ;;  %v10776_v15 = vld [vmem:[%s18430_s0 + $0x338] ss:$24 sps:$4 sm:$0xff]   ;;  %v9540_v5 = vadd.s32 4294967295, %v6378_v61  ;;  %v10816_v61 = vld [vmem:[%s18430_s0 + $0x484] ss:$24 sps:$4 sm:$0xff]  }
  0xa2   :  { %2844 = vmatmul.mubr.bf16.gmra.mrb[48].mxu1 %v10742_v6  ;;  %v10773_v6 = vld [vmem:[%s18430_s0 + $0x33c] ss:$24 sps:$4 sm:$0xff]  }
  0xa3   :  { %3389 = vmatmul.mubr.bf16.gmra.mrb[48].mxu0 %v10743_v9  ;;  %2851 = vmatprep.mubr.bf16.mxu1 %v10745_v53  ;;  %v12945_v9 = vpop.permute.xlu1 %7709  ;;  %v10835_v53 = vld [vmem:[%s18429_s1 + $0x168] sm:$0xff]  }
  0xa4   :  { %7910 = vperm.xlu1 %10626, %v9508_v10   ;;  %3396 = vmatprep.mubr.bf16.mxu0 %v10747_v14  ;;  %v9526_v10 = vadd.s32 4294967295, %v6364_v12  ;;  %v10775_v14 = vld [vmem:[%s18430_s0 + $0x330] ss:$24 sps:$4 sm:$0xff]   ;;  %v6381_v12 = vld [vmem:[%s18428_s3 + $0x360] sm:$0xff] }
  0xa5   :  { %7925 = vperm.xlu0 %10627, %v9513_v27   ;;  %3832 = vmatpush1.bf16.msra.mxu0 %v10835_v53  ;;  %v9543_v53 = vadd.s32 4294967295, %v6381_v12  ;;  %v6394_v12 = vld [vmem:[%s18428_s3 + $0x3c8] sm:$0xff] }
  0xa6   :  { %3833 = vmatprep.subr.bf16.mxu0 %v12151_v0 }
  0xa7   :  { %v12975_v27 = vpop.permute.xlu1 %7712 }
  0xa8   :  { %7916 = vperm.xlu1 %10626, %v9510_v17   ;;  %v6368_v17 = vld [vmem:[%s18428_s3 + $0x2f8] sm:$0xff] }
  0xa9   :  { %7931 = vperm.xlu0 %10627, %v9515_v33   ;;  %v9530_v31 = vadd.s32 4294967295, %v6368_v17  ;;  %v10781_v33 = vld [vmem:[%s18430_s0 + $0x360] ss:$24 sps:$4 sm:$0xff]  }
  0xaa   :  { %2852 = vmatmul.mubr.bf16.gmra.mrb[52].mxu1 %v10749_v23  ;;  %v10777_v23 = vld [vmem:[%s18430_s0 + $0x364] ss:$24 sps:$4 sm:$0xff]   ;;  %v10802_v17 = vld [vmem:[%s18430_s0 + $0x3f8] ss:$24 sps:$4 sm:$0xff]  }
  0xab   :  { %3397 = vmatmul.mubr.bf16.gmra.mrb[52].mxu0 %v10750_v25  ;;  %2859 = vmatprep.mubr.bf16.mxu1 %v10751_v20  ;;  %v6369_v25 = vld [vmem:[%s18428_s3 + $0x300] sm:$0xff]  ;;  %v10848_v20 = vld [vmem:[%s18429_s1 + $0x170] sm:$0xff]  }
  0xac   :  { %7922 = vperm.xlu1 %10626, %v9512_v30   ;;  %3404 = vmatprep.mubr.bf16.mxu0 %v10753_v32  ;;  %v9531_v59 = vadd.s32 4294967295, %v6369_v25  ;;  %v6371_v30 = vld [vmem:[%s18428_s3 + $0x310] sm:$0xff]  ;;  %v6370_v32 = vld [vmem:[%s18428_s3 + $0x308] sm:$0xff] }
  0xad   :  { %7937 = vperm.xlu0 %10627, %v9517_v38   ;;  %3834 = vmatpush1.bf16.msra.mxu0 %v10848_v20  ;;  %v9533_v24 = vadd.s32 4294967295, %v6371_v30  ;;  %v9532_v38 = vadd.s32 4294967295, %v6370_v32  ;;  %v10803_v30 = vld [vmem:[%s18430_s0 + $0x424] ss:$24 sps:$4 sm:$0xff]   ;;  %v6387_v20 = vld [vmem:[%s18428_s3 + $0x390] sm:$0xff]  ;;  %v6386_v32 = vld [vmem:[%s18428_s3 + $0x388] sm:$0xff] }
  0xae   :  { %3835 = vmatprep.subr.bf16.mxu0 %v12151_v0  ;;  %v10861_v0 = vld [vmem:[%s18429_s1 + $0x178] sm:$0xff]  }
  0xb0   :  { %7928 = vperm.xlu1 %10626, %v9514_v63   ;;  %v10782_v63 = vld [vmem:[%s18430_s0 + $0x368] ss:$24 sps:$4 sm:$0xff]  }
  0xb1   :  { %7943 = vperm.xlu0 %10627, %v9519_v45   ;;  %v6375_v45 = vld [vmem:[%s18428_s3 + $0x330] sm:$0xff]  ;;  %3836 = vmatpush1.bf16.msra.mxu0 %v10861_v0  ;;  %v9549_v0 = vadd.s32 4294967295, %v6387_v20 }
  0xb2   :  { %2860 = vmatmul.mubr.bf16.gmra.mrb[56].mxu1 %v10755_v37  ;;  %v12996_v37 = vpop.permute.xlu1 %7715  ;;  %v10827_v20 = vld [vmem:[%s18430_s0 + $0x4b0] ss:$24 sps:$4 sm:$0xff]  }
  0xb3   :  { %3405 = vmatmul.mubr.bf16.gmra.mrb[56].mxu0 %v10756_v39  ;;  %2867 = vmatprep.mubr.bf16.mxu1 %v10758_v44  ;;  %v6373_v39 = vld [vmem:[%s18428_s3 + $0x320] sm:$0xff] }
  0xb4   :  { %7934 = vperm.xlu1 %10626, %v9516_v41   ;;  %3412 = vmatprep.mubr.bf16.mxu0 %v10760_v13  ;;  %v13001_v41 = vpop.permute.xlu0 %7694  ;;  %v9535_v44 = vadd.s32 4294967295, %v6373_v39  ;;  %v9534_v13 = vadd.s32 4294967295, %v6372_v36  ;;  %v10807_v36 = vld [vmem:[%s18430_s0 + $0x420] ss:$24 sps:$4 sm:$0xff]  }
  0xb5   :  { %7949 = vperm.xlu0 %10627, %v9521_v34   ;;  %v9536_v34 = vadd.s32 4294967295, %v6374_v46  ;;  %v6389_v39 = vld [vmem:[%s18428_s3 + $0x3a0] sm:$0xff]  ;;  %v6391_v46 = vld [vmem:[%s18428_s3 + $0x3b0] sm:$0xff] }
  0xb8   :  { %7940 = vperm.xlu1 %10626, %v9518_v48   ;;  %v13018_v48 = vpop.permute.xlu1 %7718  ;;  %v13023_v50 = vpop.permute.xlu0 %7721 }
  0xb9   :  { %7955 = vperm.xlu0 %10627, %v9523_v29  }
  0xba   :  { %2868 = vmatmul.mubr.bf16.gmra.mrb[60].mxu1 %v10762_v4  ;;  %v10789_v4 = vld [vmem:[%s18430_s0 + $0x398] ss:$24 sps:$4 sm:$0xff]  }
  0xbb   :  { %3413 = vmatmul.mubr.bf16.gmra.mrb[60].mxu0 %v10763_v21  ;;  %2875 = vmatprep.mubr.bf16.mxu1 %v10764_v52  ;;  %v6376_v21 = vld [vmem:[%s18428_s3 + $0x338] sm:$0xff]  ;;  %v9537_v52 = vadd.s32 4294967295, %v6375_v45 }
  0xbc   :  { %7946 = vperm.xlu1 %10626, %v9520_v55   ;;  %3420 = vmatprep.mubr.bf16.mxu0 %v10766_v57  ;;  %v6377_v55 = vld [vmem:[%s18428_s3 + $0x340] sm:$0xff]  ;;  %v13040_v29 = vpop.permute.xlu1 %7724  ;;  %v13045_v8 = vpop.permute.xlu0 %7727  ;;  %v10812_v45 = vld [vmem:[%s18430_s0 + $0x45c] ss:$24 sps:$4 sm:$0xff]  }
  0xbd   :  { %7961 = vperm.xlu0 %10627, %v9525_v1   ;;  %v9539_v57 = vadd.s32 4294967295, %v6377_v55  ;;  %v10795_v1 = vld [vmem:[%s18430_s0 + $0x3c8] ss:$24 sps:$4 sm:$0xff]   ;;  %v10815_v55 = vld [vmem:[%s18430_s0 + $0x458] ss:$24 sps:$4 sm:$0xff]  }
  0xc0   :  { %7952 = vperm.xlu1 %10626, %v9522_v58   ;;  %v9538_v58 = vadd.s32 4294967295, %v6376_v21  ;;  %v13073_v11 = vpop.permute.xlu0 %7733 }
  0xc1   :  { %7967 = vperm.xlu0 %10627, %v9527_v7   ;;  %v13068_v7 = vpop.permute.xlu1 %7730 }
  0xc2   :  { %2876 = vmatmul.mubr.bf16.gmra.mrb[64].mxu1 %v10768_v40  ;;  %v10794_v40 = vld [vmem:[%s18430_s0 + $0x3c0] ss:$24 sps:$4 sm:$0xff]  }
  0xc3   :  { %3421 = vmatmul.mubr.bf16.gmra.mrb[64].mxu0 %v10769_v2  ;;  %2883 = vmatprep.mubr.bf16.mxu1 %v10771_v47  ;;  %v6380_v2 = vld [vmem:[%s18428_s3 + $0x358] sm:$0xff]  ;;  %v10797_v47 = vld [vmem:[%s18430_s0 + $0x3f4] ss:$24 sps:$4 sm:$0xff]  }
  0xc4   :  { %7958 = vperm.xlu1 %10626, %v9524_v3   ;;  %3428 = vmatprep.mubr.bf16.mxu0 %v10773_v6  ;;  %v9541_v3 = vadd.s32 4294967295, %v6379_v60  ;;  %v10799_v6 = vld [vmem:[%s18430_s0 + $0x3fc] ss:$24 sps:$4 sm:$0xff]  }
  0xc5   :  { %7973 = vperm.xlu0 %10627, %v9529_v18   ;;  %v6385_v18 = vld [vmem:[%s18428_s3 + $0x380] sm:$0xff]  ;;  %v13090_v25 = vpop.permute.xlu1 %7736 }
  0xc8   :  { %7964 = vperm.xlu1 %10626, %v9526_v10   ;;  %v6383_v10 = vld [vmem:[%s18428_s3 + $0x370] sm:$0xff] }
  0xc9   :  { %7979 = vperm.xlu0 %10627, %v9531_v59   ;;  %v13092_v59 = vpop.permute.xlu0 %7739 }
  0xca   :  { %2884 = vmatmul.mubr.bf16.gmra.mrb[68].mxu1 %v10775_v14  ;;  %v9542_v14 = vadd.s32 4294967295, %v6380_v2  ;;  %v6395_v2 = vld [vmem:[%s18428_s3 + $0x3d0] sm:$0xff] }
  0xcb   :  { %3429 = vmatmul.mubr.bf16.gmra.mrb[68].mxu0 %v10776_v15  ;;  %2891 = vmatprep.mubr.bf16.mxu1 %v10777_v23  ;;  %v10801_v15 = vld [vmem:[%s18430_s0 + $0x3f0] ss:$24 sps:$4 sm:$0xff]   ;;  %v9545_v23 = vadd.s32 4294967295, %v6383_v10 }
  0xcc   :  { %7970 = vperm.xlu1 %10626, %v9528_v19   ;;  %3436 = vmatprep.mubr.bf16.mxu0 %v10779_v26  ;;  %v6384_v19 = vld [vmem:[%s18428_s3 + $0x378] sm:$0xff]  ;;  %v9544_v26 = vadd.s32 4294967295, %v6382_v16  ;;  %v10821_v10 = vld [vmem:[%s18430_s0 + $0x488] ss:$24 sps:$4 sm:$0xff]  }
  0xcd   :  { %7985 = vperm.xlu0 %10627, %v9533_v24   ;;  %v13109_v24 = vpop.permute.xlu1 %7742  ;;  %v6397_v16 = vld [vmem:[%s18428_s3 + $0x3e0] sm:$0xff] }
  0xd0   :  { %7976 = vperm.xlu1 %10626, %v9530_v31   ;;  %v10805_v31 = vld [vmem:[%s18430_s0 + $0x42c] ss:$24 sps:$4 sm:$0xff]  }
  0xd1   :  { %7991 = vperm.xlu0 %10627, %v9535_v44   ;;  %v9548_v44 = vadd.s32 4294967295, %v6386_v32  ;;  %v13134_v21 = vpop.permute.xlu1 %7748 }
  0xd2   :  { %2892 = vmatmul.mubr.bf16.gmra.mrb[72].mxu1 %v10781_v33  ;;  %v9547_v33 = vadd.s32 4294967295, %v6385_v18 }
  0xd3   :  { %3437 = vmatmul.mubr.bf16.gmra.mrb[72].mxu0 %v10782_v63  ;;  %2899 = vmatprep.mubr.bf16.mxu1 %v10784_v42  ;;  %v9546_v63 = vadd.s32 4294967295, %v6384_v19  ;;  %v13117_v42 = vpop.permute.xlu0 %7745  ;;  %v10823_v19 = vld [vmem:[%s18430_s0 + $0x4b4] ss:$24 sps:$4 sm:$0xff]  }
  0xd4   :  { %7982 = vperm.xlu1 %10626, %v9532_v38   ;;  %3444 = vmatprep.mubr.bf16.mxu0 %v10786_v43  ;;  %v10808_v38 = vld [vmem:[%s18430_s0 + $0x428] ss:$24 sps:$4 sm:$0xff]   ;;  %v6388_v43 = vld [vmem:[%s18428_s3 + $0x398] sm:$0xff] }
  0xd5   :  { %7997 = vperm.xlu0 %10627, %v9537_v52  }
  0xd7   :  { %v13136_v52 = vpop.permute.xlu0 %7751 }
  0xd8   :  { %7988 = vperm.xlu1 %10626, %v9534_v13   ;;  %v10810_v13 = vld [vmem:[%s18430_s0 + $0x454] ss:$24 sps:$4 sm:$0xff]  }
  0xd9   :  { %8003 = vperm.xlu0 %10627, %v9539_v57   ;;  %v6392_v57 = vld [vmem:[%s18428_s3 + $0x3b8] sm:$0xff] }
  0xda   :  { %2900 = vmatmul.mubr.bf16.gmra.mrb[76].mxu1 %v10788_v49  ;;  %v6390_v49 = vld [vmem:[%s18428_s3 + $0x3a8] sm:$0xff] }
  0xdb   :  { %3445 = vmatmul.mubr.bf16.gmra.mrb[76].mxu0 %v10789_v4  ;;  %2907 = vmatprep.mubr.bf16.mxu1 %v10790_v51  ;;  %v9551_v4 = vadd.s32 4294967295, %v6389_v39  ;;  %v9550_v51 = vadd.s32 4294967295, %v6388_v43  ;;  %v9552_v60 = vadd.s32 4294967295, %v6390_v49  ;;  %v10831_v39 = vld [vmem:[%s18430_s0 + $0x4ec] ss:$24 sps:$4 sm:$0xff]  }
  0xdc   :  { %7994 = vperm.xlu1 %10626, %v9536_v34   ;;  %3452 = vmatprep.mubr.bf16.mxu0 %v10792_v56  ;;  %v10814_v34 = vld [vmem:[%s18430_s0 + $0x450] ss:$24 sps:$4 sm:$0xff]   ;;  %v6393_v56 = vld [vmem:[%s18428_s3 + $0x3c0] sm:$0xff] }
  0xdd   :  { %8009 = vperm.xlu0 %10627, %v9541_v3   ;;  %v13161_v3 = vpop.permute.xlu0 %7757 }
  0xe0   :  { %8000 = vperm.xlu1 %10626, %v9538_v58   ;;  %v9553_v58 = vadd.s32 4294967295, %v6391_v46  ;;  %v10840_v46 = vld [vmem:[%s18430_s0 + $0x510] ss:$24 sps:$4 sm:$0xff]  }
  0xe1   :  { %8015 = vperm.xlu0 %10627, %v9543_v53   ;;  %v6396_v53 = vld [vmem:[%s18428_s3 + $0x3d8] sm:$0xff]  ;;  %v13180_v18 = vpop.permute.xlu0 %7763 }
  0xe2   :  { %2908 = vmatmul.mubr.bf16.gmra.mrb[80].mxu1 %v10794_v40  ;;  %v10818_v40 = vld [vmem:[%s18430_s0 + $0x48c] ss:$24 sps:$4 sm:$0xff]   ;;  %18827 = vst [vmem:[#allocation2_spill] sm:$0xff] %v13180_v18 }
  0xe3   :  { %3453 = vmatmul.mubr.bf16.gmra.mrb[80].mxu0 %v10795_v1  ;;  %2915 = vmatprep.mubr.bf16.mxu1 %v10797_v47  ;;  %v13156_v1 = vpop.permute.xlu1 %7754  ;;  %v9554_v47 = vadd.s32 4294967295, %v6392_v57  ;;  %v10844_v57 = vld [vmem:[%s18430_s0 + $0x54c] ss:$24 sps:$4 sm:$0xff]  }
  0xe4   :  { %8006 = vperm.xlu1 %10626, %v9540_v5   ;;  %3460 = vmatprep.mubr.bf16.mxu0 %v10799_v6  ;;  %v9555_v5 = vadd.s32 4294967295, %v6393_v56  ;;  %v10820_v6 = vld [vmem:[%s18430_s0 + $0x480] ss:$24 sps:$4 sm:$0xff]  }
  0xe5   :  { %8021 = vperm.xlu0 %10627, %v9545_v23   ;;  %v10825_v23 = vld [vmem:[%s18430_s0 + $0x4bc] ss:$24 sps:$4 sm:$0xff]  }
  0xe8   :  { %8012 = vperm.xlu1 %10626, %v9542_v14   ;;  %v9557_v14 = vadd.s32 4294967295, %v6395_v2 }
  0xe9   :  { %8027 = vperm.xlu0 %10627, %v9547_v33   ;;  %v10828_v33 = vld [vmem:[%s18430_s0 + $0x4b8] ss:$24 sps:$4 sm:$0xff]  }
  0xea   :  { %2916 = vmatmul.mubr.bf16.gmra.mrb[84].mxu1 %v10801_v15  ;;  %v13178_v15 = vpop.permute.xlu1 %7760 }
  0xeb   :  { %3461 = vmatmul.mubr.bf16.gmra.mrb[84].mxu0 %v10802_v17  ;;  %2923 = vmatprep.mubr.bf16.mxu1 %v10803_v30  ;;  %v9556_v17 = vadd.s32 4294967295, %v6394_v12  ;;  %v9559_v30 = vadd.s32 4294967295, %v6397_v16  ;;  %v10854_v16 = vld [vmem:[%s18430_s0 + $0x578] ss:$24 sps:$4 sm:$0xff]  }
  0xec   :  { %8018 = vperm.xlu1 %10626, %v9544_v26   ;;  %3468 = vmatprep.mubr.bf16.mxu0 %v10805_v31  ;;  %v6398_v26 = vld [vmem:[%s18428_s3 + $0x3e8] sm:$0xff]  ;;  %v9558_v31 = vadd.s32 4294967295, %v6396_v53  ;;  %v10855_v53 = vld [vmem:[%s18430_s0 + $0x5a4] ss:$24 sps:$4 sm:$0xff]  }
  0xed   :  { %8033 = vperm.xlu0 %10627, %v9549_v0   ;;  %v10833_v0 = vld [vmem:[%s18430_s0 + $0x4e0] ss:$24 sps:$4 sm:$0xff]  }
  0xee   :  { %v13194_v32 = vpop.permute.xlu1 %7766 }
  0xef   :  { %18828 = vst [vmem:[#allocation3_spill] sm:$0xff] %v13194_v32 }
  0xf0   :  { %8024 = vperm.xlu1 %10626, %v9546_v63   ;;  %v13199_v63 = vpop.permute.xlu0 %7769 }
  0xf1   :  { %8039 = vperm.xlu0 %10627, %v9551_v4   ;;  %18829 = vst [vmem:[#allocation4_spill] sm:$0xff] %v13199_v63  ;;  %v10841_v4 = vld [vmem:[%s18430_s0 + $0x518] ss:$24 sps:$4 sm:$0xff]  }
  0xf2   :  { %2924 = vmatmul.mubr.bf16.gmra.mrb[88].mxu1 %v10807_v36  ;;  %v9560_v36 = vadd.s32 4294967295, %v6398_v26  ;;  %v13207_v43 = vpop.permute.xlu1 %7772  ;;  %v10859_v26 = vld [vmem:[%s18430_s0 + $0x5a0] ss:$24 sps:$4 sm:$0xff]  }
  0xf3   :  { %3469 = vmatmul.mubr.bf16.gmra.mrb[88].mxu0 %v10808_v38  ;;  %2931 = vmatprep.mubr.bf16.mxu1 %v10810_v13  ;;  %v10829_v38 = vld [vmem:[%s18430_s0 + $0x4e4] ss:$24 sps:$4 sm:$0xff]   ;;  %18830 = vst [vmem:[#allocation5_spill] sm:$0xff] %v13207_v43  ;;  %v10836_v13 = vld [vmem:[%s18430_s0 + $0x514] ss:$24 sps:$4 sm:$0xff]  }
  0xf4   :  { %8030 = vperm.xlu1 %10626, %v9548_v44   ;;  %3476 = vmatprep.mubr.bf16.mxu0 %v10812_v45  ;;  %v10834_v44 = vld [vmem:[%s18430_s0 + $0x4e8] ss:$24 sps:$4 sm:$0xff]   ;;  %v10838_v45 = vld [vmem:[%s18430_s0 + $0x51c] ss:$24 sps:$4 sm:$0xff]  }
  0xf5   :  { %8045 = vperm.xlu0 %10627, %v9553_v58   ;;  %v10846_v58 = vld [vmem:[%s18430_s0 + $0x540] ss:$24 sps:$4 sm:$0xff]   ;;  %v10926_v43 = vld [vmem:[%s18430_s0 + $0x7b0] ss:$24 sps:$4 sm:$0xff]  }
  0xf8   :  { %8036 = vperm.xlu1 %10626, %v9550_v51   ;;  %v10842_v51 = vld [vmem:[%s18430_s0 + $0x544] ss:$24 sps:$4 sm:$0xff]  }
  0xf9   :  { %8051 = vperm.xlu0 %10627, %v9555_v5  }
  0xfa   :  { %2932 = vmatmul.mubr.bf16.gmra.mrb[92].mxu1 %v10814_v34 }
  0xfb   :  { %3477 = vmatmul.mubr.bf16.gmra.mrb[92].mxu0 %v10815_v55  ;;  %2939 = vmatprep.mubr.bf16.mxu1 %v10816_v61  ;;  %v10847_v61 = vld [vmem:[%s18430_s0 + $0x548] ss:$24 sps:$4 sm:$0xff]  }
  0xfc   :  { %8042 = vperm.xlu1 %10626, %v9552_v60   ;;  %3484 = vmatprep.mubr.bf16.mxu0 %v10818_v40  ;;  %v10849_v40 = vld [vmem:[%s18430_s0 + $0x574] ss:$24 sps:$4 sm:$0xff]  }
  0xfd   :  { %8057 = vperm.xlu0 %10627, %v9557_v14  }
 0x100   :  { %8048 = vperm.xlu1 %10626, %v9554_v47   ;;  %v10851_v47 = vld [vmem:[%s18430_s0 + $0x57c] ss:$24 sps:$4 sm:$0xff]  }
 0x101   :  { %8063 = vperm.xlu0 %10627, %v9559_v30  }
 0x102   :  { %2940 = vmatmul.mubr.bf16.gmra.mrb[96].mxu1 %v10820_v6  ;;  %v10853_v6 = vld [vmem:[%s18430_s0 + $0x570] ss:$24 sps:$4 sm:$0xff]  }
 0x103   :  { %3485 = vmatmul.mubr.bf16.gmra.mrb[96].mxu0 %v10821_v10  ;;  %2947 = vmatprep.mubr.bf16.mxu1 %v10823_v19 }
 0x104   :  { %8054 = vperm.xlu1 %10626, %v9556_v17   ;;  %3492 = vmatprep.mubr.bf16.mxu0 %v10825_v23  ;;  %v10857_v23 = vld [vmem:[%s18430_s0 + $0x5ac] ss:$24 sps:$4 sm:$0xff]  }
 0x108   :  { %8060 = vperm.xlu1 %10626, %v9558_v31   ;;  %v10860_v31 = vld [vmem:[%s18430_s0 + $0x5a8] ss:$24 sps:$4 sm:$0xff]  }
 0x10a   :  { %2948 = vmatmul.mubr.bf16.gmra.mrb[100].mxu1 %v10827_v20  ;;  %v10862_v20 = vld [vmem:[%s18430_s0 + $0x5d4] ss:$24 sps:$4 sm:$0xff]  }
 0x10b   :  { %3493 = vmatmul.mubr.bf16.gmra.mrb[100].mxu0 %v10828_v33  ;;  %2955 = vmatprep.mubr.bf16.mxu1 %v10829_v38 }
 0x10c   :  { %8066 = vperm.xlu1 %10626, %v9560_v36   ;;  %3500 = vmatprep.mubr.bf16.mxu0 %v10831_v39  ;;  %v10864_v39 = vld [vmem:[%s18430_s0 + $0x5dc] ss:$24 sps:$4 sm:$0xff]  }
 0x112   :  { %2956 = vmatmul.mubr.bf16.gmra.mrb[104].mxu1 %v10833_v0  ;;  %v10866_v0 = vld [vmem:[%s18430_s0 + $0x5d0] ss:$24 sps:$4 sm:$0xff]  }
 0x113   :  { %3501 = vmatmul.mubr.bf16.gmra.mrb[104].mxu0 %v10834_v44  ;;  %2963 = vmatprep.mubr.bf16.mxu1 %v10836_v13  ;;  %v10867_v13 = vld [vmem:[%s18430_s0 + $0x5d8] ss:$24 sps:$4 sm:$0xff]  }
 0x114   :  { %3508 = vmatprep.mubr.bf16.mxu0 %v10838_v45  ;;  %v10868_v45 = vld [vmem:[%s18430_s0 + $0x604] ss:$24 sps:$4 sm:$0xff]  }
 0x115   :  { %v13224_v49 = vpop.f32.mrb[0].mxu1 }
 0x116   :  { %v2751_v34 = vpop.f32.mrb[1].mxu1 }
 0x117   :  { %v13232_v55 = vpop.f32.mrb[2].mxu1  ;;  %v10872_v34 = vld [vmem:[%s18430_s0 + $0x14] ss:$24 sps:$4 sm:$0xff]  }
 0x118   :  { %v2754_v56 = vpop.f32.mrb[3].mxu1 }
 0x119   :  { %v10873_v56 = vld [vmem:[%s18430_s0 + $0x600] ss:$24 sps:$4 sm:$0xff]  }
 0x11a   :  { %2964 = vmatmul.mubr.bf16.gmra.mrb[108].mxu1 %v10840_v46 }
 0x11b   :  { %3509 = vmatmul.mubr.bf16.gmra.mrb[108].mxu0 %v10841_v4  ;;  %2971 = vmatprep.mubr.bf16.mxu1 %v10842_v51 }
 0x11c   :  { %3516 = vmatprep.mubr.bf16.mxu0 %v10844_v57 }
 0x11d   :  { %v13240_v60 = vpop.f32.mrb[4].mxu1 }
 0x11e   :  { %v2759_v2 = vpop.f32.mrb[5].mxu1 }
 0x11f   :  { %v13248_v12 = vpop.f32.mrb[6].mxu1  ;;  %v10874_v2 = vld [vmem:[%s18430_s0 + $0x634] ss:$24 sps:$4 sm:$0xff]  }
 0x120   :  { %v2762_v5 = vpop.f32.mrb[7].mxu1 }
 0x122   :  { %2972 = vmatmul.mubr.bf16.gmra.mrb[112].mxu1 %v10846_v58 }
 0x123   :  { %3517 = vmatmul.mubr.bf16.gmra.mrb[112].mxu0 %v10847_v61  ;;  %2979 = vmatprep.mubr.bf16.mxu1 %v10849_v40  ;;  %v10870_v40 = vld [vmem:[%s18430_s0 + $0x10] ss:$24 sps:$4 sm:$0xff]  }
 0x124   :  { %3524 = vmatprep.mubr.bf16.mxu0 %v10851_v47  ;;  %v10876_v47 = vld [vmem:[%s18430_s0 + $0x44] ss:$24 sps:$4 sm:$0xff]  }
 0x125   :  { %v13256_v10 = vpop.f32.mrb[8].mxu1 }
 0x126   :  { %v2767_v14 = vpop.f32.mrb[9].mxu1 }
 0x127   :  { %v13264_v17 = vpop.f32.mrb[10].mxu1 }
 0x128   :  { %v2770_v19 = vpop.f32.mrb[11].mxu1 }
 0x129   :  { %v10879_v19 = vld [vmem:[%s18430_s0 + $0x40] ss:$24 sps:$4 sm:$0xff]  }
 0x12a   :  { %2980 = vmatmul.mubr.bf16.gmra.mrb[116].mxu1 %v10853_v6 }
 0x12b   :  { %3525 = vmatmul.mubr.bf16.gmra.mrb[116].mxu0 %v10854_v16  ;;  %2987 = vmatprep.mubr.bf16.mxu1 %v10855_v53  ;;  %v10878_v53 = vld [vmem:[%s18430_s0 + $0x630] ss:$24 sps:$4 sm:$0xff]  }
 0x12c   :  { %3532 = vmatprep.mubr.bf16.mxu0 %v10857_v23  ;;  %v10880_v23 = vld [vmem:[%s18430_s0 + $0x664] ss:$24 sps:$4 sm:$0xff]  }
 0x12d   :  { %v13272_v30 = vpop.f32.mrb[12].mxu1 }
 0x12e   :  { %v2775_v33 = vpop.f32.mrb[13].mxu1 }
 0x12f   :  { %v13280_v36 = vpop.f32.mrb[14].mxu1 }
 0x130   :  { %v2778_v38 = vpop.f32.mrb[15].mxu1 }
 0x131   :  { %v10884_v38 = vld [vmem:[%s18430_s0 + $0x660] ss:$24 sps:$4 sm:$0xff]  }
 0x132   :  { %2988 = vmatmul.mubr.bf16.gmra.mrb[120].mxu1 %v10859_v26 }
 0x133   :  { %3533 = vmatmul.mubr.bf16.gmra.mrb[120].mxu0 %v10860_v31  ;;  %2995 = vmatprep.mubr.bf16.mxu1 %v10862_v20  ;;  %v10882_v31 = vld [vmem:[%s18430_s0 + $0x74] ss:$24 sps:$4 sm:$0xff]  }
 0x134   :  { %3540 = vmatprep.mubr.bf16.mxu0 %v10864_v39 }
 0x135   :  { %v13288_v44 = vpop.f32.mrb[16].mxu1 }
 0x136   :  { %v2783_v46 = vpop.f32.mrb[17].mxu1 }
 0x137   :  { %v13296_v4 = vpop.f32.mrb[18].mxu1  ;;  %v10888_v46 = vld [vmem:[%s18430_s0 + $0xa4] ss:$24 sps:$4 sm:$0xff]  }
 0x138   :  { %v2786_v51 = vpop.f32.mrb[19].mxu1 }
 0x13a   :  { %2996 = vmatmul.mubr.bf16.gmra.mrb[124].mxu1 %v10866_v0  ;;  %v10885_v0 = vld [vmem:[%s18430_s0 + $0x70] ss:$24 sps:$4 sm:$0xff]  }
 0x13b   :  { %3541 = vmatmul.mubr.bf16.gmra.mrb[124].mxu0 %v10867_v13  ;;  %3003 = vmatprep.mubr.bf16.mxu1 %v10868_v45  ;;  %v10886_v13 = vld [vmem:[%s18430_s0 + $0x694] ss:$24 sps:$4 sm:$0xff]  }
 0x13c   :  { %3837 = vmatprep.mubr.bf16.mxu0 %v10872_v34 }
 0x13d   :  { %v13304_v57 = vpop.f32.mrb[20].mxu1 }
 0x13e   :  { %v2791_v58 = vpop.f32.mrb[21].mxu1 }
 0x13f   :  { %v13306_v61 = vpop.f32.mrb[22].mxu1 }
 0x140   :  { %v2794_v5 = vpop.f32.mrb[23].mxu1 }
 0x142   :  { %3004 = vmatmul.mubr.bf16.gmra.mrb[128].mxu1 %v10873_v56  ;;  %v10890_v56 = vld [vmem:[%s18430_s0 + $0x690] ss:$24 sps:$4 sm:$0xff]  }
 0x143   :  { %3838 = vmatmul.mubr.bf16.vlgmr.msra.gmra.mrb[0].mxu0 %v10870_v40  ;;  %3011 = vmatprep.mubr.bf16.mxu1 %v10874_v2  ;;  %v10891_v40 = vld [vmem:[%s18430_s0 + $0xa0] ss:$24 sps:$4 sm:$0xff]   ;;  %v10892_v2 = vld [vmem:[%s18430_s0 + $0x6c4] ss:$24 sps:$4 sm:$0xff]  }
 0x144   :  { %3845 = vmatprep.mubr.bf16.mxu0 %v10876_v47  ;;  %v10894_v47 = vld [vmem:[%s18430_s0 + $0xd4] ss:$24 sps:$4 sm:$0xff]  }
 0x145   :  { %v13317_v6 = vpop.f32.mrb[24].mxu1 }
 0x146   :  { %v2799_v16 = vpop.f32.mrb[25].mxu1 }
 0x147   :  { %v13322_v14 = vpop.f32.mrb[26].mxu1 }
 0x148   :  { %v2802_v26 = vpop.f32.mrb[27].mxu1 }
 0x149   :  { %v10897_v26 = vld [vmem:[%s18430_s0 + $0xd0] ss:$24 sps:$4 sm:$0xff]  }
 0x14a   :  { %3012 = vmatmul.mubr.bf16.gmra.mrb[132].mxu1 %v10878_v53 }
 0x14b   :  { %3846 = vmatmul.mubr.bf16.gmra.mrb[4].mxu0 %v10879_v19  ;;  %3019 = vmatprep.mubr.bf16.mxu1 %v10880_v23  ;;  %v10896_v19 = vld [vmem:[%s18430_s0 + $0x6c0] ss:$24 sps:$4 sm:$0xff]  }
 0x14c   :  { %3853 = vmatprep.mubr.bf16.mxu0 %v10882_v31  ;;  %v10898_v31 = vld [vmem:[%s18430_s0 + $0x6f4] ss:$24 sps:$4 sm:$0xff]  }
 0x14d   :  { %v13333_v20 = vpop.f32.mrb[28].mxu1 }
 0x14e   :  { %v2807_v33 = vpop.f32.mrb[29].mxu1 }
 0x14f   :  { %v13338_v39 = vpop.f32.mrb[30].mxu1 }
 0x150   :  { %v2810_v45 = vpop.f32.mrb[31].mxu1 }
 0x151   :  { %v10902_v45 = vld [vmem:[%s18430_s0 + $0x6f0] ss:$24 sps:$4 sm:$0xff]  }
 0x152   :  { %3020 = vmatmul.mubr.bf16.gmra.mrb[136].mxu1 %v10884_v38  ;;  %v10900_v38 = vld [vmem:[%s18430_s0 + $0x104] ss:$24 sps:$4 sm:$0xff]  }
 0x153   :  { %3854 = vmatmul.mubr.bf16.gmra.mrb[8].mxu0 %v10885_v0  ;;  %3027 = vmatprep.mubr.bf16.mxu1 %v10886_v13 }
 0x154   :  { %3861 = vmatprep.mubr.bf16.mxu0 %v10888_v46 }
 0x155   :  { %v13349_v51 = vpop.f32.mrb[32].mxu1 }
 0x156   :  { %v2815_v34 = vpop.f32.mrb[33].mxu1 }
 0x157   :  { %v13354_v58 = vpop.f32.mrb[34].mxu1  ;;  %v10903_v34 = vld [vmem:[%s18430_s0 + $0x100] ss:$24 sps:$4 sm:$0xff]  }
 0x158   :  { %v2818_v5 = vpop.f32.mrb[35].mxu1 }
 0x15a   :  { %3028 = vmatmul.mubr.bf16.gmra.mrb[140].mxu1 %v10890_v56  ;;  %v10904_v56 = vld [vmem:[%s18430_s0 + $0x724] ss:$24 sps:$4 sm:$0xff]  }
 0x15b   :  { %3862 = vmatmul.mubr.bf16.gmra.mrb[12].mxu0 %v10891_v40  ;;  %3035 = vmatprep.mubr.bf16.mxu1 %v10892_v2  ;;  %v10906_v2 = vld [vmem:[%s18430_s0 + $0x134] ss:$24 sps:$4 sm:$0xff]  }
 0x15c   :  { %3869 = vmatprep.mubr.bf16.mxu0 %v10894_v47 }
 0x15d   :  { %v13365_v16 = vpop.f32.mrb[36].mxu1 }
 0x15e   :  { %v2823_v53 = vpop.f32.mrb[37].mxu1 }
 0x15f   :  { %v13370_v23 = vpop.f32.mrb[38].mxu1  ;;  %v10908_v53 = vld [vmem:[%s18430_s0 + $0x720] ss:$24 sps:$4 sm:$0xff]  }
 0x160   :  { %v2826_v33 = vpop.f32.mrb[39].mxu1 }
 0x162   :  { %3036 = vmatmul.mubr.bf16.gmra.mrb[144].mxu1 %v10896_v19 }
 0x163   :  { %3870 = vmatmul.mubr.bf16.gmra.mrb[16].mxu0 %v10897_v26  ;;  %3043 = vmatprep.mubr.bf16.mxu1 %v10898_v31  ;;  %v10909_v26 = vld [vmem:[%s18430_s0 + $0x130] ss:$24 sps:$4 sm:$0xff]   ;;  %v10910_v31 = vld [vmem:[%s18430_s0 + $0x754] ss:$24 sps:$4 sm:$0xff]  }
 0x164   :  { %3877 = vmatprep.mubr.bf16.mxu0 %v10900_v38  ;;  %v10912_v38 = vld [vmem:[%s18430_s0 + $0x164] ss:$24 sps:$4 sm:$0xff]  }
 0x165   :  { %v13381_v0 = vpop.f32.mrb[40].mxu1 }
 0x166   :  { %v2831_v13 = vpop.f32.mrb[41].mxu1 }
 0x167   :  { %v13386_v46 = vpop.f32.mrb[42].mxu1 }
 0x168   :  { %v2834_v40 = vpop.f32.mrb[43].mxu1 }
 0x169   :  { %v10915_v40 = vld [vmem:[%s18430_s0 + $0x160] ss:$24 sps:$4 sm:$0xff]  }
 0x16a   :  { %3044 = vmatmul.mubr.bf16.gmra.mrb[148].mxu1 %v10902_v45 }
 0x16b   :  { %3878 = vmatmul.mubr.bf16.gmra.mrb[20].mxu0 %v10903_v34  ;;  %3051 = vmatprep.mubr.bf16.mxu1 %v10904_v56  ;;  %v10914_v34 = vld [vmem:[%s18430_s0 + $0x750] ss:$24 sps:$4 sm:$0xff]  }
 0x16c   :  { %3885 = vmatprep.mubr.bf16.mxu0 %v10906_v2  ;;  %v10916_v2 = vld [vmem:[%s18430_s0 + $0x784] ss:$24 sps:$4 sm:$0xff]  }
 0x16d   :  { %v13397_v5 = vpop.f32.mrb[44].mxu1 }
 0x16e   :  { %v2839_v47 = vpop.f32.mrb[45].mxu1 }
 0x16f   :  { %v13402_v19 = vpop.f32.mrb[46].mxu1 }
 0x170   :  { %v2842_v33 = vpop.f32.mrb[47].mxu1 }
 0x171   :  { %v10920_v33 = vld [vmem:[%s18430_s0 + $0x780] ss:$24 sps:$4 sm:$0xff]  }
 0x172   :  { %3052 = vmatmul.mubr.bf16.gmra.mrb[152].mxu1 %v10908_v53  ;;  %v10918_v53 = vld [vmem:[%s18430_s0 + $0x194] ss:$24 sps:$4 sm:$0xff]  }
 0x173   :  { %3886 = vmatmul.mubr.bf16.gmra.mrb[24].mxu0 %v10909_v26  ;;  %3059 = vmatprep.mubr.bf16.mxu1 %v10910_v31 }
 0x174   :  { %3893 = vmatprep.mubr.bf16.mxu0 %v10912_v38 }
 0x175   :  { %v13413_v13 = vpop.f32.mrb[48].mxu1 }
 0x176   :  { %v2847_v45 = vpop.f32.mrb[49].mxu1 }
 0x177   :  { %v13418_v56 = vpop.f32.mrb[50].mxu1  ;;  %v10921_v45 = vld [vmem:[%s18430_s0 + $0x190] ss:$24 sps:$4 sm:$0xff]  }
 0x178   :  { %v2850_v47 = vpop.f32.mrb[51].mxu1 }
 0x179   :  { %v13445_v47 = vpop.permute.xlu0 %7775 }
 0x17a   :  { %3060 = vmatmul.mubr.bf16.gmra.mrb[156].mxu1 %v10914_v34  ;;  %v10922_v34 = vld [vmem:[%s18430_s0 + $0x7b4] ss:$24 sps:$4 sm:$0xff]   ;;  %18833 = vst [vmem:[#allocation8_spill] sm:$0xff] %v13445_v47 }
 0x17b   :  { %3894 = vmatmul.mubr.bf16.gmra.mrb[28].mxu0 %v10915_v40  ;;  %3067 = vmatprep.mubr.bf16.mxu1 %v10916_v2  ;;  %v10924_v2 = vld [vmem:[%s18430_s0 + $0x1c4] ss:$24 sps:$4 sm:$0xff]  }
 0x17c   :  { %3901 = vmatprep.mubr.bf16.mxu0 %v10918_v53 }
 0x17d   :  { %v13429_v26 = vpop.f32.mrb[52].mxu1 }
 0x17e   :  { %18831 = vst [vmem:[#allocation6_spill] sm:$0xff] %v13429_v26  ;;  %v2855_v31 = vpop.f32.mrb[53].mxu1  ;;  %v11034_v26 = vld [vmem:[%s18430_s0 + $0xb10] ss:$24 sps:$4 sm:$0xff]  }
 0x17f   :  { %v13434_v38 = vpop.f32.mrb[54].mxu1 }
 0x180   :  { %18832 = vst [vmem:[#allocation7_spill] sm:$0xff] %v13434_v38  ;;  %v2858_v40 = vpop.f32.mrb[55].mxu1 }
 0x181   :  { %v10927_v40 = vld [vmem:[%s18430_s0 + $0x1c0] ss:$24 sps:$4 sm:$0xff]  }
 0x182   :  { %3068 = vmatmul.mubr.bf16.gmra.mrb[160].mxu1 %v10920_v33  ;;  %v10928_v33 = vld [vmem:[%s18430_s0 + $0x7e4] ss:$24 sps:$4 sm:$0xff]  }
 0x183   :  { %3902 = vmatmul.mubr.bf16.gmra.mrb[32].mxu0 %v10921_v45  ;;  %3075 = vmatprep.mubr.bf16.mxu1 %v10922_v34  ;;  %v10930_v34 = vld [vmem:[%s18430_s0 + $0x1f4] ss:$24 sps:$4 sm:$0xff]  }
 0x184   :  { %3909 = vmatprep.mubr.bf16.mxu0 %v10924_v2  ;;  %v13463_v2 = vpop.permute.xlu0 %7781 }
 0x185   :  { %v13447_v53 = vpop.f32.mrb[56].mxu1  ;;  %18836 = vst [vmem:[#allocation11_spill] sm:$0xff] %v13463_v2 }
 0x186   :  { %18834 = vst [vmem:[#allocation9_spill] sm:$0xff] %v13447_v53  ;;  %v2863_v31 = vpop.f32.mrb[57].mxu1  ;;  %v10932_v53 = vld [vmem:[%s18430_s0 + $0x7e0] ss:$24 sps:$4 sm:$0xff]  }
 0x187   :  { %v13452_v63 = vpop.f32.mrb[58].mxu1  ;;  %v13465_v31 = vpop.permute.xlu1 %7778 }
 0x188   :  { %18835 = vst [vmem:[#allocation10_spill] sm:$0xff] %v13452_v63  ;;  %v2866_v45 = vpop.f32.mrb[59].mxu1  ;;  %18837 = vst [vmem:[#allocation12_spill] sm:$0xff] %v13465_v31 }
 0x189   :  { %v13472_v45 = vpop.permute.xlu0 %7787 }
 0x18a   :  { %3076 = vmatmul.mubr.bf16.gmra.mrb[164].mxu1 %v10926_v43  ;;  %18839 = vst [vmem:[#allocation14_spill] sm:$0xff] %v13472_v45  ;;  %v10933_v43 = vld [vmem:[%s18430_s0 + $0x1f0] ss:$24 sps:$4 sm:$0xff]  }
 0x18b   :  { %3910 = vmatmul.mubr.bf16.gmra.mrb[36].mxu0 %v10927_v40  ;;  %3083 = vmatprep.mubr.bf16.mxu1 %v10928_v33  ;;  %v10934_v40 = vld [vmem:[%s18430_s0 + $0x814] ss:$24 sps:$4 sm:$0xff]  }
 0x18c   :  { %3917 = vmatprep.mubr.bf16.mxu0 %v10930_v34  ;;  %v13485_v34 = vpop.permute.xlu1 %7784 }
 0x18d   :  { %v13467_v47 = vpop.f32.mrb[60].mxu1  ;;  %18841 = vst [vmem:[#allocation16_spill] sm:$0xff] %v13485_v34  ;;  %v13487_v45 = vpop.permute.xlu0 %7793 }
 0x18e   :  { %18838 = vst [vmem:[#allocation13_spill] sm:$0xff] %v13467_v47  ;;  %v2871_v63 = vpop.f32.mrb[61].mxu1  ;;  %18842 = vst [vmem:[#allocation17_spill] sm:$0xff] %v13487_v45  ;;  %v10938_v47 = vld [vmem:[%s18430_s0 + $0x810] ss:$24 sps:$4 sm:$0xff]  }
 0x18f   :  { %v13474_v38 = vpop.f32.mrb[62].mxu1  ;;  %v10936_v63 = vld [vmem:[%s18430_s0 + $0x224] ss:$24 sps:$4 sm:$0xff]  }
 0x190   :  { %18840 = vst [vmem:[#allocation15_spill] sm:$0xff] %v13474_v38  ;;  %v2874_v33 = vpop.f32.mrb[63].mxu1 }
 0x191   :  { %v13494_v33 = vpop.permute.xlu1 %7790 }
 0x192   :  { %3084 = vmatmul.mubr.bf16.gmra.mrb[168].mxu1 %v10932_v53  ;;  %18844 = vst [vmem:[#allocation19_spill] sm:$0xff] %v13494_v33  ;;  %v10939_v53 = vld [vmem:[%s18430_s0 + $0x220] ss:$24 sps:$4 sm:$0xff]  }
 0x193   :  { %3918 = vmatmul.mubr.bf16.gmra.mrb[40].mxu0 %v10933_v43  ;;  %3091 = vmatprep.mubr.bf16.mxu1 %v10934_v40  ;;  %v10940_v43 = vld [vmem:[%s18430_s0 + $0x844] ss:$24 sps:$4 sm:$0xff]  }
 0x194   :  { %3925 = vmatprep.mubr.bf16.mxu0 %v10936_v63  ;;  %v13507_v63 = vpop.permute.xlu0 %7799 }
 0x195   :  { %v13489_v2 = vpop.f32.mrb[64].mxu1  ;;  %18846 = vst [vmem:[#allocation21_spill] sm:$0xff] %v13507_v63  ;;  %v13509_v45 = vpop.permute.xlu1 %7796 }
 0x196   :  { %18843 = vst [vmem:[#allocation18_spill] sm:$0xff] %v13489_v2  ;;  %v2879_v38 = vpop.f32.mrb[65].mxu1  ;;  %18847 = vst [vmem:[#allocation22_spill] sm:$0xff] %v13509_v45  ;;  %v10944_v2 = vld [vmem:[%s18430_s0 + $0x840] ss:$24 sps:$4 sm:$0xff]  }
 0x197   :  { %v13496_v31 = vpop.f32.mrb[66].mxu1  ;;  %v10942_v38 = vld [vmem:[%s18430_s0 + $0x254] ss:$24 sps:$4 sm:$0xff]  }
 0x198   :  { %18845 = vst [vmem:[#allocation20_spill] sm:$0xff] %v13496_v31  ;;  %v2882_v40 = vpop.f32.mrb[67].mxu1 }
 0x199   :  { %v13529_v63 = vpop.permute.xlu1 %7802 }
 0x19a   :  { %3092 = vmatmul.mubr.bf16.gmra.mrb[172].mxu1 %v10938_v47  ;;  %v10945_v47 = vld [vmem:[%s18430_s0 + $0x250] ss:$24 sps:$4 sm:$0xff]   ;;  %18851 = vst [vmem:[#allocation26_spill] sm:$0xff] %v13529_v63 }
 0x19b   :  { %3926 = vmatmul.mubr.bf16.gmra.mrb[44].mxu0 %v10939_v53  ;;  %3099 = vmatprep.mubr.bf16.mxu1 %v10940_v43  ;;  %v10946_v53 = vld [vmem:[%s18430_s0 + $0x874] ss:$24 sps:$4 sm:$0xff]  }
 0x19c   :  { %3933 = vmatprep.mubr.bf16.mxu0 %v10942_v38  ;;  %v10948_v38 = vld [vmem:[%s18430_s0 + $0x284] ss:$24 sps:$4 sm:$0xff]  }
 0x19d   :  { %v13511_v33 = vpop.f32.mrb[68].mxu1 }
 0x19e   :  { %18848 = vst [vmem:[#allocation23_spill] sm:$0xff] %v13511_v33  ;;  %v2887_v31 = vpop.f32.mrb[69].mxu1  ;;  %v10950_v33 = vld [vmem:[%s18430_s0 + $0x870] ss:$24 sps:$4 sm:$0xff]  }
 0x19f   :  { %v13516_v40 = vpop.f32.mrb[70].mxu1  ;;  %v13527_v31 = vpop.permute.xlu0 %7805 }
 0x1a0   :  { %18849 = vst [vmem:[#allocation24_spill] sm:$0xff] %v13516_v40  ;;  %v2890_v43 = vpop.f32.mrb[71].mxu1  ;;  %18850 = vst [vmem:[#allocation25_spill] sm:$0xff] %v13527_v31 }
 0x1a2   :  { %3100 = vmatmul.mubr.bf16.gmra.mrb[176].mxu1 %v10944_v2  ;;  %v10951_v2 = vld [vmem:[%s18430_s0 + $0x280] ss:$24 sps:$4 sm:$0xff]  }
 0x1a3   :  { %3934 = vmatmul.mubr.bf16.gmra.mrb[48].mxu0 %v10945_v47  ;;  %3107 = vmatprep.mubr.bf16.mxu1 %v10946_v53  ;;  %v13536_v43 = vpop.permute.xlu0 %7811  ;;  %v10952_v47 = vld [vmem:[%s18430_s0 + $0x8a4] ss:$24 sps:$4 sm:$0xff]  }
 0x1a4   :  { %3941 = vmatprep.mubr.bf16.mxu0 %v10948_v38  ;;  %18853 = vst [vmem:[#allocation28_spill] sm:$0xff] %v13536_v43  ;;  %v13549_v38 = vpop.permute.xlu1 %7808 }
 0x1a5   :  { %v13531_v45 = vpop.f32.mrb[72].mxu1  ;;  %18855 = vst [vmem:[#allocation30_spill] sm:$0xff] %v13549_v38 }
 0x1a6   :  { %18852 = vst [vmem:[#allocation27_spill] sm:$0xff] %v13531_v45  ;;  %v2895_v40 = vpop.f32.mrb[73].mxu1 }
 0x1a7   :  { %v13538_v34 = vpop.f32.mrb[74].mxu1  ;;  %v10954_v40 = vld [vmem:[%s18430_s0 + $0x2b4] ss:$24 sps:$4 sm:$0xff]   ;;  %v13551_v43 = vpop.permute.xlu0 %7817 }
 0x1a8   :  { %18854 = vst [vmem:[#allocation29_spill] sm:$0xff] %v13538_v34  ;;  %v2898_v53 = vpop.f32.mrb[75].mxu1  ;;  %18856 = vst [vmem:[#allocation31_spill] sm:$0xff] %v13551_v43  ;;  %v10956_v34 = vld [vmem:[%s18430_s0 + $0x8a0] ss:$24 sps:$4 sm:$0xff]  }
 0x1a9   :  { %v13558_v53 = vpop.permute.xlu1 %7814 }
 0x1aa   :  { %3108 = vmatmul.mubr.bf16.gmra.mrb[180].mxu1 %v10950_v33  ;;  %18858 = vst [vmem:[#allocation33_spill] sm:$0xff] %v13558_v53  ;;  %v10957_v33 = vld [vmem:[%s18430_s0 + $0x2b0] ss:$24 sps:$4 sm:$0xff]  }
 0x1ab   :  { %3942 = vmatmul.mubr.bf16.gmra.mrb[52].mxu0 %v10951_v2  ;;  %3115 = vmatprep.mubr.bf16.mxu1 %v10952_v47  ;;  %v10958_v2 = vld [vmem:[%s18430_s0 + $0x8d4] ss:$24 sps:$4 sm:$0xff]  }
 0x1ac   :  { %3949 = vmatprep.mubr.bf16.mxu0 %v10954_v40  ;;  %v13571_v40 = vpop.permute.xlu0 %7823 }
 0x1ad   :  { %v13553_v31 = vpop.f32.mrb[76].mxu1  ;;  %18860 = vst [vmem:[#allocation35_spill] sm:$0xff] %v13571_v40  ;;  %v13573_v43 = vpop.permute.xlu1 %7820 }
 0x1ae   :  { %18857 = vst [vmem:[#allocation32_spill] sm:$0xff] %v13553_v31  ;;  %v2903_v63 = vpop.f32.mrb[77].mxu1  ;;  %18861 = vst [vmem:[#allocation36_spill] sm:$0xff] %v13573_v43 }
 0x1af   :  { %v13560_v45 = vpop.f32.mrb[78].mxu1  ;;  %v10960_v63 = vld [vmem:[%s18430_s0 + $0x2e4] ss:$24 sps:$4 sm:$0xff]  }
 0x1b0   :  { %18859 = vst [vmem:[#allocation34_spill] sm:$0xff] %v13560_v45  ;;  %v2906_v47 = vpop.f32.mrb[79].mxu1  ;;  %v10962_v45 = vld [vmem:[%s18430_s0 + $0x8d0] ss:$24 sps:$4 sm:$0xff]  }
 0x1b1   :  { %v13593_v40 = vpop.permute.xlu1 %7826 }
 0x1b2   :  { %3116 = vmatmul.mubr.bf16.gmra.mrb[184].mxu1 %v10956_v34  ;;  %v10963_v34 = vld [vmem:[%s18430_s0 + $0x2e0] ss:$24 sps:$4 sm:$0xff]   ;;  %18865 = vst [vmem:[#allocation40_spill] sm:$0xff] %v13593_v40 }
 0x1b3   :  { %3950 = vmatmul.mubr.bf16.gmra.mrb[56].mxu0 %v10957_v33  ;;  %3123 = vmatprep.mubr.bf16.mxu1 %v10958_v2  ;;  %v10964_v33 = vld [vmem:[%s18430_s0 + $0x904] ss:$24 sps:$4 sm:$0xff]  }
 0x1b4   :  { %3957 = vmatprep.mubr.bf16.mxu0 %v10960_v63  ;;  %v10966_v63 = vld [vmem:[%s18430_s0 + $0x314] ss:$24 sps:$4 sm:$0xff]  }
 0x1b5   :  { %v13575_v53 = vpop.f32.mrb[80].mxu1 }
 0x1b6   :  { %18862 = vst [vmem:[#allocation37_spill] sm:$0xff] %v13575_v53  ;;  %v2911_v38 = vpop.f32.mrb[81].mxu1  ;;  %v10968_v53 = vld [vmem:[%s18430_s0 + $0x900] ss:$24 sps:$4 sm:$0xff]  }
 0x1b7   :  { %v13580_v47 = vpop.f32.mrb[82].mxu1  ;;  %v13591_v38 = vpop.permute.xlu0 %7829 }
 0x1b8   :  { %18863 = vst [vmem:[#allocation38_spill] sm:$0xff] %v13580_v47  ;;  %v2914_v2 = vpop.f32.mrb[83].mxu1  ;;  %18864 = vst [vmem:[#allocation39_spill] sm:$0xff] %v13591_v38 }
 0x1ba   :  { %3124 = vmatmul.mubr.bf16.gmra.mrb[188].mxu1 %v10962_v45  ;;  %v10969_v45 = vld [vmem:[%s18430_s0 + $0x310] ss:$24 sps:$4 sm:$0xff]  }
 0x1bb   :  { %3958 = vmatmul.mubr.bf16.gmra.mrb[60].mxu0 %v10963_v34  ;;  %3131 = vmatprep.mubr.bf16.mxu1 %v10964_v33  ;;  %v13600_v2 = vpop.permute.xlu0 %7835  ;;  %v10970_v34 = vld [vmem:[%s18430_s0 + $0x934] ss:$24 sps:$4 sm:$0xff]  }
 0x1bc   :  { %3965 = vmatprep.mubr.bf16.mxu0 %v10966_v63  ;;  %18867 = vst [vmem:[#allocation42_spill] sm:$0xff] %v13600_v2  ;;  %v13613_v63 = vpop.permute.xlu1 %7832 }
 0x1bd   :  { %v13595_v43 = vpop.f32.mrb[84].mxu1  ;;  %18869 = vst [vmem:[#allocation44_spill] sm:$0xff] %v13613_v63 }
 0x1be   :  { %18866 = vst [vmem:[#allocation41_spill] sm:$0xff] %v13595_v43  ;;  %v2919_v47 = vpop.f32.mrb[85].mxu1 }
 0x1bf   :  { %v13602_v31 = vpop.f32.mrb[86].mxu1  ;;  %v10972_v47 = vld [vmem:[%s18430_s0 + $0x344] ss:$24 sps:$4 sm:$0xff]   ;;  %v13615_v2 = vpop.permute.xlu0 %7841 }
 0x1c0   :  { %18868 = vst [vmem:[#allocation43_spill] sm:$0xff] %v13602_v31  ;;  %v2922_v33 = vpop.f32.mrb[87].mxu1  ;;  %18870 = vst [vmem:[#allocation45_spill] sm:$0xff] %v13615_v2  ;;  %v10974_v31 = vld [vmem:[%s18430_s0 + $0x930] ss:$24 sps:$4 sm:$0xff]  }
 0x1c1   :  { %v13622_v33 = vpop.permute.xlu1 %7838 }
 0x1c2   :  { %3132 = vmatmul.mubr.bf16.gmra.mrb[192].mxu1 %v10968_v53  ;;  %18872 = vst [vmem:[#allocation47_spill] sm:$0xff] %v13622_v33  ;;  %v10975_v53 = vld [vmem:[%s18430_s0 + $0x340] ss:$24 sps:$4 sm:$0xff]  }
 0x1c3   :  { %3966 = vmatmul.mubr.bf16.gmra.mrb[64].mxu0 %v10969_v45  ;;  %3139 = vmatprep.mubr.bf16.mxu1 %v10970_v34  ;;  %v10976_v45 = vld [vmem:[%s18430_s0 + $0x964] ss:$24 sps:$4 sm:$0xff]  }
 0x1c4   :  { %3973 = vmatprep.mubr.bf16.mxu0 %v10972_v47  ;;  %v13635_v47 = vpop.permute.xlu0 %7847 }
 0x1c5   :  { %v13617_v38 = vpop.f32.mrb[88].mxu1  ;;  %18874 = vst [vmem:[#allocation49_spill] sm:$0xff] %v13635_v47  ;;  %v13637_v2 = vpop.permute.xlu1 %7844 }
 0x1c6   :  { %18871 = vst [vmem:[#allocation46_spill] sm:$0xff] %v13617_v38  ;;  %v2927_v40 = vpop.f32.mrb[89].mxu1  ;;  %18875 = vst [vmem:[#allocation50_spill] sm:$0xff] %v13637_v2 }
 0x1c7   :  { %v13624_v43 = vpop.f32.mrb[90].mxu1  ;;  %v10978_v40 = vld [vmem:[%s18430_s0 + $0x374] ss:$24 sps:$4 sm:$0xff]  }
 0x1c8   :  { %18873 = vst [vmem:[#allocation48_spill] sm:$0xff] %v13624_v43  ;;  %v2930_v34 = vpop.f32.mrb[91].mxu1  ;;  %v10980_v43 = vld [vmem:[%s18430_s0 + $0x960] ss:$24 sps:$4 sm:$0xff]  }
 0x1c9   :  { %v13657_v47 = vpop.permute.xlu1 %7850 }
 0x1ca   :  { %3140 = vmatmul.mubr.bf16.gmra.mrb[196].mxu1 %v10974_v31  ;;  %v10981_v31 = vld [vmem:[%s18430_s0 + $0x370] ss:$24 sps:$4 sm:$0xff]   ;;  %18879 = vst [vmem:[#allocation54_spill] sm:$0xff] %v13657_v47 }
 0x1cb   :  { %3974 = vmatmul.mubr.bf16.gmra.mrb[68].mxu0 %v10975_v53  ;;  %3147 = vmatprep.mubr.bf16.mxu1 %v10976_v45  ;;  %v10982_v53 = vld [vmem:[%s18430_s0 + $0x994] ss:$24 sps:$4 sm:$0xff]  }
 0x1cc   :  { %3981 = vmatprep.mubr.bf16.mxu0 %v10978_v40  ;;  %v10984_v40 = vld [vmem:[%s18430_s0 + $0x3a4] ss:$24 sps:$4 sm:$0xff]  }
 0x1cd   :  { %v13639_v33 = vpop.f32.mrb[92].mxu1 }
 0x1ce   :  { %18876 = vst [vmem:[#allocation51_spill] sm:$0xff] %v13639_v33  ;;  %v2935_v63 = vpop.f32.mrb[93].mxu1  ;;  %v10986_v33 = vld [vmem:[%s18430_s0 + $0x990] ss:$24 sps:$4 sm:$0xff]  }
 0x1cf   :  { %v13644_v34 = vpop.f32.mrb[94].mxu1  ;;  %v13655_v63 = vpop.permute.xlu0 %7853 }
 0x1d0   :  { %18877 = vst [vmem:[#allocation52_spill] sm:$0xff] %v13644_v34  ;;  %v2938_v45 = vpop.f32.mrb[95].mxu1  ;;  %18878 = vst [vmem:[#allocation53_spill] sm:$0xff] %v13655_v63 }
 0x1d2   :  { %3148 = vmatmul.mubr.bf16.gmra.mrb[200].mxu1 %v10980_v43  ;;  %v10987_v43 = vld [vmem:[%s18430_s0 + $0x3a0] ss:$24 sps:$4 sm:$0xff]  }
 0x1d3   :  { %3982 = vmatmul.mubr.bf16.gmra.mrb[72].mxu0 %v10981_v31  ;;  %3155 = vmatprep.mubr.bf16.mxu1 %v10982_v53  ;;  %v13664_v45 = vpop.permute.xlu0 %7859  ;;  %v10988_v31 = vld [vmem:[%s18430_s0 + $0x9c4] ss:$24 sps:$4 sm:$0xff]  }
 0x1d4   :  { %3989 = vmatprep.mubr.bf16.mxu0 %v10984_v40  ;;  %18881 = vst [vmem:[#allocation56_spill] sm:$0xff] %v13664_v45  ;;  %v13677_v40 = vpop.permute.xlu1 %7856 }
 0x1d5   :  { %v13659_v2 = vpop.f32.mrb[96].mxu1  ;;  %18883 = vst [vmem:[#allocation58_spill] sm:$0xff] %v13677_v40 }
 0x1d6   :  { %18880 = vst [vmem:[#allocation55_spill] sm:$0xff] %v13659_v2  ;;  %v2943_v34 = vpop.f32.mrb[97].mxu1 }
 0x1d7   :  { %v13666_v38 = vpop.f32.mrb[98].mxu1  ;;  %v10990_v34 = vld [vmem:[%s18430_s0 + $0x3d4] ss:$24 sps:$4 sm:$0xff]   ;;  %v13679_v45 = vpop.permute.xlu0 %7865 }
 0x1d8   :  { %18882 = vst [vmem:[#allocation57_spill] sm:$0xff] %v13666_v38  ;;  %v2946_v53 = vpop.f32.mrb[99].mxu1  ;;  %18884 = vst [vmem:[#allocation59_spill] sm:$0xff] %v13679_v45  ;;  %v10992_v38 = vld [vmem:[%s18430_s0 + $0x9c0] ss:$24 sps:$4 sm:$0xff]  }
 0x1d9   :  { %v13686_v53 = vpop.permute.xlu1 %7862 }
 0x1da   :  { %3156 = vmatmul.mubr.bf16.gmra.mrb[204].mxu1 %v10986_v33  ;;  %18886 = vst [vmem:[#allocation61_spill] sm:$0xff] %v13686_v53  ;;  %v10993_v33 = vld [vmem:[%s18430_s0 + $0x3d0] ss:$24 sps:$4 sm:$0xff]  }
 0x1db   :  { %3990 = vmatmul.mubr.bf16.gmra.mrb[76].mxu0 %v10987_v43  ;;  %3163 = vmatprep.mubr.bf16.mxu1 %v10988_v31  ;;  %v10994_v43 = vld [vmem:[%s18430_s0 + $0x9f4] ss:$24 sps:$4 sm:$0xff]  }
 0x1dc   :  { %3997 = vmatprep.mubr.bf16.mxu0 %v10990_v34  ;;  %v13699_v34 = vpop.permute.xlu0 %7871 }
 0x1dd   :  { %v13681_v63 = vpop.f32.mrb[100].mxu1  ;;  %18888 = vst [vmem:[#allocation63_spill] sm:$0xff] %v13699_v34  ;;  %v13701_v45 = vpop.permute.xlu1 %7868 }
 0x1de   :  { %18885 = vst [vmem:[#allocation60_spill] sm:$0xff] %v13681_v63  ;;  %v2951_v47 = vpop.f32.mrb[101].mxu1  ;;  %18889 = vst [vmem:[#allocation64_spill] sm:$0xff] %v13701_v45 }
 0x1df   :  { %v13688_v2 = vpop.f32.mrb[102].mxu1  ;;  %v10996_v47 = vld [vmem:[%s18430_s0 + $0x404] ss:$24 sps:$4 sm:$0xff]  }
 0x1e0   :  { %18887 = vst [vmem:[#allocation62_spill] sm:$0xff] %v13688_v2  ;;  %v2954_v31 = vpop.f32.mrb[103].mxu1  ;;  %v10998_v2 = vld [vmem:[%s18430_s0 + $0x9f0] ss:$24 sps:$4 sm:$0xff]  }
 0x1e1   :  { %v13721_v34 = vpop.permute.xlu1 %7874 }
 0x1e2   :  { %3164 = vmatmul.mubr.bf16.gmra.mrb[208].mxu1 %v10992_v38  ;;  %v10999_v38 = vld [vmem:[%s18430_s0 + $0x400] ss:$24 sps:$4 sm:$0xff]   ;;  %18893 = vst [vmem:[#allocation68_spill] sm:$0xff] %v13721_v34 }
 0x1e3   :  { %3998 = vmatmul.mubr.bf16.gmra.mrb[80].mxu0 %v10993_v33  ;;  %3171 = vmatprep.mubr.bf16.mxu1 %v10994_v43  ;;  %v11000_v33 = vld [vmem:[%s18430_s0 + $0xa24] ss:$24 sps:$4 sm:$0xff]  }
 0x1e4   :  { %4005 = vmatprep.mubr.bf16.mxu0 %v10996_v47  ;;  %v11002_v47 = vld [vmem:[%s18430_s0 + $0x434] ss:$24 sps:$4 sm:$0xff]  }
 0x1e5   :  { %v13703_v53 = vpop.f32.mrb[104].mxu1 }
 0x1e6   :  { %18890 = vst [vmem:[#allocation65_spill] sm:$0xff] %v13703_v53  ;;  %v2959_v40 = vpop.f32.mrb[105].mxu1  ;;  %v11004_v53 = vld [vmem:[%s18430_s0 + $0xa20] ss:$24 sps:$4 sm:$0xff]  }
 0x1e7   :  { %v13708_v31 = vpop.f32.mrb[106].mxu1  ;;  %v13719_v40 = vpop.permute.xlu0 %7877 }
 0x1e8   :  { %18891 = vst [vmem:[#allocation66_spill] sm:$0xff] %v13708_v31  ;;  %v2962_v43 = vpop.f32.mrb[107].mxu1  ;;  %18892 = vst [vmem:[#allocation67_spill] sm:$0xff] %v13719_v40 }
 0x1ea   :  { %3172 = vmatmul.mubr.bf16.gmra.mrb[212].mxu1 %v10998_v2  ;;  %v11005_v2 = vld [vmem:[%s18430_s0 + $0x430] ss:$24 sps:$4 sm:$0xff]  }
 0x1eb   :  { %4006 = vmatmul.mubr.bf16.gmra.mrb[84].mxu0 %v10999_v38  ;;  %3179 = vmatprep.mubr.bf16.mxu1 %v11000_v33  ;;  %v13728_v43 = vpop.permute.xlu0 %7883  ;;  %v11006_v38 = vld [vmem:[%s18430_s0 + $0xa54] ss:$24 sps:$4 sm:$0xff]  }
 0x1ec   :  { %4013 = vmatprep.mubr.bf16.mxu0 %v11002_v47  ;;  %18895 = vst [vmem:[#allocation70_spill] sm:$0xff] %v13728_v43  ;;  %v13741_v47 = vpop.permute.xlu1 %7880 }
 0x1ed   :  { %v13723_v45 = vpop.f32.mrb[108].mxu1  ;;  %18897 = vst [vmem:[#allocation72_spill] sm:$0xff] %v13741_v47 }
 0x1ee   :  { %18894 = vst [vmem:[#allocation69_spill] sm:$0xff] %v13723_v45  ;;  %v2967_v31 = vpop.f32.mrb[109].mxu1 }
 0x1ef   :  { %v13730_v63 = vpop.f32.mrb[110].mxu1  ;;  %v11008_v31 = vld [vmem:[%s18430_s0 + $0x464] ss:$24 sps:$4 sm:$0xff]   ;;  %v13743_v43 = vpop.permute.xlu0 %7889 }
 0x1f0   :  { %18896 = vst [vmem:[#allocation71_spill] sm:$0xff] %v13730_v63  ;;  %v2970_v33 = vpop.f32.mrb[111].mxu1  ;;  %18898 = vst [vmem:[#allocation73_spill] sm:$0xff] %v13743_v43  ;;  %v11010_v63 = vld [vmem:[%s18430_s0 + $0xa50] ss:$24 sps:$4 sm:$0xff]  }
 0x1f1   :  { %v13750_v33 = vpop.permute.xlu1 %7886 }
 0x1f2   :  { %3180 = vmatmul.mubr.bf16.gmra.mrb[216].mxu1 %v11004_v53  ;;  %18900 = vst [vmem:[#allocation75_spill] sm:$0xff] %v13750_v33  ;;  %v11011_v53 = vld [vmem:[%s18430_s0 + $0x460] ss:$24 sps:$4 sm:$0xff]  }
 0x1f3   :  { %4014 = vmatmul.mubr.bf16.gmra.mrb[88].mxu0 %v11005_v2  ;;  %3187 = vmatprep.mubr.bf16.mxu1 %v11006_v38  ;;  %v11012_v2 = vld [vmem:[%s18430_s0 + $0xa84] ss:$24 sps:$4 sm:$0xff]  }
 0x1f4   :  { %4021 = vmatprep.mubr.bf16.mxu0 %v11008_v31  ;;  %v13763_v31 = vpop.permute.xlu0 %7895 }
 0x1f5   :  { %v13745_v40 = vpop.f32.mrb[112].mxu1  ;;  %18902 = vst [vmem:[#allocation77_spill] sm:$0xff] %v13763_v31  ;;  %v13765_v43 = vpop.permute.xlu1 %7892 }
 0x1f6   :  { %18899 = vst [vmem:[#allocation74_spill] sm:$0xff] %v13745_v40  ;;  %v2975_v34 = vpop.f32.mrb[113].mxu1  ;;  %18903 = vst [vmem:[#allocation78_spill] sm:$0xff] %v13765_v43 }
 0x1f7   :  { %v13752_v45 = vpop.f32.mrb[114].mxu1  ;;  %v11014_v34 = vld [vmem:[%s18430_s0 + $0x494] ss:$24 sps:$4 sm:$0xff]  }
 0x1f8   :  { %18901 = vst [vmem:[#allocation76_spill] sm:$0xff] %v13752_v45  ;;  %v2978_v38 = vpop.f32.mrb[115].mxu1  ;;  %v11016_v45 = vld [vmem:[%s18430_s0 + $0xa80] ss:$24 sps:$4 sm:$0xff]  }
 0x1f9   :  { %v13785_v31 = vpop.permute.xlu1 %7898 }
 0x1fa   :  { %3188 = vmatmul.mubr.bf16.gmra.mrb[220].mxu1 %v11010_v63  ;;  %v11017_v63 = vld [vmem:[%s18430_s0 + $0x490] ss:$24 sps:$4 sm:$0xff]   ;;  %18907 = vst [vmem:[#allocation82_spill] sm:$0xff] %v13785_v31 }
 0x1fb   :  { %4022 = vmatmul.mubr.bf16.gmra.mrb[92].mxu0 %v11011_v53  ;;  %3195 = vmatprep.mubr.bf16.mxu1 %v11012_v2  ;;  %v11018_v53 = vld [vmem:[%s18430_s0 + $0xab4] ss:$24 sps:$4 sm:$0xff]  }
 0x1fc   :  { %4029 = vmatprep.mubr.bf16.mxu0 %v11014_v34  ;;  %v11020_v34 = vld [vmem:[%s18430_s0 + $0x4c4] ss:$24 sps:$4 sm:$0xff]  }
 0x1fd   :  { %v13767_v33 = vpop.f32.mrb[116].mxu1 }
 0x1fe   :  { %18904 = vst [vmem:[#allocation79_spill] sm:$0xff] %v13767_v33  ;;  %v2983_v47 = vpop.f32.mrb[117].mxu1  ;;  %v11022_v33 = vld [vmem:[%s18430_s0 + $0xab0] ss:$24 sps:$4 sm:$0xff]  }
 0x1ff   :  { %v13772_v38 = vpop.f32.mrb[118].mxu1  ;;  %v13783_v47 = vpop.permute.xlu0 %7901 }
 0x200   :  { %18905 = vst [vmem:[#allocation80_spill] sm:$0xff] %v13772_v38  ;;  %v2986_v2 = vpop.f32.mrb[119].mxu1  ;;  %18906 = vst [vmem:[#allocation81_spill] sm:$0xff] %v13783_v47 }
 0x202   :  { %3196 = vmatmul.mubr.bf16.gmra.mrb[224].mxu1 %v11016_v45  ;;  %v11023_v45 = vld [vmem:[%s18430_s0 + $0x4c0] ss:$24 sps:$4 sm:$0xff]  }
 0x203   :  { %4030 = vmatmul.mubr.bf16.gmra.mrb[96].mxu0 %v11017_v63  ;;  %3203 = vmatprep.mubr.bf16.mxu1 %v11018_v53  ;;  %v13792_v2 = vpop.permute.xlu0 %7907  ;;  %v11024_v63 = vld [vmem:[%s18430_s0 + $0xae4] ss:$24 sps:$4 sm:$0xff]  }
 0x204   :  { %4037 = vmatprep.mubr.bf16.mxu0 %v11020_v34  ;;  %18909 = vst [vmem:[#allocation84_spill] sm:$0xff] %v13792_v2  ;;  %v13805_v34 = vpop.permute.xlu1 %7904 }
 0x205   :  { %v13787_v43 = vpop.f32.mrb[120].mxu1  ;;  %18911 = vst [vmem:[#allocation86_spill] sm:$0xff] %v13805_v34 }
 0x206   :  { %18908 = vst [vmem:[#allocation83_spill] sm:$0xff] %v13787_v43  ;;  %v2991_v38 = vpop.f32.mrb[121].mxu1 }
 0x207   :  { %v13794_v40 = vpop.f32.mrb[122].mxu1  ;;  %v11026_v38 = vld [vmem:[%s18430_s0 + $0x4f4] ss:$24 sps:$4 sm:$0xff]   ;;  %v13807_v2 = vpop.permute.xlu0 %7913 }
 0x208   :  { %18910 = vst [vmem:[#allocation85_spill] sm:$0xff] %v13794_v40  ;;  %v2994_v53 = vpop.f32.mrb[123].mxu1  ;;  %18912 = vst [vmem:[#allocation87_spill] sm:$0xff] %v13807_v2  ;;  %v11028_v40 = vld [vmem:[%s18430_s0 + $0xae0] ss:$24 sps:$4 sm:$0xff]  }
 0x209   :  { %v13814_v53 = vpop.permute.xlu1 %7910  ;;  %v13830_v2 = vld [vmem:[%s18431_s2] ss:$0 sm:$0xff] }
 0x20a   :  { %3204 = vmatmul.mubr.bf16.gmra.mrb[228].mxu1 %v11022_v33  ;;  %18914 = vst [vmem:[#allocation89_spill] sm:$0xff] %v13814_v53  ;;  %v11029_v33 = vld [vmem:[%s18430_s0 + $0x4f0] ss:$24 sps:$4 sm:$0xff]  }
 0x20b   :  { %4038 = vmatmul.mubr.bf16.gmra.mrb[100].mxu0 %v11023_v45  ;;  %3211 = vmatprep.mubr.bf16.mxu1 %v11024_v63  ;;  %v11030_v45 = vld [vmem:[%s18430_s0 + $0xb14] ss:$24 sps:$4 sm:$0xff]   ;;  %v4350_v63 = vlaneseq  ;;  %v13832_v53 = vpop.permute.xlu0 %7919 }
 0x20c   :  { %4045 = vmatprep.mubr.bf16.mxu0 %v11026_v38  ;;  %18916 = vst [vmem:[#allocation91_spill] sm:$0xff] %v13832_v53  ;;  %v11038_v53 = vld [vmem:[%s18430_s0 + $0x554] ss:$24 sps:$4 sm:$0xff]  }
 0x20d   :  { %v13809_v47 = vpop.f32.mrb[124].mxu1  ;;  %v13834_v34 = vand.u32 127, %v4350_v63  ;;  %v11035_v63 = vld [vmem:[%s18430_s0 + $0x520] ss:$24 sps:$4 sm:$0xff]  }
 0x20e   :  { %18913 = vst [vmem:[#allocation88_spill] sm:$0xff] %v13809_v47  ;;  %v2999_v31 = vpop.f32.mrb[125].mxu1 }
 0x20f   :  { %v13816_v43 = vpop.f32.mrb[126].mxu1  ;;  %v11032_v31 = vld [vmem:[%s18430_s0 + $0x524] ss:$24 sps:$4 sm:$0xff]   ;;  %18917 = vst [vmem:[#allocation92_spill] sm:$0xff] %v13834_v34  ;;  %vm4352_vm0 = vcmp.lt.s32.totalorder %v13834_v34, 5  ;;  %vm8074_vm1 = vcmp.eq.s32.totalorder %v13834_v34, %v12833_v22  ;;  %vm8075_vm2 = vcmp.eq.s32.totalorder %v13834_v34, %v13001_v41  ;;  %vm8076_vm5 = vcmp.eq.s32.totalorder %v13834_v34, %v12857_v35 }
 0x210   :  { %18915 = vst [vmem:[#allocation90_spill] sm:$0xff] %v13816_v43  ;;  %v3002_v38 = vpop.f32.mrb[127].mxu1  ;;  %v13838_v43 = vpop.permute.xlu1 %7916  ;;  %v11040_v41 = vld [vmem:[%s18430_s0 + $0xb40] ss:$24 sps:$4 sm:$0xff]   ;;  %vm8077_vm6 = vcmp.eq.s32.totalorder %v13834_v34, %v12883_v28  ;;  %v18437_v35 = vmov 0.0   ;;  %vm8078_vm10 = vcmp.eq.s32.totalorder %v13834_v34, %v12907_v54  ;;  %vm8079_vm11 = vcmp.eq.s32.totalorder %v13834_v34, %v12924_v62 }
 0x211   :  { %v2750_v38 = vadd.f32 %v13830_v2, %v13224_v49  ;;  %18918 = vst [vmem:[#allocation93_spill] sm:$0xff] %v13838_v43  ;;  %v11036_v49 = vld [vmem:[%s18430_s0 + $0xb44] ss:$24 sps:$4 sm:$0xff]   ;;  %v13855_v43 = vpop.permute.xlu0 %7925  ;;  %v18929_v54 = vmov 0.0   ;;  %vm8080_vm14 = vcmp.eq.s32.totalorder %v13834_v34, %v12945_v9  ;;  %vm8081_vm15 = vcmp.eq.s32.totalorder %v13834_v34, %v12975_v27 }
 0x212   :  { %3212 = vmatmul.mubr.bf16.gmra.mrb[232].mxu1 %v11028_v40  ;;  %v2753_v40 = vadd.f32 %v13830_v2, %v13232_v55  ;;  %18919 = vst [vmem:[#allocation94_spill] sm:$0xff] %v13855_v43 }
 0x213   :  { %4046 = vmatmul.mubr.bf16.gmra.mrb[104].mxu0 %v11029_v33  ;;  %3219 = vmatprep.mubr.bf16.mxu1 %v11030_v45 }
 0x214   :  { %4053 = vmatprep.mubr.bf16.mxu0 %v11032_v31 }
 0x216   :  { %v3839_v47 = vpop.f32.mrb[0].mxu0 }
 0x217   :  { %v10107_v33 = vadd.f32 %v3839_v47, %v2750_v38  ;;  %v3841_v45 = vpop.f32.mrb[1].mxu0  ;;  %v13866_v47 = vpop.permute.xlu1 %7922 }
 0x218   :  { %v3842_v31 = vpop.f32.mrb[2].mxu0  ;;  %18920 = vst [vmem:[#allocation95_spill] sm:$0xff] %v13866_v47 }
 0x219   :  { %v10109_v32 = vadd.f32 %v3842_v31, %v2753_v40  ;;  %v3844_v18 = vpop.f32.mrb[3].mxu0  ;;  %v13859_v55 = vsel %vm4352_vm0, %v10107_v33, -1e+30  ;;  %v8202_v38 = vsel %vm8074_vm1, %v10107_v33, 0.0  ;;  %v2758_v40 = vadd.f32 %v13830_v2, %v13240_v60  ;;  %v13880_v33 = vpop.permute.xlu0 %7931  ;;  %v11041_v60 = vld [vmem:[%s18430_s0 + $0x550] ss:$24 sps:$4 sm:$0xff]  }
 0x21a   :  { %4481 = vmax.xlane.f32.xlu0 %v13859_v55  ;;  %3220 = vmatmul.mubr.bf16.gmra.mrb[236].mxu1 %v11034_v26  ;;  %v2761_v26 = vadd.f32 %v13830_v2, %v13248_v12  ;;  %18922 = vst [vmem:[#allocation97_spill] sm:$0xff] %v13880_v33  ;;  %v12021_v12 = vld [vmem:[%s18428_s3 + $0x8] sm:$0xff] }
 0x21b   :  { %v8203_v45 = vsel %vm8075_vm2, %v10109_v32, 0.0  ;;  %4054 = vmatmul.mubr.bf16.gmra.mrb[108].mxu0 %v11035_v63  ;;  %3227 = vmatprep.mubr.bf16.mxu1 %v11036_v49  ;;  %v13872_v22 = vsel %vm4352_vm0, %v10109_v32, -1e+30  ;;  %v11042_v32 = vld [vmem:[%s18430_s0 + $0xb74] ss:$24 sps:$4 sm:$0xff]   ;;  %v12020_v49 = vld [vmem:[%s18428_s3] sm:$0xff] }
 0x21c   :  { %v8330_v18 = vadd.f32 %v8203_v45, %v8202_v38  ;;  %4061 = vmatprep.mubr.bf16.mxu0 %v11038_v53  ;;  %18921 = vst [vmem:[#allocation96_spill] sm:$0xff] %v13872_v22  ;;  %vm6401_vm3 = vcmp.gt.s32.totalorder %v12020_v49, 0  ;;  %vm6402_vm4 = vcmp.gt.s32.totalorder %v12021_v12, 0  ;;  %v11044_v45 = vld [vmem:[%s18430_s0 + $0x584] ss:$24 sps:$4 sm:$0xff]   ;;  %v2766_v49 = vadd.f32 %v13830_v2, %v13256_v10 }
 0x21d   :  { %v13925_v12 = vpop.permute.xlu0 %7937  ;;  %v2769_v10 = vadd.f32 %v13830_v2, %v13264_v17 }
 0x21e   :  { %v3847_v31 = vpop.f32.mrb[4].mxu0  ;;  %4483 = vmax.xlane.f32.xlu0 %v13872_v22  ;;  %v13910_v22 = vsel %vm6401_vm3, 1.0, %v18437_v35  ;;  %18926 = vst [vmem:[#allocation101_spill] sm:$0xff] %v13925_v12  ;;  %vm8082_vm3 = vcmp.eq.s32.totalorder %v13834_v34, %v12996_v37 }
 0x21f   :  { %v10111_v53 = vadd.f32 %v3847_v31, %v2758_v40  ;;  %v3849_v63 = vpop.f32.mrb[5].mxu0  ;;  %v13899_v40 = vpop.permute.xlu1 %7928  ;;  %18924 = vst [vmem:[#allocation99_spill] sm:$0xff] %v13910_v22  ;;  %v8467_v28 = vsel %vm7297_vm7, %v13910_v22, 0.0 }
 0x220   :  { %v3850_v38 = vpop.f32.mrb[6].mxu0  ;;  %18923 = vst [vmem:[#allocation98_spill] sm:$0xff] %v13899_v40 }
 0x221   :  { %v8204_v31 = vsel %vm8076_vm5, %v10111_v53, 0.0  ;;  %v10113_v63 = vadd.f32 %v3850_v38, %v2761_v26  ;;  %v3852_v33 = vpop.f32.mrb[7].mxu0  ;;  %v13903_v43 = vsel %vm4352_vm0, %v10111_v53, -1e+30  ;;  %v13914_v26 = vsel %vm6402_vm4, 1.0, %v18437_v35  ;;  %v13968_v22 = vpop.permute.xlu0 %7943 }
 0x222   :  { %v8331_v47 = vadd.f32 %v8330_v18, %v8204_v31  ;;  %4485 = vmax.xlane.f32.xlu1 %v13903_v43  ;;  %3228 = vmatmul.mubr.bf16.gmra.mrb[240].mxu1 %v11040_v41  ;;  %18925 = vst [vmem:[#allocation100_spill] sm:$0xff] %v13914_v26  ;;  %v12022_v18 = vld [vmem:[%s18428_s3 + $0x10] sm:$0xff]  ;;  %v8468_v41 = vsel %vm7297_vm7, %v13914_v26, 0.0  ;;  %v11048_v26 = vld [vmem:[%s18430_s0 + $0xba4] ss:$24 sps:$4 sm:$0xff]   ;;  %18931 = vst [vmem:[#allocation105_spill] sm:$0xff] %v13968_v22  ;;  %vm8083_vm4 = vcmp.eq.s32.totalorder %v13834_v34, %v13018_v48 }
 0x223   :  { %v8205_v33 = vsel %vm8077_vm6, %v10113_v63, 0.0  ;;  %4062 = vmatmul.mubr.bf16.gmra.mrb[112].mxu0 %v11041_v60  ;;  %3235 = vmatprep.mubr.bf16.mxu1 %v11042_v32  ;;  %vm6403_vm8 = vcmp.gt.s32.totalorder %v12022_v18, 0  ;;  %v13929_v60 = vsel %vm4352_vm0, %v10113_v63, -1e+30  ;;  %v11046_v38 = vld [vmem:[%s18430_s0 + $0xb70] ss:$24 sps:$4 sm:$0xff]  }
 0x224   :  { %v8332_v53 = vadd.f32 %v8331_v47, %v8205_v33  ;;  %4069 = vmatprep.mubr.bf16.mxu0 %v11044_v45  ;;  %v13936_v31 = vsel %vm6403_vm8, 1.0, %v18437_v35  ;;  %v8469_v47 = vadd.f32 %v8468_v41, %v8467_v28  ;;  %v13940_v45 = vpop.permute.xlu1 %7934  ;;  %v11047_v63 = vld [vmem:[%s18430_s0 + $0x580] ss:$24 sps:$4 sm:$0xff]   ;;  %v11050_v41 = vld [vmem:[%s18430_s0 + $0x5b4] ss:$24 sps:$4 sm:$0xff]   ;;  %vm8084_vm8 = vcmp.eq.s32.totalorder %v13834_v34, %v13023_v50 }
 0x225   :  { %18927 = vst [vmem:[#allocation102_spill] sm:$0xff] %v13936_v31  ;;  %18928 = vst [vmem:[#allocation103_spill] sm:$0xff] %v13940_v45  ;;  %v8470_v35 = vsel %vm7297_vm7, %v13936_v31, 0.0  ;;  %v12023_v28 = vld [vmem:[%s18428_s3 + $0x18] sm:$0xff]  ;;  %v12028_v48 = vld [vmem:[%s18428_s3 + $0x40] sm:$0xff] }
 0x226   :  { %v3855_v32 = vpop.f32.mrb[8].mxu0  ;;  %4487 = vmax.xlane.f32.xlu1 %v13929_v60  ;;  %vm6404_vm9 = vcmp.gt.s32.totalorder %v12023_v28, 0  ;;  %v8471_v45 = vadd.f32 %v8470_v35, %v8469_v47  ;;  %v2774_v35 = vadd.f32 %v13830_v2, %v13272_v30  ;;  %v11053_v30 = vld [vmem:[%s18430_s0 + $0x5b0] ss:$24 sps:$4 sm:$0xff]   ;;  %vm6409_vm5 = vcmp.gt.s32.totalorder %v12028_v48, 0 }
 0x227   :  { %v10115_v33 = vadd.f32 %v3855_v32, %v2766_v49  ;;  %v3857_v18 = vpop.f32.mrb[9].mxu0  ;;  %v13966_v28 = vsel %vm6404_vm9, 1.0, %v18929_v54  ;;  %vm8085_vm9 = vcmp.eq.s32.totalorder %v13834_v34, %v13040_v29 }
 0x228   :  { %v3858_v17 = vpop.f32.mrb[10].mxu0  ;;  %18930 = vst [vmem:[#allocation104_spill] sm:$0xff] %v13966_v28  ;;  %v8472_v62 = vsel %vm7297_vm7, %v13966_v28, 0.0  ;;  %v13982_v47 = vpop.permute.xlu1 %7940 }
 0x229   :  { %v8206_v49 = vsel %vm8078_vm10, %v10115_v33, 0.0  ;;  %v10117_v32 = vadd.f32 %v3858_v17, %v2769_v10  ;;  %v3860_v18 = vpop.f32.mrb[11].mxu0  ;;  %v13960_v12 = vsel %vm4352_vm0, %v10115_v33, -1e+30  ;;  %18932 = vst [vmem:[#allocation106_spill] sm:$0xff] %v13982_v47  ;;  %v8473_v17 = vadd.f32 %v8472_v62, %v8471_v45  ;;  %v12025_v45 = vld [vmem:[%s18428_s3 + $0x28] sm:$0xff]  ;;  %v14008_v62 = vpop.permute.xlu0 %7949 }
 0x22a   :  { %v8333_v31 = vadd.f32 %v8332_v53, %v8206_v49  ;;  %4489 = vmax.xlane.f32.xlu0 %v13960_v12  ;;  %3236 = vmatmul.mubr.bf16.gmra.mrb[244].mxu1 %v11046_v38  ;;  %v12024_v53 = vld [vmem:[%s18428_s3 + $0x20] sm:$0xff]  ;;  %vm6406_vm13 = vcmp.gt.s32.totalorder %v12025_v45, 0  ;;  %18934 = vst [vmem:[#allocation108_spill] sm:$0xff] %v14008_v62 }
 0x22b   :  { %v8207_v40 = vsel %vm8079_vm11, %v10117_v32, 0.0  ;;  %4070 = vmatmul.mubr.bf16.gmra.mrb[116].mxu0 %v11047_v63  ;;  %v13972_v10 = vsel %vm4352_vm0, %v10117_v32, -1e+30  ;;  %3243 = vmatprep.mubr.bf16.mxu1 %v11048_v26  ;;  %vm6405_vm12 = vcmp.gt.s32.totalorder %v12024_v53, 0  ;;  %v11052_v26 = vld [vmem:[%s18430_s0 + $0xba0] ss:$24 sps:$4 sm:$0xff]  }
 0x22c   :  { %v8334_v38 = vadd.f32 %v8333_v31, %v8207_v40  ;;  %4491 = vmax.xlane.f32.xlu1 %v13972_v10  ;;  %4077 = vmatprep.mubr.bf16.mxu0 %v11050_v41  ;;  %v13988_v63 = vsel %vm6405_vm12, 1.0, %v18929_v54  ;;  %v2777_v40 = vadd.f32 %v13830_v2, %v13280_v36  ;;  %v11054_v41 = vld [vmem:[%s18430_s0 + $0xbd4] ss:$24 sps:$4 sm:$0xff]   ;;  %v11056_v18 = vld [vmem:[%s18430_s0 + $0x5e4] ss:$24 sps:$4 sm:$0xff]   ;;  %v14018_v9 = vsel %vm6406_vm13, 1.0, %v18929_v54  ;;  %v14020_v28 = vpop.permute.xlu1 %7946 }
 0x22d   :  { %18933 = vst [vmem:[#allocation107_spill] sm:$0xff] %v13988_v63  ;;  %v8474_v32 = vsel %vm7297_vm7, %v13988_v63, 0.0  ;;  %18935 = vst [vmem:[#allocation109_spill] sm:$0xff] %v14018_v9  ;;  %v8476_v27 = vsel %vm7297_vm7, %v14018_v9, 0.0  ;;  %vm8086_vm12 = vcmp.eq.s32.totalorder %v13834_v34, %v13045_v8  ;;  %vm8087_vm13 = vcmp.eq.s32.totalorder %v13834_v34, %v13068_v7 }
 0x22e   :  { %v3863_v33 = vpop.f32.mrb[12].mxu0  ;;  %v8475_v63 = vadd.f32 %v8474_v32, %v8473_v17  ;;  %18936 = vst [vmem:[#allocation110_spill] sm:$0xff] %v14020_v28  ;;  %v2782_v17 = vadd.f32 %v13830_v2, %v13288_v44  ;;  %v11059_v44 = vld [vmem:[%s18430_s0 + $0x5e0] ss:$24 sps:$4 sm:$0xff]  }
 0x22f   :  { %v10119_v31 = vadd.f32 %v3863_v33, %v2774_v35  ;;  %v3865_v49 = vpop.f32.mrb[13].mxu0 }
 0x230   :  { %v3866_v36 = vpop.f32.mrb[14].mxu0  ;;  %v8477_v32 = vadd.f32 %v8476_v27, %v8475_v63  ;;  %v12027_v63 = vld [vmem:[%s18428_s3 + $0x38] sm:$0xff]  ;;  %v14060_v27 = vpop.permute.xlu1 %7952 }
 0x231   :  { %v8208_v53 = vsel %vm8080_vm14, %v10119_v31, 0.0  ;;  %v10121_v35 = vadd.f32 %v3866_v36, %v2777_v40  ;;  %v3868_v33 = vpop.f32.mrb[15].mxu0  ;;  %v14012_v49 = vsel %vm4352_vm0, %v10119_v31, -1e+30  ;;  %v2785_v36 = vadd.f32 %v13830_v2, %v13296_v4  ;;  %18939 = vst [vmem:[#allocation113_spill] sm:$0xff] %v14060_v27 }
 0x232   :  { %v8335_v45 = vadd.f32 %v8334_v38, %v8208_v53  ;;  %4493 = vmax.xlane.f32.xlu0 %v14012_v49  ;;  %3244 = vmatmul.mubr.bf16.gmra.mrb[248].mxu1 %v11052_v26  ;;  %v12026_v38 = vld [vmem:[%s18428_s3 + $0x30] sm:$0xff]  ;;  %v14042_v53 = vpop.permute.xlu0 %7955  ;;  %vm6408_vm2 = vcmp.gt.s32.totalorder %v12027_v63, 0 }
 0x233   :  { %v8209_v62 = vsel %vm8081_vm15, %v10121_v35, 0.0  ;;  %4078 = vmatmul.mubr.bf16.gmra.mrb[120].mxu0 %v11053_v30  ;;  %v14024_v40 = vsel %vm4352_vm0, %v10121_v35, -1e+30  ;;  %3251 = vmatprep.mubr.bf16.mxu1 %v11054_v41  ;;  %vm6407_vm1 = vcmp.gt.s32.totalorder %v12026_v38, 0  ;;  %v11058_v30 = vld [vmem:[%s18430_s0 + $0xbd0] ss:$24 sps:$4 sm:$0xff]  }
 0x234   :  { %v8336_v26 = vadd.f32 %v8335_v45, %v8209_v62  ;;  %4495 = vmax.xlane.f32.xlu1 %v14024_v40  ;;  %4085 = vmatprep.mubr.bf16.mxu0 %v11056_v18  ;;  %v14038_v41 = vsel %vm6407_vm1, 1.0, %v18929_v54  ;;  %18938 = vst [vmem:[#allocation112_spill] sm:$0xff] %v14042_v53  ;;  %v11062_v18 = vld [vmem:[%s18430_s0 + $0x60c] ss:$24 sps:$4 sm:$0xff]   ;;  %v14070_v37 = vsel %vm6408_vm2, 1.0, %v18929_v54  ;;  %vm8088_vm1 = vcmp.eq.s32.totalorder %v13834_v34, %v13073_v11 }
 0x235   :  { %18937 = vst [vmem:[#allocation111_spill] sm:$0xff] %v14038_v41  ;;  %v8478_v33 = vsel %vm7297_vm7, %v14038_v41, 0.0  ;;  %v11063_v45 = vld [vmem:[%s18430_s0 + $0x614] ss:$24 sps:$4 sm:$0xff]   ;;  %18940 = vst [vmem:[#allocation114_spill] sm:$0xff] %v14070_v37  ;;  %vm8089_vm2 = vcmp.eq.s32.totalorder %v13834_v34, %v13090_v25 }
 0x236   :  { %v3871_v31 = vpop.f32.mrb[16].mxu0  ;;  %v8479_v53 = vadd.f32 %v8478_v33, %v8477_v32  ;;  %v14084_v32 = vpop.permute.xlu0 %7961  ;;  %v14090_v33 = vsel %vm6409_vm5, 1.0, %v18929_v54  ;;  %v12034_v25 = vld [vmem:[%s18428_s3 + $0x70] sm:$0xff]  ;;  %vm8090_vm5 = vcmp.eq.s32.totalorder %v13834_v34, %v13092_v59 }
 0x237   :  { %v10123_v62 = vadd.f32 %v3871_v31, %v2782_v17  ;;  %v3873_v35 = vpop.f32.mrb[17].mxu0  ;;  %18941 = vst [vmem:[#allocation115_spill] sm:$0xff] %v14084_v32  ;;  %18942 = vst [vmem:[#allocation116_spill] sm:$0xff] %v14090_v33 }
 0x238   :  { %v3874_v4 = vpop.f32.mrb[18].mxu0 }
 0x239   :  { %v8210_v38 = vsel %vm8082_vm3, %v10123_v62, 0.0  ;;  %v10125_v17 = vadd.f32 %v3874_v4, %v2785_v36  ;;  %v3876_v31 = vpop.f32.mrb[19].mxu0  ;;  %v14064_v35 = vsel %vm4352_vm0, %v10123_v62, -1e+30  ;;  %v8480_v62 = vsel %vm7297_vm7, %v14070_v37, 0.0 }
 0x23a   :  { %v8337_v63 = vadd.f32 %v8336_v26, %v8210_v38  ;;  %4497 = vmax.xlane.f32.xlu0 %v14064_v35  ;;  %3252 = vmatmul.mubr.bf16.gmra.mrb[252].mxu1 %v11058_v30  ;;  %v2790_v30 = vadd.f32 %v13830_v2, %v13304_v57  ;;  %v8481_v4 = vadd.f32 %v8480_v62, %v8479_v53  ;;  %v14094_v38 = vpop.permute.xlu1 %7958  ;;  %v11065_v57 = vld [vmem:[%s18430_s0 + $0x610] ss:$24 sps:$4 sm:$0xff]   ;;  %v11066_v31 = vld [vmem:[%s18430_s0 + $0x63c] ss:$24 sps:$4 sm:$0xff]   ;;  %vm6415_vm3 = vcmp.gt.s32.totalorder %v12034_v25, 0 }
 0x23b   :  { %v8211_v41 = vsel %vm8083_vm4, %v10125_v17, 0.0  ;;  %4086 = vmatmul.mubr.bf16.gmra.mrb[124].mxu0 %v11059_v44  ;;  %v14074_v36 = vsel %vm4352_vm0, %v10125_v17, -1e+30  ;;  %3548 = vmatprep.mubr.bf16.mxu1 %v11062_v18  ;;  %v11060_v18 = vld [vmem:[%s18430_s0 + $0x608] ss:$24 sps:$4 sm:$0xff]   ;;  %18943 = vst [vmem:[#allocation117_spill] sm:$0xff] %v14094_v38  ;;  %v14122_v38 = vpop.permute.xlu0 %7967 }
 0x23c   :  { %v8338_v26 = vadd.f32 %v8337_v63, %v8211_v41  ;;  %4499 = vmax.xlane.f32.xlu1 %v14074_v36  ;;  %4093 = vmatprep.mubr.bf16.mxu0 %v11063_v45  ;;  %v2793_v41 = vadd.f32 %v13830_v2, %v13306_v61  ;;  %v8482_v63 = vsel %vm7297_vm7, %v14090_v33, 0.0  ;;  %v12029_v53 = vld [vmem:[%s18428_s3 + $0x48] sm:$0xff]  ;;  %v11069_v62 = vld [vmem:[%s18430_s0 + $0x644] ss:$24 sps:$4 sm:$0xff]   ;;  %18945 = vst [vmem:[#allocation119_spill] sm:$0xff] %v14122_v38 }
 0x23d   :  { %vm6410_vm6 = vcmp.gt.s32.totalorder %v12029_v53, 0  ;;  %v8483_v53 = vadd.f32 %v8482_v63, %v8481_v4  ;;  %v2798_v4 = vadd.f32 %v13830_v2, %v13317_v6  ;;  %v11071_v6 = vld [vmem:[%s18430_s0 + $0x640] ss:$24 sps:$4 sm:$0xff]  }
 0x23e   :  { %v3879_v44 = vpop.f32.mrb[20].mxu0  ;;  %v14120_v50 = vsel %vm6410_vm6, 1.0, %v18929_v54  ;;  %vm8091_vm6 = vcmp.eq.s32.totalorder %v13834_v34, %v13109_v24 }
 0x23f   :  { %v10127_v45 = vadd.f32 %v3879_v44, %v2790_v30  ;;  %v3881_v17 = vpop.f32.mrb[21].mxu0  ;;  %18944 = vst [vmem:[#allocation118_spill] sm:$0xff] %v14120_v50  ;;  %v8484_v29 = vsel %vm7297_vm7, %v14120_v50, 0.0 }
 0x240   :  { %v3882_v61 = vpop.f32.mrb[22].mxu0 }
 0x241   :  { %v8212_v48 = vsel %vm8084_vm8, %v10127_v45, 0.0  ;;  %v10129_v30 = vadd.f32 %v3882_v61, %v2793_v41  ;;  %v3884_v44 = vpop.f32.mrb[23].mxu0  ;;  %v14114_v17 = vsel %vm4352_vm0, %v10127_v45, -1e+30  ;;  %v14136_v45 = vpop.permute.xlu1 %7964  ;;  %v8485_v61 = vadd.f32 %v8484_v29, %v8483_v53  ;;  %v11075_v53 = vld [vmem:[%s18430_s0 + $0x674] ss:$24 sps:$4 sm:$0xff]  }
 0x242   :  { %v8339_v32 = vadd.f32 %v8338_v26, %v8212_v48  ;;  %4501 = vmax.xlane.f32.xlu0 %v14114_v17  ;;  %3549 = vmatmul.mubr.bf16.vlgmr.msra.gmra.mrb[128].mxu1 %v11060_v18  ;;  %v12030_v26 = vld [vmem:[%s18428_s3 + $0x50] sm:$0xff]  ;;  %18946 = vst [vmem:[#allocation120_spill] sm:$0xff] %v14136_v45  ;;  %v14162_v29 = vpop.permute.xlu0 %7973 }
 0x243   :  { %v8213_v33 = vsel %vm8085_vm9, %v10129_v30, 0.0  ;;  %v14126_v41 = vsel %vm4352_vm0, %v10129_v30, -1e+30  ;;  %4094 = vmatmul.mubr.bf16.gmra.mrb[128].mxu0 %v11065_v57  ;;  %3556 = vmatprep.mubr.bf16.mxu1 %v11066_v31  ;;  %vm6411_vm10 = vcmp.gt.s32.totalorder %v12030_v26, 0  ;;  %v11068_v57 = vld [vmem:[%s18430_s0 + $0x638] ss:$24 sps:$4 sm:$0xff]  }
 0x244   :  { %v8340_v18 = vadd.f32 %v8339_v32, %v8213_v33  ;;  %4503 = vmax.xlane.f32.xlu1 %v14126_v41  ;;  %4101 = vmatprep.mubr.bf16.mxu0 %v11069_v62  ;;  %v14142_v31 = vsel %vm6411_vm10, 1.0, %v18929_v54  ;;  %v2801_v32 = vadd.f32 %v13830_v2, %v13322_v14  ;;  %v11072_v62 = vld [vmem:[%s18430_s0 + $0x66c] ss:$24 sps:$4 sm:$0xff]   ;;  %v12031_v30 = vld [vmem:[%s18428_s3 + $0x58] sm:$0xff]  ;;  %18948 = vst [vmem:[#allocation122_spill] sm:$0xff] %v14162_v29 }
 0x245   :  { %18947 = vst [vmem:[#allocation121_spill] sm:$0xff] %v14142_v31  ;;  %vm6412_vm11 = vcmp.gt.s32.totalorder %v12031_v30, 0  ;;  %v8486_v44 = vsel %vm7297_vm7, %v14142_v31, 0.0  ;;  %v14174_v31 = vpop.permute.xlu1 %7970  ;;  %vm8092_vm10 = vcmp.eq.s32.totalorder %v13834_v34, %v13117_v42 }
 0x246   :  { %v3887_v63 = vpop.f32.mrb[24].mxu0  ;;  %v14172_v8 = vsel %vm6412_vm11, 1.0, %v18929_v54  ;;  %v8487_v38 = vadd.f32 %v8486_v44, %v8485_v61  ;;  %18950 = vst [vmem:[#allocation124_spill] sm:$0xff] %v14174_v31  ;;  %v2806_v61 = vadd.f32 %v13830_v2, %v13333_v20  ;;  %v11077_v20 = vld [vmem:[%s18430_s0 + $0x670] ss:$24 sps:$4 sm:$0xff]   ;;  %vm8093_vm11 = vcmp.eq.s32.totalorder %v13834_v34, %v13134_v21 }
 0x247   :  { %v10131_v33 = vadd.f32 %v3887_v63, %v2798_v4  ;;  %v3889_v48 = vpop.f32.mrb[25].mxu0  ;;  %18949 = vst [vmem:[#allocation123_spill] sm:$0xff] %v14172_v8  ;;  %v8488_v7 = vsel %vm7297_vm7, %v14172_v8, 0.0 }
 0x248   :  { %v3890_v14 = vpop.f32.mrb[26].mxu0 }
 0x249   :  { %v8214_v26 = vsel %vm8086_vm12, %v10131_v33, 0.0  ;;  %v10133_v4 = vadd.f32 %v3890_v14, %v2801_v32  ;;  %v3892_v63 = vpop.f32.mrb[27].mxu0  ;;  %v14166_v48 = vsel %vm4352_vm0, %v10131_v33, -1e+30  ;;  %v2809_v14 = vadd.f32 %v13830_v2, %v13338_v39 }
 0x24a   :  { %v8341_v30 = vadd.f32 %v8340_v18, %v8214_v26  ;;  %4505 = vmax.xlane.f32.xlu0 %v14166_v48  ;;  %3557 = vmatmul.mubr.bf16.gmra.mrb[132].mxu1 %v11068_v57  ;;  %v12032_v18 = vld [vmem:[%s18428_s3 + $0x60] sm:$0xff]  ;;  %v14196_v26 = vpop.permute.xlu0 %7979 }
 0x24b   :  { %v8215_v29 = vsel %vm8087_vm13, %v10133_v4, 0.0  ;;  %v14178_v32 = vsel %vm4352_vm0, %v10133_v4, -1e+30  ;;  %4102 = vmatmul.mubr.bf16.gmra.mrb[132].mxu0 %v11071_v6  ;;  %3564 = vmatprep.mubr.bf16.mxu1 %v11072_v62  ;;  %vm6413_vm14 = vcmp.gt.s32.totalorder %v12032_v18, 0  ;;  %v11074_v6 = vld [vmem:[%s18430_s0 + $0x668] ss:$24 sps:$4 sm:$0xff]   ;;  %v8489_v62 = vadd.f32 %v8488_v7, %v8487_v38  ;;  %v14214_v7 = vpop.permute.xlu1 %7976 }
 0x24c   :  { %v8342_v57 = vadd.f32 %v8341_v30, %v8215_v29  ;;  %4507 = vmax.xlane.f32.xlu1 %v14178_v32  ;;  %4109 = vmatprep.mubr.bf16.mxu0 %v11075_v53  ;;  %v14192_v44 = vsel %vm6413_vm14, 1.0, %v18929_v54  ;;  %18952 = vst [vmem:[#allocation126_spill] sm:$0xff] %v14196_v26  ;;  %v11078_v53 = vld [vmem:[%s18430_s0 + $0x69c] ss:$24 sps:$4 sm:$0xff]   ;;  %v12033_v38 = vld [vmem:[%s18428_s3 + $0x68] sm:$0xff]  ;;  %18953 = vst [vmem:[#allocation127_spill] sm:$0xff] %v14214_v7  ;;  %vm8094_vm14 = vcmp.eq.s32.totalorder %v13834_v34, %v13136_v52 }
 0x24d   :  { %18951 = vst [vmem:[#allocation125_spill] sm:$0xff] %v14192_v44  ;;  %vm6414_vm15 = vcmp.gt.s32.totalorder %v12033_v38, 0  ;;  %v8490_v39 = vsel %vm7297_vm7, %v14192_v44, 0.0  ;;  %v11081_v30 = vld [vmem:[%s18430_s0 + $0x6a4] ss:$24 sps:$4 sm:$0xff]  }
 0x24e   :  { %v3895_v33 = vpop.f32.mrb[28].mxu0  ;;  %v14224_v11 = vsel %vm6414_vm15, 1.0, %v18929_v54  ;;  %v8491_v26 = vadd.f32 %v8490_v39, %v8489_v62  ;;  %v14238_v62 = vpop.permute.xlu0 %7985  ;;  %vm8095_vm15 = vcmp.eq.s32.totalorder %v13834_v34, %v13156_v1  ;;  %v12040_v1 = vld [vmem:[%s18428_s3 + $0xa0] sm:$0xff] }
 0x24f   :  { %v10135_v29 = vadd.f32 %v3895_v33, %v2806_v61  ;;  %v3897_v4 = vpop.f32.mrb[29].mxu0  ;;  %18954 = vst [vmem:[#allocation128_spill] sm:$0xff] %v14224_v11  ;;  %18955 = vst [vmem:[#allocation129_spill] sm:$0xff] %v14238_v62 }
 0x250   :  { %v3898_v63 = vpop.f32.mrb[30].mxu0 }
 0x251   :  { %v8216_v18 = vsel %vm8088_vm1, %v10135_v29, 0.0  ;;  %v10137_v61 = vadd.f32 %v3898_v63, %v2809_v14  ;;  %v3900_v33 = vpop.f32.mrb[31].mxu0  ;;  %v14218_v4 = vsel %vm4352_vm0, %v10135_v29, -1e+30  ;;  %v8492_v29 = vsel %vm7297_vm7, %v14224_v11, 0.0 }
 0x252   :  { %v8343_v38 = vadd.f32 %v8342_v57, %v8216_v18  ;;  %4509 = vmax.xlane.f32.xlu0 %v14218_v4  ;;  %3565 = vmatmul.mubr.bf16.gmra.mrb[136].mxu1 %v11074_v6  ;;  %v2814_v6 = vadd.f32 %v13830_v2, %v13349_v51  ;;  %v14244_v63 = vsel %vm6415_vm3, 1.0, %v18929_v54  ;;  %v14246_v18 = vpop.permute.xlu1 %7982  ;;  %v11083_v51 = vld [vmem:[%s18430_s0 + $0x6a0] ss:$24 sps:$4 sm:$0xff]   ;;  %v11084_v33 = vld [vmem:[%s18430_s0 + $0x6cc] ss:$24 sps:$4 sm:$0xff]   ;;  %vm6421_vm1 = vcmp.gt.s32.totalorder %v12040_v1, 0 }
 0x253   :  { %v8217_v44 = vsel %vm8089_vm2, %v10137_v61, 0.0  ;;  %v14228_v14 = vsel %vm4352_vm0, %v10137_v61, -1e+30  ;;  %4110 = vmatmul.mubr.bf16.gmra.mrb[136].mxu0 %v11077_v20  ;;  %3572 = vmatprep.mubr.bf16.mxu1 %v11078_v53  ;;  %v11080_v20 = vld [vmem:[%s18430_s0 + $0x698] ss:$24 sps:$4 sm:$0xff]   ;;  %v8493_v53 = vadd.f32 %v8492_v29, %v8491_v26  ;;  %18956 = vst [vmem:[#allocation130_spill] sm:$0xff] %v14244_v63  ;;  %vm8096_vm3 = vcmp.eq.s32.totalorder %v13834_v34, %v13161_v3 }
 0x254   :  { %v8344_v57 = vadd.f32 %v8343_v38, %v8217_v44  ;;  %4511 = vmax.xlane.f32.xlu1 %v14228_v14  ;;  %4117 = vmatprep.mubr.bf16.mxu0 %v11081_v30  ;;  %18957 = vst [vmem:[#allocation131_spill] sm:$0xff] %v14246_v18  ;;  %v2817_v44 = vadd.f32 %v13830_v2, %v13354_v58  ;;  %v12035_v26 = vld [vmem:[%s18428_s3 + $0x78] sm:$0xff]  ;;  %v8494_v38 = vsel %vm7297_vm7, %v14244_v63, 0.0  ;;  %v11087_v29 = vld [vmem:[%s18430_s0 + $0x6d4] ss:$24 sps:$4 sm:$0xff]   ;;  %v14276_v18 = vpop.permute.xlu0 %7991 }
 0x255   :  { %vm6416_vm4 = vcmp.gt.s32.totalorder %v12035_v26, 0  ;;  %v8495_v62 = vadd.f32 %v8494_v38, %v8493_v53  ;;  %18959 = vst [vmem:[#allocation133_spill] sm:$0xff] %v14276_v18 }
 0x256   :  { %v3903_v39 = vpop.f32.mrb[32].mxu0  ;;  %v14274_v59 = vsel %vm6416_vm4, 1.0, %v18929_v54  ;;  %v14288_v53 = vpop.permute.xlu1 %7988  ;;  %vm8097_vm4 = vcmp.eq.s32.totalorder %v13834_v34, %v13178_v15 }
 0x257   :  { %v10139_v30 = vadd.f32 %v3903_v39, %v2814_v6  ;;  %v3905_v61 = vpop.f32.mrb[33].mxu0  ;;  %18958 = vst [vmem:[#allocation132_spill] sm:$0xff] %v14274_v59  ;;  %v8496_v24 = vsel %vm7297_vm7, %v14274_v59, 0.0  ;;  %18960 = vst [vmem:[#allocation134_spill] sm:$0xff] %v14288_v53 }
 0x258   :  { %v3906_v58 = vpop.f32.mrb[34].mxu0 }
 0x259   :  { %v8218_v25 = vsel %vm8090_vm5, %v10139_v30, 0.0  ;;  %v10141_v6 = vadd.f32 %v3906_v58, %v2817_v44  ;;  %v3908_v39 = vpop.f32.mrb[35].mxu0  ;;  %v14268_v61 = vsel %vm4352_vm0, %v10139_v30, -1e+30  ;;  %v2822_v30 = vadd.f32 %v13830_v2, %v13365_v16  ;;  %v11090_v16 = vld [vmem:[%s18430_s0 + $0x6fc] ss:$24 sps:$4 sm:$0xff]  }
 0x25a   :  { %v8345_v26 = vadd.f32 %v8344_v57, %v8218_v25  ;;  %4513 = vmax.xlane.f32.xlu0 %v14268_v61  ;;  %3573 = vmatmul.mubr.bf16.gmra.mrb[140].mxu1 %v11080_v20  ;;  %v12036_v57 = vld [vmem:[%s18428_s3 + $0x80] sm:$0xff]  ;;  %v14328_v53 = vpop.permute.xlu1 %7994 }
 0x25b   :  { %v8219_v63 = vsel %vm8091_vm6, %v10141_v6, 0.0  ;;  %v14280_v44 = vsel %vm4352_vm0, %v10141_v6, -1e+30  ;;  %4118 = vmatmul.mubr.bf16.gmra.mrb[140].mxu0 %v11083_v51  ;;  %3580 = vmatprep.mubr.bf16.mxu1 %v11084_v33  ;;  %vm6417_vm8 = vcmp.gt.s32.totalorder %v12036_v57, 0  ;;  %v11086_v51 = vld [vmem:[%s18430_s0 + $0x6c8] ss:$24 sps:$4 sm:$0xff]   ;;  %v8497_v33 = vadd.f32 %v8496_v24, %v8495_v62  ;;  %v14316_v24 = vpop.permute.xlu0 %7997 }
 0x25c   :  { %v8346_v20 = vadd.f32 %v8345_v26, %v8219_v63  ;;  %4515 = vmax.xlane.f32.xlu1 %v14280_v44  ;;  %4125 = vmatprep.mubr.bf16.mxu0 %v11087_v29  ;;  %v14296_v58 = vsel %vm6417_vm8, 1.0, %v18929_v54  ;;  %v2825_v63 = vadd.f32 %v13830_v2, %v13370_v23  ;;  %v11089_v29 = vld [vmem:[%s18430_s0 + $0x6d0] ss:$24 sps:$4 sm:$0xff]   ;;  %v11093_v26 = vld [vmem:[%s18430_s0 + $0x704] ss:$24 sps:$4 sm:$0xff]   ;;  %18962 = vst [vmem:[#allocation136_spill] sm:$0xff] %v14316_v24 }
 0x25d   :  { %18961 = vst [vmem:[#allocation135_spill] sm:$0xff] %v14296_v58  ;;  %v12037_v62 = vld [vmem:[%s18428_s3 + $0x88] sm:$0xff]  ;;  %v8498_v39 = vsel %vm7297_vm7, %v14296_v58, 0.0  ;;  %18964 = vst [vmem:[#allocation138_spill] sm:$0xff] %v14328_v53 }
 0x25e   :  { %v3911_v38 = vpop.f32.mrb[36].mxu0  ;;  %vm6418_vm9 = vcmp.gt.s32.totalorder %v12037_v62, 0  ;;  %v8499_v18 = vadd.f32 %v8498_v39, %v8497_v33  ;;  %v2830_v33 = vadd.f32 %v13830_v2, %v13381_v0  ;;  %v11095_v0 = vld [vmem:[%s18430_s0 + $0x700] ss:$24 sps:$4 sm:$0xff]  }
 0x25f   :  { %v10143_v25 = vadd.f32 %v3911_v38, %v2822_v30  ;;  %v3913_v6 = vpop.f32.mrb[37].mxu0  ;;  %v14326_v42 = vsel %vm6418_vm9, 1.0, %v18929_v54 }
 0x260   :  { %v3914_v23 = vpop.f32.mrb[38].mxu0  ;;  %18963 = vst [vmem:[#allocation137_spill] sm:$0xff] %v14326_v42  ;;  %v8500_v21 = vsel %vm7297_vm7, %v14326_v42, 0.0 }
 0x261   :  { %v8220_v57 = vsel %vm8092_vm10, %v10143_v25, 0.0  ;;  %v10145_v30 = vadd.f32 %v3914_v23, %v2825_v63  ;;  %v3916_v38 = vpop.f32.mrb[39].mxu0  ;;  %v14320_v6 = vsel %vm4352_vm0, %v10143_v25, -1e+30  ;;  %v2833_v23 = vadd.f32 %v13830_v2, %v13386_v46 }
 0x262   :  { %v8347_v62 = vadd.f32 %v8346_v20, %v8220_v57  ;;  %4517 = vmax.xlane.f32.xlu0 %v14320_v6  ;;  %3581 = vmatmul.mubr.bf16.gmra.mrb[144].mxu1 %v11086_v51  ;;  %v12038_v20 = vld [vmem:[%s18428_s3 + $0x90] sm:$0xff]  ;;  %v14350_v57 = vpop.permute.xlu0 %8003 }
 0x263   :  { %v8221_v24 = vsel %vm8093_vm11, %v10145_v30, 0.0  ;;  %v14332_v63 = vsel %vm4352_vm0, %v10145_v30, -1e+30  ;;  %4126 = vmatmul.mubr.bf16.gmra.mrb[144].mxu0 %v11089_v29  ;;  %3588 = vmatprep.mubr.bf16.mxu1 %v11090_v16  ;;  %vm6419_vm12 = vcmp.gt.s32.totalorder %v12038_v20, 0  ;;  %v11092_v29 = vld [vmem:[%s18430_s0 + $0x6f8] ss:$24 sps:$4 sm:$0xff]   ;;  %v8501_v16 = vadd.f32 %v8500_v21, %v8499_v18  ;;  %v14368_v21 = vpop.permute.xlu1 %8000 }
 0x264   :  { %v8348_v51 = vadd.f32 %v8347_v62, %v8221_v24  ;;  %4519 = vmax.xlane.f32.xlu1 %v14332_v63  ;;  %4133 = vmatprep.mubr.bf16.mxu0 %v11093_v26  ;;  %v14346_v39 = vsel %vm6419_vm12, 1.0, %v18929_v54  ;;  %18966 = vst [vmem:[#allocation140_spill] sm:$0xff] %v14350_v57  ;;  %v11096_v26 = vld [vmem:[%s18430_s0 + $0x72c] ss:$24 sps:$4 sm:$0xff]   ;;  %v12039_v18 = vld [vmem:[%s18428_s3 + $0x98] sm:$0xff]  ;;  %18967 = vst [vmem:[#allocation141_spill] sm:$0xff] %v14368_v21 }
 0x265   :  { %18965 = vst [vmem:[#allocation139_spill] sm:$0xff] %v14346_v39  ;;  %vm6420_vm13 = vcmp.gt.s32.totalorder %v12039_v18, 0  ;;  %v8502_v46 = vsel %vm7297_vm7, %v14346_v39, 0.0  ;;  %v11099_v62 = vld [vmem:[%s18430_s0 + $0x734] ss:$24 sps:$4 sm:$0xff]  }
 0x266   :  { %v3919_v25 = vpop.f32.mrb[40].mxu0  ;;  %v14378_v52 = vsel %vm6420_vm13, 1.0, %v18929_v54  ;;  %v8503_v57 = vadd.f32 %v8502_v46, %v8501_v16  ;;  %v14392_v16 = vpop.permute.xlu0 %8009 }
 0x267   :  { %v10147_v24 = vadd.f32 %v3919_v25, %v2830_v33  ;;  %v3921_v30 = vpop.f32.mrb[41].mxu0  ;;  %18968 = vst [vmem:[#allocation142_spill] sm:$0xff] %v14378_v52  ;;  %18969 = vst [vmem:[#allocation143_spill] sm:$0xff] %v14392_v16 }
 0x268   :  { %v3922_v38 = vpop.f32.mrb[42].mxu0 }
 0x269   :  { %v8222_v20 = vsel %vm8094_vm14, %v10147_v24, 0.0  ;;  %v10149_v33 = vadd.f32 %v3922_v38, %v2833_v23  ;;  %v3924_v25 = vpop.f32.mrb[43].mxu0  ;;  %v14372_v30 = vsel %vm4352_vm0, %v10147_v24, -1e+30  ;;  %v8504_v24 = vsel %vm7297_vm7, %v14378_v52, 0.0  ;;  %v18995_v52 = vld [vmem:[#allocation12_spill] sm:$0xff] }
 0x26a   :  { %v8349_v18 = vadd.f32 %v8348_v51, %v8222_v20  ;;  %4521 = vmax.xlane.f32.xlu0 %v14372_v30  ;;  %3589 = vmatmul.mubr.bf16.gmra.mrb[148].mxu1 %v11092_v29  ;;  %v2838_v29 = vadd.f32 %v13830_v2, %v13397_v5  ;;  %v14398_v38 = vsel %vm6421_vm1, 1.0, %v18929_v54  ;;  %v14400_v20 = vpop.permute.xlu1 %8006  ;;  %v11101_v5 = vld [vmem:[%s18430_s0 + $0x730] ss:$24 sps:$4 sm:$0xff]   ;;  %v11102_v25 = vld [vmem:[%s18430_s0 + $0x75c] ss:$24 sps:$4 sm:$0xff]  }
 0x26b   :  { %v8223_v53 = vsel %vm8095_vm15, %v10149_v33, 0.0  ;;  %v14382_v23 = vsel %vm4352_vm0, %v10149_v33, -1e+30  ;;  %4134 = vmatmul.mubr.bf16.gmra.mrb[148].mxu0 %v11095_v0  ;;  %3596 = vmatprep.mubr.bf16.mxu1 %v11096_v26  ;;  %v11098_v0 = vld [vmem:[%s18430_s0 + $0x728] ss:$24 sps:$4 sm:$0xff]   ;;  %v8505_v26 = vadd.f32 %v8504_v24, %v8503_v57  ;;  %18970 = vst [vmem:[#allocation144_spill] sm:$0xff] %v14398_v38 }
 0x26c   :  { %v8350_v51 = vadd.f32 %v8349_v18, %v8223_v53  ;;  %4523 = vmax.xlane.f32.xlu1 %v14382_v23  ;;  %4141 = vmatprep.mubr.bf16.mxu0 %v11099_v62  ;;  %18971 = vst [vmem:[#allocation145_spill] sm:$0xff] %v14400_v20  ;;  %v2841_v53 = vadd.f32 %v13830_v2, %v13402_v19  ;;  %v12041_v57 = vld [vmem:[%s18428_s3 + $0xa8] sm:$0xff]  ;;  %v8506_v18 = vsel %vm7297_vm7, %v14398_v38, 0.0  ;;  %v11105_v24 = vld [vmem:[%s18430_s0 + $0x764] ss:$24 sps:$4 sm:$0xff]   ;;  %v14430_v20 = vpop.permute.xlu0 %8015 }
 0x26d   :  { %vm6422_vm2 = vcmp.gt.s32.totalorder %v12041_v57, 0  ;;  %v8507_v16 = vadd.f32 %v8506_v18, %v8505_v26  ;;  %18973 = vst [vmem:[#allocation147_spill] sm:$0xff] %v14430_v20 }
 0x26e   :  { %v3927_v46 = vpop.f32.mrb[44].mxu0  ;;  %v14428_v3 = vsel %vm6422_vm2, 1.0, %v18929_v54  ;;  %v14442_v26 = vpop.permute.xlu1 %8012  ;;  %vm8103_vm2 = vcmp.eq.s32.totalorder %v13834_v34, %v18995_v52 }
 0x26f   :  { %v10151_v62 = vadd.f32 %v3927_v46, %v2838_v29  ;;  %v3929_v33 = vpop.f32.mrb[45].mxu0  ;;  %18972 = vst [vmem:[#allocation146_spill] sm:$0xff] %v14428_v3  ;;  %v8508_v15 = vsel %vm7297_vm7, %v14428_v3, 0.0  ;;  %18974 = vst [vmem:[#allocation148_spill] sm:$0xff] %v14442_v26 }
 0x270   :  { %v3930_v19 = vpop.f32.mrb[46].mxu0 }
 0x271   :  { %v8224_v1 = vsel %vm8096_vm3, %v10151_v62, 0.0  ;;  %v10153_v29 = vadd.f32 %v3930_v19, %v2841_v53  ;;  %v3932_v46 = vpop.f32.mrb[47].mxu0  ;;  %v14422_v33 = vsel %vm4352_vm0, %v10151_v62, -1e+30  ;;  %v2846_v62 = vadd.f32 %v13830_v2, %v13413_v13  ;;  %v11108_v13 = vld [vmem:[%s18430_s0 + $0x78c] ss:$24 sps:$4 sm:$0xff]  }
 0x272   :  { %v8351_v57 = vadd.f32 %v8350_v51, %v8224_v1  ;;  %4525 = vmax.xlane.f32.xlu0 %v14422_v33  ;;  %3597 = vmatmul.mubr.bf16.gmra.mrb[152].mxu1 %v11098_v0  ;;  %v12042_v51 = vld [vmem:[%s18428_s3 + $0xb0] sm:$0xff]  ;;  %v14482_v3 = vpop.permute.xlu1 %8018 }
 0x273   :  { %v8225_v21 = vsel %vm8097_vm4, %v10153_v29, 0.0  ;;  %v14434_v53 = vsel %vm4352_vm0, %v10153_v29, -1e+30  ;;  %4142 = vmatmul.mubr.bf16.gmra.mrb[152].mxu0 %v11101_v5  ;;  %3604 = vmatprep.mubr.bf16.mxu1 %v11102_v25  ;;  %vm6423_vm5 = vcmp.gt.s32.totalorder %v12042_v51, 0  ;;  %v11104_v5 = vld [vmem:[%s18430_s0 + $0x758] ss:$24 sps:$4 sm:$0xff]   ;;  %v8509_v25 = vadd.f32 %v8508_v15, %v8507_v16  ;;  %v14470_v51 = vpop.permute.xlu0 %8021 }
 0x274   :  { %v8352_v0 = vadd.f32 %v8351_v57, %v8225_v21  ;;  %4527 = vmax.xlane.f32.xlu1 %v14434_v53  ;;  %4149 = vmatprep.mubr.bf16.mxu0 %v11105_v24  ;;  %v14450_v19 = vsel %vm6423_vm5, 1.0, %v18929_v54  ;;  %v2849_v21 = vadd.f32 %v13830_v2, %v13418_v56  ;;  %v11107_v24 = vld [vmem:[%s18430_s0 + $0x760] ss:$24 sps:$4 sm:$0xff]   ;;  %v11111_v15 = vld [vmem:[%s18430_s0 + $0x794] ss:$24 sps:$4 sm:$0xff]   ;;  %18980 = vst [vmem:[#allocation150_spill] sm:$0xff] %v14482_v3 }
 0x275   :  { %18975 = vst [vmem:[#allocation149_spill] sm:$0xff] %v14450_v19  ;;  %v12043_v16 = vld [vmem:[%s18428_s3 + $0xb8] sm:$0xff]  ;;  %v8510_v46 = vsel %vm7297_vm7, %v14450_v19, 0.0  ;;  %v18976_v57 = vld [vmem:[#allocation2_spill] sm:$0xff] }
 0x276   :  { %v3935_v18 = vpop.f32.mrb[48].mxu0  ;;  %vm6424_vm6 = vcmp.gt.s32.totalorder %v12043_v16, 0  ;;  %vm8098_vm8 = vcmp.eq.s32.totalorder %v13834_v34, %v18976_v57  ;;  %18977 = vst [vmem:[#allocation2_spill] sm:$0xff] %v14470_v51  ;;  %v18978_v16 = vld [vmem:[#allocation3_spill] sm:$0xff]  ;;  %v8511_v19 = vadd.f32 %v8510_v46, %v8509_v25  ;;  %v18981_v25 = vld [vmem:[#allocation6_spill] sm:$0xff] }
 0x277   :  { %v10155_v1 = vadd.f32 %v3935_v18, %v2846_v62  ;;  %v3937_v29 = vpop.f32.mrb[49].mxu0  ;;  %vm8099_vm9 = vcmp.eq.s32.totalorder %v13834_v34, %v18978_v16  ;;  %v14480_v57 = vsel %vm6424_vm6, 1.0, %v18929_v54  ;;  %v2854_v46 = vadd.f32 %v13830_v2, %v18981_v25  ;;  %v18985_v25 = vld [vmem:[#allocation4_spill] sm:$0xff] }
 0x278   :  { %v3938_v56 = vpop.f32.mrb[50].mxu0  ;;  %18979 = vst [vmem:[#allocation3_spill] sm:$0xff] %v14480_v57  ;;  %vm8100_vm12 = vcmp.eq.s32.totalorder %v13834_v34, %v18985_v25 }
 0x279   :  { %v8226_v62 = vsel %vm8098_vm8, %v10155_v1, 0.0  ;;  %v10157_v18 = vadd.f32 %v3938_v56, %v2849_v21  ;;  %v3940_v29 = vpop.f32.mrb[51].mxu0  ;;  %v14474_v20 = vsel %vm4352_vm0, %v10155_v1, -1e+30  ;;  %v8512_v1 = vsel %vm7297_vm7, %v14480_v57, 0.0 }
 0x27a   :  { %v8353_v26 = vadd.f32 %v8352_v0, %v8226_v62  ;;  %4529 = vmax.xlane.f32.xlu0 %v14474_v20  ;;  %3605 = vmatmul.mubr.bf16.gmra.mrb[156].mxu1 %v11104_v5  ;;  %v12044_v0 = vld [vmem:[%s18428_s3 + $0xc0] sm:$0xff]  ;;  %v18984_v29 = vld [vmem:[#allocation7_spill] sm:$0xff] }
 0x27b   :  { %v8227_v51 = vsel %vm8099_vm9, %v10157_v18, 0.0  ;;  %v14486_v21 = vsel %vm4352_vm0, %v10157_v18, -1e+30  ;;  %4150 = vmatmul.mubr.bf16.gmra.mrb[156].mxu0 %v11107_v24  ;;  %3612 = vmatprep.mubr.bf16.mxu1 %v11108_v13  ;;  %vm6425_vm10 = vcmp.gt.s32.totalorder %v12044_v0, 0  ;;  %v11110_v24 = vld [vmem:[%s18430_s0 + $0x788] ss:$24 sps:$4 sm:$0xff]   ;;  %v8513_v13 = vadd.f32 %v8512_v1, %v8511_v19  ;;  %v14502_v18 = vpop.permute.xlu0 %8027 }
 0x27c   :  { %v8354_v5 = vadd.f32 %v8353_v26, %v8227_v51  ;;  %4531 = vmax.xlane.f32.xlu1 %v14486_v21  ;;  %4157 = vmatprep.mubr.bf16.mxu0 %v11111_v15  ;;  %v14500_v62 = vsel %vm6425_vm10, 1.0, %v18929_v54  ;;  %18983 = vst [vmem:[#allocation151_spill] sm:$0xff] %v14502_v18  ;;  %v2857_v26 = vadd.f32 %v13830_v2, %v18984_v29  ;;  %v11113_v15 = vld [vmem:[%s18430_s0 + $0x790] ss:$24 sps:$4 sm:$0xff]   ;;  %v11114_v0 = vld [vmem:[%s18430_s0 + $0x7bc] ss:$24 sps:$4 sm:$0xff]  }
 0x27d   :  { %18982 = vst [vmem:[#allocation6_spill] sm:$0xff] %v14500_v62  ;;  %v12045_v19 = vld [vmem:[%s18428_s3 + $0xc8] sm:$0xff]  ;;  %v8514_v1 = vsel %vm7297_vm7, %v14500_v62, 0.0 }
 0x27e   :  { %v3943_v56 = vpop.f32.mrb[52].mxu0  ;;  %vm6426_vm11 = vcmp.gt.s32.totalorder %v12045_v19, 0  ;;  %v18987_v19 = vld [vmem:[#allocation5_spill] sm:$0xff]  ;;  %v8515_v57 = vadd.f32 %v8514_v1, %v8513_v13 }
 0x27f   :  { %v10159_v51 = vadd.f32 %v3943_v56, %v2854_v46  ;;  %v3945_v16 = vpop.f32.mrb[53].mxu0  ;;  %v11117_v46 = vld [vmem:[%s18430_s0 + $0x7c4] ss:$24 sps:$4 sm:$0xff]   ;;  %v14522_v56 = vpop.permute.xlu1 %8024  ;;  %vm8101_vm13 = vcmp.eq.s32.totalorder %v13834_v34, %v18987_v19  ;;  %v14532_v25 = vsel %vm6426_vm11, 1.0, %v18929_v54 }
 0x280   :  { %v3946_v2 = vpop.f32.mrb[54].mxu0  ;;  %18986 = vst [vmem:[#allocation7_spill] sm:$0xff] %v14522_v56  ;;  %18988 = vst [vmem:[#allocation4_spill] sm:$0xff] %v14532_v25  ;;  %v14544_v13 = vpop.permute.xlu0 %8033 }
 0x281   :  { %v8228_v29 = vsel %vm8100_vm12, %v10159_v51, 0.0  ;;  %v10161_v16 = vadd.f32 %v3946_v2, %v2857_v26  ;;  %v3948_v18 = vpop.f32.mrb[55].mxu0  ;;  %v14526_v3 = vsel %vm4352_vm0, %v10159_v51, -1e+30  ;;  %18989 = vst [vmem:[#allocation5_spill] sm:$0xff] %v14544_v13 }
 0x282   :  { %v8355_v62 = vadd.f32 %v8354_v5, %v8228_v29  ;;  %4533 = vmax.xlane.f32.xlu0 %v14526_v3  ;;  %3613 = vmatmul.mubr.bf16.gmra.mrb[160].mxu1 %v11110_v24  ;;  %v8516_v18 = vsel %vm7297_vm7, %v14532_v25, 0.0  ;;  %v12046_v5 = vld [vmem:[%s18428_s3 + $0xd0] sm:$0xff]  ;;  %v14549_v51 = vld [vmem:[%s18431_s2] ss:$0 sm:$0xff]  ;;  %v11120_v13 = vld [vmem:[%s18430_s0 + $0x7ec] ss:$24 sps:$4 sm:$0xff]  }
 0x283   :  { %v8229_v38 = vsel %vm8101_vm13, %v10161_v16, 0.0  ;;  %v14536_v26 = vsel %vm4352_vm0, %v10161_v16, -1e+30  ;;  %4158 = vmatmul.mubr.bf16.gmra.mrb[160].mxu0 %v11113_v15  ;;  %3620 = vmatprep.mubr.bf16.mxu1 %v11114_v0  ;;  %vm6427_vm14 = vcmp.gt.s32.totalorder %v12046_v5, 0  ;;  %v18990_v15 = vld [vmem:[#allocation9_spill] sm:$0xff]  ;;  %v8517_v29 = vadd.f32 %v8516_v18, %v8515_v57 }
 0x284   :  { %v8356_v24 = vadd.f32 %v8355_v62, %v8229_v38  ;;  %4535 = vmax.xlane.f32.xlu1 %v14536_v26  ;;  %4165 = vmatprep.mubr.bf16.mxu0 %v11117_v46  ;;  %v2862_v0 = vadd.f32 %v14549_v51, %v18990_v15  ;;  %v11116_v2 = vld [vmem:[%s18430_s0 + $0x7b8] ss:$24 sps:$4 sm:$0xff]   ;;  %v14557_v38 = vsel %vm6427_vm14, 1.0, %v18929_v54  ;;  %v14559_v62 = vpop.permute.xlu1 %8030  ;;  %v18993_v46 = vld [vmem:[#allocation10_spill] sm:$0xff]  ;;  %v14589_v39 = vpop.permute.xlu0 %8039 }
 0x285   :  { %18991 = vst [vmem:[#allocation9_spill] sm:$0xff] %v14557_v38  ;;  %18992 = vst [vmem:[#allocation152_spill] sm:$0xff] %v14559_v62  ;;  %v2865_v16 = vadd.f32 %v14549_v51, %v18993_v46  ;;  %v11119_v15 = vld [vmem:[%s18430_s0 + $0x7c0] ss:$24 sps:$4 sm:$0xff]   ;;  %v8518_v18 = vsel %vm7297_vm7, %v14557_v38, 0.0  ;;  %v18994_v62 = vld [vmem:[#allocation8_spill] sm:$0xff] }
 0x286   :  { %v3951_v1 = vpop.f32.mrb[56].mxu0  ;;  %v12048_v57 = vld [vmem:[%s18428_s3 + $0xd8] sm:$0xff]  ;;  %vm8102_vm1 = vcmp.eq.s32.totalorder %v13834_v34, %v18994_v62  ;;  %v8519_v38 = vadd.f32 %v8518_v18, %v8517_v29  ;;  %18997 = vst [vmem:[#allocation8_spill] sm:$0xff] %v14589_v39 }
 0x287   :  { %v10163_v19 = vadd.f32 %v3951_v1, %v2862_v0  ;;  %v3953_v5 = vpop.f32.mrb[57].mxu0  ;;  %vm6428_vm15 = vcmp.gt.s32.totalorder %v12048_v57, 0  ;;  %v11123_v1 = vld [vmem:[%s18430_s0 + $0x7f4] ss:$24 sps:$4 sm:$0xff]  }
 0x288   :  { %v3954_v0 = vpop.f32.mrb[58].mxu0  ;;  %v14587_v62 = vsel %vm6428_vm15, 1.0, %v18929_v54  ;;  %v14601_v29 = vpop.permute.xlu1 %8036 }
 0x289   :  { %v8230_v46 = vsel %vm8102_vm1, %v10163_v19, 0.0  ;;  %v10165_v5 = vadd.f32 %v3954_v0, %v2865_v16  ;;  %v3956_v56 = vpop.f32.mrb[59].mxu0  ;;  %v14581_v25 = vsel %vm4352_vm0, %v10163_v19, -1e+30  ;;  %18996 = vst [vmem:[#allocation10_spill] sm:$0xff] %v14587_v62  ;;  %v8520_v52 = vsel %vm7297_vm7, %v14587_v62, 0.0 }
 0x28a   :  { %v8357_v57 = vadd.f32 %v8356_v24, %v8230_v46  ;;  %4537 = vmax.xlane.f32.xlu0 %v14581_v25  ;;  %3621 = vmatmul.mubr.bf16.gmra.mrb[164].mxu1 %v11116_v2  ;;  %v12049_v24 = vld [vmem:[%s18428_s3 + $0xe0] sm:$0xff]  ;;  %18998 = vst [vmem:[#allocation12_spill] sm:$0xff] %v14601_v29  ;;  %v18999_v16 = vld [vmem:[#allocation13_spill] sm:$0xff]  ;;  %v19001_v46 = vld [vmem:[#allocation15_spill] sm:$0xff] }
 0x28b   :  { %v8231_v42 = vsel %vm8103_vm2, %v10165_v5, 0.0  ;;  %v14593_v56 = vsel %vm4352_vm0, %v10165_v5, -1e+30  ;;  %4166 = vmatmul.mubr.bf16.gmra.mrb[164].mxu0 %v11119_v15  ;;  %3628 = vmatprep.mubr.bf16.mxu1 %v11120_v13  ;;  %vm6429_vm3 = vcmp.gt.s32.totalorder %v12049_v24, 0  ;;  %v2870_v19 = vadd.f32 %v14549_v51, %v18999_v16  ;;  %v11122_v13 = vld [vmem:[%s18430_s0 + $0x7e8] ss:$24 sps:$4 sm:$0xff]  }
 0x28c   :  { %v8358_v2 = vadd.f32 %v8357_v57, %v8231_v42  ;;  %4539 = vmax.xlane.f32.xlu1 %v14593_v56  ;;  %4173 = vmatprep.mubr.bf16.mxu0 %v11123_v1  ;;  %v8521_v15 = vadd.f32 %v8520_v52, %v8519_v38  ;;  %v14609_v0 = vsel %vm6429_vm3, 1.0, %v18929_v54  ;;  %v2873_v42 = vadd.f32 %v14549_v51, %v19001_v46  ;;  %v11125_v1 = vld [vmem:[%s18430_s0 + $0x7f0] ss:$24 sps:$4 sm:$0xff]   ;;  %v11126_v24 = vld [vmem:[%s18430_s0 + $0x81c] ss:$24 sps:$4 sm:$0xff]   ;;  %v14629_v46 = vpop.permute.xlu0 %8045  ;;  %v14641_v59 = vpop.permute.xlu1 %8042 }
 0x28d   :  { %19000 = vst [vmem:[#allocation13_spill] sm:$0xff] %v14609_v0  ;;  %v12050_v38 = vld [vmem:[%s18428_s3 + $0xe8] sm:$0xff]  ;;  %v8522_v52 = vsel %vm7297_vm7, %v14609_v0, 0.0  ;;  %19003 = vst [vmem:[#allocation15_spill] sm:$0xff] %v14629_v46 }
 0x28e   :  { %v3959_v18 = vpop.f32.mrb[60].mxu0  ;;  %vm6430_vm4 = vcmp.gt.s32.totalorder %v12050_v38, 0  ;;  %v19002_v16 = vld [vmem:[#allocation11_spill] sm:$0xff]  ;;  %v19004_v38 = vld [vmem:[#allocation16_spill] sm:$0xff]  ;;  %v8523_v58 = vadd.f32 %v8522_v52, %v8521_v15  ;;  %v19007_v15 = vld [vmem:[#allocation18_spill] sm:$0xff] }
 0x28f   :  { %v10167_v5 = vadd.f32 %v3959_v18, %v2870_v19  ;;  %v3961_v57 = vpop.f32.mrb[61].mxu0  ;;  %vm8104_vm5 = vcmp.eq.s32.totalorder %v13834_v34, %v19002_v16  ;;  %v11129_v18 = vld [vmem:[%s18430_s0 + $0x824] ss:$24 sps:$4 sm:$0xff]   ;;  %vm8105_vm6 = vcmp.eq.s32.totalorder %v13834_v34, %v19004_v38  ;;  %v14639_v16 = vsel %vm6430_vm4, 1.0, %v18929_v54  ;;  %19006 = vst [vmem:[#allocation16_spill] sm:$0xff] %v14641_v59 }
 0x290   :  { %v3962_v19 = vpop.f32.mrb[62].mxu0  ;;  %19005 = vst [vmem:[#allocation11_spill] sm:$0xff] %v14639_v16 }
 0x291   :  { %v8232_v57 = vsel %vm8104_vm5, %v10167_v5, 0.0  ;;  %v10169_v39 = vadd.f32 %v3962_v19, %v2873_v42  ;;  %v3964_v29 = vpop.f32.mrb[63].mxu0  ;;  %v14633_v62 = vsel %vm4352_vm0, %v10167_v5, -1e+30  ;;  %v8524_v42 = vsel %vm7297_vm7, %v14639_v16, 0.0  ;;  %v14661_v19 = vpop.permute.xlu0 %8051 }
 0x292   :  { %v8359_v0 = vadd.f32 %v8358_v2, %v8232_v57  ;;  %4541 = vmax.xlane.f32.xlu0 %v14633_v62  ;;  %3629 = vmatmul.mubr.bf16.gmra.mrb[168].mxu1 %v11122_v13  ;;  %v12051_v2 = vld [vmem:[%s18428_s3 + $0xf0] sm:$0xff]  ;;  %v2878_v5 = vadd.f32 %v14549_v51, %v19007_v15  ;;  %19009 = vst [vmem:[#allocation153_spill] sm:$0xff] %v14661_v19  ;;  %v19011_v15 = vld [vmem:[#allocation14_spill] sm:$0xff] }
 0x293   :  { %v8233_v46 = vsel %vm8105_vm6, %v10169_v39, 0.0  ;;  %v14645_v29 = vsel %vm4352_vm0, %v10169_v39, -1e+30  ;;  %4174 = vmatmul.mubr.bf16.gmra.mrb[168].mxu0 %v11125_v1  ;;  %3636 = vmatprep.mubr.bf16.mxu1 %v11126_v24  ;;  %vm6431_vm8 = vcmp.gt.s32.totalorder %v12051_v2, 0  ;;  %v11128_v39 = vld [vmem:[%s18430_s0 + $0x818] ss:$24 sps:$4 sm:$0xff]   ;;  %v8525_v1 = vadd.f32 %v8524_v42, %v8523_v58 }
 0x294   :  { %v8360_v13 = vadd.f32 %v8359_v0, %v8233_v46  ;;  %4543 = vmax.xlane.f32.xlu1 %v14645_v29  ;;  %4181 = vmatprep.mubr.bf16.mxu0 %v11129_v18  ;;  %v14659_v24 = vsel %vm6431_vm8, 1.0, %v18929_v54  ;;  %v19010_v57 = vld [vmem:[#allocation20_spill] sm:$0xff]  ;;  %v11131_v18 = vld [vmem:[%s18430_s0 + $0x820] ss:$24 sps:$4 sm:$0xff]   ;;  %v11132_v2 = vld [vmem:[%s18430_s0 + $0x84c] ss:$24 sps:$4 sm:$0xff]   ;;  %vm8106_vm10 = vcmp.eq.s32.totalorder %v13834_v34, %v19011_v15 }
 0x295   :  { %19008 = vst [vmem:[#allocation18_spill] sm:$0xff] %v14659_v24  ;;  %v2881_v0 = vadd.f32 %v14549_v51, %v19010_v57  ;;  %v12052_v58 = vld [vmem:[%s18428_s3 + $0xf8] sm:$0xff]  ;;  %v8526_v42 = vsel %vm7297_vm7, %v14659_v24, 0.0  ;;  %v14681_v57 = vpop.permute.xlu1 %8048 }
 0x296   :  { %v3967_v52 = vpop.f32.mrb[64].mxu0  ;;  %vm6432_vm9 = vcmp.gt.s32.totalorder %v12052_v58, 0  ;;  %19012 = vst [vmem:[#allocation20_spill] sm:$0xff] %v14681_v57  ;;  %v19013_v58 = vld [vmem:[#allocation19_spill] sm:$0xff]  ;;  %v8527_v7 = vadd.f32 %v8526_v42, %v8525_v1  ;;  %v14703_v1 = vpop.permute.xlu0 %8057 }
 0x297   :  { %v10171_v46 = vadd.f32 %v3967_v52, %v2878_v5  ;;  %v3969_v38 = vpop.f32.mrb[65].mxu0  ;;  %v11135_v52 = vld [vmem:[%s18430_s0 + $0x854] ss:$24 sps:$4 sm:$0xff]   ;;  %vm8107_vm11 = vcmp.eq.s32.totalorder %v13834_v34, %v19013_v58  ;;  %v14691_v15 = vsel %vm6432_vm9, 1.0, %v18929_v54  ;;  %19015 = vst [vmem:[#allocation19_spill] sm:$0xff] %v14703_v1  ;;  %v19020_v1 = vld [vmem:[#allocation17_spill] sm:$0xff] }
 0x298   :  { %v3970_v5 = vpop.f32.mrb[66].mxu0  ;;  %19014 = vst [vmem:[#allocation14_spill] sm:$0xff] %v14691_v15  ;;  %vm8108_vm14 = vcmp.eq.s32.totalorder %v13834_v34, %v19020_v1 }
 0x299   :  { %v8234_v38 = vsel %vm8106_vm10, %v10171_v46, 0.0  ;;  %v10173_v19 = vadd.f32 %v3970_v5, %v2881_v0  ;;  %v3972_v59 = vpop.f32.mrb[67].mxu0  ;;  %v14685_v16 = vsel %vm4352_vm0, %v10171_v46, -1e+30  ;;  %v19016_v46 = vld [vmem:[#allocation23_spill] sm:$0xff] }
 0x29a   :  { %v8361_v24 = vadd.f32 %v8360_v13, %v8234_v38  ;;  %4545 = vmax.xlane.f32.xlu0 %v14685_v16  ;;  %3637 = vmatmul.mubr.bf16.gmra.mrb[172].mxu1 %v11128_v39  ;;  %v8528_v59 = vsel %vm7297_vm7, %v14691_v15, 0.0  ;;  %v12053_v13 = vld [vmem:[%s18428_s3 + $0x100] sm:$0xff]  ;;  %v14713_v38 = vpop.permute.xlu1 %8054  ;;  %v14743_v31 = vpop.permute.xlu0 %8063 }
 0x29b   :  { %v8235_v11 = vsel %vm8107_vm11, %v10173_v19, 0.0  ;;  %v14695_v0 = vsel %vm4352_vm0, %v10173_v19, -1e+30  ;;  %4182 = vmatmul.mubr.bf16.gmra.mrb[172].mxu0 %v11131_v18  ;;  %3644 = vmatprep.mubr.bf16.mxu1 %v11132_v2  ;;  %vm6433_vm12 = vcmp.gt.s32.totalorder %v12053_v13, 0  ;;  %v2886_v19 = vadd.f32 %v14549_v51, %v19016_v46  ;;  %v11134_v18 = vld [vmem:[%s18430_s0 + $0x848] ss:$24 sps:$4 sm:$0xff]  }
 0x29c   :  { %v8362_v39 = vadd.f32 %v8361_v24, %v8235_v11  ;;  %4547 = vmax.xlane.f32.xlu1 %v14695_v0  ;;  %4189 = vmatprep.mubr.bf16.mxu0 %v11135_v52  ;;  %v8529_v2 = vadd.f32 %v8528_v59, %v8527_v7  ;;  %v14711_v5 = vsel %vm6433_vm12, 1.0, %v18929_v54  ;;  %19018 = vst [vmem:[#allocation154_spill] sm:$0xff] %v14713_v38  ;;  %v19019_v11 = vld [vmem:[#allocation24_spill] sm:$0xff]  ;;  %v12054_v7 = vld [vmem:[%s18428_s3 + $0x108] sm:$0xff]  ;;  %v19021_v15 = vld [vmem:[#allocation22_spill] sm:$0xff] }
 0x29d   :  { %19017 = vst [vmem:[#allocation23_spill] sm:$0xff] %v14711_v5  ;;  %v2889_v24 = vadd.f32 %v14549_v51, %v19019_v11  ;;  %v11137_v13 = vld [vmem:[%s18430_s0 + $0x850] ss:$24 sps:$4 sm:$0xff]   ;;  %v11138_v46 = vld [vmem:[%s18430_s0 + $0x87c] ss:$24 sps:$4 sm:$0xff]   ;;  %vm6434_vm13 = vcmp.gt.s32.totalorder %v12054_v7, 0  ;;  %vm8109_vm15 = vcmp.eq.s32.totalorder %v13834_v34, %v19021_v15 }
 0x29e   :  { %v3975_v42 = vpop.f32.mrb[68].mxu0  ;;  %v8530_v59 = vsel %vm7297_vm7, %v14711_v5, 0.0  ;;  %v14741_v1 = vsel %vm6434_vm13, 1.0, %v18929_v54  ;;  %19023 = vst [vmem:[#allocation17_spill] sm:$0xff] %v14743_v31  ;;  %v11144_v31 = vld [vmem:[%s18430_s0 + $0x8ac] ss:$24 sps:$4 sm:$0xff]  }
 0x29f   :  { %v10175_v52 = vadd.f32 %v3975_v42, %v2886_v19  ;;  %v3977_v58 = vpop.f32.mrb[69].mxu0  ;;  %v11141_v42 = vld [vmem:[%s18430_s0 + $0x884] ss:$24 sps:$4 sm:$0xff]   ;;  %19022 = vst [vmem:[#allocation24_spill] sm:$0xff] %v14741_v1  ;;  %v8531_v5 = vadd.f32 %v8530_v59, %v8529_v2  ;;  %v8532_v15 = vsel %vm7297_vm7, %v14741_v1, 0.0  ;;  %v14755_v2 = vpop.permute.xlu1 %8060 }
 0x2a0   :  { %v3978_v19 = vpop.f32.mrb[70].mxu0  ;;  %19024 = vst [vmem:[#allocation22_spill] sm:$0xff] %v14755_v2  ;;  %v11140_v59 = vld [vmem:[%s18430_s0 + $0x878] ss:$24 sps:$4 sm:$0xff]  }
 0x2a1   :  { %v8236_v11 = vsel %vm8108_vm14, %v10175_v52, 0.0  ;;  %v10177_v58 = vadd.f32 %v3978_v19, %v2889_v24  ;;  %v3980_v38 = vpop.f32.mrb[71].mxu0  ;;  %v14735_v57 = vsel %vm4352_vm0, %v10175_v52, -1e+30  ;;  %v19025_v24 = vld [vmem:[#allocation27_spill] sm:$0xff]  ;;  %v8533_v19 = vadd.f32 %v8532_v15, %v8531_v5  ;;  %v19028_v15 = vld [vmem:[#allocation21_spill] sm:$0xff] }
 0x2a2   :  { %v8363_v7 = vadd.f32 %v8362_v39, %v8236_v11  ;;  %4549 = vmax.xlane.f32.xlu0 %v14735_v57  ;;  %3645 = vmatmul.mubr.bf16.gmra.mrb[176].mxu1 %v11134_v18  ;;  %v12055_v39 = vld [vmem:[%s18428_s3 + $0x110] sm:$0xff]  ;;  %v2894_v52 = vadd.f32 %v14549_v51, %v19025_v24  ;;  %v11143_v24 = vld [vmem:[%s18430_s0 + $0x880] ss:$24 sps:$4 sm:$0xff]   ;;  %vm8110_vm3 = vcmp.eq.s32.totalorder %v13834_v34, %v19028_v15 }
 0x2a3   :  { %v8237_v8 = vsel %vm8109_vm15, %v10177_v58, 0.0  ;;  %v14747_v38 = vsel %vm4352_vm0, %v10177_v58, -1e+30  ;;  %4190 = vmatmul.mubr.bf16.gmra.mrb[176].mxu0 %v11137_v13  ;;  %3652 = vmatprep.mubr.bf16.mxu1 %v11138_v46  ;;  %vm6435_vm1 = vcmp.gt.s32.totalorder %v12055_v39, 0  ;;  %v12056_v13 = vld [vmem:[%s18428_s3 + $0x118] sm:$0xff]  ;;  %v19030_v15 = vld [vmem:[#allocation26_spill] sm:$0xff] }
 0x2a4   :  { %v8364_v18 = vadd.f32 %v8363_v7, %v8237_v8  ;;  %4551 = vmax.xlane.f32.xlu1 %v14747_v38  ;;  %4197 = vmatprep.mubr.bf16.mxu0 %v11141_v42  ;;  %vm6436_vm2 = vcmp.gt.s32.totalorder %v12056_v13, 0  ;;  %v14766_v8 = vsel %vm6435_vm1, 1.0, %v18929_v54  ;;  %v19027_v42 = vld [vmem:[#allocation29_spill] sm:$0xff]  ;;  %vm8111_vm4 = vcmp.eq.s32.totalorder %v13834_v34, %v19030_v15 }
 0x2a5   :  { %19026 = vst [vmem:[#allocation27_spill] sm:$0xff] %v14766_v8  ;;  %v2897_v11 = vadd.f32 %v14549_v51, %v19027_v42  ;;  %v8534_v5 = vsel %vm7297_vm7, %v14766_v8, 0.0  ;;  %v11147_v42 = vld [vmem:[%s18430_s0 + $0x8b4] ss:$24 sps:$4 sm:$0xff]   ;;  %v14793_v8 = vsel %vm6436_vm2, 1.0, %v18929_v54 }
 0x2a6   :  { %v3983_v46 = vpop.f32.mrb[72].mxu0  ;;  %19029 = vst [vmem:[#allocation29_spill] sm:$0xff] %v14793_v8 }
 0x2a7   :  { %v10179_v58 = vadd.f32 %v3983_v46, %v2894_v52  ;;  %v3985_v7 = vpop.f32.mrb[73].mxu0  ;;  %v14770_v39 = vpop.xlane.xlu0 %4481 }
 0x2a8   :  { %v4737_v52 = vsub.f32 %v13859_v55, %v14770_v39  ;;  %v3986_v46 = vpop.f32.mrb[74].mxu0 }
 0x2a9   :  { %v8238_v7 = vsel %vm8110_vm3, %v10179_v58, 0.0  ;;  %v10181_v2 = vadd.f32 %v3986_v46, %v2897_v11  ;;  %v3988_v1 = vpop.f32.mrb[75].mxu0  ;;  %v14789_v45 = vsel %vm4352_vm0, %v10179_v58, -1e+30  ;;  %v8536_v11 = vsel %vm7297_vm7, %v14793_v8, 0.0  ;;  %v14800_v46 = vpop.permute.xlu1 %8066 }
 0x2aa   :  { %v8365_v55 = vadd.f32 %v8364_v18, %v8238_v7  ;;  %v4865_v50 = vmul.f32 1.442695, %v4737_v52  ;;  %4553 = vmax.xlane.f32.xlu0 %v14789_v45  ;;  %3653 = vmatmul.mubr.bf16.gmra.mrb[180].mxu1 %v11140_v59  ;;  %v8535_v1 = vadd.f32 %v8534_v5, %v8533_v19  ;;  %19031 = vst [vmem:[#allocation21_spill] sm:$0xff] %v14800_v46  ;;  %v12057_v18 = vld [vmem:[%s18428_s3 + $0x120] sm:$0xff]  ;;  %v19032_v19 = vld [vmem:[#allocation96_spill] sm:$0xff] }
 0x2ab   :  { %v8239_v58 = vsel %vm8111_vm4, %v10181_v2, 0.0  ;;  %v14802_v37 = vpop.xlane.xlu0 %4483  ;;  %v14806_v13 = vsel %vm4352_vm0, %v10181_v2, -1e+30  ;;  %4198 = vmatmul.mubr.bf16.gmra.mrb[180].mxu0 %v11143_v24  ;;  %3660 = vmatprep.mubr.bf16.mxu1 %v11144_v31  ;;  %vm6437_vm5 = vcmp.gt.s32.totalorder %v12057_v18, 0  ;;  %v19033_v52 = vld [vmem:[#allocation32_spill] sm:$0xff]  ;;  %v12058_v31 = vld [vmem:[%s18428_s3 + $0x128] sm:$0xff] }
 0x2ac   :  { %11252 = vpow2.f32 %v4865_v50  ;;  %v8366_v59 = vadd.f32 %v8365_v55, %v8239_v58  ;;  %v4738_v5 = vsub.f32 %v19032_v19, %v14802_v37  ;;  %4555 = vmax.xlane.f32.xlu1 %v14806_v13  ;;  %4205 = vmatprep.mubr.bf16.mxu0 %v11147_v42  ;;  %v2902_v7 = vadd.f32 %v14549_v51, %v19033_v52  ;;  %v11146_v50 = vld [vmem:[%s18430_s0 + $0x8a8] ss:$24 sps:$4 sm:$0xff]   ;;  %v11150_v46 = vld [vmem:[%s18430_s0 + $0x8dc] ss:$24 sps:$4 sm:$0xff]  }
 0x2ad   :  { %vm6438_vm6 = vcmp.gt.s32.totalorder %v12058_v31, 0  ;;  %v8537_v15 = vadd.f32 %v8536_v11, %v8535_v1  ;;  %v14823_v55 = vsel %vm6437_vm5, 1.0, %v18929_v54  ;;  %v19035_v58 = vld [vmem:[#allocation34_spill] sm:$0xff]  ;;  %v19037_v1 = vld [vmem:[#allocation25_spill] sm:$0xff] }
 0x2ae   :  { %v4867_v2 = vmul.f32 1.442695, %v4738_v5  ;;  %v3991_v24 = vpop.f32.mrb[76].mxu0  ;;  %19034 = vst [vmem:[#allocation26_spill] sm:$0xff] %v14823_v55  ;;  %v2905_v42 = vadd.f32 %v14549_v51, %v19035_v58  ;;  %v11149_v5 = vld [vmem:[%s18430_s0 + $0x8b0] ss:$24 sps:$4 sm:$0xff]   ;;  %vm8112_vm8 = vcmp.eq.s32.totalorder %v13834_v34, %v19037_v1 }
 0x2af   :  { %v10183_v18 = vadd.f32 %v3991_v24, %v2902_v7  ;;  %v3993_v19 = vpop.f32.mrb[77].mxu0  ;;  %v14827_v52 = vpop.xlane.xlu1 %4485  ;;  %v8538_v11 = vsel %vm7297_vm7, %v14823_v55, 0.0  ;;  %v11153_v58 = vld [vmem:[%s18430_s0 + $0x8e4] ss:$24 sps:$4 sm:$0xff]  }
 0x2b0   :  { %19036 = vst [vmem:[#allocation96_spill] sm:$0xff] %v14827_v52  ;;  %11254 = vpow2.f32 %v4867_v2  ;;  %v4739_v7 = vsub.f32 %v13903_v43, %v14827_v52  ;;  %v3994_v24 = vpop.f32.mrb[78].mxu0  ;;  %v14846_v19 = vsel %vm6438_vm6, 1.0, %v18929_v54  ;;  %v19039_v43 = vld [vmem:[#allocation30_spill] sm:$0xff]  ;;  %v12059_v31 = vld [vmem:[%s18428_s3 + $0x138] sm:$0xff] }
 0x2b1   :  { %19038 = vst [vmem:[#allocation32_spill] sm:$0xff] %v14846_v19  ;;  %v8240_v8 = vsel %vm8112_vm8, %v10183_v18, 0.0  ;;  %v10185_v27 = vadd.f32 %v3994_v24, %v2905_v42  ;;  %v3996_v9 = vpop.f32.mrb[79].mxu0  ;;  %v14850_v55 = vsel %vm4352_vm0, %v10183_v18, -1e+30  ;;  %v8540_v2 = vsel %vm7297_vm7, %v14846_v19, 0.0 }
 0x2b2   :  { %vm8113_vm9 = vcmp.eq.s32.totalorder %v13834_v34, %v19039_v43  ;;  %v8367_v1 = vadd.f32 %v8366_v59, %v8240_v8  ;;  %v4869_v28 = vmul.f32 1.442695, %v4739_v7  ;;  %4557 = vmax.xlane.f32.xlu0 %v14850_v55  ;;  %3661 = vmatmul.mubr.bf16.gmra.mrb[184].mxu1 %v11146_v50  ;;  %vm6440_vm10 = vcmp.gt.s32.totalorder %v12059_v31, 0  ;;  %v12060_v8 = vld [vmem:[%s18428_s3 + $0x130] sm:$0xff] }
 0x2b3   :  { %v8539_v9 = vadd.f32 %v8538_v11, %v8537_v15  ;;  %v8241_v42 = vsel %vm8113_vm9, %v10185_v27, 0.0  ;;  %v14860_v18 = vpop.xlane.xlu1 %4487  ;;  %v14864_v24 = vsel %vm4352_vm0, %v10185_v27, -1e+30  ;;  %4206 = vmatmul.mubr.bf16.gmra.mrb[184].mxu0 %v11149_v5  ;;  %3668 = vmatprep.mubr.bf16.mxu1 %v11150_v46  ;;  %vm6439_vm11 = vcmp.gt.s32.totalorder %v12060_v8, 0  ;;  %v19041_v15 = vld [vmem:[#allocation37_spill] sm:$0xff] }
 0x2b4   :  { %19040 = vst [vmem:[#allocation34_spill] sm:$0xff] %v14860_v18  ;;  %11256 = vpow2.f32 %v4869_v28  ;;  %v8368_v59 = vadd.f32 %v8367_v1, %v8241_v42  ;;  %v4740_v50 = vsub.f32 %v13929_v60, %v14860_v18  ;;  %4559 = vmax.xlane.f32.xlu1 %v14864_v24  ;;  %4213 = vmatprep.mubr.bf16.mxu0 %v11153_v58  ;;  %v14878_v46 = vsel %vm6440_vm10, 1.0, %v18929_v54  ;;  %v11152_v28 = vld [vmem:[%s18430_s0 + $0x8d8] ss:$24 sps:$4 sm:$0xff]   ;;  %v19044_v58 = vld [vmem:[#allocation38_spill] sm:$0xff] }
 0x2b5   :  { %v2910_v11 = vadd.f32 %v14549_v51, %v19041_v15  ;;  %19042 = vst [vmem:[#allocation25_spill] sm:$0xff] %v14878_v46  ;;  %v8541_v43 = vadd.f32 %v8540_v2, %v8539_v9  ;;  %v14884_v60 = vsel %vm6439_vm11, 1.0, %v18929_v54  ;;  %v2913_v1 = vadd.f32 %v14549_v51, %v19044_v58  ;;  %v19046_v15 = vld [vmem:[#allocation28_spill] sm:$0xff] }
 0x2b6   :  { %v14874_v27 = vpop.eup %11252  ;;  %v4871_v5 = vmul.f32 1.442695, %v4740_v50  ;;  %v3999_v7 = vpop.f32.mrb[80].mxu0  ;;  %19043 = vst [vmem:[#allocation30_spill] sm:$0xff] %v14884_v60  ;;  %v8542_v50 = vsel %vm7297_vm7, %v14884_v60, 0.0  ;;  %vm8114_vm12 = vcmp.eq.s32.totalorder %v13834_v34, %v19046_v15 }
 0x2b7   :  { %v10187_v42 = vadd.f32 %v3999_v7, %v2910_v11  ;;  %v4001_v8 = vpop.f32.mrb[81].mxu0  ;;  %5121 = vadd.xlane.f32.xlu0 %v14874_v27  ;;  %v14889_v31 = vpop.xlane.xlu0 %4489  ;;  %v11155_v11 = vld [vmem:[%s18430_s0 + $0x8e0] ss:$24 sps:$4 sm:$0xff]   ;;  %v11156_v7 = vld [vmem:[%s18430_s0 + $0x90c] ss:$24 sps:$4 sm:$0xff]  }
 0x2b8   :  { %19045 = vst [vmem:[#allocation37_spill] sm:$0xff] %v14889_v31  ;;  %11258 = vpow2.f32 %v4871_v5  ;;  %v4741_v2 = vsub.f32 %v13960_v12, %v14889_v31  ;;  %v4002_v9 = vpop.f32.mrb[82].mxu0  ;;  %v11159_v12 = vld [vmem:[%s18430_s0 + $0x914] ss:$24 sps:$4 sm:$0xff]   ;;  %v19048_v31 = vld [vmem:[#allocation33_spill] sm:$0xff] }
 0x2b9   :  { %v8242_v58 = vsel %vm8114_vm12, %v10187_v42, 0.0  ;;  %v10189_v8 = vadd.f32 %v4002_v9, %v2913_v1  ;;  %v4004_v19 = vpop.f32.mrb[83].mxu0  ;;  %v14903_v60 = vpop.xlane.xlu1 %4491  ;;  %v14907_v5 = vsel %vm4352_vm0, %v10187_v42, -1e+30  ;;  %vm8115_vm13 = vcmp.eq.s32.totalorder %v13834_v34, %v19048_v31  ;;  %v12061_v42 = vld [vmem:[%s18428_s3 + $0x148] sm:$0xff]  ;;  %v19049_v31 = vld [vmem:[#allocation41_spill] sm:$0xff] }
 0x2ba   :  { %19047 = vst [vmem:[#allocation38_spill] sm:$0xff] %v14903_v60  ;;  %v14912_v15 = vpop.eup %11254  ;;  %v8369_v22 = vadd.f32 %v8368_v59, %v8242_v58  ;;  %v4873_v47 = vmul.f32 1.442695, %v4741_v2  ;;  %v4742_v19 = vsub.f32 %v13972_v10, %v14903_v60  ;;  %3669 = vmatmul.mubr.bf16.gmra.mrb[188].mxu1 %v11152_v28  ;;  %v8544_v1 = vsel %vm7297_vm7, %v14878_v46, 0.0  ;;  %v12062_v59 = vld [vmem:[%s18428_s3 + $0x140] sm:$0xff] }
 0x2bb   :  { %vm6442_vm14 = vcmp.gt.s32.totalorder %v12061_v42, 0  ;;  %v8543_v9 = vadd.f32 %v8542_v50, %v8541_v43  ;;  %v8243_v18 = vsel %vm8115_vm13, %v10189_v8, 0.0  ;;  %4561 = vmax.xlane.f32.xlu0 %v14907_v5  ;;  %5123 = vadd.xlane.f32.xlu1 %v14912_v15  ;;  %vm6441_vm15 = vcmp.gt.s32.totalorder %v12062_v59, 0 }
 0x2bc   :  { %11260 = vpow2.f32 %v4873_v47  ;;  %v8370_v10 = vadd.f32 %v8369_v22, %v8243_v18  ;;  %v4875_v28 = vmul.f32 1.442695, %v4742_v19  ;;  %4214 = vmatmul.mubr.bf16.gmra.mrb[188].mxu0 %v11155_v11  ;;  %3676 = vmatprep.mubr.bf16.mxu1 %v11156_v7  ;;  %v2918_v2 = vadd.f32 %v14549_v51, %v19049_v31  ;;  %v11158_v22 = vld [vmem:[%s18430_s0 + $0x908] ss:$24 sps:$4 sm:$0xff]  }
 0x2bd   :  { %4221 = vmatprep.mubr.bf16.mxu0 %v11159_v12  ;;  %v14933_v50 = vsel %vm6442_vm14, 1.0, %v18929_v54  ;;  %v14937_v42 = vsel %vm4352_vm0, %v10189_v8, -1e+30  ;;  %v8545_v47 = vadd.f32 %v8544_v1, %v8543_v9  ;;  %v14943_v18 = vsel %vm6441_vm15, 1.0, %v18929_v54  ;;  %v19053_v11 = vld [vmem:[#allocation43_spill] sm:$0xff] }
 0x2be   :  { %v14930_v43 = vpop.eup %11256  ;;  %19051 = vst [vmem:[#allocation33_spill] sm:$0xff] %v14933_v50  ;;  %v4007_v58 = vpop.f32.mrb[84].mxu0  ;;  %19052 = vst [vmem:[#allocation41_spill] sm:$0xff] %v14943_v18  ;;  %v2921_v7 = vadd.f32 %v14549_v51, %v19053_v11  ;;  %v8546_v8 = vsel %vm7297_vm7, %v14943_v18, 0.0  ;;  %v19055_v31 = vld [vmem:[#allocation31_spill] sm:$0xff]  ;;  %11262 = vpow2.f32 %v4875_v28 }
 0x2bf   :  { %19050 = vst [vmem:[#allocation28_spill] sm:$0xff] %v14930_v43  ;;  %v10191_v12 = vadd.f32 %v4007_v58, %v2918_v2  ;;  %v4009_v19 = vpop.f32.mrb[85].mxu0  ;;  %5125 = vadd.xlane.f32.xlu0 %v14930_v43  ;;  %4563 = vmax.xlane.f32.xlu1 %v14937_v42  ;;  %v14949_v59 = vpop.xlane.xlu0 %4493  ;;  %vm8116_vm1 = vcmp.eq.s32.totalorder %v13834_v34, %v19055_v31  ;;  %v11161_v2 = vld [vmem:[%s18430_s0 + $0x910] ss:$24 sps:$4 sm:$0xff]   ;;  %v11162_v58 = vld [vmem:[%s18430_s0 + $0x93c] ss:$24 sps:$4 sm:$0xff]  }
 0x2c0   :  { %19054 = vst [vmem:[#allocation43_spill] sm:$0xff] %v14949_v59  ;;  %v4743_v1 = vsub.f32 %v14012_v49, %v14949_v59  ;;  %v4010_v9 = vpop.f32.mrb[86].mxu0  ;;  %v11165_v49 = vld [vmem:[%s18430_s0 + $0x944] ss:$24 sps:$4 sm:$0xff]   ;;  %v19058_v59 = vld [vmem:[#allocation36_spill] sm:$0xff] }
 0x2c1   :  { %v8244_v11 = vsel %vm8116_vm1, %v10191_v12, 0.0  ;;  %v10193_v19 = vadd.f32 %v4010_v9, %v2921_v7  ;;  %v4012_v46 = vpop.f32.mrb[87].mxu0  ;;  %v14963_v18 = vpop.xlane.xlu1 %4495  ;;  %v14967_v28 = vsel %vm4352_vm0, %v10191_v12, -1e+30  ;;  %vm8117_vm2 = vcmp.eq.s32.totalorder %v13834_v34, %v19058_v59  ;;  %v12063_v12 = vld [vmem:[%s18428_s3 + $0x158] sm:$0xff]  ;;  %v19059_v59 = vld [vmem:[#allocation46_spill] sm:$0xff] }
 0x2c2   :  { %19056 = vst [vmem:[#allocation31_spill] sm:$0xff] %v14963_v18  ;;  %v14972_v31 = vpop.eup %11258  ;;  %v8371_v60 = vadd.f32 %v8370_v10, %v8244_v11  ;;  %v4877_v52 = vmul.f32 1.442695, %v4743_v1  ;;  %v4744_v46 = vsub.f32 %v14024_v40, %v14963_v18  ;;  %3677 = vmatmul.mubr.bf16.gmra.mrb[192].mxu1 %v11158_v22  ;;  %v8548_v7 = vsel %vm7297_vm7, %v14933_v50, 0.0  ;;  %v12064_v10 = vld [vmem:[%s18428_s3 + $0x150] sm:$0xff] }
 0x2c3   :  { %19057 = vst [vmem:[#allocation155_spill] sm:$0xff] %v14972_v31  ;;  %vm6444_vm3 = vcmp.gt.s32.totalorder %v12063_v12, 0  ;;  %v8547_v9 = vadd.f32 %v8546_v8, %v8545_v47  ;;  %v8245_v43 = vsel %vm8117_vm2, %v10193_v19, 0.0  ;;  %4565 = vmax.xlane.f32.xlu0 %v14967_v28  ;;  %5127 = vadd.xlane.f32.xlu1 %v14972_v31  ;;  %vm6443_vm4 = vcmp.gt.s32.totalorder %v12064_v10, 0 }
 0x2c4   :  { %11264 = vpow2.f32 %v4877_v52  ;;  %v8372_v40 = vadd.f32 %v8371_v60, %v8245_v43  ;;  %v4879_v22 = vmul.f32 1.442695, %v4744_v46  ;;  %4222 = vmatmul.mubr.bf16.gmra.mrb[192].mxu0 %v11161_v2  ;;  %3684 = vmatprep.mubr.bf16.mxu1 %v11162_v58  ;;  %v2926_v1 = vadd.f32 %v14549_v51, %v19059_v59  ;;  %v11164_v52 = vld [vmem:[%s18430_s0 + $0x938] ss:$24 sps:$4 sm:$0xff]   ;;  %v19065_v59 = vld [vmem:[#allocation35_spill] sm:$0xff] }
 0x2c5   :  { %4229 = vmatprep.mubr.bf16.mxu0 %v11165_v49  ;;  %v14993_v8 = vsel %vm6444_vm3, 1.0, %v18929_v54  ;;  %v14997_v12 = vsel %vm4352_vm0, %v10193_v19, -1e+30  ;;  %v8549_v60 = vadd.f32 %v8548_v7, %v8547_v9  ;;  %v15003_v43 = vsel %vm6443_vm4, 1.0, %v18929_v54  ;;  %v19063_v2 = vld [vmem:[#allocation48_spill] sm:$0xff] }
 0x2c6   :  { %v14990_v47 = vpop.eup %11260  ;;  %19061 = vst [vmem:[#allocation46_spill] sm:$0xff] %v14993_v8  ;;  %v4015_v11 = vpop.f32.mrb[88].mxu0  ;;  %19062 = vst [vmem:[#allocation156_spill] sm:$0xff] %v15003_v43  ;;  %v2929_v58 = vadd.f32 %v14549_v51, %v19063_v2  ;;  %v8550_v19 = vsel %vm7297_vm7, %v15003_v43, 0.0  ;;  %vm8118_vm5 = vcmp.eq.s32.totalorder %v13834_v34, %v19065_v59  ;;  %11266 = vpow2.f32 %v4879_v22 }
 0x2c7   :  { %19060 = vst [vmem:[#allocation36_spill] sm:$0xff] %v14990_v47  ;;  %v10195_v49 = vadd.f32 %v4015_v11, %v2926_v1  ;;  %v4017_v46 = vpop.f32.mrb[89].mxu0  ;;  %4567 = vmax.xlane.f32.xlu1 %v14997_v12  ;;  %5129 = vadd.xlane.f32.xlu0 %v14990_v47  ;;  %v15009_v10 = vpop.xlane.xlu0 %4497  ;;  %v11167_v1 = vld [vmem:[%s18430_s0 + $0x940] ss:$24 sps:$4 sm:$0xff]   ;;  %v11168_v11 = vld [vmem:[%s18430_s0 + $0x96c] ss:$24 sps:$4 sm:$0xff]  }
 0x2c8   :  { %19064 = vst [vmem:[#allocation48_spill] sm:$0xff] %v15009_v10  ;;  %v4745_v7 = vsub.f32 %v14064_v35, %v15009_v10  ;;  %v4018_v9 = vpop.f32.mrb[90].mxu0  ;;  %v11171_v35 = vld [vmem:[%s18430_s0 + $0x974] ss:$24 sps:$4 sm:$0xff]   ;;  %v15032_v59 = vpop.eup %11262 }
 0x2c9   :  { %v8246_v2 = vsel %vm8118_vm5, %v10195_v49, 0.0  ;;  %v10197_v46 = vadd.f32 %v4018_v9, %v2929_v58  ;;  %v4020_v50 = vpop.f32.mrb[91].mxu0  ;;  %v15023_v43 = vpop.xlane.xlu1 %4499  ;;  %v15027_v22 = vsel %vm4352_vm0, %v10195_v49, -1e+30  ;;  %19067 = vst [vmem:[#allocation157_spill] sm:$0xff] %v15032_v59  ;;  %v19068_v10 = vld [vmem:[#allocation40_spill] sm:$0xff]  ;;  %v8551_v9 = vadd.f32 %v8550_v19, %v8549_v60 }
 0x2ca   :  { %19066 = vst [vmem:[#allocation35_spill] sm:$0xff] %v15023_v43  ;;  %vm8119_vm6 = vcmp.eq.s32.totalorder %v13834_v34, %v19068_v10  ;;  %v8373_v18 = vadd.f32 %v8372_v40, %v8246_v2  ;;  %v4881_v47 = vmul.f32 1.442695, %v4745_v7  ;;  %v4746_v50 = vsub.f32 %v14074_v36, %v15023_v43  ;;  %3685 = vmatmul.mubr.bf16.gmra.mrb[196].mxu1 %v11164_v52  ;;  %v12065_v49 = vld [vmem:[%s18428_s3 + $0x168] sm:$0xff]  ;;  %v12066_v40 = vld [vmem:[%s18428_s3 + $0x160] sm:$0xff] }
 0x2cb   :  { %v8552_v58 = vsel %vm7297_vm7, %v14993_v8, 0.0  ;;  %vm6446_vm8 = vcmp.gt.s32.totalorder %v12065_v49, 0  ;;  %v8247_v31 = vsel %vm8119_vm6, %v10197_v46, 0.0  ;;  %5131 = vadd.xlane.f32.xlu1 %v15032_v59  ;;  %4569 = vmax.xlane.f32.xlu0 %v15027_v22  ;;  %vm6445_vm9 = vcmp.gt.s32.totalorder %v12066_v40, 0  ;;  %v19069_v10 = vld [vmem:[#allocation51_spill] sm:$0xff] }
 0x2cc   :  { %11268 = vpow2.f32 %v4881_v47  ;;  %v8374_v36 = vadd.f32 %v8373_v18, %v8247_v31  ;;  %v4883_v52 = vmul.f32 1.442695, %v4746_v50  ;;  %4230 = vmatmul.mubr.bf16.gmra.mrb[196].mxu0 %v11167_v1  ;;  %3692 = vmatprep.mubr.bf16.mxu1 %v11168_v11  ;;  %v2934_v7 = vadd.f32 %v14549_v51, %v19069_v10  ;;  %v11170_v18 = vld [vmem:[%s18430_s0 + $0x968] ss:$24 sps:$4 sm:$0xff]   ;;  %v19073_v1 = vld [vmem:[#allocation52_spill] sm:$0xff] }
 0x2cd   :  { %4237 = vmatprep.mubr.bf16.mxu0 %v11171_v35  ;;  %v15053_v19 = vsel %vm6446_vm8, 1.0, %v18929_v54  ;;  %v15057_v49 = vsel %vm4352_vm0, %v10197_v46, -1e+30  ;;  %v8553_v31 = vadd.f32 %v8552_v58, %v8551_v9  ;;  %v15063_v47 = vsel %vm6445_vm9, 1.0, %v18929_v54  ;;  %v19075_v10 = vld [vmem:[#allocation39_spill] sm:$0xff] }
 0x2ce   :  { %v15050_v60 = vpop.eup %11264  ;;  %19071 = vst [vmem:[#allocation51_spill] sm:$0xff] %v15053_v19  ;;  %v4023_v2 = vpop.f32.mrb[92].mxu0  ;;  %19072 = vst [vmem:[#allocation158_spill] sm:$0xff] %v15063_v47  ;;  %v2937_v11 = vadd.f32 %v14549_v51, %v19073_v1  ;;  %v8554_v46 = vsel %vm7297_vm7, %v15063_v47, 0.0  ;;  %vm8120_vm10 = vcmp.eq.s32.totalorder %v13834_v34, %v19075_v10  ;;  %11270 = vpow2.f32 %v4883_v52 }
 0x2cf   :  { %19070 = vst [vmem:[#allocation40_spill] sm:$0xff] %v15050_v60  ;;  %v10199_v35 = vadd.f32 %v4023_v2, %v2934_v7  ;;  %v4025_v50 = vpop.f32.mrb[93].mxu0  ;;  %4571 = vmax.xlane.f32.xlu1 %v15057_v49  ;;  %5133 = vadd.xlane.f32.xlu0 %v15050_v60  ;;  %v15069_v40 = vpop.xlane.xlu0 %4501  ;;  %v11173_v7 = vld [vmem:[%s18430_s0 + $0x970] ss:$24 sps:$4 sm:$0xff]   ;;  %v11174_v2 = vld [vmem:[%s18430_s0 + $0x99c] ss:$24 sps:$4 sm:$0xff]  }
 0x2d0   :  { %19074 = vst [vmem:[#allocation52_spill] sm:$0xff] %v15069_v40  ;;  %v4747_v58 = vsub.f32 %v14114_v17, %v15069_v40  ;;  %v4026_v9 = vpop.f32.mrb[94].mxu0  ;;  %v11177_v17 = vld [vmem:[%s18430_s0 + $0x9a4] ss:$24 sps:$4 sm:$0xff]   ;;  %v15092_v10 = vpop.eup %11266  ;;  %v19078_v40 = vld [vmem:[#allocation44_spill] sm:$0xff] }
 0x2d1   :  { %v8248_v1 = vsel %vm8120_vm10, %v10199_v35, 0.0  ;;  %v10201_v50 = vadd.f32 %v4026_v9, %v2937_v11  ;;  %v4028_v8 = vpop.f32.mrb[95].mxu0  ;;  %v15083_v47 = vpop.xlane.xlu1 %4503  ;;  %v15087_v52 = vsel %vm4352_vm0, %v10199_v35, -1e+30  ;;  %19077 = vst [vmem:[#allocation159_spill] sm:$0xff] %v15092_v10  ;;  %vm8121_vm11 = vcmp.eq.s32.totalorder %v13834_v34, %v19078_v40  ;;  %v12067_v35 = vld [vmem:[%s18428_s3 + $0x178] sm:$0xff] }
 0x2d2   :  { %19076 = vst [vmem:[#allocation39_spill] sm:$0xff] %v15083_v47  ;;  %v8375_v43 = vadd.f32 %v8374_v36, %v8248_v1  ;;  %v4885_v60 = vmul.f32 1.442695, %v4747_v58  ;;  %v4748_v8 = vsub.f32 %v14126_v41, %v15083_v47  ;;  %3693 = vmatmul.mubr.bf16.gmra.mrb[200].mxu1 %v11170_v18  ;;  %v8556_v11 = vsel %vm7297_vm7, %v15053_v19, 0.0  ;;  %v12068_v36 = vld [vmem:[%s18428_s3 + $0x170] sm:$0xff]  ;;  %v19079_v40 = vld [vmem:[#allocation55_spill] sm:$0xff] }
 0x2d3   :  { %vm6448_vm12 = vcmp.gt.s32.totalorder %v12067_v35, 0  ;;  %v8555_v9 = vadd.f32 %v8554_v46, %v8553_v31  ;;  %v8249_v59 = vsel %vm8121_vm11, %v10201_v50, 0.0  ;;  %5135 = vadd.xlane.f32.xlu1 %v15092_v10  ;;  %4573 = vmax.xlane.f32.xlu0 %v15087_v52  ;;  %vm6447_vm13 = vcmp.gt.s32.totalorder %v12068_v36, 0 }
 0x2d4   :  { %11272 = vpow2.f32 %v4885_v60  ;;  %v8376_v41 = vadd.f32 %v8375_v43, %v8249_v59  ;;  %v4887_v18 = vmul.f32 1.442695, %v4748_v8  ;;  %4238 = vmatmul.mubr.bf16.gmra.mrb[200].mxu0 %v11173_v7  ;;  %3700 = vmatprep.mubr.bf16.mxu1 %v11174_v2  ;;  %v2942_v58 = vadd.f32 %v14549_v51, %v19079_v40  ;;  %v11176_v43 = vld [vmem:[%s18430_s0 + $0x998] ss:$24 sps:$4 sm:$0xff]   ;;  %v19085_v40 = vld [vmem:[#allocation42_spill] sm:$0xff] }
 0x2d5   :  { %4245 = vmatprep.mubr.bf16.mxu0 %v11177_v17  ;;  %v15113_v46 = vsel %vm6448_vm12, 1.0, %v18929_v54  ;;  %v15117_v35 = vsel %vm4352_vm0, %v10201_v50, -1e+30  ;;  %v8557_v59 = vadd.f32 %v8556_v11, %v8555_v9  ;;  %v15123_v60 = vsel %vm6447_vm13, 1.0, %v18929_v54  ;;  %v19083_v7 = vld [vmem:[#allocation57_spill] sm:$0xff] }
 0x2d6   :  { %v15110_v31 = vpop.eup %11268  ;;  %19081 = vst [vmem:[#allocation55_spill] sm:$0xff] %v15113_v46  ;;  %v4031_v1 = vpop.f32.mrb[96].mxu0  ;;  %19082 = vst [vmem:[#allocation160_spill] sm:$0xff] %v15123_v60  ;;  %v2945_v2 = vadd.f32 %v14549_v51, %v19083_v7  ;;  %v8558_v50 = vsel %vm7297_vm7, %v15123_v60, 0.0  ;;  %vm8122_vm14 = vcmp.eq.s32.totalorder %v13834_v34, %v19085_v40  ;;  %11274 = vpow2.f32 %v4887_v18 }
 0x2d7   :  { %19080 = vst [vmem:[#allocation44_spill] sm:$0xff] %v15110_v31  ;;  %v10203_v17 = vadd.f32 %v4031_v1, %v2942_v58  ;;  %v4033_v8 = vpop.f32.mrb[97].mxu0  ;;  %4575 = vmax.xlane.f32.xlu1 %v15117_v35  ;;  %5137 = vadd.xlane.f32.xlu0 %v15110_v31  ;;  %v15129_v36 = vpop.xlane.xlu0 %4505  ;;  %v11179_v58 = vld [vmem:[%s18430_s0 + $0x9a0] ss:$24 sps:$4 sm:$0xff]   ;;  %v11180_v1 = vld [vmem:[%s18430_s0 + $0x9cc] ss:$24 sps:$4 sm:$0xff]  }
 0x2d8   :  { %19084 = vst [vmem:[#allocation57_spill] sm:$0xff] %v15129_v36  ;;  %v4749_v11 = vsub.f32 %v14166_v48, %v15129_v36  ;;  %v4034_v9 = vpop.f32.mrb[98].mxu0  ;;  %v11183_v48 = vld [vmem:[%s18430_s0 + $0x9d4] ss:$24 sps:$4 sm:$0xff]   ;;  %v15152_v40 = vpop.eup %11270 }
 0x2d9   :  { %v8250_v7 = vsel %vm8122_vm14, %v10203_v17, 0.0  ;;  %v10205_v8 = vadd.f32 %v4034_v9, %v2945_v2  ;;  %v4036_v19 = vpop.f32.mrb[99].mxu0  ;;  %v15143_v60 = vpop.xlane.xlu1 %4507  ;;  %v15147_v18 = vsel %vm4352_vm0, %v10203_v17, -1e+30  ;;  %19087 = vst [vmem:[#allocation161_spill] sm:$0xff] %v15152_v40  ;;  %v19088_v36 = vld [vmem:[#allocation47_spill] sm:$0xff]  ;;  %v8559_v9 = vadd.f32 %v8558_v50, %v8557_v59 }
 0x2da   :  { %19086 = vst [vmem:[#allocation42_spill] sm:$0xff] %v15143_v60  ;;  %vm8123_vm15 = vcmp.eq.s32.totalorder %v13834_v34, %v19088_v36  ;;  %v8377_v47 = vadd.f32 %v8376_v41, %v8250_v7  ;;  %v4889_v31 = vmul.f32 1.442695, %v4749_v11  ;;  %v4750_v19 = vsub.f32 %v14178_v32, %v15143_v60  ;;  %3701 = vmatmul.mubr.bf16.gmra.mrb[204].mxu1 %v11176_v43  ;;  %v12069_v17 = vld [vmem:[%s18428_s3 + $0x188] sm:$0xff]  ;;  %v12070_v41 = vld [vmem:[%s18428_s3 + $0x180] sm:$0xff]  ;;  %v19089_v36 = vld [vmem:[#allocation60_spill] sm:$0xff] }
 0x2db   :  { %v8560_v2 = vsel %vm7297_vm7, %v15113_v46, 0.0  ;;  %vm6450_vm1 = vcmp.gt.s32.totalorder %v12069_v17, 0  ;;  %v8251_v10 = vsel %vm8123_vm15, %v10205_v8, 0.0  ;;  %5139 = vadd.xlane.f32.xlu1 %v15152_v40  ;;  %4577 = vmax.xlane.f32.xlu0 %v15147_v18  ;;  %vm6449_vm2 = vcmp.gt.s32.totalorder %v12070_v41, 0 }
 0x2dc   :  { %11276 = vpow2.f32 %v4889_v31  ;;  %v8378_v32 = vadd.f32 %v8377_v47, %v8251_v10  ;;  %v4891_v43 = vmul.f32 1.442695, %v4750_v19  ;;  %4246 = vmatmul.mubr.bf16.gmra.mrb[204].mxu0 %v11179_v58  ;;  %3708 = vmatprep.mubr.bf16.mxu1 %v11180_v1  ;;  %v2950_v11 = vadd.f32 %v14549_v51, %v19089_v36  ;;  %v11182_v47 = vld [vmem:[%s18430_s0 + $0x9c8] ss:$24 sps:$4 sm:$0xff]   ;;  %v19095_v36 = vld [vmem:[#allocation45_spill] sm:$0xff] }
 0x2dd   :  { %4253 = vmatprep.mubr.bf16.mxu0 %v11183_v48  ;;  %v15173_v50 = vsel %vm6450_vm1, 1.0, %v18929_v54  ;;  %v15177_v17 = vsel %vm4352_vm0, %v10205_v8, -1e+30  ;;  %v8561_v10 = vadd.f32 %v8560_v2, %v8559_v9  ;;  %v15183_v31 = vsel %vm6449_vm2, 1.0, %v18929_v54  ;;  %v19093_v58 = vld [vmem:[#allocation62_spill] sm:$0xff] }
 0x2de   :  { %v15170_v59 = vpop.eup %11272  ;;  %19091 = vst [vmem:[#allocation60_spill] sm:$0xff] %v15173_v50  ;;  %v4039_v7 = vpop.f32.mrb[100].mxu0  ;;  %19092 = vst [vmem:[#allocation162_spill] sm:$0xff] %v15183_v31  ;;  %v2953_v1 = vadd.f32 %v14549_v51, %v19093_v58  ;;  %v8562_v8 = vsel %vm7297_vm7, %v15183_v31, 0.0  ;;  %vm8124_vm3 = vcmp.eq.s32.totalorder %v13834_v34, %v19095_v36  ;;  %11278 = vpow2.f32 %v4891_v43 }
 0x2df   :  { %19090 = vst [vmem:[#allocation47_spill] sm:$0xff] %v15170_v59  ;;  %v10207_v48 = vadd.f32 %v4039_v7, %v2950_v11  ;;  %v4041_v19 = vpop.f32.mrb[101].mxu0  ;;  %4579 = vmax.xlane.f32.xlu1 %v15177_v17  ;;  %5141 = vadd.xlane.f32.xlu0 %v15170_v59  ;;  %v15189_v41 = vpop.xlane.xlu0 %4509  ;;  %v11185_v11 = vld [vmem:[%s18430_s0 + $0x9d0] ss:$24 sps:$4 sm:$0xff]   ;;  %v11186_v7 = vld [vmem:[%s18430_s0 + $0x9fc] ss:$24 sps:$4 sm:$0xff]  }
 0x2e0   :  { %19094 = vst [vmem:[#allocation62_spill] sm:$0xff] %v15189_v41  ;;  %v4751_v2 = vsub.f32 %v14218_v4, %v15189_v41  ;;  %v4042_v9 = vpop.f32.mrb[102].mxu0  ;;  %v11189_v4 = vld [vmem:[%s18430_s0 + $0xa04] ss:$24 sps:$4 sm:$0xff]   ;;  %v15212_v36 = vpop.eup %11274 }
 0x2e1   :  { %v8252_v58 = vsel %vm8124_vm3, %v10207_v48, 0.0  ;;  %v10209_v19 = vadd.f32 %v4042_v9, %v2953_v1  ;;  %v4044_v46 = vpop.f32.mrb[103].mxu0  ;;  %v15203_v31 = vpop.xlane.xlu1 %4511  ;;  %v15207_v43 = vsel %vm4352_vm0, %v10207_v48, -1e+30  ;;  %19097 = vst [vmem:[#allocation163_spill] sm:$0xff] %v15212_v36  ;;  %v19098_v41 = vld [vmem:[#allocation50_spill] sm:$0xff]  ;;  %v8563_v9 = vadd.f32 %v8562_v8, %v8561_v10 }
 0x2e2   :  { %19096 = vst [vmem:[#allocation45_spill] sm:$0xff] %v15203_v31  ;;  %vm8125_vm4 = vcmp.eq.s32.totalorder %v13834_v34, %v19098_v41  ;;  %v8379_v60 = vadd.f32 %v8378_v32, %v8252_v58  ;;  %v4893_v59 = vmul.f32 1.442695, %v4751_v2  ;;  %v4752_v46 = vsub.f32 %v14228_v14, %v15203_v31  ;;  %3709 = vmatmul.mubr.bf16.gmra.mrb[208].mxu1 %v11182_v47  ;;  %v12071_v48 = vld [vmem:[%s18428_s3 + $0x198] sm:$0xff]  ;;  %v12072_v32 = vld [vmem:[%s18428_s3 + $0x190] sm:$0xff] }
 0x2e3   :  { %v8564_v1 = vsel %vm7297_vm7, %v15173_v50, 0.0  ;;  %vm6452_vm5 = vcmp.gt.s32.totalorder %v12071_v48, 0  ;;  %v8253_v40 = vsel %vm8125_vm4, %v10209_v19, 0.0  ;;  %5143 = vadd.xlane.f32.xlu1 %v15212_v36  ;;  %4581 = vmax.xlane.f32.xlu0 %v15207_v43  ;;  %vm6451_vm6 = vcmp.gt.s32.totalorder %v12072_v32, 0  ;;  %v19099_v41 = vld [vmem:[#allocation65_spill] sm:$0xff] }
 0x2e4   :  { %11280 = vpow2.f32 %v4893_v59  ;;  %v8380_v14 = vadd.f32 %v8379_v60, %v8253_v40  ;;  %v4895_v47 = vmul.f32 1.442695, %v4752_v46  ;;  %4254 = vmatmul.mubr.bf16.gmra.mrb[208].mxu0 %v11185_v11  ;;  %3716 = vmatprep.mubr.bf16.mxu1 %v11186_v7  ;;  %v2958_v2 = vadd.f32 %v14549_v51, %v19099_v41  ;;  %v11188_v60 = vld [vmem:[%s18430_s0 + $0x9f8] ss:$24 sps:$4 sm:$0xff]   ;;  %v15248_v51 = vld [vmem:[%s18431_s2] ss:$0 sm:$0xff] }
 0x2e5   :  { %4261 = vmatprep.mubr.bf16.mxu0 %v11189_v4  ;;  %v15233_v8 = vsel %vm6452_vm5, 1.0, %v18929_v54  ;;  %v15237_v48 = vsel %vm4352_vm0, %v10209_v19, -1e+30  ;;  %v8565_v40 = vadd.f32 %v8564_v1, %v8563_v9  ;;  %v15243_v59 = vsel %vm6451_vm6, 1.0, %v18929_v54  ;;  %v19103_v11 = vld [vmem:[#allocation66_spill] sm:$0xff]  ;;  %v19105_v9 = vld [vmem:[#allocation49_spill] sm:$0xff] }
 0x2e6   :  { %v15230_v10 = vpop.eup %11276  ;;  %19101 = vst [vmem:[#allocation65_spill] sm:$0xff] %v15233_v8  ;;  %v4047_v58 = vpop.f32.mrb[104].mxu0  ;;  %19102 = vst [vmem:[#allocation164_spill] sm:$0xff] %v15243_v59  ;;  %v2961_v7 = vadd.f32 %v15248_v51, %v19103_v11  ;;  %v8566_v1 = vsel %vm7297_vm7, %v15243_v59, 0.0  ;;  %vm8126_vm8 = vcmp.eq.s32.totalorder %v13834_v34, %v19105_v9  ;;  %11282 = vpow2.f32 %v4895_v47 }
 0x2e7   :  { %19100 = vst [vmem:[#allocation50_spill] sm:$0xff] %v15230_v10  ;;  %v10211_v4 = vadd.f32 %v4047_v58, %v2958_v2  ;;  %v4049_v46 = vpop.f32.mrb[105].mxu0  ;;  %4583 = vmax.xlane.f32.xlu1 %v15237_v48  ;;  %5145 = vadd.xlane.f32.xlu0 %v15230_v10  ;;  %v15254_v19 = vpop.xlane.xlu0 %4513  ;;  %v11191_v2 = vld [vmem:[%s18430_s0 + $0xa00] ss:$24 sps:$4 sm:$0xff]   ;;  %v11192_v58 = vld [vmem:[%s18430_s0 + $0xa2c] ss:$24 sps:$4 sm:$0xff]  }
 0x2e8   :  { %19104 = vst [vmem:[#allocation66_spill] sm:$0xff] %v15254_v19  ;;  %v4753_v32 = vsub.f32 %v14268_v61, %v15254_v19  ;;  %v4050_v41 = vpop.f32.mrb[106].mxu0  ;;  %v11195_v61 = vld [vmem:[%s18430_s0 + $0xa34] ss:$24 sps:$4 sm:$0xff]   ;;  %v15277_v9 = vpop.eup %11278  ;;  %v19108_v19 = vld [vmem:[#allocation54_spill] sm:$0xff] }
 0x2e9   :  { %v8254_v11 = vsel %vm8126_vm8, %v10211_v4, 0.0  ;;  %v10213_v46 = vadd.f32 %v4050_v41, %v2961_v7  ;;  %v4052_v50 = vpop.f32.mrb[107].mxu0  ;;  %v15268_v59 = vpop.xlane.xlu1 %4515  ;;  %v15272_v47 = vsel %vm4352_vm0, %v10211_v4, -1e+30  ;;  %19107 = vst [vmem:[#allocation165_spill] sm:$0xff] %v15277_v9  ;;  %vm8127_vm9 = vcmp.eq.s32.totalorder %v13834_v34, %v19108_v19  ;;  %v12074_v4 = vld [vmem:[%s18428_s3 + $0x1a8] sm:$0xff] }
 0x2ea   :  { %19106 = vst [vmem:[#allocation49_spill] sm:$0xff] %v15268_v59  ;;  %v8381_v31 = vadd.f32 %v8380_v14, %v8254_v11  ;;  %v4897_v10 = vmul.f32 1.442695, %v4753_v32  ;;  %v4754_v50 = vsub.f32 %v14280_v44, %v15268_v59  ;;  %3717 = vmatmul.mubr.bf16.gmra.mrb[212].mxu1 %v11188_v60  ;;  %v8568_v7 = vsel %vm7297_vm7, %v15233_v8, 0.0  ;;  %v12075_v14 = vld [vmem:[%s18428_s3 + $0x1a0] sm:$0xff]  ;;  %v19109_v19 = vld [vmem:[#allocation69_spill] sm:$0xff] }
 0x2eb   :  { %vm6454_vm10 = vcmp.gt.s32.totalorder %v12074_v4, 0  ;;  %v8567_v41 = vadd.f32 %v8566_v1, %v8565_v40  ;;  %v8255_v36 = vsel %vm8127_vm9, %v10213_v46, 0.0  ;;  %5147 = vadd.xlane.f32.xlu1 %v15277_v9  ;;  %4585 = vmax.xlane.f32.xlu0 %v15272_v47  ;;  %vm6453_vm11 = vcmp.gt.s32.totalorder %v12075_v14, 0 }
 0x2ec   :  { %11284 = vpow2.f32 %v4897_v10  ;;  %v8382_v44 = vadd.f32 %v8381_v31, %v8255_v36  ;;  %v4899_v60 = vmul.f32 1.442695, %v4754_v50  ;;  %4262 = vmatmul.mubr.bf16.gmra.mrb[212].mxu0 %v11191_v2  ;;  %3724 = vmatprep.mubr.bf16.mxu1 %v11192_v58  ;;  %v2966_v32 = vadd.f32 %v15248_v51, %v19109_v19  ;;  %v11194_v31 = vld [vmem:[%s18430_s0 + $0xa28] ss:$24 sps:$4 sm:$0xff]   ;;  %v19115_v19 = vld [vmem:[#allocation53_spill] sm:$0xff] }
 0x2ed   :  { %4269 = vmatprep.mubr.bf16.mxu0 %v11195_v61  ;;  %v15298_v1 = vsel %vm6454_vm10, 1.0, %v18929_v54  ;;  %v15302_v4 = vsel %vm4352_vm0, %v10213_v46, -1e+30  ;;  %v15308_v36 = vsel %vm6453_vm11, 1.0, %v18929_v54  ;;  %v8569_v10 = vadd.f32 %v8568_v7, %v8567_v41  ;;  %v19113_v2 = vld [vmem:[#allocation71_spill] sm:$0xff] }
 0x2ee   :  { %v15295_v40 = vpop.eup %11280  ;;  %19111 = vst [vmem:[#allocation69_spill] sm:$0xff] %v15298_v1  ;;  %v4055_v11 = vpop.f32.mrb[108].mxu0  ;;  %19112 = vst [vmem:[#allocation166_spill] sm:$0xff] %v15308_v36  ;;  %v2969_v58 = vadd.f32 %v15248_v51, %v19113_v2  ;;  %v8570_v46 = vsel %vm7297_vm7, %v15308_v36, 0.0  ;;  %vm8128_vm12 = vcmp.eq.s32.totalorder %v13834_v34, %v19115_v19  ;;  %11286 = vpow2.f32 %v4899_v60 }
 0x2ef   :  { %19110 = vst [vmem:[#allocation54_spill] sm:$0xff] %v15295_v40  ;;  %v10215_v61 = vadd.f32 %v4055_v11, %v2966_v32  ;;  %v4057_v50 = vpop.f32.mrb[109].mxu0  ;;  %4587 = vmax.xlane.f32.xlu1 %v15302_v4  ;;  %5149 = vadd.xlane.f32.xlu0 %v15295_v40  ;;  %v15314_v14 = vpop.xlane.xlu0 %4517  ;;  %v11197_v32 = vld [vmem:[%s18430_s0 + $0xa30] ss:$24 sps:$4 sm:$0xff]   ;;  %v11198_v11 = vld [vmem:[%s18430_s0 + $0xa5c] ss:$24 sps:$4 sm:$0xff]  }
 0x2f0   :  { %19114 = vst [vmem:[#allocation71_spill] sm:$0xff] %v15314_v14  ;;  %v4755_v7 = vsub.f32 %v14320_v6, %v15314_v14  ;;  %v4058_v41 = vpop.f32.mrb[110].mxu0  ;;  %v11201_v6 = vld [vmem:[%s18430_s0 + $0xa64] ss:$24 sps:$4 sm:$0xff]   ;;  %v15337_v19 = vpop.eup %11282 }
 0x2f1   :  { %v8256_v2 = vsel %vm8128_vm12, %v10215_v61, 0.0  ;;  %v10217_v50 = vadd.f32 %v4058_v41, %v2969_v58  ;;  %v4060_v8 = vpop.f32.mrb[111].mxu0  ;;  %v15328_v36 = vpop.xlane.xlu1 %4519  ;;  %v15332_v60 = vsel %vm4352_vm0, %v10215_v61, -1e+30  ;;  %19117 = vst [vmem:[#allocation167_spill] sm:$0xff] %v15337_v19  ;;  %v19118_v14 = vld [vmem:[#allocation58_spill] sm:$0xff]  ;;  %v8571_v41 = vadd.f32 %v8570_v46, %v8569_v10 }
 0x2f2   :  { %19116 = vst [vmem:[#allocation53_spill] sm:$0xff] %v15328_v36  ;;  %vm8129_vm13 = vcmp.eq.s32.totalorder %v13834_v34, %v19118_v14  ;;  %v8383_v59 = vadd.f32 %v8382_v44, %v8256_v2  ;;  %v4901_v40 = vmul.f32 1.442695, %v4755_v7  ;;  %v4756_v8 = vsub.f32 %v14332_v63, %v15328_v36  ;;  %3725 = vmatmul.mubr.bf16.gmra.mrb[216].mxu1 %v11194_v31  ;;  %v12076_v61 = vld [vmem:[%s18428_s3 + $0x1b8] sm:$0xff]  ;;  %v12077_v44 = vld [vmem:[%s18428_s3 + $0x1b0] sm:$0xff]  ;;  %v19119_v14 = vld [vmem:[#allocation74_spill] sm:$0xff] }
 0x2f3   :  { %v8572_v58 = vsel %vm7297_vm7, %v15298_v1, 0.0  ;;  %vm6456_vm14 = vcmp.gt.s32.totalorder %v12076_v61, 0  ;;  %v8257_v9 = vsel %vm8129_vm13, %v10217_v50, 0.0  ;;  %5151 = vadd.xlane.f32.xlu1 %v15337_v19  ;;  %4589 = vmax.xlane.f32.xlu0 %v15332_v60  ;;  %vm6455_vm15 = vcmp.gt.s32.totalorder %v12077_v44, 0 }
 0x2f4   :  { %11288 = vpow2.f32 %v4901_v40  ;;  %v8384_v63 = vadd.f32 %v8383_v59, %v8257_v9  ;;  %v4903_v31 = vmul.f32 1.442695, %v4756_v8  ;;  %4270 = vmatmul.mubr.bf16.gmra.mrb[216].mxu0 %v11197_v32  ;;  %3732 = vmatprep.mubr.bf16.mxu1 %v11198_v11  ;;  %v2974_v7 = vadd.f32 %v15248_v51, %v19119_v14  ;;  %v11200_v59 = vld [vmem:[%s18430_s0 + $0xa58] ss:$24 sps:$4 sm:$0xff]  }
 0x2f5   :  { %4277 = vmatprep.mubr.bf16.mxu0 %v11201_v6  ;;  %v15358_v46 = vsel %vm6456_vm14, 1.0, %v18929_v54  ;;  %v15362_v61 = vsel %vm4352_vm0, %v10217_v50, -1e+30  ;;  %v15368_v9 = vsel %vm6455_vm15, 1.0, %v18929_v54  ;;  %v8573_v40 = vadd.f32 %v8572_v58, %v8571_v41  ;;  %v19123_v32 = vld [vmem:[#allocation76_spill] sm:$0xff] }
 0x2f6   :  { %v15355_v10 = vpop.eup %11284  ;;  %19121 = vst [vmem:[#allocation74_spill] sm:$0xff] %v15358_v46  ;;  %v4063_v2 = vpop.f32.mrb[112].mxu0  ;;  %19122 = vst [vmem:[#allocation168_spill] sm:$0xff] %v15368_v9  ;;  %v2977_v11 = vadd.f32 %v15248_v51, %v19123_v32  ;;  %v8574_v50 = vsel %vm7297_vm7, %v15368_v9, 0.0  ;;  %v19125_v14 = vld [vmem:[#allocation56_spill] sm:$0xff]  ;;  %11290 = vpow2.f32 %v4903_v31 }
 0x2f7   :  { %19120 = vst [vmem:[#allocation58_spill] sm:$0xff] %v15355_v10  ;;  %v10219_v6 = vadd.f32 %v4063_v2, %v2974_v7  ;;  %v4065_v8 = vpop.f32.mrb[113].mxu0  ;;  %4591 = vmax.xlane.f32.xlu1 %v15362_v61  ;;  %5153 = vadd.xlane.f32.xlu0 %v15355_v10  ;;  %v15374_v44 = vpop.xlane.xlu0 %4521  ;;  %vm8130_vm1 = vcmp.eq.s32.totalorder %v13834_v34, %v19125_v14  ;;  %v11203_v7 = vld [vmem:[%s18430_s0 + $0xa60] ss:$24 sps:$4 sm:$0xff]   ;;  %v11204_v2 = vld [vmem:[%s18430_s0 + $0xa8c] ss:$24 sps:$4 sm:$0xff]  }
 0x2f8   :  { %19124 = vst [vmem:[#allocation76_spill] sm:$0xff] %v15374_v44  ;;  %v4757_v58 = vsub.f32 %v14372_v30, %v15374_v44  ;;  %v4066_v41 = vpop.f32.mrb[114].mxu0  ;;  %v11207_v30 = vld [vmem:[%s18430_s0 + $0xa94] ss:$24 sps:$4 sm:$0xff]   ;;  %v15397_v14 = vpop.eup %11286  ;;  %v19128_v44 = vld [vmem:[#allocation61_spill] sm:$0xff] }
 0x2f9   :  { %v8258_v32 = vsel %vm8130_vm1, %v10219_v6, 0.0  ;;  %v10221_v8 = vadd.f32 %v4066_v41, %v2977_v11  ;;  %v4068_v1 = vpop.f32.mrb[115].mxu0  ;;  %v15388_v9 = vpop.xlane.xlu1 %4523  ;;  %v15392_v31 = vsel %vm4352_vm0, %v10219_v6, -1e+30  ;;  %19127 = vst [vmem:[#allocation169_spill] sm:$0xff] %v15397_v14  ;;  %vm8131_vm2 = vcmp.eq.s32.totalorder %v13834_v34, %v19128_v44  ;;  %v12078_v6 = vld [vmem:[%s18428_s3 + $0x1c8] sm:$0xff] }
 0x2fa   :  { %19126 = vst [vmem:[#allocation56_spill] sm:$0xff] %v15388_v9  ;;  %v8385_v36 = vadd.f32 %v8384_v63, %v8258_v32  ;;  %v4905_v10 = vmul.f32 1.442695, %v4757_v58  ;;  %v4758_v1 = vsub.f32 %v14382_v23, %v15388_v9  ;;  %3733 = vmatmul.mubr.bf16.gmra.mrb[220].mxu1 %v11200_v59  ;;  %v8576_v11 = vsel %vm7297_vm7, %v15358_v46, 0.0  ;;  %v12079_v63 = vld [vmem:[%s18428_s3 + $0x1c0] sm:$0xff]  ;;  %v19129_v44 = vld [vmem:[#allocation79_spill] sm:$0xff] }
 0x2fb   :  { %vm6458_vm3 = vcmp.gt.s32.totalorder %v12078_v6, 0  ;;  %v8575_v41 = vadd.f32 %v8574_v50, %v8573_v40  ;;  %v8259_v19 = vsel %vm8131_vm2, %v10221_v8, 0.0  ;;  %5155 = vadd.xlane.f32.xlu1 %v15397_v14  ;;  %4593 = vmax.xlane.f32.xlu0 %v15392_v31  ;;  %vm6457_vm4 = vcmp.gt.s32.totalorder %v12079_v63, 0  ;;  %v12080_v14 = vld [vmem:[%s18428_s3 + $0x1d0] sm:$0xff] }
 0x2fc   :  { %11292 = vpow2.f32 %v4905_v10  ;;  %v8386_v23 = vadd.f32 %v8385_v36, %v8259_v19  ;;  %v4907_v59 = vmul.f32 1.442695, %v4758_v1  ;;  %4278 = vmatmul.mubr.bf16.gmra.mrb[220].mxu0 %v11203_v7  ;;  %3740 = vmatprep.mubr.bf16.mxu1 %v11204_v2  ;;  %v2982_v58 = vadd.f32 %v15248_v51, %v19129_v44  ;;  %v11206_v36 = vld [vmem:[%s18430_s0 + $0xa88] ss:$24 sps:$4 sm:$0xff]   ;;  %v19133_v7 = vld [vmem:[#allocation80_spill] sm:$0xff] }
 0x2fd   :  { %4285 = vmatprep.mubr.bf16.mxu0 %v11207_v30  ;;  %v15418_v50 = vsel %vm6458_vm3, 1.0, %v18929_v54  ;;  %v15422_v6 = vsel %vm4352_vm0, %v10221_v8, -1e+30  ;;  %v15428_v19 = vsel %vm6457_vm4, 1.0, %v18929_v54  ;;  %v8577_v10 = vadd.f32 %v8576_v11, %v8575_v41  ;;  %v19135_v44 = vld [vmem:[#allocation59_spill] sm:$0xff] }
 0x2fe   :  { %v15415_v40 = vpop.eup %11288  ;;  %19131 = vst [vmem:[#allocation79_spill] sm:$0xff] %v15418_v50  ;;  %v4071_v32 = vpop.f32.mrb[116].mxu0  ;;  %19132 = vst [vmem:[#allocation170_spill] sm:$0xff] %v15428_v19  ;;  %v2985_v2 = vadd.f32 %v15248_v51, %v19133_v7  ;;  %v8578_v8 = vsel %vm7297_vm7, %v15428_v19, 0.0  ;;  %vm8132_vm5 = vcmp.eq.s32.totalorder %v13834_v34, %v19135_v44  ;;  %11294 = vpow2.f32 %v4907_v59 }
 0x2ff   :  { %19130 = vst [vmem:[#allocation61_spill] sm:$0xff] %v15415_v40  ;;  %v10223_v30 = vadd.f32 %v4071_v32, %v2982_v58  ;;  %v4073_v1 = vpop.f32.mrb[117].mxu0  ;;  %4595 = vmax.xlane.f32.xlu1 %v15422_v6  ;;  %5157 = vadd.xlane.f32.xlu0 %v15415_v40  ;;  %v15434_v63 = vpop.xlane.xlu0 %4525  ;;  %v11209_v58 = vld [vmem:[%s18430_s0 + $0xa90] ss:$24 sps:$4 sm:$0xff]   ;;  %v11210_v32 = vld [vmem:[%s18430_s0 + $0xabc] ss:$24 sps:$4 sm:$0xff]  }
 0x300   :  { %19134 = vst [vmem:[#allocation80_spill] sm:$0xff] %v15434_v63  ;;  %v4759_v11 = vsub.f32 %v14422_v33, %v15434_v63  ;;  %v4074_v41 = vpop.f32.mrb[118].mxu0  ;;  %v11213_v33 = vld [vmem:[%s18430_s0 + $0xac4] ss:$24 sps:$4 sm:$0xff]   ;;  %v15457_v44 = vpop.eup %11290  ;;  %v19138_v63 = vld [vmem:[#allocation64_spill] sm:$0xff]  ;;  %vm6459_vm8 = vcmp.gt.s32.totalorder %v12080_v14, 0 }
 0x301   :  { %v8260_v7 = vsel %vm8132_vm5, %v10223_v30, 0.0  ;;  %v10225_v1 = vadd.f32 %v4074_v41, %v2985_v2  ;;  %v4076_v46 = vpop.f32.mrb[119].mxu0  ;;  %v15448_v19 = vpop.xlane.xlu1 %4527  ;;  %v15452_v59 = vsel %vm4352_vm0, %v10223_v30, -1e+30  ;;  %19137 = vst [vmem:[#allocation171_spill] sm:$0xff] %v15457_v44  ;;  %vm8133_vm6 = vcmp.eq.s32.totalorder %v13834_v34, %v19138_v63 }
 0x302   :  { %19136 = vst [vmem:[#allocation59_spill] sm:$0xff] %v15448_v19  ;;  %v8387_v9 = vadd.f32 %v8386_v23, %v8260_v7  ;;  %v4909_v40 = vmul.f32 1.442695, %v4759_v11  ;;  %v4760_v46 = vsub.f32 %v14434_v53, %v15448_v19  ;;  %3741 = vmatmul.mubr.bf16.gmra.mrb[224].mxu1 %v11206_v36  ;;  %v8580_v2 = vsel %vm7297_vm7, %v15418_v50, 0.0  ;;  %v19139_v53 = vld [vmem:[#allocation83_spill] sm:$0xff] }
 0x303   :  { %v8579_v30 = vadd.f32 %v8578_v8, %v8577_v10  ;;  %v8261_v41 = vsel %vm8133_vm6, %v10225_v1, 0.0  ;;  %5159 = vadd.xlane.f32.xlu1 %v15457_v44  ;;  %4597 = vmax.xlane.f32.xlu0 %v15452_v59  ;;  %v2990_v36 = vadd.f32 %v15248_v51, %v19139_v53  ;;  %v12081_v8 = vld [vmem:[%s18428_s3 + $0x1d8] sm:$0xff]  ;;  %v15479_v14 = vsel %vm4352_vm0, %v10225_v1, -1e+30  ;;  %v19144_v53 = vld [vmem:[#allocation63_spill] sm:$0xff] }
 0x304   :  { %11296 = vpow2.f32 %v4909_v40  ;;  %v8388_v23 = vadd.f32 %v8387_v9, %v8261_v41  ;;  %v4911_v63 = vmul.f32 1.442695, %v4760_v46  ;;  %4286 = vmatmul.mubr.bf16.gmra.mrb[224].mxu0 %v11209_v58  ;;  %3748 = vmatprep.mubr.bf16.mxu1 %v11210_v32  ;;  %vm6460_vm9 = vcmp.gt.s32.totalorder %v12081_v8, 0  ;;  %v11212_v9 = vld [vmem:[%s18430_s0 + $0xab8] ss:$24 sps:$4 sm:$0xff]   ;;  %v12083_v8 = vld [vmem:[%s18428_s3 + $0x1e8] sm:$0xff] }
 0x305   :  { %4293 = vmatprep.mubr.bf16.mxu0 %v11213_v33  ;;  %v15485_v40 = vsel %vm6459_vm8, 1.0, %v18929_v54  ;;  %v8581_v58 = vadd.f32 %v8580_v2, %v8579_v30  ;;  %v19142_v32 = vld [vmem:[#allocation85_spill] sm:$0xff]  ;;  %vm8134_vm10 = vcmp.eq.s32.totalorder %v13834_v34, %v19144_v53  ;;  %vm6462_vm13 = vcmp.gt.s32.totalorder %v12083_v8, 0 }
 0x306   :  { %v15472_v10 = vpop.eup %11292  ;;  %v4079_v11 = vpop.f32.mrb[120].mxu0  ;;  %19141 = vst [vmem:[#allocation83_spill] sm:$0xff] %v15485_v40  ;;  %v2993_v7 = vadd.f32 %v15248_v51, %v19142_v32  ;;  %v8582_v1 = vsel %vm7297_vm7, %v15485_v40, 0.0  ;;  %11298 = vpow2.f32 %v4911_v63 }
 0x307   :  { %19140 = vst [vmem:[#allocation64_spill] sm:$0xff] %v15472_v10  ;;  %v10227_v33 = vadd.f32 %v4079_v11, %v2990_v36  ;;  %v4081_v46 = vpop.f32.mrb[121].mxu0  ;;  %4599 = vmax.xlane.f32.xlu1 %v15479_v14  ;;  %5161 = vadd.xlane.f32.xlu0 %v15472_v10  ;;  %v15491_v41 = vpop.xlane.xlu0 %4529  ;;  %v11215_v36 = vld [vmem:[%s18430_s0 + $0xac0] ss:$24 sps:$4 sm:$0xff]   ;;  %v11216_v11 = vld [vmem:[%s18430_s0 + $0xaec] ss:$24 sps:$4 sm:$0xff]  }
 0x308   :  { %19143 = vst [vmem:[#allocation85_spill] sm:$0xff] %v15491_v41  ;;  %v4761_v2 = vsub.f32 %v14474_v20, %v15491_v41  ;;  %v4082_v30 = vpop.f32.mrb[122].mxu0  ;;  %v11219_v20 = vld [vmem:[%s18430_s0 + $0xaf4] ss:$24 sps:$4 sm:$0xff]   ;;  %v15514_v53 = vpop.eup %11294 }
 0x309   :  { %v8262_v32 = vsel %vm8134_vm10, %v10227_v33, 0.0  ;;  %v10229_v46 = vadd.f32 %v4082_v30, %v2993_v7  ;;  %v4084_v50 = vpop.f32.mrb[123].mxu0  ;;  %v15505_v40 = vpop.xlane.xlu1 %4531  ;;  %v15509_v63 = vsel %vm4352_vm0, %v10227_v33, -1e+30  ;;  %19147 = vst [vmem:[#allocation173_spill] sm:$0xff] %v15514_v53  ;;  %v19148_v41 = vld [vmem:[#allocation68_spill] sm:$0xff]  ;;  %v8583_v33 = vadd.f32 %v8582_v1, %v8581_v58 }
 0x30a   :  { %19145 = vst [vmem:[#allocation63_spill] sm:$0xff] %v15505_v40  ;;  %19146 = vst [vmem:[#allocation172_spill] sm:$0xff] %v15509_v63  ;;  %vm8135_vm11 = vcmp.eq.s32.totalorder %v13834_v34, %v19148_v41  ;;  %v8389_v19 = vadd.f32 %v8388_v23, %v8262_v32  ;;  %v4913_v10 = vmul.f32 1.442695, %v4761_v2  ;;  %v4762_v50 = vsub.f32 %v14486_v21, %v15505_v40  ;;  %v12082_v30 = vld [vmem:[%s18428_s3 + $0x1e0] sm:$0xff]  ;;  %v19150_v58 = vld [vmem:[#allocation88_spill] sm:$0xff] }
 0x30b   :  { %3749 = vmatmul.mubr.bf16.gmra.mrb[228].mxu1 %v11212_v9  ;;  %v15522_v7 = vsel %vm6460_vm9, 1.0, %v18929_v54  ;;  %vm6461_vm12 = vcmp.gt.s32.totalorder %v12082_v30, 0  ;;  %v8263_v44 = vsel %vm8135_vm11, %v10229_v46, 0.0  ;;  %5163 = vadd.xlane.f32.xlu1 %v15514_v53  ;;  %v2998_v41 = vadd.f32 %v15248_v51, %v19150_v58 }
 0x30c   :  { %19149 = vst [vmem:[#allocation68_spill] sm:$0xff] %v15522_v7  ;;  %4601 = vmax.xlane.f32.xlu0 %v15509_v63  ;;  %v8584_v23 = vsel %vm7297_vm7, %v15522_v7, 0.0  ;;  %11300 = vpow2.f32 %v4913_v10  ;;  %v8390_v21 = vadd.f32 %v8389_v19, %v8263_v44  ;;  %v4915_v9 = vmul.f32 1.442695, %v4762_v50  ;;  %4294 = vmatmul.mubr.bf16.gmra.mrb[228].mxu0 %v11215_v36  ;;  %v11218_v44 = vld [vmem:[%s18430_s0 + $0xae8] ss:$24 sps:$4 sm:$0xff]  }
 0x30d   :  { %3756 = vmatprep.mubr.bf16.mxu1 %v11216_v11  ;;  %4301 = vmatprep.mubr.bf16.mxu0 %v11219_v20  ;;  %v15539_v2 = vsel %vm6461_vm12, 1.0, %v18929_v54  ;;  %v15543_v19 = vsel %vm4352_vm0, %v10229_v46, -1e+30  ;;  %v8585_v36 = vadd.f32 %v8584_v23, %v8583_v33  ;;  %v19154_v11 = vld [vmem:[#allocation90_spill] sm:$0xff]  ;;  %v12084_v46 = vld [vmem:[%s18428_s3 + $0x1f0] sm:$0xff]  ;;  %v19156_v7 = vld [vmem:[#allocation67_spill] sm:$0xff] }
 0x30e   :  { %v15536_v1 = vpop.eup %11296  ;;  %19152 = vst [vmem:[#allocation174_spill] sm:$0xff] %v15539_v2  ;;  %v4087_v32 = vpop.f32.mrb[124].mxu0  ;;  %19153 = vst [vmem:[#allocation175_spill] sm:$0xff] %v15543_v19  ;;  %v8586_v10 = vsel %vm7297_vm7, %v15539_v2, 0.0  ;;  %v3001_v20 = vadd.f32 %v15248_v51, %v19154_v11  ;;  %vm6463_vm14 = vcmp.gt.s32.totalorder %v12084_v46, 0  ;;  %vm8136_vm15 = vcmp.eq.s32.totalorder %v13834_v34, %v19156_v7 }
 0x30f   :  { %19151 = vst [vmem:[#allocation88_spill] sm:$0xff] %v15536_v1  ;;  %v10231_v50 = vadd.f32 %v4087_v32, %v2998_v41  ;;  %v4089_v30 = vpop.f32.mrb[125].mxu0  ;;  %4603 = vmax.xlane.f32.xlu1 %v15543_v19  ;;  %v15554_v58 = vpop.xlane.xlu0 %4533  ;;  %11302 = vpow2.f32 %v4915_v9  ;;  %v11221_v41 = vld [vmem:[%s18430_s0 + $0xaf0] ss:$24 sps:$4 sm:$0xff]   ;;  %v11222_v32 = vld [vmem:[%s18430_s0 + $0xb1c] ss:$24 sps:$4 sm:$0xff]  }
 0x310   :  { %5165 = vadd.xlane.f32.xlu0 %v15536_v1  ;;  %19155 = vst [vmem:[#allocation90_spill] sm:$0xff] %v15554_v58  ;;  %v4763_v33 = vsub.f32 %v14526_v3, %v15554_v58  ;;  %v4090_v23 = vpop.f32.mrb[126].mxu0  ;;  %v11225_v3 = vld [vmem:[%s18430_s0 + $0xb24] ss:$24 sps:$4 sm:$0xff]   ;;  %v15578_v9 = vpop.eup %11298  ;;  %v19160_v58 = vld [vmem:[#allocation72_spill] sm:$0xff]  ;;  %v15597_v8 = vsel %vm6463_vm14, 1.0, %v18929_v54 }
 0x311   :  { %v8264_v11 = vsel %vm8136_vm15, %v10231_v50, 0.0  ;;  %v10233_v30 = vadd.f32 %v4090_v23, %v3001_v20  ;;  %v4092_v2 = vpop.f32.mrb[127].mxu0  ;;  %v15569_v40 = vpop.xlane.xlu1 %4535  ;;  %v15573_v7 = vsel %vm4352_vm0, %v10231_v50, -1e+30  ;;  %19159 = vst [vmem:[#allocation177_spill] sm:$0xff] %v15578_v9  ;;  %vm8137_vm1 = vcmp.eq.s32.totalorder %v13834_v34, %v19160_v58  ;;  %v12085_v50 = vld [vmem:[%s18428_s3 + $0x1f8] sm:$0xff] }
 0x312   :  { %19157 = vst [vmem:[#allocation67_spill] sm:$0xff] %v15569_v40  ;;  %19158 = vst [vmem:[#allocation176_spill] sm:$0xff] %v15573_v7  ;;  %v8391_v1 = vadd.f32 %v8390_v21, %v8264_v11  ;;  %v4917_v53 = vmul.f32 1.442695, %v4763_v33  ;;  %v4764_v2 = vsub.f32 %v14536_v26, %v15569_v40  ;;  %v15586_v20 = vsel %vm6462_vm13, 1.0, %v18929_v54 }
 0x313   :  { %3757 = vmatmul.mubr.bf16.gmra.mrb[232].mxu1 %v11218_v44  ;;  %19161 = vst [vmem:[#allocation72_spill] sm:$0xff] %v15586_v20  ;;  %vm6464_vm2 = vcmp.gt.s32.totalorder %v12085_v50, 0  ;;  %v8587_v23 = vadd.f32 %v8586_v10, %v8585_v36  ;;  %v8265_v19 = vsel %vm8137_vm1, %v10233_v30, 0.0  ;;  %5167 = vadd.xlane.f32.xlu1 %v15578_v9  ;;  %v8588_v21 = vsel %vm7297_vm7, %v15586_v20, 0.0  ;;  %19162 = vst [vmem:[#allocation178_spill] sm:$0xff] %v15597_v8  ;;  %v12086_v20 = vld [vmem:[%s18428_s3 + $0x208] sm:$0xff] }
 0x314   :  { %4605 = vmax.xlane.f32.xlu0 %v15573_v7  ;;  %11304 = vpow2.f32 %v4917_v53  ;;  %v8392_v26 = vadd.f32 %v8391_v1, %v8265_v19  ;;  %v4919_v44 = vmul.f32 1.442695, %v4764_v2  ;;  %4302 = vmatmul.mubr.bf16.gmra.mrb[232].mxu0 %v11221_v41  ;;  %v15604_v11 = vsel %vm4352_vm0, %v10233_v30, -1e+30  ;;  %v11224_v1 = vld [vmem:[%s18430_s0 + $0xb18] ss:$24 sps:$4 sm:$0xff]  }
 0x315   :  { %3764 = vmatprep.mubr.bf16.mxu1 %v11222_v32  ;;  %v3550_v58 = vpop.f32.mrb[128].mxu1  ;;  %4309 = vmatprep.mubr.bf16.mxu0 %v11225_v3  ;;  %19164 = vst [vmem:[#allocation180_spill] sm:$0xff] %v15604_v11  ;;  %v15611_v19 = vsel %vm6464_vm2, 1.0, %v18929_v54  ;;  %v8590_v46 = vsel %vm7297_vm7, %v15597_v8, 0.0  ;;  %v8589_v41 = vadd.f32 %v8588_v21, %v8587_v23  ;;  %v11228_v3 = vld [vmem:[%s18430_s0 + $0xb4c] ss:$24 sps:$4 sm:$0xff]  }
 0x316   :  { %v15599_v10 = vpop.eup %11300  ;;  %v10234_v36 = vadd.f32 %v15248_v51, %v3550_v58  ;;  %v3552_v33 = vpop.f32.mrb[129].mxu1  ;;  %19165 = vst [vmem:[#allocation181_spill] sm:$0xff] %v15611_v19  ;;  %11306 = vpow2.f32 %v4919_v44  ;;  %v11227_v21 = vld [vmem:[%s18430_s0 + $0xb20] ss:$24 sps:$4 sm:$0xff]   ;;  %v8592_v8 = vsel %vm7297_vm7, %v15611_v19, 0.0  ;;  %vm6466_vm3 = vcmp.gt.s32.totalorder %v12086_v20, 0 }
 0x317   :  { %19163 = vst [vmem:[#allocation179_spill] sm:$0xff] %v15599_v10  ;;  %v4095_v53 = vpop.f32.mrb[128].mxu0  ;;  %4607 = vmax.xlane.f32.xlu1 %v15604_v11  ;;  %v15617_v32 = vpop.xlane.xlu0 %4537  ;;  %v19167_v44 = vld [vmem:[#allocation70_spill] sm:$0xff]  ;;  %v8591_v9 = vadd.f32 %v8590_v46, %v8589_v41  ;;  %v19170_v11 = vld [vmem:[#allocation75_spill] sm:$0xff] }
 0x318   :  { %5169 = vadd.xlane.f32.xlu0 %v15599_v10  ;;  %19166 = vst [vmem:[#allocation182_spill] sm:$0xff] %v15617_v32  ;;  %v3553_v30 = vpop.f32.mrb[130].mxu1  ;;  %v4765_v2 = vsub.f32 %v14581_v25, %v15617_v32  ;;  %v10235_v58 = vadd.f32 %v10234_v36, %v4095_v53  ;;  %v4097_v23 = vpop.f32.mrb[129].mxu0  ;;  %v12087_v25 = vld [vmem:[%s18428_s3 + $0x200] sm:$0xff]  ;;  %vm8138_vm5 = vcmp.eq.s32.totalorder %v13834_v34, %v19167_v44 }
 0x319   :  { %v10236_v50 = vadd.f32 %v15248_v51, %v3553_v30  ;;  %v3555_v33 = vpop.f32.mrb[131].mxu1  ;;  %vm6465_vm4 = vcmp.gt.s32.totalorder %v12087_v25, 0  ;;  %v15638_v36 = vpop.xlane.xlu1 %4539  ;;  %v11231_v30 = vld [vmem:[%s18430_s0 + $0xb54] ss:$24 sps:$4 sm:$0xff]   ;;  %vm8139_vm6 = vcmp.eq.s32.totalorder %v13834_v34, %v19170_v11 }
 0x31a   :  { %19168 = vst [vmem:[#allocation70_spill] sm:$0xff] %v15638_v36  ;;  %v4098_v53 = vpop.f32.mrb[130].mxu0  ;;  %v15643_v33 = vpop.eup %11302  ;;  %v4921_v23 = vmul.f32 1.442695, %v4765_v2  ;;  %v8266_v19 = vsel %vm8138_vm5, %v10235_v58, 0.0  ;;  %v4766_v32 = vsub.f32 %v14593_v56, %v15638_v36  ;;  %v19178_v36 = vld [vmem:[#allocation78_spill] sm:$0xff] }
 0x31b   :  { %19169 = vst [vmem:[#allocation183_spill] sm:$0xff] %v15643_v33  ;;  %v10237_v40 = vadd.f32 %v10236_v50, %v4098_v53  ;;  %3765 = vmatmul.mubr.bf16.gmra.mrb[236].mxu1 %v11224_v1  ;;  %v4100_v10 = vpop.f32.mrb[131].mxu0  ;;  %v8393_v44 = vadd.f32 %v8392_v26, %v8266_v19  ;;  %5171 = vadd.xlane.f32.xlu1 %v15643_v33  ;;  %v15652_v7 = vsel %vm4352_vm0, %v10235_v58, -1e+30  ;;  %v15663_v1 = vsel %vm6465_vm4, 1.0, %v18929_v54 }
 0x31c   :  { %3772 = vmatprep.mubr.bf16.mxu1 %v11228_v3  ;;  %11308 = vpow2.f32 %v4921_v23  ;;  %v4923_v2 = vmul.f32 1.442695, %v4766_v32  ;;  %4609 = vmax.xlane.f32.xlu0 %v15652_v7  ;;  %19172 = vst [vmem:[#allocation184_spill] sm:$0xff] %v15663_v1  ;;  %v11230_v32 = vld [vmem:[%s18430_s0 + $0xb48] ss:$24 sps:$4 sm:$0xff]   ;;  %v8593_v3 = vadd.f32 %v8592_v8, %v8591_v9  ;;  %vm8141_vm11 = vcmp.eq.s32.totalorder %v13834_v34, %v19178_v36 }
 0x31d   :  { %v8267_v63 = vsel %vm8139_vm6, %v10237_v40, 0.0  ;;  %4310 = vmatmul.mubr.bf16.gmra.mrb[236].mxu0 %v11227_v21  ;;  %v15657_v56 = vsel %vm4352_vm0, %v10237_v40, -1e+30  ;;  %v3558_v11 = vpop.f32.mrb[132].mxu1  ;;  %v15671_v40 = vsel %vm6466_vm3, 1.0, %v18929_v54 }
 0x31e   :  { %v8394_v10 = vadd.f32 %v8393_v44, %v8267_v63  ;;  %4317 = vmatprep.mubr.bf16.mxu0 %v11231_v30  ;;  %v15659_v26 = vpop.eup %11304  ;;  %v10238_v19 = vadd.f32 %v15248_v51, %v3558_v11  ;;  %v3560_v46 = vpop.f32.mrb[133].mxu1  ;;  %19173 = vst [vmem:[#allocation185_spill] sm:$0xff] %v15671_v40  ;;  %v8594_v63 = vsel %vm7297_vm7, %v15663_v1, 0.0  ;;  %v11234_v21 = vld [vmem:[%s18430_s0 + $0xb7c] ss:$24 sps:$4 sm:$0xff]   ;;  %11310 = vpow2.f32 %v4923_v2 }
 0x31f   :  { %19171 = vst [vmem:[#allocation75_spill] sm:$0xff] %v15659_v26  ;;  %v4103_v41 = vpop.f32.mrb[132].mxu0  ;;  %4611 = vmax.xlane.f32.xlu1 %v15657_v56  ;;  %v15676_v50 = vpop.xlane.xlu0 %4541  ;;  %v11233_v8 = vld [vmem:[%s18430_s0 + $0xb50] ss:$24 sps:$4 sm:$0xff]   ;;  %v8596_v23 = vsel %vm7297_vm7, %v15671_v40, 0.0  ;;  %v12088_v44 = vld [vmem:[%s18428_s3 + $0x218] sm:$0xff] }
 0x320   :  { %19174 = vst [vmem:[#allocation186_spill] sm:$0xff] %v15676_v50  ;;  %v3561_v58 = vpop.f32.mrb[134].mxu1  ;;  %v4767_v25 = vsub.f32 %v14633_v62, %v15676_v50  ;;  %v10239_v53 = vadd.f32 %v10238_v19, %v4103_v41  ;;  %5173 = vadd.xlane.f32.xlu0 %v15659_v26  ;;  %v4105_v9 = vpop.f32.mrb[133].mxu0  ;;  %vm6468_vm8 = vcmp.gt.s32.totalorder %v12088_v44, 0  ;;  %v12089_v62 = vld [vmem:[%s18428_s3 + $0x210] sm:$0xff]  ;;  %v19175_v2 = vld [vmem:[#allocation73_spill] sm:$0xff]  ;;  %v8595_v50 = vadd.f32 %v8594_v63, %v8593_v3 }
 0x321   :  { %v10240_v20 = vadd.f32 %v15248_v51, %v3561_v58  ;;  %v3563_v30 = vpop.f32.mrb[135].mxu1  ;;  %vm6467_vm9 = vcmp.gt.s32.totalorder %v12089_v62, 0  ;;  %vm8140_vm10 = vcmp.eq.s32.totalorder %v13834_v34, %v19175_v2  ;;  %v15698_v11 = vpop.xlane.xlu1 %4543  ;;  %v11237_v46 = vld [vmem:[%s18430_s0 + $0xb84] ss:$24 sps:$4 sm:$0xff]  }
 0x322   :  { %19176 = vst [vmem:[#allocation73_spill] sm:$0xff] %v15698_v11  ;;  %v4106_v19 = vpop.f32.mrb[134].mxu0  ;;  %v15703_v41 = vpop.eup %11306  ;;  %v4925_v58 = vmul.f32 1.442695, %v4767_v25  ;;  %v8268_v30 = vsel %vm8140_vm10, %v10239_v53, 0.0  ;;  %v4768_v9 = vsub.f32 %v14645_v29, %v15698_v11  ;;  %v19186_v11 = vld [vmem:[#allocation82_spill] sm:$0xff] }
 0x323   :  { %19177 = vst [vmem:[#allocation187_spill] sm:$0xff] %v15703_v41  ;;  %v10241_v40 = vadd.f32 %v10240_v20, %v4106_v19  ;;  %3773 = vmatmul.mubr.bf16.gmra.mrb[240].mxu1 %v11230_v32  ;;  %v4108_v1 = vpop.f32.mrb[135].mxu0  ;;  %v8395_v2 = vadd.f32 %v8394_v10, %v8268_v30  ;;  %5175 = vadd.xlane.f32.xlu1 %v15703_v41  ;;  %v15712_v26 = vsel %vm4352_vm0, %v10239_v53, -1e+30  ;;  %v15723_v32 = vsel %vm6467_vm9, 1.0, %v18929_v54 }
 0x324   :  { %3780 = vmatprep.mubr.bf16.mxu1 %v11234_v21  ;;  %11312 = vpow2.f32 %v4925_v58  ;;  %v4927_v25 = vmul.f32 1.442695, %v4768_v9  ;;  %4613 = vmax.xlane.f32.xlu0 %v15712_v26  ;;  %19180 = vst [vmem:[#allocation188_spill] sm:$0xff] %v15723_v32  ;;  %v11236_v20 = vld [vmem:[%s18430_s0 + $0xb78] ss:$24 sps:$4 sm:$0xff]   ;;  %v8597_v53 = vadd.f32 %v8596_v23, %v8595_v50  ;;  %vm8143_vm15 = vcmp.eq.s32.totalorder %v13834_v34, %v19186_v11 }
 0x325   :  { %v8269_v33 = vsel %vm8141_vm11, %v10241_v40, 0.0  ;;  %4318 = vmatmul.mubr.bf16.gmra.mrb[240].mxu0 %v11233_v8  ;;  %v15717_v29 = vsel %vm4352_vm0, %v10241_v40, -1e+30  ;;  %v3566_v36 = vpop.f32.mrb[136].mxu1  ;;  %v15731_v40 = vsel %vm6468_vm8, 1.0, %v18929_v54 }
 0x326   :  { %v8396_v1 = vadd.f32 %v8395_v2, %v8269_v33  ;;  %4325 = vmatprep.mubr.bf16.mxu0 %v11237_v46  ;;  %v15719_v10 = vpop.eup %11308  ;;  %v10242_v63 = vadd.f32 %v15248_v51, %v3566_v36  ;;  %v3568_v3 = vpop.f32.mrb[137].mxu1  ;;  %19181 = vst [vmem:[#allocation189_spill] sm:$0xff] %v15731_v40  ;;  %v8598_v33 = vsel %vm7297_vm7, %v15723_v32, 0.0  ;;  %v11240_v19 = vld [vmem:[%s18430_s0 + $0xbac] ss:$24 sps:$4 sm:$0xff]   ;;  %11314 = vpow2.f32 %v4927_v25  ;;  %v19183_v25 = vld [vmem:[#allocation77_spill] sm:$0xff] }
 0x327   :  { %19179 = vst [vmem:[#allocation78_spill] sm:$0xff] %v15719_v10  ;;  %v4111_v21 = vpop.f32.mrb[136].mxu0  ;;  %4615 = vmax.xlane.f32.xlu1 %v15717_v29  ;;  %v15736_v8 = vpop.xlane.xlu0 %4545  ;;  %v11239_v23 = vld [vmem:[%s18430_s0 + $0xb80] ss:$24 sps:$4 sm:$0xff]   ;;  %v8600_v9 = vsel %vm7297_vm7, %v15731_v40, 0.0  ;;  %v12090_v2 = vld [vmem:[%s18428_s3 + $0x228] sm:$0xff]  ;;  %vm8142_vm14 = vcmp.eq.s32.totalorder %v13834_v34, %v19183_v25 }
 0x328   :  { %19182 = vst [vmem:[#allocation190_spill] sm:$0xff] %v15736_v8  ;;  %v3569_v62 = vpop.f32.mrb[138].mxu1  ;;  %v4769_v46 = vsub.f32 %v14685_v16, %v15736_v8  ;;  %v10243_v58 = vadd.f32 %v10242_v63, %v4111_v21  ;;  %5177 = vadd.xlane.f32.xlu0 %v15719_v10  ;;  %v4113_v50 = vpop.f32.mrb[137].mxu0  ;;  %vm6470_vm12 = vcmp.gt.s32.totalorder %v12090_v2, 0  ;;  %v12091_v16 = vld [vmem:[%s18428_s3 + $0x220] sm:$0xff]  ;;  %v8599_v8 = vadd.f32 %v8598_v33, %v8597_v53 }
 0x329   :  { %v10244_v44 = vadd.f32 %v15248_v51, %v3569_v62  ;;  %v3571_v30 = vpop.f32.mrb[139].mxu1  ;;  %vm6469_vm13 = vcmp.gt.s32.totalorder %v12091_v16, 0  ;;  %v15758_v36 = vpop.xlane.xlu1 %4547  ;;  %v11243_v3 = vld [vmem:[%s18430_s0 + $0xbb4] ss:$24 sps:$4 sm:$0xff]  }
 0x32a   :  { %19184 = vst [vmem:[#allocation77_spill] sm:$0xff] %v15758_v36  ;;  %v4114_v63 = vpop.f32.mrb[138].mxu0  ;;  %v15763_v21 = vpop.eup %11310  ;;  %v4929_v62 = vmul.f32 1.442695, %v4769_v46  ;;  %v8270_v30 = vsel %vm8142_vm14, %v10243_v58, 0.0  ;;  %v4770_v50 = vsub.f32 %v14695_v0, %v15758_v36  ;;  %v19193_v36 = vld [vmem:[#allocation86_spill] sm:$0xff] }
 0x32b   :  { %19185 = vst [vmem:[#allocation191_spill] sm:$0xff] %v15763_v21  ;;  %v10245_v40 = vadd.f32 %v10244_v44, %v4114_v63  ;;  %3781 = vmatmul.mubr.bf16.gmra.mrb[244].mxu1 %v11236_v20  ;;  %v4116_v32 = vpop.f32.mrb[139].mxu0  ;;  %v8397_v25 = vadd.f32 %v8396_v1, %v8270_v30  ;;  %5179 = vadd.xlane.f32.xlu1 %v15763_v21  ;;  %v15772_v10 = vsel %vm4352_vm0, %v10243_v58, -1e+30  ;;  %v15783_v20 = vsel %vm6469_vm13, 1.0, %v18929_v54 }
 0x32c   :  { %3788 = vmatprep.mubr.bf16.mxu1 %v11240_v19  ;;  %11316 = vpow2.f32 %v4929_v62  ;;  %v4931_v46 = vmul.f32 1.442695, %v4770_v50  ;;  %4617 = vmax.xlane.f32.xlu0 %v15772_v10  ;;  %19188 = vst [vmem:[#allocation192_spill] sm:$0xff] %v15783_v20  ;;  %v11242_v44 = vld [vmem:[%s18430_s0 + $0xba8] ss:$24 sps:$4 sm:$0xff]   ;;  %v8601_v58 = vadd.f32 %v8600_v9, %v8599_v8  ;;  %vm8145_vm4 = vcmp.eq.s32.totalorder %v13834_v34, %v19193_v36 }
 0x32d   :  { %v8271_v41 = vsel %vm8143_vm15, %v10245_v40, 0.0  ;;  %4326 = vmatmul.mubr.bf16.gmra.mrb[244].mxu0 %v11239_v23  ;;  %v15777_v0 = vsel %vm4352_vm0, %v10245_v40, -1e+30  ;;  %v3574_v11 = vpop.f32.mrb[140].mxu1  ;;  %v15791_v40 = vsel %vm6470_vm12, 1.0, %v18929_v54 }
 0x32e   :  { %v8398_v32 = vadd.f32 %v8397_v25, %v8271_v41  ;;  %4333 = vmatprep.mubr.bf16.mxu0 %v11243_v3  ;;  %v15779_v1 = vpop.eup %11312  ;;  %v10246_v33 = vadd.f32 %v15248_v51, %v3574_v11  ;;  %v3576_v53 = vpop.f32.mrb[141].mxu1  ;;  %19189 = vst [vmem:[#allocation193_spill] sm:$0xff] %v15791_v40  ;;  %v8602_v41 = vsel %vm7297_vm7, %v15783_v20, 0.0  ;;  %v11246_v63 = vld [vmem:[%s18430_s0 + $0xbdc] ss:$24 sps:$4 sm:$0xff]   ;;  %11318 = vpow2.f32 %v4931_v46 }
 0x32f   :  { %19187 = vst [vmem:[#allocation82_spill] sm:$0xff] %v15779_v1  ;;  %v4119_v19 = vpop.f32.mrb[140].mxu0  ;;  %4619 = vmax.xlane.f32.xlu1 %v15777_v0  ;;  %v15796_v23 = vpop.xlane.xlu0 %4549  ;;  %v11245_v9 = vld [vmem:[%s18430_s0 + $0xbb0] ss:$24 sps:$4 sm:$0xff]   ;;  %v8604_v50 = vsel %vm7297_vm7, %v15791_v40, 0.0  ;;  %v12092_v25 = vld [vmem:[%s18428_s3 + $0x238] sm:$0xff] }
 0x330   :  { %19190 = vst [vmem:[#allocation194_spill] sm:$0xff] %v15796_v23  ;;  %v3577_v16 = vpop.f32.mrb[142].mxu1  ;;  %v4771_v3 = vsub.f32 %v14735_v57, %v15796_v23  ;;  %v10247_v62 = vadd.f32 %v10246_v33, %v4119_v19  ;;  %5181 = vadd.xlane.f32.xlu0 %v15779_v1  ;;  %v4121_v8 = vpop.f32.mrb[141].mxu0  ;;  %vm6472_vm1 = vcmp.gt.s32.totalorder %v12092_v25, 0  ;;  %v12093_v57 = vld [vmem:[%s18428_s3 + $0x230] sm:$0xff]  ;;  %v19191_v46 = vld [vmem:[#allocation81_spill] sm:$0xff]  ;;  %v8603_v23 = vadd.f32 %v8602_v41, %v8601_v58 }
 0x331   :  { %v10248_v2 = vadd.f32 %v15248_v51, %v3577_v16  ;;  %v3579_v30 = vpop.f32.mrb[143].mxu1  ;;  %vm6471_vm2 = vcmp.gt.s32.totalorder %v12093_v57, 0  ;;  %vm8144_vm3 = vcmp.eq.s32.totalorder %v13834_v34, %v19191_v46  ;;  %v15818_v11 = vpop.xlane.xlu1 %4551  ;;  %v11249_v53 = vld [vmem:[%s18430_s0 + $0xbe4] ss:$24 sps:$4 sm:$0xff]  }
 0x332   :  { %19192 = vst [vmem:[#allocation81_spill] sm:$0xff] %v15818_v11  ;;  %v4122_v33 = vpop.f32.mrb[142].mxu0  ;;  %v15823_v19 = vpop.eup %11314  ;;  %v4933_v16 = vmul.f32 1.442695, %v4771_v3  ;;  %v8272_v30 = vsel %vm8144_vm3, %v10247_v62, 0.0  ;;  %v4772_v8 = vsub.f32 %v14747_v38, %v15818_v11 }
 0x333   :  { %v10249_v40 = vadd.f32 %v10248_v2, %v4122_v33  ;;  %3789 = vmatmul.mubr.bf16.gmra.mrb[248].mxu1 %v11242_v44  ;;  %v4124_v20 = vpop.f32.mrb[143].mxu0  ;;  %v8399_v46 = vadd.f32 %v8398_v32, %v8272_v30  ;;  %5183 = vadd.xlane.f32.xlu1 %v15823_v19  ;;  %v15832_v1 = vsel %vm4352_vm0, %v10247_v62, -1e+30  ;;  %v15843_v44 = vsel %vm6471_vm2, 1.0, %v18929_v54  ;;  %v11248_v2 = vld [vmem:[%s18430_s0 + $0xbd8] ss:$24 sps:$4 sm:$0xff]  }
 0x334   :  { %3796 = vmatprep.mubr.bf16.mxu1 %v11246_v63  ;;  %11320 = vpow2.f32 %v4933_v16  ;;  %v4935_v3 = vmul.f32 1.442695, %v4772_v8  ;;  %4621 = vmax.xlane.f32.xlu0 %v15832_v1  ;;  %19194 = vst [vmem:[#allocation86_spill] sm:$0xff] %v15843_v44  ;;  %v8605_v62 = vadd.f32 %v8604_v50, %v8603_v23  ;;  %v11251_v23 = vld [vmem:[%s18430_s0 + $0xbe0] ss:$24 sps:$4 sm:$0xff]  }
 0x335   :  { %v8273_v21 = vsel %vm8145_vm4, %v10249_v40, 0.0  ;;  %4334 = vmatmul.mubr.bf16.gmra.mrb[248].mxu0 %v11245_v9  ;;  %v15837_v38 = vsel %vm4352_vm0, %v10249_v40, -1e+30  ;;  %v3582_v36 = vpop.f32.mrb[144].mxu1  ;;  %v15851_v40 = vsel %vm6472_vm1, 1.0, %v18929_v54  ;;  %v12094_v8 = vld [vmem:[%s18428_s3 + $0x240] sm:$0xff] }
 0x336   :  { %v8400_v20 = vadd.f32 %v8399_v46, %v8273_v21  ;;  %4341 = vmatprep.mubr.bf16.mxu0 %v11249_v53  ;;  %v15839_v32 = vpop.eup %11316  ;;  %v10250_v41 = vadd.f32 %v15248_v51, %v3582_v36  ;;  %v3584_v58 = vpop.f32.mrb[145].mxu1  ;;  %19195 = vst [vmem:[#allocation195_spill] sm:$0xff] %v15851_v40  ;;  %v8606_v21 = vsel %vm7297_vm7, %v15843_v44, 0.0  ;;  %11322 = vpow2.f32 %v4935_v3 }
 0x337   :  { %v4127_v63 = vpop.f32.mrb[144].mxu0  ;;  %4623 = vmax.xlane.f32.xlu1 %v15837_v38  ;;  %v15856_v9 = vpop.xlane.xlu0 %4553  ;;  %v8608_v50 = vsel %vm7297_vm7, %v15851_v40, 0.0  ;;  %vm6473_vm5 = vcmp.gt.s32.totalorder %v12094_v8, 0 }
 0x338   :  { %19196 = vst [vmem:[#allocation196_spill] sm:$0xff] %v15856_v9  ;;  %v3585_v57 = vpop.f32.mrb[146].mxu1  ;;  %v4773_v33 = vsub.f32 %v14789_v45, %v15856_v9  ;;  %v10251_v16 = vadd.f32 %v10250_v41, %v4127_v63  ;;  %5185 = vadd.xlane.f32.xlu0 %v15839_v32  ;;  %v4129_v30 = vpop.f32.mrb[145].mxu0  ;;  %v19197_v45 = vld [vmem:[#allocation84_spill] sm:$0xff] }
 0x339   :  { %v10252_v53 = vadd.f32 %v15248_v51, %v3585_v57  ;;  %v3587_v25 = vpop.f32.mrb[147].mxu1  ;;  %vm8146_vm6 = vcmp.eq.s32.totalorder %v13834_v34, %v19197_v45  ;;  %v15872_v51 = vpop.xlane.xlu1 %4555  ;;  %v19199_v30 = vld [vmem:[#allocation89_spill] sm:$0xff] }
 0x33a   :  { %19198 = vst [vmem:[#allocation84_spill] sm:$0xff] %v15872_v51  ;;  %v4130_v46 = vpop.f32.mrb[146].mxu0  ;;  %v15874_v3 = vpop.eup %11318  ;;  %v4937_v36 = vmul.f32 1.442695, %v4773_v33  ;;  %v8274_v41 = vsel %vm8146_vm6, %v10251_v16, 0.0  ;;  %v4774_v58 = vsub.f32 %v14806_v13, %v15872_v51  ;;  %v8607_v25 = vadd.f32 %v8606_v21, %v8605_v62 }
 0x33b   :  { %v10253_v63 = vadd.f32 %v10252_v53, %v4130_v46  ;;  %3797 = vmatmul.mubr.bf16.gmra.mrb[252].mxu1 %v11248_v2  ;;  %v4132_v57 = vpop.f32.mrb[147].mxu0  ;;  %vm8147_vm8 = vcmp.eq.s32.totalorder %v13834_v34, %v19199_v30  ;;  %v8401_v40 = vadd.f32 %v8400_v20, %v8274_v41  ;;  %5187 = vadd.xlane.f32.xlu1 %v15874_v3  ;;  %v15883_v45 = vsel %vm4352_vm0, %v10251_v16, -1e+30  ;;  %v12095_v20 = vld [vmem:[%s18428_s3 + $0x248] sm:$0xff]  ;;  %v15902_v16 = vld [vmem:[%s18431_s2] ss:$0 sm:$0xff] }
 0x33c   :  { %11324 = vpow2.f32 %v4937_v36  ;;  %v4939_v33 = vmul.f32 1.442695, %v4774_v58  ;;  %4625 = vmax.xlane.f32.xlu0 %v15883_v45  ;;  %vm6474_vm9 = vcmp.gt.s32.totalorder %v12095_v20, 0  ;;  %v15897_v53 = vsel %vm6473_vm5, 1.0, %v18929_v54 }
 0x33d   :  { %v8275_v44 = vsel %vm8147_vm8, %v10253_v63, 0.0  ;;  %4342 = vmatmul.mubr.bf16.gmra.mrb[252].mxu0 %v11251_v23  ;;  %v15888_v13 = vsel %vm4352_vm0, %v10253_v63, -1e+30  ;;  %v3590_v21 = vpop.f32.mrb[148].mxu1  ;;  %19200 = vst [vmem:[#allocation89_spill] sm:$0xff] %v15897_v53  ;;  %v8610_v46 = vsel %vm7297_vm7, %v15897_v53, 0.0  ;;  %v8609_v36 = vadd.f32 %v8608_v50, %v8607_v25 }
 0x33e   :  { %v8402_v2 = vadd.f32 %v8401_v40, %v8275_v44  ;;  %v15890_v62 = vpop.eup %11320  ;;  %v10254_v23 = vadd.f32 %v15902_v16, %v3590_v21  ;;  %v3592_v44 = vpop.f32.mrb[149].mxu1  ;;  %11326 = vpow2.f32 %v4939_v33  ;;  %v12097_v50 = vld [vmem:[%s18428_s3 + $0x250] sm:$0xff]  ;;  %v19203_v25 = vld [vmem:[#allocation87_spill] sm:$0xff] }
 0x33f   :  { %v4135_v40 = vpop.f32.mrb[148].mxu0  ;;  %4627 = vmax.xlane.f32.xlu1 %v15888_v13  ;;  %v15908_v41 = vpop.xlane.xlu0 %4557  ;;  %v15916_v44 = vsel %vm6474_vm9, 1.0, %v18929_v54  ;;  %vm6475_vm10 = vcmp.gt.s32.totalorder %v12097_v50, 0  ;;  %vm8148_vm11 = vcmp.eq.s32.totalorder %v13834_v34, %v19203_v25  ;;  %v8611_v53 = vadd.f32 %v8610_v46, %v8609_v36 }
 0x340   :  { %19201 = vst [vmem:[#allocation197_spill] sm:$0xff] %v15908_v41  ;;  %v3593_v8 = vpop.f32.mrb[150].mxu1  ;;  %v4775_v58 = vsub.f32 %v14850_v55, %v15908_v41  ;;  %v10255_v57 = vadd.f32 %v10254_v23, %v4135_v40  ;;  %5189 = vadd.xlane.f32.xlu0 %v15890_v62  ;;  %v4137_v21 = vpop.f32.mrb[149].mxu0  ;;  %19202 = vst [vmem:[#allocation198_spill] sm:$0xff] %v15916_v44  ;;  %v19205_v41 = vld [vmem:[#allocation93_spill] sm:$0xff]  ;;  %v8612_v46 = vsel %vm7297_vm7, %v15916_v44, 0.0 }
 0x341   :  { %v10256_v63 = vadd.f32 %v15902_v16, %v3593_v8  ;;  %v3595_v30 = vpop.f32.mrb[151].mxu1  ;;  %v15923_v55 = vpop.xlane.xlu1 %4559  ;;  %vm8149_vm12 = vcmp.eq.s32.totalorder %v13834_v34, %v19205_v41 }
 0x342   :  { %19204 = vst [vmem:[#allocation87_spill] sm:$0xff] %v15923_v55  ;;  %v4138_v33 = vpop.f32.mrb[150].mxu0  ;;  %v15925_v23 = vpop.eup %11322  ;;  %v4941_v40 = vmul.f32 1.442695, %v4775_v58  ;;  %v8276_v8 = vsel %vm8148_vm11, %v10255_v57, 0.0  ;;  %v4776_v20 = vsub.f32 %v14864_v24, %v15923_v55  ;;  %v19209_v55 = vld [vmem:[#allocation91_spill] sm:$0xff] }
 0x343   :  { %v10257_v30 = vadd.f32 %v10256_v63, %v4138_v33  ;;  %v4140_v21 = vpop.f32.mrb[151].mxu0  ;;  %v8403_v51 = vadd.f32 %v8402_v2, %v8276_v8  ;;  %5191 = vadd.xlane.f32.xlu1 %v15925_v23  ;;  %v15934_v25 = vsel %vm4352_vm0, %v10255_v57, -1e+30  ;;  %v12099_v8 = vld [vmem:[%s18428_s3 + $0x268] sm:$0xff]  ;;  %vm8150_vm15 = vcmp.eq.s32.totalorder %v13834_v34, %v19209_v55  ;;  %v12100_v55 = vld [vmem:[%s18428_s3 + $0x260] sm:$0xff] }
 0x344   :  { %11328 = vpow2.f32 %v4941_v40  ;;  %v4943_v9 = vmul.f32 1.442695, %v4776_v20  ;;  %4629 = vmax.xlane.f32.xlu0 %v15934_v25  ;;  %v5122_v11 = vpop.xlane.xlu0 %5121  ;;  %v12098_v40 = vld [vmem:[%s18428_s3 + $0x258] sm:$0xff]  ;;  %vm6478_vm14 = vcmp.gt.s32.totalorder %v12099_v8, 0  ;;  %v8613_v21 = vadd.f32 %v8612_v46, %v8611_v53 }
 0x345   :  { %v8277_v58 = vsel %vm8149_vm12, %v10257_v30, 0.0  ;;  %v15939_v24 = vsel %vm4352_vm0, %v10257_v30, -1e+30  ;;  %11330 = vrcp.f32 %v5122_v11  ;;  %v3598_v36 = vpop.f32.mrb[152].mxu1  ;;  %vm6476_vm13 = vcmp.gt.s32.totalorder %v12098_v40, 0 }
 0x346   :  { %v8404_v2 = vadd.f32 %v8403_v51, %v8277_v58  ;;  %v15943_v41 = vpop.eup %11324  ;;  %v10258_v63 = vadd.f32 %v15902_v16, %v3598_v36  ;;  %v3600_v57 = vpop.f32.mrb[153].mxu1  ;;  %v15954_v51 = vsel %vm6475_vm10, 1.0, %v18929_v54  ;;  %11332 = vlog2.f32 %v5122_v11 }
 0x347   :  { %19206 = vst [vmem:[#allocation93_spill] sm:$0xff] %v15943_v41  ;;  %v4143_v33 = vpop.f32.mrb[152].mxu0  ;;  %19207 = vst [vmem:[#allocation199_spill] sm:$0xff] %v15954_v51  ;;  %4631 = vmax.xlane.f32.xlu1 %v15939_v24  ;;  %v3601_v20 = vpop.f32.mrb[154].mxu1  ;;  %11334 = vpow2.f32 %v4943_v9  ;;  %v8614_v50 = vsel %vm7297_vm7, %v15954_v51, 0.0  ;;  %vm6477_vm1 = vcmp.gt.s32.totalorder %v12100_v55, 0 }
 0x348   :  { %v4145_v30 = vpop.f32.mrb[153].mxu0  ;;  %v10260_v58 = vadd.f32 %v15902_v16, %v3601_v20  ;;  %v10259_v36 = vadd.f32 %v10258_v63, %v4143_v33  ;;  %v5124_v57 = vpop.xlane.xlu1 %5123  ;;  %5193 = vadd.xlane.f32.xlu0 %v15943_v41  ;;  %v19211_v51 = vld [vmem:[#allocation95_spill] sm:$0xff] }
 0x349   :  { %v15959_v44 = vpop.xlane.xlu0 %4561  ;;  %11336 = vrcp.f32 %v5124_v57  ;;  %v3603_v53 = vpop.f32.mrb[155].mxu1  ;;  %vm8151_vm2 = vcmp.eq.s32.totalorder %v13834_v34, %v19211_v51 }
 0x34a   :  { %19208 = vst [vmem:[#allocation200_spill] sm:$0xff] %v15959_v44  ;;  %v4777_v11 = vsub.f32 %v14907_v5, %v15959_v44  ;;  %v4146_v9 = vpop.f32.mrb[154].mxu0  ;;  %v15967_v46 = vpop.eup %11326  ;;  %v8278_v63 = vsel %vm8150_vm15, %v10259_v36, 0.0  ;;  %11338 = vlog2.f32 %v5124_v57  ;;  %v15971_v30 = vsel %vm4352_vm0, %v10259_v36, -1e+30 }
 0x34b   :  { %19210 = vst [vmem:[#allocation91_spill] sm:$0xff] %v15967_v46  ;;  %v10261_v33 = vadd.f32 %v10260_v58, %v4146_v9  ;;  %v4148_v20 = vpop.f32.mrb[155].mxu0  ;;  %v8405_v5 = vadd.f32 %v8404_v2, %v8278_v63  ;;  %5195 = vadd.xlane.f32.xlu1 %v15967_v46  ;;  %v15981_v58 = vsel %vm6476_vm13, 1.0, %v18929_v54  ;;  %v8615_v57 = vadd.f32 %v8614_v50, %v8613_v21 }
 0x34c   :  { %v4945_v53 = vmul.f32 1.442695, %v4777_v11  ;;  %19212 = vst [vmem:[#allocation95_spill] sm:$0xff] %v15981_v58  ;;  %v15983_v36 = vpop.xlane.xlu1 %4563  ;;  %4633 = vmax.xlane.f32.xlu0 %v15971_v30  ;;  %v8616_v2 = vsel %vm7297_vm7, %v15981_v58, 0.0  ;;  %v15998_v50 = vsel %vm6478_vm14, 1.0, %v18929_v54  ;;  %v16002_v63 = vsel %vm6477_vm1, 1.0, %v18929_v54 }
 0x34d   :  { %v8279_v9 = vsel %vm8151_vm2, %v10261_v33, 0.0  ;;  %19213 = vst [vmem:[#allocation201_spill] sm:$0xff] %v15983_v36  ;;  %v5126_v20 = vpop.xlane.xlu0 %5125  ;;  %v15988_v44 = vsel %vm4352_vm0, %v10261_v33, -1e+30  ;;  %v4778_v40 = vsub.f32 %v14937_v42, %v15983_v36  ;;  %v3606_v11 = vpop.f32.mrb[156].mxu1  ;;  %19215 = vst [vmem:[#allocation203_spill] sm:$0xff] %v15998_v50  ;;  %v16014_v36 = vadd.f32 %v8616_v2, %v8615_v57 }
 0x34e   :  { %11340 = vpow2.f32 %v4945_v53  ;;  %v8406_v51 = vadd.f32 %v8405_v5, %v8279_v9  ;;  %v15994_v21 = vpop.eup %11328  ;;  %19216 = vst [vmem:[#allocation204_spill] sm:$0xff] %v16002_v63  ;;  %v10262_v33 = vadd.f32 %v15902_v16, %v3606_v11  ;;  %v3608_v58 = vpop.f32.mrb[157].mxu1  ;;  %v16007_v42 = vsel %vm7297_vm7, %v15998_v50, 0.0  ;;  %v19220_v11 = vld [vmem:[#allocation94_spill] sm:$0xff] }
 0x34f   :  { %19214 = vst [vmem:[#allocation202_spill] sm:$0xff] %v15994_v21  ;;  %11342 = vrcp.f32 %v5126_v20  ;;  %v4151_v53 = vpop.f32.mrb[156].mxu0  ;;  %v11331_v5 = vpop.eup %11330  ;;  %19217 = vst [vmem:[#allocation205_spill] sm:$0xff] %v16007_v42  ;;  %v16011_v9 = vsel %vm7297_vm7, %v16002_v63, 0.0  ;;  %v4947_v8 = vmul.f32 1.442695, %v4778_v40  ;;  %4635 = vmax.xlane.f32.xlu1 %v15988_v44  ;;  %vm8152_vm3 = vcmp.eq.s32.totalorder %v13834_v34, %v19220_v11 }
 0x350   :  { %19218 = vst [vmem:[#allocation206_spill] sm:$0xff] %v16011_v9  ;;  %11344 = vlog2.f32 %v5126_v20  ;;  %v3609_v55 = vpop.f32.mrb[158].mxu1  ;;  %v4153_v54 = vpop.f32.mrb[157].mxu0  ;;  %19219 = vst [vmem:[#allocation207_spill] sm:$0xff] %v16014_v36  ;;  %v10263_v46 = vadd.f32 %v10262_v33, %v4151_v53  ;;  %5197 = vadd.xlane.f32.xlu0 %v15994_v21  ;;  %v19222_v40 = vld [vmem:[#allocation98_spill] sm:$0xff]  ;;  %v5505_v20 = vmul.f32 %v11331_v5, %v14874_v27 }
 0x351   :  { %v10264_v58 = vadd.f32 %v15902_v16, %v3609_v55  ;;  %v5128_v50 = vpop.xlane.xlu1 %5127  ;;  %v16020_v42 = vpop.xlane.xlu0 %4565  ;;  %vm8153_vm4 = vcmp.eq.s32.totalorder %v13834_v34, %v19222_v40  ;;  %11346 = vpow2.f32 %v4947_v8 }
 0x352   :  { %19221 = vst [vmem:[#allocation94_spill] sm:$0xff] %v16020_v42  ;;  %v11333_v63 = vpop.eup %11332  ;;  %v4779_v54 = vsub.f32 %v14967_v28, %v16020_v42  ;;  %v3611_v57 = vpop.f32.mrb[159].mxu1  ;;  %v8280_v53 = vsel %vm8152_vm3, %v10263_v46, 0.0  ;;  %11348 = vrcp.f32 %v5128_v50  ;;  %v16032_v27 = vsel %vm4352_vm0, %v10263_v46, -1e+30  ;;  %v19227_v42 = vld [vmem:[#allocation97_spill] sm:$0xff] }
 0x353   :  { %v4154_v2 = vpop.f32.mrb[158].mxu0  ;;  %v16027_v11 = vpop.eup %11334  ;;  %v6786_v33 = vmul.f32 0.6931472, %v11333_v63  ;;  %v8407_v21 = vadd.f32 %v8406_v51, %v8280_v53  ;;  %11350 = vlog2.f32 %v5128_v50  ;;  %vm8154_vm5 = vcmp.eq.s32.totalorder %v13834_v34, %v19227_v42 }
 0x354   :  { %19223 = vst [vmem:[#allocation98_spill] sm:$0xff] %v16027_v11  ;;  %v10265_v55 = vadd.f32 %v10264_v58, %v4154_v2  ;;  %v4156_v9 = vpop.f32.mrb[159].mxu0  ;;  %v11337_v36 = vpop.eup %11336  ;;  %v4949_v41 = vmul.f32 1.442695, %v4779_v54  ;;  %5199 = vadd.xlane.f32.xlu1 %v16027_v11  ;;  %4637 = vmax.xlane.f32.xlu0 %v16032_v27 }
 0x355   :  { %v11339_v28 = vpop.eup %11338  ;;  %v7041_v5 = vadd.f32 %v6786_v33, %v14770_v39  ;;  %v5506_v8 = vmul.f32 %v11337_v36, %v14912_v15  ;;  %v16039_v9 = vpop.xlane.xlu1 %4567  ;;  %v19225_v36 = vld [vmem:[#allocation99_spill] sm:$0xff] }
 0x356   :  { %v8281_v63 = vsel %vm8153_vm4, %v10265_v55, 0.0  ;;  %19224 = vst [vmem:[#allocation208_spill] sm:$0xff] %v16039_v9  ;;  %v5130_v51 = vpop.xlane.xlu0 %5129  ;;  %v16044_v50 = vsel %vm4352_vm0, %v10265_v55, -1e+30  ;;  %v6788_v46 = vmul.f32 0.6931472, %v11339_v28  ;;  %11352 = vpow2.f32 %v4949_v41 }
 0x357   :  { %v8408_v58 = vadd.f32 %v8407_v21, %v8281_v63  ;;  %v4780_v39 = vsub.f32 %v14997_v12, %v16039_v9  ;;  %v3614_v15 = vpop.f32.mrb[160].mxu1  ;;  %v7169_v54 = vmul.f32 %v19225_v36, %v7041_v5  ;;  %v9694_v40 = vpack.c.bf16 %v5506_v8, %v5505_v20  ;;  %v4159_v33 = vpop.f32.mrb[160].mxu0  ;;  %v19228_v20 = vld [vmem:[#allocation103_spill] sm:$0xff] }
 0x358   :  { %11354 = vrcp.f32 %v5130_v51  ;;  %v10266_v57 = vadd.f32 %v15902_v16, %v3614_v15  ;;  %v3616_v2 = vpop.f32.mrb[161].mxu1  ;;  %v16050_v53 = vpop.eup %11340  ;;  %v7042_v41 = vadd.f32 %v6788_v46, %v14802_v37  ;;  %4639 = vmax.xlane.f32.xlu1 %v16044_v50  ;;  %vm8155_vm6 = vcmp.eq.s32.totalorder %v13834_v34, %v19228_v20  ;;  %v19231_v15 = vld [vmem:[#allocation100_spill] sm:$0xff] }
 0x359   :  { %19226 = vst [vmem:[#allocation99_spill] sm:$0xff] %v16050_v53  ;;  %v4951_v21 = vmul.f32 1.442695, %v4780_v39  ;;  %11356 = vlog2.f32 %v5130_v51  ;;  %v3617_v12 = vpop.f32.mrb[162].mxu1  ;;  %v4161_v55 = vpop.f32.mrb[161].mxu0  ;;  %v7298_v5 = vsel %vm7297_vm7, %v7169_v54, 0.0  ;;  %9695 = vst [vmem:[%s18432_s4] sm:$0xff] %v9694_v40   ;;  %5201 = vadd.xlane.f32.xlu0 %v16050_v53 }
 0x35a   :  { %v11343_v28 = vpop.eup %11342  ;;  %v10268_v8 = vadd.f32 %v15902_v16, %v3617_v12  ;;  %v10267_v63 = vadd.f32 %v10266_v57, %v4159_v33  ;;  %v5132_v37 = vpop.xlane.xlu1 %5131  ;;  %v19230_v39 = vld [vmem:[#allocation101_spill] sm:$0xff]  ;;  %v7170_v36 = vmul.f32 %v19231_v15, %v7042_v41  ;;  %v19232_v2 = vld [vmem:[#allocation28_spill] sm:$0xff] }
 0x35b   :  { %v16064_v51 = vpop.xlane.xlu0 %4569  ;;  %v11345_v46 = vpop.eup %11344  ;;  %vm8156_vm8 = vcmp.eq.s32.totalorder %v13834_v34, %v19230_v39  ;;  %v5507_v54 = vmul.f32 %v11343_v28, %v19232_v2  ;;  %11358 = vpow2.f32 %v4951_v21 }
 0x35c   :  { %19229 = vst [vmem:[#allocation97_spill] sm:$0xff] %v16064_v51  ;;  %v4781_v40 = vsub.f32 %v15027_v22, %v16064_v51  ;;  %v3619_v55 = vpop.f32.mrb[163].mxu1  ;;  %v4162_v12 = vpop.f32.mrb[162].mxu0  ;;  %v6790_v57 = vmul.f32 0.6931472, %v11345_v46  ;;  %v8282_v33 = vsel %vm8154_vm5, %v10267_v63, 0.0  ;;  %11360 = vrcp.f32 %v5132_v37 }
 0x35d   :  { %v10269_v9 = vadd.f32 %v10268_v8, %v4162_v12  ;;  %v4164_v53 = vpop.f32.mrb[163].mxu0  ;;  %v16075_v11 = vpop.eup %11346  ;;  %v7299_v41 = vsel %vm7297_vm7, %v7170_v36, 0.0  ;;  %v8409_v15 = vadd.f32 %v8408_v58, %v8282_v33  ;;  %11362 = vlog2.f32 %v5132_v37  ;;  %v19234_v22 = vld [vmem:[#allocation96_spill] sm:$0xff]  ;;  %v19236_v37 = vld [vmem:[#allocation155_spill] sm:$0xff]  ;;  %v19237_v12 = vld [vmem:[#allocation102_spill] sm:$0xff] }
 0x35e   :  { %19233 = vst [vmem:[#allocation103_spill] sm:$0xff] %v16075_v11  ;;  %v4953_v21 = vmul.f32 1.442695, %v4781_v40  ;;  %v11349_v28 = vpop.eup %11348  ;;  %v7300_v2 = vadd.f32 %v7299_v41, %v7298_v5  ;;  %v7043_v55 = vadd.f32 %v6790_v57, %v19234_v22  ;;  %5203 = vadd.xlane.f32.xlu1 %v16075_v11  ;;  %v16083_v42 = vpop.xlane.xlu1 %4571  ;;  %v16087_v53 = vsel %vm4352_vm0, %v10267_v63, -1e+30 }
 0x35f   :  { %v8283_v46 = vsel %vm8155_vm6, %v10269_v9, 0.0  ;;  %19235 = vst [vmem:[#allocation101_spill] sm:$0xff] %v16083_v42  ;;  %v5134_v8 = vpop.xlane.xlu0 %5133  ;;  %v11351_v58 = vpop.eup %11350  ;;  %v5508_v36 = vmul.f32 %v11349_v28, %v19236_v37  ;;  %v4782_v40 = vsub.f32 %v15057_v49, %v16083_v42  ;;  %4641 = vmax.xlane.f32.xlu0 %v16087_v53  ;;  %v16099_v49 = vsel %vm4352_vm0, %v10269_v9, -1e+30 }
 0x360   :  { %11364 = vpow2.f32 %v4953_v21  ;;  %v8410_v5 = vadd.f32 %v8409_v15, %v8283_v46  ;;  %v3622_v20 = vpop.f32.mrb[164].mxu1  ;;  %v7171_v57 = vmul.f32 %v19237_v12, %v7043_v55  ;;  %v6792_v33 = vmul.f32 0.6931472, %v11351_v58  ;;  %v4167_v22 = vpop.f32.mrb[164].mxu0  ;;  %19239 = vst [vmem:[#allocation28_spill] sm:$0xff] %v16099_v49  ;;  %v19240_v58 = vld [vmem:[#allocation34_spill] sm:$0xff] }
 0x361   :  { %11366 = vrcp.f32 %v5134_v8  ;;  %v10270_v41 = vadd.f32 %v15902_v16, %v3622_v20  ;;  %v3624_v63 = vpop.f32.mrb[165].mxu1  ;;  %v16095_v51 = vpop.eup %11352  ;;  %v9699_v11 = vpack.c.bf16 %v5508_v36, %v5507_v54  ;;  %v4955_v28 = vmul.f32 1.442695, %v4782_v40  ;;  %v19242_v36 = vld [vmem:[#allocation106_spill] sm:$0xff] }
 0x362   :  { %19238 = vst [vmem:[#allocation100_spill] sm:$0xff] %v16095_v51  ;;  %11368 = vlog2.f32 %v5134_v8  ;;  %v3625_v15 = vpop.f32.mrb[166].mxu1  ;;  %v4169_v21 = vpop.f32.mrb[165].mxu0  ;;  %v7301_v55 = vsel %vm7297_vm7, %v7171_v57, 0.0  ;;  %v7044_v37 = vadd.f32 %v6792_v33, %v19240_v58  ;;  %4643 = vmax.xlane.f32.xlu1 %v16099_v49  ;;  %vm8157_vm9 = vcmp.eq.s32.totalorder %v13834_v34, %v19242_v36 }
 0x363   :  { %v11355_v46 = vpop.eup %11354  ;;  %v10272_v20 = vadd.f32 %v15902_v16, %v3625_v15  ;;  %v10271_v12 = vadd.f32 %v10270_v41, %v4167_v22  ;;  %v5136_v63 = vpop.xlane.xlu1 %5135  ;;  %v7302_v9 = vadd.f32 %v7301_v55, %v7300_v2  ;;  %10011 = vst [vmem:[%s18432_s4 + $0x8] sm:$0xff] %v9699_v11   ;;  %11370 = vpow2.f32 %v4955_v28  ;;  %5205 = vadd.xlane.f32.xlu0 %v16095_v51  ;;  %v19243_v41 = vld [vmem:[#allocation105_spill] sm:$0xff]  ;;  %v19244_v22 = vld [vmem:[#allocation104_spill] sm:$0xff] }
 0x364   :  { %v16105_v54 = vpop.xlane.xlu0 %4573  ;;  %v11357_v8 = vpop.eup %11356  ;;  %vm8158_vm10 = vcmp.eq.s32.totalorder %v13834_v34, %v19243_v41  ;;  %v7172_v15 = vmul.f32 %v19244_v22, %v7044_v37  ;;  %11372 = vrcp.f32 %v5136_v63  ;;  %v19247_v37 = vld [vmem:[#allocation36_spill] sm:$0xff]  ;;  %v19248_v22 = vld [vmem:[#allocation37_spill] sm:$0xff] }
 0x365   :  { %19241 = vst [vmem:[#allocation96_spill] sm:$0xff] %v16105_v54  ;;  %v4783_v40 = vsub.f32 %v15087_v52, %v16105_v54  ;;  %v3627_v57 = vpop.f32.mrb[167].mxu1  ;;  %v4170_v33 = vpop.f32.mrb[166].mxu0  ;;  %v6794_v21 = vmul.f32 0.6931472, %v11357_v8  ;;  %v8284_v2 = vsel %vm8156_vm8, %v10271_v12, 0.0  ;;  %11374 = vlog2.f32 %v5136_v63 }
 0x366   :  { %v4172_v11 = vpop.f32.mrb[167].mxu0  ;;  %v16121_v28 = vpop.eup %11358  ;;  %v8411_v55 = vadd.f32 %v8410_v5, %v8284_v2  ;;  %v10273_v52 = vadd.f32 %v10272_v20, %v4170_v33  ;;  %v19246_v54 = vld [vmem:[#allocation110_spill] sm:$0xff]  ;;  %v7303_v42 = vsel %vm7297_vm7, %v7172_v15, 0.0  ;;  %v5509_v8 = vmul.f32 %v11355_v46, %v19247_v37  ;;  %v19250_v33 = vld [vmem:[#allocation157_spill] sm:$0xff] }
 0x367   :  { %19245 = vst [vmem:[#allocation155_spill] sm:$0xff] %v16121_v28  ;;  %v4957_v58 = vmul.f32 1.442695, %v4783_v40  ;;  %v11361_v57 = vpop.eup %11360  ;;  %vm8159_vm11 = vcmp.eq.s32.totalorder %v13834_v34, %v19246_v54  ;;  %v7045_v51 = vadd.f32 %v6794_v21, %v19248_v22  ;;  %5207 = vadd.xlane.f32.xlu1 %v16121_v28  ;;  %v16129_v39 = vpop.xlane.xlu1 %4575  ;;  %v16133_v5 = vsel %vm4352_vm0, %v10271_v12, -1e+30  ;;  %v19251_v21 = vld [vmem:[#allocation107_spill] sm:$0xff] }
 0x368   :  { %19249 = vst [vmem:[#allocation102_spill] sm:$0xff] %v16129_v39  ;;  %v5138_v63 = vpop.xlane.xlu0 %5137  ;;  %v11363_v20 = vpop.eup %11362  ;;  %v7304_v40 = vadd.f32 %v7303_v42, %v7302_v9  ;;  %v5510_v2 = vmul.f32 %v11361_v57, %v19250_v33  ;;  %v8285_v46 = vsel %vm8157_vm9, %v10273_v52, 0.0  ;;  %4645 = vmax.xlane.f32.xlu0 %v16133_v5  ;;  %v4784_v12 = vsub.f32 %v15117_v35, %v16129_v39 }
 0x369   :  { %11376 = vpow2.f32 %v4957_v58  ;;  %v3630_v15 = vpop.f32.mrb[168].mxu1  ;;  %v7173_v11 = vmul.f32 %v19251_v21, %v7045_v51  ;;  %v6796_v37 = vmul.f32 0.6931472, %v11363_v20  ;;  %v8412_v22 = vadd.f32 %v8411_v55, %v8285_v46  ;;  %v4175_v49 = vpop.f32.mrb[168].mxu0  ;;  %v19254_v20 = vld [vmem:[#allocation38_spill] sm:$0xff] }
 0x36a   :  { %v3632_v28 = vpop.f32.mrb[169].mxu1  ;;  %v16143_v42 = vpop.eup %11364  ;;  %v9704_v9 = vpack.c.bf16 %v5510_v2, %v5509_v8  ;;  %11378 = vrcp.f32 %v5138_v63  ;;  %v10274_v58 = vadd.f32 %v15902_v16, %v3630_v15  ;;  %v16148_v57 = vsel %vm4352_vm0, %v10273_v52, -1e+30  ;;  %v19256_v52 = vld [vmem:[#allocation40_spill] sm:$0xff] }
 0x36b   :  { %19252 = vst [vmem:[#allocation34_spill] sm:$0xff] %v16143_v42  ;;  %v3633_v36 = vpop.f32.mrb[170].mxu1  ;;  %19253 = vst [vmem:[#allocation106_spill] sm:$0xff] %v16148_v57  ;;  %v4177_v33 = vpop.f32.mrb[169].mxu0  ;;  %v7305_v55 = vsel %vm7297_vm7, %v7173_v11, 0.0  ;;  %v7046_v46 = vadd.f32 %v6796_v37, %v19254_v20  ;;  %11380 = vlog2.f32 %v5138_v63  ;;  %4647 = vmax.xlane.f32.xlu1 %v16148_v57  ;;  %v19258_v20 = vld [vmem:[#allocation109_spill] sm:$0xff] }
 0x36c   :  { %v11367_v51 = vpop.eup %11366  ;;  %v4959_v35 = vmul.f32 1.442695, %v4784_v12  ;;  %v5140_v28 = vpop.xlane.xlu1 %5139  ;;  %v7306_v15 = vadd.f32 %v7305_v55, %v7304_v40  ;;  %10012 = vst [vmem:[%s18432_s4 + $0x10] sm:$0xff] %v9704_v9   ;;  %v10276_v33 = vadd.f32 %v15902_v16, %v3633_v36  ;;  %v10275_v11 = vadd.f32 %v10274_v58, %v4175_v49  ;;  %5209 = vadd.xlane.f32.xlu0 %v16143_v42  ;;  %v19257_v12 = vld [vmem:[#allocation108_spill] sm:$0xff] }
 0x36d   :  { %v16153_v8 = vpop.xlane.xlu0 %4577  ;;  %v11369_v2 = vpop.eup %11368  ;;  %v5511_v21 = vmul.f32 %v11367_v51, %v19256_v52  ;;  %vm8160_vm12 = vcmp.eq.s32.totalorder %v13834_v34, %v19257_v12  ;;  %v7174_v39 = vmul.f32 %v19258_v20, %v7046_v46  ;;  %v19260_v46 = vld [vmem:[#allocation113_spill] sm:$0xff]  ;;  %v19263_v20 = vld [vmem:[#allocation159_spill] sm:$0xff] }
 0x36e   :  { %19255 = vst [vmem:[#allocation105_spill] sm:$0xff] %v16153_v8  ;;  %v3635_v37 = vpop.f32.mrb[171].mxu1  ;;  %v4178_v63 = vpop.f32.mrb[170].mxu0  ;;  %v6798_v57 = vmul.f32 0.6931472, %v11369_v2  ;;  %11382 = vpow2.f32 %v4959_v35  ;;  %v4785_v40 = vsub.f32 %v15147_v18, %v16153_v8  ;;  %v8286_v49 = vsel %vm8158_vm10, %v10275_v11, 0.0 }
 0x36f   :  { %v4180_v9 = vpop.f32.mrb[171].mxu0  ;;  %v16166_v55 = vpop.eup %11370  ;;  %11384 = vrcp.f32 %v5140_v28  ;;  %v10277_v58 = vadd.f32 %v10276_v33, %v4178_v63  ;;  %v16173_v36 = vsel %vm4352_vm0, %v10275_v11, -1e+30  ;;  %vm8161_vm13 = vcmp.eq.s32.totalorder %v13834_v34, %v19260_v46  ;;  %v19261_v18 = vld [vmem:[#allocation43_spill] sm:$0xff] }
 0x370   :  { %19259 = vst [vmem:[#allocation104_spill] sm:$0xff] %v16166_v55  ;;  %v11373_v51 = vpop.eup %11372  ;;  %v7307_v35 = vsel %vm7297_vm7, %v7174_v39, 0.0  ;;  %v7047_v2 = vadd.f32 %v6798_v57, %v19261_v18  ;;  %v8413_v52 = vadd.f32 %v8412_v22, %v8286_v49  ;;  %11386 = vlog2.f32 %v5140_v28  ;;  %5211 = vadd.xlane.f32.xlu1 %v16166_v55  ;;  %v16180_v41 = vpop.xlane.xlu1 %4579  ;;  %4649 = vmax.xlane.f32.xlu0 %v16173_v36  ;;  %v19264_v57 = vld [vmem:[#allocation111_spill] sm:$0xff] }
 0x371   :  { %19262 = vst [vmem:[#allocation110_spill] sm:$0xff] %v16180_v41  ;;  %v5142_v37 = vpop.xlane.xlu0 %5141  ;;  %v11375_v33 = vpop.eup %11374  ;;  %v7308_v63 = vadd.f32 %v7307_v35, %v7306_v15  ;;  %v5512_v11 = vmul.f32 %v11373_v51, %v19263_v20  ;;  %v4961_v9 = vmul.f32 1.442695, %v4785_v40  ;;  %v8287_v8 = vsel %vm8159_vm11, %v10277_v58, 0.0 }
 0x372   :  { %v3638_v39 = vpop.f32.mrb[172].mxu1  ;;  %v7175_v22 = vmul.f32 %v19264_v57, %v7047_v2  ;;  %v6800_v28 = vmul.f32 0.6931472, %v11375_v33  ;;  %v8414_v49 = vadd.f32 %v8413_v52, %v8287_v8  ;;  %v4786_v18 = vsub.f32 %v15177_v17, %v16180_v41  ;;  %v4183_v42 = vpop.f32.mrb[172].mxu0  ;;  %v19266_v8 = vld [vmem:[#allocation31_spill] sm:$0xff]  ;;  %v19270_v41 = vld [vmem:[#allocation112_spill] sm:$0xff] }
 0x373   :  { %v3640_v55 = vpop.f32.mrb[173].mxu1  ;;  %v16190_v15 = vpop.eup %11376  ;;  %v9709_v51 = vpack.c.bf16 %v5512_v11, %v5511_v21  ;;  %11388 = vpow2.f32 %v4961_v9  ;;  %v10278_v40 = vadd.f32 %v15902_v16, %v3638_v39  ;;  %v16195_v35 = vsel %vm4352_vm0, %v10277_v58, -1e+30 }
 0x374   :  { %19265 = vst [vmem:[#allocation36_spill] sm:$0xff] %v16190_v15  ;;  %v3641_v54 = vpop.f32.mrb[174].mxu1  ;;  %v4185_v20 = vpop.f32.mrb[173].mxu0  ;;  %v7309_v2 = vsel %vm7297_vm7, %v7175_v22, 0.0  ;;  %v7048_v52 = vadd.f32 %v6800_v28, %v19266_v8  ;;  %v4963_v33 = vmul.f32 1.442695, %v4786_v18  ;;  %11390 = vrcp.f32 %v5142_v37  ;;  %4651 = vmax.xlane.f32.xlu1 %v16195_v35  ;;  %5213 = vadd.xlane.f32.xlu0 %v16190_v15 }
 0x375   :  { %v5144_v17 = vpop.xlane.xlu1 %5143  ;;  %v16200_v55 = vpop.xlane.xlu0 %4581  ;;  %v7310_v11 = vadd.f32 %v7309_v2, %v7308_v63  ;;  %10013 = vst [vmem:[%s18432_s4 + $0x18] sm:$0xff] %v9709_v51   ;;  %11392 = vlog2.f32 %v5142_v37  ;;  %v10280_v58 = vadd.f32 %v15902_v16, %v3641_v54  ;;  %v10279_v9 = vadd.f32 %v10278_v40, %v4183_v42  ;;  %v19268_v28 = vld [vmem:[#allocation114_spill] sm:$0xff]  ;;  %v19269_v20 = vld [vmem:[#allocation44_spill] sm:$0xff] }
 0x376   :  { %19267 = vst [vmem:[#allocation37_spill] sm:$0xff] %v16200_v55  ;;  %v11379_v21 = vpop.eup %11378  ;;  %v3643_v39 = vpop.f32.mrb[175].mxu1  ;;  %v7176_v18 = vmul.f32 %v19268_v28, %v7048_v52  ;;  %11394 = vpow2.f32 %v4963_v33  ;;  %v4787_v63 = vsub.f32 %v15207_v43, %v16200_v55  ;;  %vm8162_vm14 = vcmp.eq.s32.totalorder %v13834_v34, %v19270_v41 }
 0x377   :  { %v4186_v57 = vpop.f32.mrb[174].mxu0  ;;  %v11381_v22 = vpop.eup %11380  ;;  %v5513_v8 = vmul.f32 %v11379_v21, %v19269_v20  ;;  %v8288_v42 = vsel %vm8160_vm12, %v10279_v9, 0.0  ;;  %11396 = vrcp.f32 %v5144_v17  ;;  %v19273_v20 = vld [vmem:[#allocation48_spill] sm:$0xff] }
 0x378   :  { %v4188_v2 = vpop.f32.mrb[175].mxu0  ;;  %v6802_v37 = vmul.f32 0.6931472, %v11381_v22  ;;  %v10281_v51 = vadd.f32 %v10280_v58, %v4186_v57  ;;  %v16216_v40 = vpop.eup %11382  ;;  %v7311_v54 = vsel %vm7297_vm7, %v7176_v18, 0.0  ;;  %v8415_v52 = vadd.f32 %v8414_v49, %v8288_v42  ;;  %v19276_v42 = vld [vmem:[#allocation116_spill] sm:$0xff] }
 0x379   :  { %19271 = vst [vmem:[#allocation157_spill] sm:$0xff] %v16216_v40  ;;  %11398 = vlog2.f32 %v5144_v17  ;;  %v4965_v33 = vmul.f32 1.442695, %v4787_v63  ;;  %v16219_v21 = vpop.xlane.xlu1 %4583  ;;  %v5146_v43 = vpop.xlane.xlu0 %5145  ;;  %v7312_v28 = vadd.f32 %v7311_v54, %v7310_v11  ;;  %5215 = vadd.xlane.f32.xlu1 %v16216_v40  ;;  %v19274_v17 = vld [vmem:[#allocation161_spill] sm:$0xff]  ;;  %v16231_v11 = vsel %vm4352_vm0, %v10279_v9, -1e+30 }
 0x37a   :  { %19272 = vst [vmem:[#allocation107_spill] sm:$0xff] %v16219_v21  ;;  %v11385_v39 = vpop.eup %11384  ;;  %v7049_v22 = vadd.f32 %v6802_v37, %v19273_v20  ;;  %v8289_v12 = vsel %vm8161_vm13, %v10281_v51, 0.0  ;;  %v4788_v58 = vsub.f32 %v15237_v48, %v16219_v21  ;;  %v3646_v57 = vpop.f32.mrb[176].mxu1  ;;  %19275 = vst [vmem:[#allocation38_spill] sm:$0xff] %v16231_v11  ;;  %4653 = vmax.xlane.f32.xlu0 %v16231_v11  ;;  %v19287_v40 = vld [vmem:[#allocation120_spill] sm:$0xff] }
 0x37b   :  { %v11387_v49 = vpop.eup %11386  ;;  %v5514_v18 = vmul.f32 %v11385_v39, %v19274_v17  ;;  %11400 = vpow2.f32 %v4965_v33  ;;  %v8416_v63 = vadd.f32 %v8415_v52, %v8289_v12  ;;  %v3648_v2 = vpop.f32.mrb[177].mxu1  ;;  %v10282_v33 = vadd.f32 %v15902_v16, %v3646_v57 }
 0x37c   :  { %v4191_v37 = vpop.f32.mrb[176].mxu0  ;;  %v7177_v46 = vmul.f32 %v19276_v42, %v7049_v22  ;;  %v6804_v54 = vmul.f32 0.6931472, %v11387_v49  ;;  %v4967_v20 = vmul.f32 1.442695, %v4788_v58  ;;  %11402 = vrcp.f32 %v5146_v43  ;;  %v3649_v48 = vpop.f32.mrb[178].mxu1 }
 0x37d   :  { %v4193_v21 = vpop.f32.mrb[177].mxu0  ;;  %v9714_v55 = vpack.c.bf16 %v5514_v18, %v5513_v8  ;;  %11404 = vlog2.f32 %v5146_v43  ;;  %v10284_v52 = vadd.f32 %v15902_v16, %v3649_v48  ;;  %v5148_v39 = vpop.xlane.xlu1 %5147  ;;  %v19279_v49 = vld [vmem:[#allocation35_spill] sm:$0xff]  ;;  %v16245_v17 = vsel %vm4352_vm0, %v10281_v51, -1e+30 }
 0x37e   :  { %v16237_v9 = vpop.xlane.xlu0 %4585  ;;  %v16239_v12 = vpop.eup %11388  ;;  %v7313_v22 = vsel %vm7297_vm7, %v7177_v46, 0.0  ;;  %v7050_v58 = vadd.f32 %v6804_v54, %v19279_v49  ;;  %11406 = vpow2.f32 %v4967_v20  ;;  %19280 = vst [vmem:[#allocation109_spill] sm:$0xff] %v16245_v17  ;;  %v10283_v18 = vadd.f32 %v10282_v33, %v4191_v37  ;;  %4655 = vmax.xlane.f32.xlu1 %v16245_v17  ;;  %v19281_v54 = vld [vmem:[#allocation117_spill] sm:$0xff]  ;;  %v19282_v51 = vld [vmem:[#allocation115_spill] sm:$0xff] }
 0x37f   :  { %19277 = vst [vmem:[#allocation40_spill] sm:$0xff] %v16237_v9  ;;  %19278 = vst [vmem:[#allocation108_spill] sm:$0xff] %v16239_v12  ;;  %v3651_v8 = vpop.f32.mrb[179].mxu1  ;;  %v4194_v21 = vpop.f32.mrb[178].mxu0  ;;  %v7314_v57 = vadd.f32 %v7313_v22, %v7312_v28  ;;  %11408 = vrcp.f32 %v5148_v39  ;;  %v4789_v2 = vsub.f32 %v15272_v47, %v16237_v9  ;;  %vm8163_vm15 = vcmp.eq.s32.totalorder %v13834_v34, %v19281_v54  ;;  %v19283_v28 = vld [vmem:[#allocation118_spill] sm:$0xff]  ;;  %v19285_v48 = vld [vmem:[#allocation47_spill] sm:$0xff] }
 0x380   :  { %v11391_v43 = vpop.eup %11390  ;;  %10014 = vst [vmem:[%s18432_s4 + $0x20] sm:$0xff] %v9714_v55   ;;  %v4196_v42 = vpop.f32.mrb[179].mxu0  ;;  %vm8164_vm1 = vcmp.eq.s32.totalorder %v13834_v34, %v19282_v51  ;;  %v7178_v20 = vmul.f32 %v19283_v28, %v7050_v58  ;;  %11410 = vlog2.f32 %v5148_v39  ;;  %5217 = vadd.xlane.f32.xlu0 %v16239_v12  ;;  %v10285_v55 = vadd.f32 %v10284_v52, %v4194_v21  ;;  %v19302_v51 = vld [vmem:[#allocation165_spill] sm:$0xff] }
 0x381   :  { %v11393_v46 = vpop.eup %11392  ;;  %v5515_v33 = vmul.f32 %v11391_v43, %v19285_v48  ;;  %v8290_v47 = vsel %vm8162_vm14, %v10283_v18, 0.0  ;;  %v4969_v49 = vmul.f32 1.442695, %v4789_v2  ;;  %v16265_v8 = vpop.xlane.xlu1 %4587  ;;  %vm8165_vm2 = vcmp.eq.s32.totalorder %v13834_v34, %v19287_v40  ;;  %v19289_v48 = vld [vmem:[#allocation163_spill] sm:$0xff] }
 0x382   :  { %v16259_v37 = vpop.eup %11394  ;;  %v6806_v22 = vmul.f32 0.6931472, %v11393_v46  ;;  %19286 = vst [vmem:[#allocation43_spill] sm:$0xff] %v16265_v8  ;;  %v5150_v42 = vpop.xlane.xlu0 %5149  ;;  %v7315_v39 = vsel %vm7297_vm7, %v7178_v20, 0.0  ;;  %v8417_v52 = vadd.f32 %v8416_v63, %v8290_v47  ;;  %v8291_v58 = vsel %vm8163_vm15, %v10285_v55, 0.0  ;;  %v19288_v46 = vld [vmem:[#allocation52_spill] sm:$0xff] }
 0x383   :  { %19284 = vst [vmem:[#allocation113_spill] sm:$0xff] %v16259_v37  ;;  %v11397_v9 = vpop.eup %11396  ;;  %v4790_v21 = vsub.f32 %v15302_v4, %v16265_v8  ;;  %v3654_v41 = vpop.f32.mrb[180].mxu1  ;;  %v7316_v2 = vadd.f32 %v7315_v39, %v7314_v57  ;;  %11412 = vpow2.f32 %v4969_v49  ;;  %5219 = vadd.xlane.f32.xlu1 %v16259_v37  ;;  %v16280_v54 = vsel %vm4352_vm0, %v10283_v18, -1e+30  ;;  %v19292_v8 = vld [vmem:[#allocation121_spill] sm:$0xff] }
 0x384   :  { %v11399_v43 = vpop.eup %11398  ;;  %v7051_v28 = vadd.f32 %v6806_v22, %v19288_v46  ;;  %v5516_v12 = vmul.f32 %v11397_v9, %v19289_v48  ;;  %v3656_v15 = vpop.f32.mrb[181].mxu1  ;;  %v8418_v47 = vadd.f32 %v8417_v52, %v8291_v58  ;;  %19290 = vst [vmem:[#allocation159_spill] sm:$0xff] %v16280_v54  ;;  %4657 = vmax.xlane.f32.xlu0 %v16280_v54  ;;  %11414 = vrcp.f32 %v5150_v42 }
 0x385   :  { %v4199_v20 = vpop.f32.mrb[180].mxu0  ;;  %v6808_v63 = vmul.f32 0.6931472, %v11399_v43  ;;  %v4971_v17 = vmul.f32 1.442695, %v4790_v21  ;;  %v16282_v4 = vpop.eup %11400  ;;  %v10286_v9 = vadd.f32 %v15902_v16, %v3654_v41  ;;  %v19293_v43 = vld [vmem:[#allocation39_spill] sm:$0xff] }
 0x386   :  { %19291 = vst [vmem:[#allocation111_spill] sm:$0xff] %v16282_v4  ;;  %v7179_v57 = vmul.f32 %v19292_v8, %v7051_v28  ;;  %v9719_v39 = vpack.c.bf16 %v5516_v12, %v5515_v33  ;;  %v3657_v22 = vpop.f32.mrb[182].mxu1  ;;  %v5152_v15 = vpop.xlane.xlu1 %5151  ;;  %v16291_v18 = vsel %vm4352_vm0, %v10285_v55, -1e+30  ;;  %v19296_v41 = vld [vmem:[#allocation50_spill] sm:$0xff]  ;;  %v19297_v55 = vld [vmem:[#allocation119_spill] sm:$0xff] }
 0x387   :  { %v11403_v49 = vpop.eup %11402  ;;  %v7052_v52 = vadd.f32 %v6808_v63, %v19293_v43  ;;  %11416 = vpow2.f32 %v4971_v17  ;;  %v10288_v58 = vadd.f32 %v15902_v16, %v3657_v22  ;;  %19294 = vst [vmem:[#allocation31_spill] sm:$0xff] %v16291_v18  ;;  %v16293_v21 = vpop.xlane.xlu0 %4589  ;;  %v10287_v17 = vadd.f32 %v10286_v9, %v4199_v20  ;;  %4659 = vmax.xlane.f32.xlu1 %v16291_v18  ;;  %v19298_v22 = vld [vmem:[#allocation123_spill] sm:$0xff] }
 0x388   :  { %19295 = vst [vmem:[#allocation114_spill] sm:$0xff] %v16293_v21  ;;  %v3659_v12 = vpop.f32.mrb[183].mxu1  ;;  %v11405_v33 = vpop.eup %11404  ;;  %v7317_v8 = vsel %vm7297_vm7, %v7179_v57, 0.0  ;;  %10015 = vst [vmem:[%s18432_s4 + $0x28] sm:$0xff] %v9719_v39   ;;  %v5517_v46 = vmul.f32 %v11403_v49, %v19296_v41  ;;  %11418 = vlog2.f32 %v5150_v42  ;;  %vm8166_vm3 = vcmp.eq.s32.totalorder %v13834_v34, %v19297_v55  ;;  %5221 = vadd.xlane.f32.xlu0 %v16282_v4 }
 0x389   :  { %v4201_v28 = vpop.f32.mrb[181].mxu0  ;;  %v16301_v48 = vpop.eup %11406  ;;  %v7318_v63 = vadd.f32 %v7317_v8, %v7316_v2  ;;  %v7180_v43 = vmul.f32 %v19298_v22, %v7052_v52  ;;  %v6810_v57 = vmul.f32 0.6931472, %v11405_v33  ;;  %11420 = vrcp.f32 %v5152_v15  ;;  %v19300_v52 = vld [vmem:[#allocation124_spill] sm:$0xff]  ;;  %v19301_v8 = vld [vmem:[#allocation57_spill] sm:$0xff] }
 0x38a   :  { %v4202_v12 = vpop.f32.mrb[182].mxu0  ;;  %v11409_v37 = vpop.eup %11408  ;;  %v8292_v42 = vsel %vm8164_vm1, %v10287_v17, 0.0  ;;  %11422 = vlog2.f32 %v5152_v15  ;;  %v4791_v20 = vsub.f32 %v15332_v60, %v16293_v21  ;;  %vm8167_vm4 = vcmp.eq.s32.totalorder %v13834_v34, %v19300_v52 }
 0x38b   :  { %v10289_v39 = vadd.f32 %v10288_v58, %v4202_v12  ;;  %v4204_v9 = vpop.f32.mrb[183].mxu0  ;;  %v16312_v49 = vpop.xlane.xlu1 %4591  ;;  %v7319_v33 = vsel %vm7297_vm7, %v7180_v43, 0.0  ;;  %v7053_v41 = vadd.f32 %v6810_v57, %v19301_v8  ;;  %v5518_v28 = vmul.f32 %v11409_v37, %v19302_v51  ;;  %5223 = vadd.xlane.f32.xlu1 %v16301_v48 }
 0x38c   :  { %19299 = vst [vmem:[#allocation44_spill] sm:$0xff] %v16312_v49  ;;  %v11411_v2 = vpop.eup %11410  ;;  %v8419_v15 = vadd.f32 %v8418_v47, %v8292_v42  ;;  %v5154_v22 = vpop.xlane.xlu0 %5153  ;;  %v7320_v18 = vadd.f32 %v7319_v33, %v7318_v63  ;;  %v4973_v60 = vmul.f32 1.442695, %v4791_v20  ;;  %v19303_v9 = vld [vmem:[#allocation125_spill] sm:$0xff]  ;;  %v4792_v37 = vsub.f32 %v15362_v61, %v16312_v49  ;;  %v19305_v63 = vld [vmem:[#allocation42_spill] sm:$0xff] }
 0x38d   :  { %v3662_v4 = vpop.f32.mrb[184].mxu1  ;;  %v6812_v54 = vmul.f32 0.6931472, %v11411_v2  ;;  %v8293_v58 = vsel %vm8165_vm2, %v10289_v39, 0.0  ;;  %v7181_v21 = vmul.f32 %v19303_v9, %v7053_v41  ;;  %v9724_v43 = vpack.c.bf16 %v5518_v28, %v5517_v46  ;;  %v4207_v57 = vpop.f32.mrb[184].mxu0  ;;  %v19310_v9 = vld [vmem:[#allocation54_spill] sm:$0xff] }
 0x38e   :  { %v3664_v12 = vpop.f32.mrb[185].mxu1  ;;  %v8420_v11 = vadd.f32 %v8419_v15, %v8293_v58  ;;  %v16326_v42 = vpop.eup %11412  ;;  %11424 = vpow2.f32 %v4973_v60  ;;  %v16331_v40 = vsel %vm4352_vm0, %v10287_v17, -1e+30  ;;  %v10290_v2 = vadd.f32 %v15902_v16, %v3662_v4  ;;  %v19307_v4 = vld [vmem:[#allocation128_spill] sm:$0xff] }
 0x38f   :  { %v3665_v47 = vpop.f32.mrb[186].mxu1  ;;  %19304 = vst [vmem:[#allocation112_spill] sm:$0xff] %v16326_v42  ;;  %v7054_v20 = vadd.f32 %v6812_v54, %v19305_v63  ;;  %v5156_v33 = vpop.xlane.xlu1 %5155  ;;  %v7321_v46 = vsel %vm7297_vm7, %v7181_v21, 0.0  ;;  %10016 = vst [vmem:[%s18432_s4 + $0x30] sm:$0xff] %v9724_v43   ;;  %v4975_v61 = vmul.f32 1.442695, %v4792_v37  ;;  %4661 = vmax.xlane.f32.xlu0 %v16331_v40  ;;  %11426 = vrcp.f32 %v5154_v22 }
 0x390   :  { %v3667_v8 = vpop.f32.mrb[187].mxu1  ;;  %v10292_v54 = vadd.f32 %v15902_v16, %v3665_v47  ;;  %v16340_v41 = vpop.xlane.xlu0 %4593  ;;  %v7322_v28 = vadd.f32 %v7321_v46, %v7320_v18  ;;  %11428 = vlog2.f32 %v5154_v22  ;;  %v10291_v60 = vadd.f32 %v10290_v2, %v4207_v57  ;;  %v19309_v12 = vld [vmem:[#allocation122_spill] sm:$0xff] }
 0x391   :  { %19306 = vst [vmem:[#allocation48_spill] sm:$0xff] %v16340_v41  ;;  %v4209_v17 = vpop.f32.mrb[185].mxu0  ;;  %v11415_v51 = vpop.eup %11414  ;;  %v7182_v15 = vmul.f32 %v19307_v4, %v7054_v20  ;;  %vm8168_vm5 = vcmp.eq.s32.totalorder %v13834_v34, %v19309_v12  ;;  %11430 = vpow2.f32 %v4975_v61  ;;  %v16350_v16 = vsel %vm4352_vm0, %v10289_v39, -1e+30  ;;  %v19312_v39 = vld [vmem:[#allocation127_spill] sm:$0xff] }
 0x392   :  { %v4210_v21 = vpop.f32.mrb[186].mxu0  ;;  %v16343_v58 = vpop.eup %11416  ;;  %v5519_v43 = vmul.f32 %v11415_v51, %v19310_v9  ;;  %v4793_v18 = vsub.f32 %v15392_v31, %v16340_v41  ;;  %v8294_v57 = vsel %vm8166_vm3, %v10291_v60, 0.0  ;;  %4663 = vmax.xlane.f32.xlu1 %v16350_v16  ;;  %11432 = vrcp.f32 %v5156_v33  ;;  %v19313_v51 = vld [vmem:[#allocation167_spill] sm:$0xff] }
 0x393   :  { %19308 = vst [vmem:[#allocation161_spill] sm:$0xff] %v16343_v58  ;;  %v4212_v37 = vpop.f32.mrb[187].mxu0  ;;  %v11419_v47 = vpop.eup %11418  ;;  %v7323_v22 = vsel %vm7297_vm7, %v7182_v15, 0.0  ;;  %v10293_v63 = vadd.f32 %v10292_v54, %v4210_v21  ;;  %vm8169_vm6 = vcmp.eq.s32.totalorder %v13834_v34, %v19312_v39  ;;  %v8421_v46 = vadd.f32 %v8420_v11, %v8294_v57  ;;  %5225 = vadd.xlane.f32.xlu0 %v16326_v42 }
 0x394   :  { %v16359_v20 = vpop.xlane.xlu1 %4595  ;;  %v11421_v2 = vpop.eup %11420  ;;  %v7324_v8 = vadd.f32 %v7323_v22, %v7322_v28  ;;  %v6814_v31 = vmul.f32 0.6931472, %v11419_v47  ;;  %11434 = vlog2.f32 %v5156_v33  ;;  %v4977_v15 = vmul.f32 1.442695, %v4793_v18  ;;  %v19314_v28 = vld [vmem:[#allocation62_spill] sm:$0xff] }
 0x395   :  { %19311 = vst [vmem:[#allocation116_spill] sm:$0xff] %v16359_v20  ;;  %v5158_v61 = vpop.xlane.xlu0 %5157  ;;  %v3670_v17 = vpop.f32.mrb[188].mxu1  ;;  %v5520_v4 = vmul.f32 %v11421_v2, %v19313_v51  ;;  %v8295_v54 = vsel %vm8167_vm4, %v10293_v63, 0.0  ;;  %v4794_v21 = vsub.f32 %v15422_v6, %v16359_v20  ;;  %v16373_v47 = vsel %vm4352_vm0, %v10291_v60, -1e+30  ;;  %v19316_v60 = vld [vmem:[#allocation45_spill] sm:$0xff] }
 0x396   :  { %v11423_v55 = vpop.eup %11422  ;;  %v3672_v9 = vpop.f32.mrb[189].mxu1  ;;  %v7055_v37 = vadd.f32 %v6814_v31, %v19314_v28  ;;  %v8422_v33 = vadd.f32 %v8421_v46, %v8295_v54  ;;  %11436 = vpow2.f32 %v4977_v15  ;;  %5227 = vadd.xlane.f32.xlu1 %v16343_v58  ;;  %v16379_v6 = vld [vmem:[%s18431_s2] ss:$0 sm:$0xff] }
 0x397   :  { %v6816_v11 = vmul.f32 0.6931472, %v11423_v55  ;;  %v3673_v22 = vpop.f32.mrb[190].mxu1  ;;  %v4215_v57 = vpop.f32.mrb[188].mxu0  ;;  %v9729_v2 = vpack.c.bf16 %v5520_v4, %v5519_v43  ;;  %v4979_v52 = vmul.f32 1.442695, %v4794_v21  ;;  %v10294_v18 = vadd.f32 %v16379_v6, %v3670_v17  ;;  %4665 = vmax.xlane.f32.xlu0 %v16373_v47 }
 0x398   :  { %v5160_v31 = vpop.xlane.xlu1 %5159  ;;  %v3675_v46 = vpop.f32.mrb[191].mxu1  ;;  %v19315_v55 = vld [vmem:[#allocation130_spill] sm:$0xff]  ;;  %11438 = vrcp.f32 %v5158_v61  ;;  %v10296_v43 = vadd.f32 %v16379_v6, %v3673_v22  ;;  %v16395_v9 = vsel %vm4352_vm0, %v10293_v63, -1e+30 }
 0x399   :  { %v7183_v51 = vmul.f32 %v19315_v55, %v7055_v37  ;;  %v7056_v54 = vadd.f32 %v6816_v11, %v19316_v60  ;;  %v16386_v4 = vpop.xlane.xlu0 %4597  ;;  %v4217_v15 = vpop.f32.mrb[189].mxu0  ;;  %10017 = vst [vmem:[%s18432_s4 + $0x38] sm:$0xff] %v9729_v2   ;;  %11440 = vpow2.f32 %v4979_v52  ;;  %v10295_v17 = vadd.f32 %v10294_v18, %v4215_v57  ;;  %v19319_v22 = vld [vmem:[#allocation126_spill] sm:$0xff]  ;;  %v19320_v55 = vld [vmem:[#allocation132_spill] sm:$0xff]  ;;  %v19321_v18 = vld [vmem:[#allocation131_spill] sm:$0xff] }
 0x39a   :  { %19317 = vst [vmem:[#allocation35_spill] sm:$0xff] %v16386_v4  ;;  %v16388_v21 = vpop.eup %11424  ;;  %v4795_v28 = vsub.f32 %v15452_v59, %v16386_v4  ;;  %v4218_v37 = vpop.f32.mrb[190].mxu0  ;;  %vm8170_vm8 = vcmp.eq.s32.totalorder %v13834_v34, %v19319_v22  ;;  %11442 = vlog2.f32 %v5158_v61  ;;  %vm8171_vm9 = vcmp.eq.s32.totalorder %v13834_v34, %v19321_v18  ;;  %v19322_v15 = vld [vmem:[#allocation58_spill] sm:$0xff]  ;;  %4667 = vmax.xlane.f32.xlu1 %v16395_v9 }
 0x39b   :  { %19318 = vst [vmem:[#allocation117_spill] sm:$0xff] %v16388_v21  ;;  %v11427_v11 = vpop.eup %11426  ;;  %v7325_v46 = vsel %vm7297_vm7, %v7183_v51, 0.0  ;;  %v7184_v60 = vmul.f32 %v19320_v55, %v7056_v54  ;;  %v10297_v2 = vadd.f32 %v10296_v43, %v4218_v37  ;;  %v4220_v52 = vpop.f32.mrb[191].mxu0  ;;  %v8296_v59 = vsel %vm8168_vm5, %v10295_v17, 0.0  ;;  %5229 = vadd.xlane.f32.xlu0 %v16388_v21  ;;  %v19328_v21 = vld [vmem:[#allocation135_spill] sm:$0xff] }
 0x39c   :  { %v11429_v57 = vpop.eup %11428  ;;  %v7326_v63 = vadd.f32 %v7325_v46, %v7324_v8  ;;  %v5521_v20 = vmul.f32 %v11427_v11, %v19322_v15  ;;  %11444 = vrcp.f32 %v5160_v31  ;;  %v16410_v51 = vpop.xlane.xlu1 %4599  ;;  %v8423_v37 = vadd.f32 %v8422_v33, %v8296_v59  ;;  %v19326_v33 = vld [vmem:[#allocation169_spill] sm:$0xff] }
 0x39d   :  { %19323 = vst [vmem:[#allocation115_spill] sm:$0xff] %v16410_v51  ;;  %v16412_v54 = vpop.eup %11430  ;;  %v7327_v61 = vsel %vm7297_vm7, %v7184_v60, 0.0  ;;  %v6818_v43 = vmul.f32 0.6931472, %v11429_v57  ;;  %11446 = vlog2.f32 %v5160_v31  ;;  %v5162_v8 = vpop.xlane.xlu0 %5161  ;;  %v4981_v12 = vmul.f32 1.442695, %v4795_v28 }
 0x39e   :  { %19324 = vst [vmem:[#allocation118_spill] sm:$0xff] %v16412_v54  ;;  %v3678_v11 = vpop.f32.mrb[192].mxu1  ;;  %v11433_v46 = vpop.eup %11432  ;;  %v7328_v55 = vadd.f32 %v7327_v61, %v7326_v63  ;;  %v8297_v52 = vsel %vm8169_vm6, %v10297_v2, 0.0  ;;  %v4796_v15 = vsub.f32 %v15479_v14, %v16410_v51  ;;  %v19325_v60 = vld [vmem:[#allocation66_spill] sm:$0xff]  ;;  %v16425_v49 = vsel %vm4352_vm0, %v10295_v17, -1e+30  ;;  %5231 = vadd.xlane.f32.xlu1 %v16412_v54 }
 0x39f   :  { %v3680_v4 = vpop.f32.mrb[193].mxu1  ;;  %v11435_v41 = vpop.eup %11434  ;;  %v7057_v57 = vadd.f32 %v6818_v43, %v19325_v60  ;;  %v5522_v31 = vmul.f32 %v11433_v46, %v19326_v33  ;;  %v8424_v59 = vadd.f32 %v8423_v37, %v8297_v52  ;;  %19327 = vst [vmem:[#allocation47_spill] sm:$0xff] %v16425_v49  ;;  %11448 = vpow2.f32 %v4981_v12  ;;  %4669 = vmax.xlane.f32.xlu0 %v16425_v49  ;;  %v19331_v12 = vld [vmem:[#allocation49_spill] sm:$0xff] }
 0x3a0   :  { %v3681_v63 = vpop.f32.mrb[194].mxu1  ;;  %v4223_v28 = vpop.f32.mrb[192].mxu0  ;;  %v6820_v61 = vmul.f32 0.6931472, %v11435_v41  ;;  %v4983_v39 = vmul.f32 1.442695, %v4796_v15  ;;  %v10298_v14 = vadd.f32 %v16379_v6, %v3678_v11  ;;  %11450 = vrcp.f32 %v5162_v8 }
 0x3a1   :  { %v5164_v4 = vpop.xlane.xlu1 %5163  ;;  %v3683_v51 = vpop.f32.mrb[195].mxu1  ;;  %v7185_v43 = vmul.f32 %v19328_v21, %v7057_v57  ;;  %v9734_v60 = vpack.c.bf16 %v5522_v31, %v5521_v20  ;;  %v10300_v17 = vadd.f32 %v16379_v6, %v3681_v63  ;;  %v19333_v57 = vld [vmem:[#allocation172_spill] sm:$0xff] }
 0x3a2   :  { %v16432_v37 = vpop.xlane.xlu0 %4601  ;;  %v4225_v46 = vpop.f32.mrb[193].mxu0  ;;  %v7058_v52 = vadd.f32 %v6820_v61, %v19331_v12  ;;  %11452 = vpow2.f32 %v4983_v39  ;;  %v10299_v15 = vadd.f32 %v10298_v14, %v4223_v28  ;;  %v16439_v51 = vsel %vm4352_vm0, %v10297_v2, -1e+30  ;;  %v19335_v28 = vld [vmem:[#allocation129_spill] sm:$0xff] }
 0x3a3   :  { %19329 = vst [vmem:[#allocation120_spill] sm:$0xff] %v16432_v37  ;;  %v16434_v41 = vpop.eup %11436  ;;  %19332 = vst [vmem:[#allocation163_spill] sm:$0xff] %v16439_v51  ;;  %v4226_v21 = vpop.f32.mrb[194].mxu0  ;;  %v7329_v11 = vsel %vm7297_vm7, %v7185_v43, 0.0  ;;  %11454 = vlog2.f32 %v5162_v8  ;;  %v4797_v33 = vsub.f32 %v19333_v57, %v16432_v37  ;;  %vm8172_vm10 = vcmp.eq.s32.totalorder %v13834_v34, %v19335_v28  ;;  %v19336_v39 = vld [vmem:[#allocation137_spill] sm:$0xff]  ;;  %4671 = vmax.xlane.f32.xlu1 %v16439_v51  ;;  %v19340_v37 = vld [vmem:[#allocation171_spill] sm:$0xff] }
 0x3a4   :  { %19330 = vst [vmem:[#allocation52_spill] sm:$0xff] %v16434_v41  ;;  %v11439_v20 = vpop.eup %11438  ;;  %10018 = vst [vmem:[%s18432_s4 + $0x40] sm:$0xff] %v9734_v60   ;;  %v10301_v31 = vadd.f32 %v10300_v17, %v4226_v21  ;;  %v4228_v63 = vpop.f32.mrb[195].mxu0  ;;  %v7330_v2 = vadd.f32 %v7329_v11, %v7328_v55  ;;  %v7186_v14 = vmul.f32 %v19336_v39, %v7058_v52  ;;  %v19337_v46 = vld [vmem:[#allocation61_spill] sm:$0xff]  ;;  %v8298_v60 = vsel %vm8170_vm8, %v10299_v15, 0.0  ;;  %v19341_v51 = vld [vmem:[#allocation71_spill] sm:$0xff] }
 0x3a5   :  { %v16447_v61 = vpop.eup %11440  ;;  %v5523_v43 = vmul.f32 %v11439_v20, %v19337_v46  ;;  %v16457_v8 = vpop.xlane.xlu1 %4603  ;;  %v8425_v12 = vadd.f32 %v8424_v59, %v8298_v60  ;;  %11456 = vrcp.f32 %v5164_v4  ;;  %5233 = vadd.xlane.f32.xlu0 %v16434_v41  ;;  %v4985_v21 = vmul.f32 1.442695, %v4797_v33  ;;  %v19339_v63 = vld [vmem:[#allocation175_spill] sm:$0xff]  ;;  %v19356_v28 = vld [vmem:[#allocation180_spill] sm:$0xff] }
 0x3a6   :  { %19334 = vst [vmem:[#allocation121_spill] sm:$0xff] %v16447_v61  ;;  %19338 = vst [vmem:[#allocation39_spill] sm:$0xff] %v16457_v8  ;;  %v11443_v17 = vpop.eup %11442  ;;  %v8299_v55 = vsel %vm8171_vm9, %v10301_v31, 0.0  ;;  %v5166_v52 = vpop.xlane.xlu0 %5165  ;;  %v7331_v22 = vsel %vm7297_vm7, %v7186_v14, 0.0  ;;  %11458 = vlog2.f32 %v5164_v4  ;;  %v4798_v39 = vsub.f32 %v19339_v63, %v16457_v8  ;;  %v19343_v63 = vld [vmem:[#allocation134_spill] sm:$0xff] }
 0x3a7   :  { %v3686_v20 = vpop.f32.mrb[196].mxu1  ;;  %v11445_v11 = vpop.eup %11444  ;;  %v6822_v57 = vmul.f32 0.6931472, %v11443_v17  ;;  %v7332_v60 = vadd.f32 %v7331_v22, %v7330_v2  ;;  %11460 = vpow2.f32 %v4985_v21  ;;  %v8426_v33 = vadd.f32 %v8425_v12, %v8299_v55  ;;  %5235 = vadd.xlane.f32.xlu1 %v16447_v61  ;;  %v19346_v55 = vld [vmem:[#allocation139_spill] sm:$0xff]  ;;  %v19347_v22 = vld [vmem:[#allocation53_spill] sm:$0xff]  ;;  %v19355_v61 = vld [vmem:[#allocation138_spill] sm:$0xff] }
 0x3a8   :  { %v3688_v46 = vpop.f32.mrb[197].mxu1  ;;  %v11447_v59 = vpop.eup %11446  ;;  %v5524_v41 = vmul.f32 %v11445_v11, %v19340_v37  ;;  %v4987_v14 = vmul.f32 1.442695, %v4798_v39  ;;  %v16471_v4 = vsel %vm4352_vm0, %v10299_v15, -1e+30  ;;  %vm8173_vm11 = vcmp.eq.s32.totalorder %v13834_v34, %v19343_v63 }
 0x3a9   :  { %v3689_v54 = vpop.f32.mrb[198].mxu1  ;;  %v4231_v18 = vpop.f32.mrb[196].mxu0  ;;  %v7059_v58 = vadd.f32 %v6822_v57, %v19341_v51  ;;  %v6824_v42 = vmul.f32 0.6931472, %v11447_v59  ;;  %19342 = vst [vmem:[#allocation50_spill] sm:$0xff] %v16471_v4  ;;  %4673 = vmax.xlane.f32.xlu0 %v16471_v4  ;;  %11462 = vrcp.f32 %v5166_v52  ;;  %v10302_v37 = vadd.f32 %v16379_v6, %v3686_v20  ;;  %v19349_v20 = vld [vmem:[#allocation176_spill] sm:$0xff] }
 0x3aa   :  { %v5168_v17 = vpop.xlane.xlu1 %5167  ;;  %v9739_v2 = vpack.c.bf16 %v5524_v41, %v5523_v43  ;;  %v16477_v12 = vpop.xlane.xlu0 %4605  ;;  %11464 = vpow2.f32 %v4987_v14  ;;  %v10304_v57 = vadd.f32 %v16379_v6, %v3689_v54  ;;  %v16489_v43 = vsel %vm4352_vm0, %v10301_v31, -1e+30  ;;  %v19351_v14 = vld [vmem:[#allocation142_spill] sm:$0xff]  ;;  %v19362_v4 = vld [vmem:[#allocation56_spill] sm:$0xff] }
 0x3ab   :  { %19344 = vst [vmem:[#allocation119_spill] sm:$0xff] %v16477_v12  ;;  %v3691_v51 = vpop.f32.mrb[199].mxu1  ;;  %v16479_v21 = vpop.eup %11448  ;;  %v7187_v11 = vmul.f32 %v19346_v55, %v7059_v58  ;;  %v7060_v15 = vadd.f32 %v6824_v42, %v19347_v22  ;;  %11466 = vlog2.f32 %v5166_v52  ;;  %v10303_v41 = vadd.f32 %v10302_v37, %v4231_v18  ;;  %19348 = vst [vmem:[#allocation124_spill] sm:$0xff] %v16489_v43  ;;  %v19352_v55 = vld [vmem:[#allocation64_spill] sm:$0xff] }
 0x3ac   :  { %19345 = vst [vmem:[#allocation123_spill] sm:$0xff] %v16479_v21  ;;  %v4233_v39 = vpop.f32.mrb[197].mxu0  ;;  %v11451_v46 = vpop.eup %11450  ;;  %10019 = vst [vmem:[%s18432_s4 + $0x48] sm:$0xff] %v9739_v2   ;;  %v4799_v58 = vsub.f32 %v19349_v20, %v16477_v12  ;;  %4675 = vmax.xlane.f32.xlu1 %v16489_v43  ;;  %11468 = vrcp.f32 %v5168_v17  ;;  %v19354_v2 = vld [vmem:[#allocation133_spill] sm:$0xff]  ;;  %vm8175_vm13 = vcmp.eq.s32.totalorder %v13834_v34, %v19355_v61 }
 0x3ad   :  { %v4234_v59 = vpop.f32.mrb[198].mxu0  ;;  %v16493_v42 = vpop.eup %11452  ;;  %v7333_v54 = vsel %vm7297_vm7, %v7187_v11, 0.0  ;;  %v7188_v51 = vmul.f32 %v19351_v14, %v7060_v15  ;;  %v5525_v22 = vmul.f32 %v11451_v46, %v19352_v55  ;;  %vm8174_vm12 = vcmp.eq.s32.totalorder %v13834_v34, %v19354_v2  ;;  %5237 = vadd.xlane.f32.xlu0 %v16479_v21  ;;  %v19370_v2 = vld [vmem:[#allocation80_spill] sm:$0xff] }
 0x3ae   :  { %19350 = vst [vmem:[#allocation57_spill] sm:$0xff] %v16493_v42  ;;  %v4236_v52 = vpop.f32.mrb[199].mxu0  ;;  %v16499_v18 = vpop.xlane.xlu1 %4607  ;;  %v7334_v37 = vadd.f32 %v7333_v54, %v7332_v60  ;;  %v8300_v39 = vsel %vm8172_vm10, %v10303_v41, 0.0  ;;  %11470 = vlog2.f32 %v5168_v17  ;;  %v4989_v11 = vmul.f32 1.442695, %v4799_v58 }
 0x3af   :  { %19353 = vst [vmem:[#allocation165_spill] sm:$0xff] %v16499_v18  ;;  %v11455_v31 = vpop.eup %11454  ;;  %v5170_v15 = vpop.xlane.xlu0 %5169  ;;  %v7335_v20 = vsel %vm7297_vm7, %v7188_v51, 0.0  ;;  %v8427_v55 = vadd.f32 %v8426_v33, %v8300_v39  ;;  %v10305_v52 = vadd.f32 %v10304_v57, %v4234_v59  ;;  %v4800_v17 = vsub.f32 %v19356_v28, %v16499_v18  ;;  %v19358_v57 = vld [vmem:[#allocation173_spill] sm:$0xff] }
 0x3b0   :  { %v3694_v46 = vpop.f32.mrb[200].mxu1  ;;  %v6826_v14 = vmul.f32 0.6931472, %v11455_v31  ;;  %v11457_v8 = vpop.eup %11456  ;;  %v7336_v60 = vadd.f32 %v7335_v20, %v7334_v37  ;;  %11472 = vpow2.f32 %v4989_v11  ;;  %v16514_v58 = vsel %vm4352_vm0, %v10303_v41, -1e+30  ;;  %v19357_v31 = vld [vmem:[#allocation76_spill] sm:$0xff]  ;;  %5239 = vadd.xlane.f32.xlu1 %v16493_v42 }
 0x3b1   :  { %v3696_v12 = vpop.f32.mrb[201].mxu1  ;;  %v4239_v21 = vpop.f32.mrb[200].mxu0  ;;  %v8301_v59 = vsel %vm8173_vm11, %v10305_v52, 0.0  ;;  %11474 = vrcp.f32 %v5170_v15  ;;  %v4991_v28 = vmul.f32 1.442695, %v4800_v17  ;;  %4677 = vmax.xlane.f32.xlu0 %v16514_v58  ;;  %v10306_v18 = vadd.f32 %v16379_v6, %v3694_v46  ;;  %v19364_v46 = vld [vmem:[#allocation88_spill] sm:$0xff] }
 0x3b2   :  { %v3697_v54 = vpop.f32.mrb[202].mxu1  ;;  %v11459_v51 = vpop.eup %11458  ;;  %v7061_v33 = vadd.f32 %v6826_v14, %v19357_v31  ;;  %v5526_v12 = vmul.f32 %v11457_v8, %v19358_v57  ;;  %v8428_v20 = vadd.f32 %v8427_v55, %v8301_v59  ;;  %11476 = vlog2.f32 %v5170_v15  ;;  %v19361_v8 = vld [vmem:[#allocation144_spill] sm:$0xff] }
 0x3b3   :  { %v5172_v37 = vpop.xlane.xlu1 %5171  ;;  %v3699_v39 = vpop.f32.mrb[203].mxu1  ;;  %v6828_v41 = vmul.f32 0.6931472, %v11459_v51  ;;  %v10308_v42 = vadd.f32 %v16379_v6, %v3697_v54  ;;  %11478 = vpow2.f32 %v4991_v28  ;;  %v16533_v55 = vsel %vm4352_vm0, %v10305_v52, -1e+30 }
 0x3b4   :  { %v16522_v11 = vpop.eup %11460  ;;  %v4241_v14 = vpop.f32.mrb[201].mxu0  ;;  %v7189_v57 = vmul.f32 %v19361_v8, %v7061_v33  ;;  %v9744_v63 = vpack.c.bf16 %v5526_v12, %v5525_v22  ;;  %4679 = vmax.xlane.f32.xlu1 %v16533_v55  ;;  %11480 = vrcp.f32 %v5172_v37 }
 0x3b5   :  { %19359 = vst [vmem:[#allocation125_spill] sm:$0xff] %v16522_v11  ;;  %v16525_v31 = vpop.xlane.xlu0 %4609  ;;  %v4242_v43 = vpop.f32.mrb[202].mxu0  ;;  %v7062_v49 = vadd.f32 %v6828_v41, %v19362_v4  ;;  %v10307_v4 = vadd.f32 %v10306_v18, %v4239_v21  ;;  %11482 = vlog2.f32 %v5172_v37  ;;  %5241 = vadd.xlane.f32.xlu0 %v16522_v11 }
 0x3b6   :  { %19360 = vst [vmem:[#allocation42_spill] sm:$0xff] %v16525_v31  ;;  %v11463_v39 = vpop.eup %11462  ;;  %v4801_v15 = vsub.f32 %v15652_v7, %v16525_v31  ;;  %v4244_v17 = vpop.f32.mrb[203].mxu0  ;;  %v7337_v22 = vsel %vm7297_vm7, %v7189_v57, 0.0  ;;  %10020 = vst [vmem:[%s18432_s4 + $0x50] sm:$0xff] %v9744_v63   ;;  %v19366_v7 = vld [vmem:[#allocation146_spill] sm:$0xff]  ;;  %v19367_v57 = vld [vmem:[#allocation136_spill] sm:$0xff]  ;;  %v10309_v63 = vadd.f32 %v10308_v42, %v4242_v43 }
 0x3b7   :  { %v16537_v51 = vpop.eup %11464  ;;  %v5527_v54 = vmul.f32 %v11463_v39, %v19364_v46  ;;  %v16545_v52 = vpop.xlane.xlu1 %4611  ;;  %v7338_v12 = vadd.f32 %v7337_v22, %v7336_v60  ;;  %v7190_v59 = vmul.f32 %v19366_v7, %v7062_v49  ;;  %vm8176_vm14 = vcmp.eq.s32.totalorder %v13834_v34, %v19367_v57  ;;  %v19368_v39 = vld [vmem:[#allocation141_spill] sm:$0xff] }
 0x3b8   :  { %19363 = vst [vmem:[#allocation128_spill] sm:$0xff] %v16537_v51  ;;  %19365 = vst [vmem:[#allocation122_spill] sm:$0xff] %v16545_v52  ;;  %v11467_v33 = vpop.eup %11466  ;;  %v4993_v41 = vmul.f32 1.442695, %v4801_v15  ;;  %v3702_v14 = vpop.f32.mrb[204].mxu1  ;;  %v8302_v18 = vsel %vm8174_vm12, %v10307_v4, 0.0  ;;  %v4802_v60 = vsub.f32 %v15657_v56, %v16545_v52  ;;  %vm8177_vm15 = vcmp.eq.s32.totalorder %v13834_v34, %v19368_v39  ;;  %5243 = vadd.xlane.f32.xlu1 %v16537_v51 }
 0x3b9   :  { %v5174_v28 = vpop.xlane.xlu0 %5173  ;;  %v11469_v8 = vpop.eup %11468  ;;  %v6830_v21 = vmul.f32 0.6931472, %v11467_v33  ;;  %v7339_v15 = vsel %vm7297_vm7, %v7190_v59, 0.0  ;;  %v19369_v17 = vld [vmem:[#allocation177_spill] sm:$0xff]  ;;  %v8429_v46 = vadd.f32 %v8428_v20, %v8302_v18  ;;  %v8303_v56 = vsel %vm8175_vm13, %v10309_v63, 0.0 }
 0x3ba   :  { %v3704_v49 = vpop.f32.mrb[205].mxu1  ;;  %v11471_v37 = vpop.eup %11470  ;;  %v5528_v22 = vmul.f32 %v11469_v8, %v19369_v17  ;;  %11484 = vpow2.f32 %v4993_v41  ;;  %v7340_v31 = vadd.f32 %v7339_v15, %v7338_v12  ;;  %v4995_v20 = vmul.f32 1.442695, %v4802_v60  ;;  %v19374_v15 = vld [vmem:[#allocation59_spill] sm:$0xff] }
 0x3bb   :  { %v3705_v33 = vpop.f32.mrb[206].mxu1  ;;  %v4247_v7 = vpop.f32.mrb[204].mxu0  ;;  %v7063_v11 = vadd.f32 %v6830_v21, %v19370_v2  ;;  %v6832_v43 = vmul.f32 0.6931472, %v11471_v37  ;;  %v8430_v8 = vadd.f32 %v8429_v46, %v8303_v56  ;;  %v16569_v41 = vsel %vm4352_vm0, %v10307_v4, -1e+30 }
 0x3bc   :  { %v5176_v42 = vpop.xlane.xlu1 %5175  ;;  %v3707_v49 = vpop.f32.mrb[207].mxu1  ;;  %v9749_v59 = vpack.c.bf16 %v5528_v22, %v5527_v54  ;;  %v19373_v37 = vld [vmem:[#allocation149_spill] sm:$0xff]  ;;  %4681 = vmax.xlane.f32.xlu0 %v16569_v41  ;;  %11486 = vrcp.f32 %v5174_v28  ;;  %v10310_v2 = vadd.f32 %v16379_v6, %v3702_v14  ;;  %v19375_v4 = vld [vmem:[#allocation179_spill] sm:$0xff]  ;;  %v10312_v46 = vadd.f32 %v16379_v6, %v3705_v33 }
 0x3bd   :  { %v16565_v52 = vpop.eup %11472  ;;  %v4249_v12 = vpop.f32.mrb[205].mxu0  ;;  %v7191_v61 = vmul.f32 %v19373_v37, %v7063_v11  ;;  %v7064_v17 = vadd.f32 %v6832_v43, %v19374_v15  ;;  %11488 = vpow2.f32 %v4995_v20  ;;  %v16584_v11 = vsel %vm4352_vm0, %v10309_v63, -1e+30  ;;  %v19377_v49 = vld [vmem:[#allocation3_spill] sm:$0xff] }
 0x3be   :  { %19371 = vst [vmem:[#allocation54_spill] sm:$0xff] %v16565_v52  ;;  %v16571_v21 = vpop.xlane.xlu0 %4613  ;;  %v11475_v18 = vpop.eup %11474  ;;  %10021 = vst [vmem:[%s18432_s4 + $0x58] sm:$0xff] %v9749_v59   ;;  %11490 = vlog2.f32 %v5174_v28  ;;  %4683 = vmax.xlane.f32.xlu1 %v16584_v11 }
 0x3bf   :  { %19372 = vst [vmem:[#allocation127_spill] sm:$0xff] %v16571_v21  ;;  %v4250_v54 = vpop.f32.mrb[206].mxu0  ;;  %v11477_v22 = vpop.eup %11476  ;;  %v5529_v60 = vmul.f32 %v11475_v18, %v19375_v4  ;;  %19376 = vst [vmem:[#allocation167_spill] sm:$0xff] %v16584_v11  ;;  %v7341_v56 = vsel %vm7297_vm7, %v7191_v61, 0.0  ;;  %v7192_v14 = vmul.f32 %v19377_v49, %v7064_v17  ;;  %v10311_v18 = vadd.f32 %v10310_v2, %v4247_v7  ;;  %v19380_v61 = vld [vmem:[#allocation140_spill] sm:$0xff]  ;;  %v19381_v17 = vld [vmem:[#allocation85_spill] sm:$0xff] }
 0x3c0   :  { %v4252_v43 = vpop.f32.mrb[207].mxu0  ;;  %v6834_v12 = vmul.f32 0.6931472, %v11477_v22  ;;  %v16589_v37 = vpop.xlane.xlu1 %4615  ;;  %v7342_v20 = vadd.f32 %v7341_v56, %v7340_v31  ;;  %11492 = vrcp.f32 %v5176_v42  ;;  %v4803_v63 = vsub.f32 %v15712_v26, %v16571_v21  ;;  %5245 = vadd.xlane.f32.xlu0 %v16565_v52  ;;  %v19382_v2 = vld [vmem:[#allocation145_spill] sm:$0xff]  ;;  %v19383_v56 = vld [vmem:[#allocation183_spill] sm:$0xff] }
 0x3c1   :  { %19378 = vst [vmem:[#allocation62_spill] sm:$0xff] %v16589_v37  ;;  %v16591_v59 = vpop.eup %11478  ;;  %v3710_v15 = vpop.f32.mrb[208].mxu1  ;;  %vm8178_vm1 = vcmp.eq.s32.totalorder %v13834_v34, %v19380_v61  ;;  %v7343_v28 = vsel %vm7297_vm7, %v7192_v14, 0.0  ;;  %11494 = vlog2.f32 %v5176_v42  ;;  %v10313_v43 = vadd.f32 %v10312_v46, %v4250_v54 }
 0x3c2   :  { %19379 = vst [vmem:[#allocation130_spill] sm:$0xff] %v16591_v59  ;;  %v5178_v33 = vpop.xlane.xlu0 %5177  ;;  %v11481_v4 = vpop.eup %11480  ;;  %v7065_v22 = vadd.f32 %v6834_v12, %v19381_v17  ;;  %vm8179_vm2 = vcmp.eq.s32.totalorder %v13834_v34, %v19382_v2  ;;  %v7344_v26 = vadd.f32 %v7343_v28, %v7342_v20  ;;  %v8304_v21 = vsel %vm8176_vm14, %v10311_v18, 0.0  ;;  %v19384_v12 = vld [vmem:[#allocation6_spill] sm:$0xff]  ;;  %5247 = vadd.xlane.f32.xlu1 %v16591_v59 }
 0x3c3   :  { %v3712_v31 = vpop.f32.mrb[209].mxu1  ;;  %v11483_v7 = vpop.eup %11482  ;;  %v5530_v49 = vmul.f32 %v11481_v4, %v19383_v56  ;;  %v4997_v51 = vmul.f32 1.442695, %v4803_v63  ;;  %v8431_v52 = vadd.f32 %v8430_v8, %v8304_v21  ;;  %v8305_v54 = vsel %vm8177_vm15, %v10313_v43, 0.0 }
 0x3c4   :  { %v3713_v14 = vpop.f32.mrb[210].mxu1  ;;  %v4255_v11 = vpop.f32.mrb[208].mxu0  ;;  %v7193_v42 = vmul.f32 %v19384_v12, %v7065_v22  ;;  %v6836_v17 = vmul.f32 0.6931472, %v11483_v7  ;;  %v4804_v57 = vsub.f32 %v15717_v29, %v16589_v37  ;;  %v16617_v63 = vsel %vm4352_vm0, %v10311_v18, -1e+30 }
 0x3c5   :  { %v5180_v46 = vpop.xlane.xlu1 %5179  ;;  %v3715_v20 = vpop.f32.mrb[211].mxu1  ;;  %v9754_v28 = vpack.c.bf16 %v5530_v49, %v5529_v60  ;;  %11496 = vpow2.f32 %v4997_v51  ;;  %v19387_v22 = vld [vmem:[#allocation63_spill] sm:$0xff]  ;;  %v8432_v7 = vadd.f32 %v8431_v52, %v8305_v54  ;;  %4685 = vmax.xlane.f32.xlu0 %v16617_v63  ;;  %v10314_v18 = vadd.f32 %v16379_v6, %v3710_v15  ;;  %v19388_v12 = vld [vmem:[#allocation4_spill] sm:$0xff] }
 0x3c6   :  { %v16611_v4 = vpop.eup %11484  ;;  %v4257_v8 = vpop.f32.mrb[209].mxu0  ;;  %v7345_v39 = vsel %vm7297_vm7, %v7193_v42, 0.0  ;;  %v7066_v31 = vadd.f32 %v6836_v17, %v19387_v22  ;;  %11498 = vrcp.f32 %v5178_v33  ;;  %v4999_v29 = vmul.f32 1.442695, %v4804_v57  ;;  %v19391_v20 = vld [vmem:[#allocation143_spill] sm:$0xff] }
 0x3c7   :  { %19385 = vst [vmem:[#allocation45_spill] sm:$0xff] %v16611_v4  ;;  %v16619_v21 = vpop.xlane.xlu0 %4617  ;;  %v4258_v60 = vpop.f32.mrb[210].mxu0  ;;  %v7346_v51 = vadd.f32 %v7345_v39, %v7344_v26  ;;  %10022 = vst [vmem:[%s18432_s4 + $0x60] sm:$0xff] %v9754_v28   ;;  %11500 = vlog2.f32 %v5178_v33  ;;  %v10316_v17 = vadd.f32 %v16379_v6, %v3713_v14  ;;  %v16632_v52 = vsel %vm4352_vm0, %v10313_v43, -1e+30  ;;  %v19392_v33 = vld [vmem:[#allocation75_spill] sm:$0xff] }
 0x3c8   :  { %19386 = vst [vmem:[#allocation126_spill] sm:$0xff] %v16619_v21  ;;  %v4260_v56 = vpop.f32.mrb[211].mxu0  ;;  %v11487_v49 = vpop.eup %11486  ;;  %v7194_v42 = vmul.f32 %v19388_v12, %v7066_v31  ;;  %11502 = vrcp.f32 %v5180_v46  ;;  %vm8180_vm3 = vcmp.eq.s32.totalorder %v13834_v34, %v19391_v20  ;;  %v10315_v28 = vadd.f32 %v10314_v18, %v4255_v11  ;;  %4687 = vmax.xlane.f32.xlu1 %v16632_v52 }
 0x3c9   :  { %v16634_v26 = vpop.xlane.xlu1 %4619  ;;  %v16636_v54 = vpop.eup %11488  ;;  %v5531_v15 = vmul.f32 %v11487_v49, %v19392_v33  ;;  %11504 = vpow2.f32 %v4999_v29  ;;  %v4805_v14 = vsub.f32 %v15772_v10, %v16619_v21  ;;  %5249 = vadd.xlane.f32.xlu0 %v16611_v4  ;;  %v10317_v22 = vadd.f32 %v10316_v17, %v4258_v60  ;;  %v19393_v21 = vld [vmem:[#allocation187_spill] sm:$0xff] }
 0x3ca   :  { %19389 = vst [vmem:[#allocation132_spill] sm:$0xff] %v16634_v26  ;;  %19390 = vst [vmem:[#allocation131_spill] sm:$0xff] %v16636_v54  ;;  %v3718_v43 = vpop.f32.mrb[212].mxu1  ;;  %v11491_v8 = vpop.eup %11490  ;;  %v7347_v39 = vsel %vm7297_vm7, %v7194_v42, 0.0  ;;  %11506 = vlog2.f32 %v5180_v46  ;;  %v4806_v31 = vsub.f32 %v15777_v0, %v16634_v26  ;;  %v8306_v10 = vsel %vm8178_vm1, %v10315_v28, 0.0  ;;  %v19394_v26 = vld [vmem:[#allocation148_spill] sm:$0xff] }
 0x3cb   :  { %v5182_v57 = vpop.xlane.xlu0 %5181  ;;  %v3720_v56 = vpop.f32.mrb[213].mxu1  ;;  %v7348_v11 = vadd.f32 %v7347_v39, %v7346_v51  ;;  %v6838_v18 = vmul.f32 0.6931472, %v11491_v8  ;;  %v5001_v49 = vmul.f32 1.442695, %v4805_v14  ;;  %v8433_v46 = vadd.f32 %v8432_v7, %v8306_v10  ;;  %v19395_v51 = vld [vmem:[#allocation90_spill] sm:$0xff] }
 0x3cc   :  { %v11493_v29 = vpop.eup %11492  ;;  %v3721_v12 = vpop.f32.mrb[214].mxu1  ;;  %v8307_v60 = vsel %vm8179_vm2, %v10317_v22, 0.0  ;;  %v5003_v17 = vmul.f32 1.442695, %v4806_v31  ;;  %vm8181_vm4 = vcmp.eq.s32.totalorder %v13834_v34, %v19394_v26  ;;  %5251 = vadd.xlane.f32.xlu1 %v16636_v54  ;;  %v10318_v31 = vadd.f32 %v16379_v6, %v3718_v43 }
 0x3cd   :  { %v11495_v33 = vpop.eup %11494  ;;  %v5532_v42 = vmul.f32 %v11493_v29, %v19393_v21  ;;  %v4263_v0 = vpop.f32.mrb[212].mxu0  ;;  %v7067_v8 = vadd.f32 %v6838_v18, %v19395_v51  ;;  %11508 = vpow2.f32 %v5001_v49  ;;  %v16661_v21 = vsel %vm4352_vm0, %v10315_v28, -1e+30  ;;  %v19399_v49 = vld [vmem:[#allocation9_spill] sm:$0xff]  ;;  %v19400_v51 = vld [vmem:[#allocation67_spill] sm:$0xff] }
 0x3ce   :  { %v5184_v56 = vpop.xlane.xlu1 %5183  ;;  %v6840_v61 = vmul.f32 0.6931472, %v11495_v33  ;;  %19396 = vst [vmem:[#allocation58_spill] sm:$0xff] %v16661_v21  ;;  %v3723_v7 = vpop.f32.mrb[215].mxu1  ;;  %v8434_v39 = vadd.f32 %v8433_v46, %v8307_v60  ;;  %11510 = vpow2.f32 %v5003_v17  ;;  %4689 = vmax.xlane.f32.xlu0 %v16661_v21  ;;  %v10320_v28 = vadd.f32 %v16379_v6, %v3721_v12 }
 0x3cf   :  { %v4265_v14 = vpop.f32.mrb[213].mxu0  ;;  %v9759_v2 = vpack.c.bf16 %v5532_v42, %v5531_v15  ;;  %v16665_v29 = vpop.xlane.xlu0 %4621  ;;  %v7195_v33 = vmul.f32 %v19399_v49, %v7067_v8  ;;  %11512 = vrcp.f32 %v5182_v57  ;;  %v10319_v43 = vadd.f32 %v10318_v31, %v4263_v0  ;;  %v19403_v8 = vld [vmem:[#allocation10_spill] sm:$0xff] }
 0x3d0   :  { %19397 = vst [vmem:[#allocation66_spill] sm:$0xff] %v16665_v29  ;;  %v4266_v18 = vpop.f32.mrb[214].mxu0  ;;  %v16667_v10 = vpop.eup %11496  ;;  %v7068_v37 = vadd.f32 %v6840_v61, %v19400_v51  ;;  %11514 = vlog2.f32 %v5182_v57  ;;  %v16677_v42 = vsel %vm4352_vm0, %v10317_v22, -1e+30  ;;  %v4807_v46 = vsub.f32 %v15832_v1, %v16665_v29  ;;  %v19404_v14 = vld [vmem:[#allocation78_spill] sm:$0xff] }
 0x3d1   :  { %19398 = vst [vmem:[#allocation169_spill] sm:$0xff] %v16667_v10  ;;  %v4268_v7 = vpop.f32.mrb[215].mxu0  ;;  %v11499_v15 = vpop.eup %11498  ;;  %10023 = vst [vmem:[%s18432_s4 + $0x68] sm:$0xff] %v9759_v2   ;;  %v7349_v12 = vsel %vm7297_vm7, %v7195_v33, 0.0  ;;  %4691 = vmax.xlane.f32.xlu1 %v16677_v42  ;;  %11516 = vrcp.f32 %v5184_v56  ;;  %v19405_v2 = vld [vmem:[#allocation147_spill] sm:$0xff]  ;;  %v8308_v1 = vsel %vm8180_vm3, %v10319_v43, 0.0 }
 0x3d2   :  { %19401 = vst [vmem:[#allocation135_spill] sm:$0xff] %v16677_v42  ;;  %v16681_v60 = vpop.xlane.xlu1 %4623  ;;  %v11501_v17 = vpop.eup %11500  ;;  %v7196_v61 = vmul.f32 %v19403_v8, %v7068_v37  ;;  %v5533_v49 = vmul.f32 %v11499_v15, %v19404_v14  ;;  %vm8182_vm5 = vcmp.eq.s32.totalorder %v13834_v34, %v19405_v2  ;;  %v7350_v22 = vadd.f32 %v7349_v12, %v7348_v11  ;;  %v19406_v15 = vld [vmem:[#allocation191_spill] sm:$0xff]  ;;  %v19407_v12 = vld [vmem:[#allocation150_spill] sm:$0xff] }
 0x3d3   :  { %19402 = vst [vmem:[#allocation49_spill] sm:$0xff] %v16681_v60  ;;  %v3726_v57 = vpop.f32.mrb[216].mxu1  ;;  %v11503_v0 = vpop.eup %11502  ;;  %v6842_v31 = vmul.f32 0.6931472, %v11501_v17  ;;  %11518 = vlog2.f32 %v5184_v56  ;;  %5253 = vadd.xlane.f32.xlu0 %v16667_v10  ;;  %v8435_v14 = vadd.f32 %v8434_v39, %v8308_v1  ;;  %v5005_v29 = vmul.f32 1.442695, %v4807_v46 }
 0x3d4   :  { %v5186_v37 = vpop.xlane.xlu0 %5185  ;;  %v3728_v33 = vpop.f32.mrb[217].mxu1  ;;  %v7351_v7 = vsel %vm7297_vm7, %v7196_v61, 0.0  ;;  %v5534_v8 = vmul.f32 %v11503_v0, %v19406_v15  ;;  %vm8183_vm6 = vcmp.eq.s32.totalorder %v13834_v34, %v19407_v12  ;;  %v19408_v56 = vld [vmem:[#allocation182_spill] sm:$0xff]  ;;  %v10321_v10 = vadd.f32 %v10320_v28, %v4266_v18  ;;  %v19409_v0 = vld [vmem:[#allocation13_spill] sm:$0xff] }
 0x3d5   :  { %v16693_v51 = vpop.eup %11504  ;;  %v3729_v54 = vpop.f32.mrb[218].mxu1  ;;  %v7352_v20 = vadd.f32 %v7351_v7, %v7350_v22  ;;  %v7069_v4 = vadd.f32 %v6842_v31, %v19408_v56  ;;  %v4808_v33 = vsub.f32 %v15837_v38, %v16681_v60  ;;  %11520 = vpow2.f32 %v5005_v29  ;;  %v19420_v12 = vld [vmem:[#allocation73_spill] sm:$0xff] }
 0x3d6   :  { %v4271_v11 = vpop.f32.mrb[216].mxu0  ;;  %v11507_v17 = vpop.eup %11506  ;;  %v9764_v61 = vpack.c.bf16 %v5534_v8, %v5533_v49  ;;  %5255 = vadd.xlane.f32.xlu1 %v16693_v51  ;;  %v16705_v39 = vsel %vm4352_vm0, %v10319_v43, -1e+30  ;;  %v8309_v18 = vsel %vm8181_vm4, %v10321_v10, 0.0  ;;  %11522 = vrcp.f32 %v5186_v37  ;;  %v19411_v43 = vld [vmem:[#allocation70_spill] sm:$0xff] }
 0x3d7   :  { %v5188_v42 = vpop.xlane.xlu1 %5187  ;;  %v3731_v59 = vpop.f32.mrb[219].mxu1  ;;  %v6844_v21 = vmul.f32 0.6931472, %v11507_v17  ;;  %v7197_v22 = vmul.f32 %v19409_v0, %v7069_v4  ;;  %v5007_v28 = vmul.f32 1.442695, %v4808_v33  ;;  %4693 = vmax.xlane.f32.xlu0 %v16705_v39  ;;  %v8436_v4 = vadd.f32 %v8435_v14, %v8309_v18  ;;  %v19413_v14 = vld [vmem:[#allocation11_spill] sm:$0xff] }
 0x3d8   :  { %v4273_v46 = vpop.f32.mrb[217].mxu0  ;;  %v16712_v38 = vpop.xlane.xlu0 %4625  ;;  %10024 = vst [vmem:[%s18432_s4 + $0x70] sm:$0xff] %v9764_v61   ;;  %11524 = vlog2.f32 %v5186_v37  ;;  %v10322_v26 = vadd.f32 %v16379_v6, %v3726_v57  ;;  %v10324_v15 = vadd.f32 %v16379_v6, %v3729_v54  ;;  %v16727_v8 = vsel %vm4352_vm0, %v10321_v10, -1e+30 }
 0x3d9   :  { %19410 = vst [vmem:[#allocation172_spill] sm:$0xff] %v16712_v38  ;;  %v4274_v59 = vpop.f32.mrb[218].mxu0  ;;  %v16714_v29 = vpop.eup %11508  ;;  %v7070_v49 = vadd.f32 %v6844_v21, %v19411_v43  ;;  %v7353_v7 = vsel %vm7297_vm7, %v7197_v22, 0.0  ;;  %11526 = vpow2.f32 %v5007_v28  ;;  %v19414_v46 = vld [vmem:[#allocation82_spill] sm:$0xff]  ;;  %v4809_v54 = vsub.f32 %v15883_v45, %v16712_v38 }
 0x3da   :  { %v4276_v31 = vpop.f32.mrb[219].mxu0  ;;  %v16721_v1 = vpop.eup %11510  ;;  %v7354_v21 = vadd.f32 %v7353_v7, %v7352_v20  ;;  %v10323_v33 = vadd.f32 %v10322_v26, %v4271_v11  ;;  %4695 = vmax.xlane.f32.xlu1 %v16727_v8  ;;  %11528 = vrcp.f32 %v5188_v42  ;;  %v10325_v10 = vadd.f32 %v10324_v15, %v4274_v59  ;;  %v19415_v28 = vld [vmem:[#allocation2_spill] sm:$0xff]  ;;  %v19416_v59 = vld [vmem:[#allocation7_spill] sm:$0xff] }
 0x3db   :  { %v16729_v17 = vpop.xlane.xlu1 %4627  ;;  %v11513_v56 = vpop.eup %11512  ;;  %v7198_v37 = vmul.f32 %v19413_v14, %v7070_v49  ;;  %11530 = vlog2.f32 %v5188_v42  ;;  %5257 = vadd.xlane.f32.xlu0 %v16714_v29  ;;  %vm8184_vm8 = vcmp.eq.s32.totalorder %v13834_v34, %v19415_v28  ;;  %vm8185_vm9 = vcmp.eq.s32.totalorder %v13834_v34, %v19416_v59 }
 0x3dc   :  { %19412 = vst [vmem:[#allocation129_spill] sm:$0xff] %v16729_v17  ;;  %v3734_v57 = vpop.f32.mrb[220].mxu1  ;;  %v11515_v61 = vpop.eup %11514  ;;  %v5535_v0 = vmul.f32 %v11513_v56, %v19414_v46  ;;  %v8310_v49 = vsel %vm8182_vm5, %v10323_v33, 0.0  ;;  %v4810_v42 = vsub.f32 %v15888_v13, %v16729_v17  ;;  %v5009_v14 = vmul.f32 1.442695, %v4809_v54  ;;  %v19417_v46 = vld [vmem:[#allocation186_spill] sm:$0xff] }
 0x3dd   :  { %v5190_v22 = vpop.xlane.xlu0 %5189  ;;  %v3736_v18 = vpop.f32.mrb[221].mxu1  ;;  %v7355_v11 = vsel %vm7297_vm7, %v7198_v37, 0.0  ;;  %v6846_v43 = vmul.f32 0.6931472, %v11515_v61  ;;  %v8437_v56 = vadd.f32 %v8436_v4, %v8310_v49  ;;  %v8311_v13 = vsel %vm8183_vm6, %v10325_v10, 0.0 }
 0x3de   :  { %v11517_v20 = vpop.eup %11516  ;;  %v3737_v26 = vpop.f32.mrb[222].mxu1  ;;  %v7356_v7 = vadd.f32 %v7355_v11, %v7354_v21  ;;  %5259 = vadd.xlane.f32.xlu1 %v16721_v1  ;;  %v5011_v17 = vmul.f32 1.442695, %v4810_v42  ;;  %11532 = vpow2.f32 %v5009_v14  ;;  %v19419_v11 = vld [vmem:[#allocation18_spill] sm:$0xff] }
 0x3df   :  { %v4279_v31 = vpop.f32.mrb[220].mxu0  ;;  %v11519_v45 = vpop.eup %11518  ;;  %v5536_v15 = vmul.f32 %v11517_v20, %v15823_v19  ;;  %v7071_v18 = vadd.f32 %v6846_v43, %v19417_v46  ;;  %v8438_v21 = vadd.f32 %v8437_v56, %v8311_v13  ;;  %v16755_v19 = vsel %vm4352_vm0, %v10323_v33, -1e+30  ;;  %v19422_v14 = vld [vmem:[#allocation14_spill] sm:$0xff] }
 0x3e0   :  { %v5192_v37 = vpop.xlane.xlu1 %5191  ;;  %v3739_v61 = vpop.f32.mrb[223].mxu1  ;;  %v6848_v2 = vmul.f32 0.6931472, %v11519_v45  ;;  %11534 = vpow2.f32 %v5011_v17  ;;  %4697 = vmax.xlane.f32.xlu0 %v16755_v19  ;;  %v10328_v33 = vadd.f32 %v16379_v6, %v3737_v26  ;;  %v16771_v45 = vsel %vm4352_vm0, %v10325_v10, -1e+30  ;;  %v19424_v10 = vld [vmem:[#allocation151_spill] sm:$0xff] }
 0x3e1   :  { %v4281_v38 = vpop.f32.mrb[221].mxu0  ;;  %v9769_v60 = vpack.c.bf16 %v5536_v15, %v5535_v0  ;;  %v16757_v4 = vpop.xlane.xlu0 %4629  ;;  %v7199_v43 = vmul.f32 %v19419_v11, %v7071_v18  ;;  %11536 = vrcp.f32 %v5190_v22  ;;  %vm8186_vm10 = vcmp.eq.s32.totalorder %v13834_v34, %v19424_v10 }
 0x3e2   :  { %19418 = vst [vmem:[#allocation137_spill] sm:$0xff] %v16757_v4  ;;  %v4282_v54 = vpop.f32.mrb[222].mxu0  ;;  %v16759_v20 = vpop.eup %11520  ;;  %v7072_v49 = vadd.f32 %v6848_v2, %v19420_v12  ;;  %v10326_v38 = vadd.f32 %v16379_v6, %v3734_v57  ;;  %v4811_v17 = vsub.f32 %v15934_v25, %v16757_v4  ;;  %11538 = vlog2.f32 %v5190_v22  ;;  %4699 = vmax.xlane.f32.xlu1 %v16771_v45 }
 0x3e3   :  { %v4284_v0 = vpop.f32.mrb[223].mxu0  ;;  %v11523_v42 = vpop.eup %11522  ;;  %10025 = vst [vmem:[%s18432_s4 + $0x78] sm:$0xff] %v9769_v60   ;;  %v7357_v57 = vsel %vm7297_vm7, %v7199_v43, 0.0  ;;  %11540 = vrcp.f32 %v5192_v37  ;;  %v10329_v22 = vadd.f32 %v10328_v33, %v4282_v54 }
 0x3e4   :  { %v16775_v15 = vpop.xlane.xlu1 %4631  ;;  %v11525_v56 = vpop.eup %11524  ;;  %v7200_v61 = vmul.f32 %v19422_v14, %v7072_v49  ;;  %v5537_v46 = vmul.f32 %v11523_v42, %v15839_v32  ;;  %v7358_v26 = vadd.f32 %v7357_v57, %v7356_v7  ;;  %v10327_v18 = vadd.f32 %v10326_v38, %v4279_v31  ;;  %5261 = vadd.xlane.f32.xlu0 %v16759_v20  ;;  %v19425_v42 = vld [vmem:[#allocation152_spill] sm:$0xff] }
 0x3e5   :  { %19421 = vst [vmem:[#allocation61_spill] sm:$0xff] %v16775_v15  ;;  %v3742_v6 = vpop.f32.mrb[224].mxu1  ;;  %v16781_v60 = vpop.eup %11526  ;;  %v6850_v25 = vmul.f32 0.6931472, %v11525_v56  ;;  %11542 = vlog2.f32 %v5192_v37  ;;  %v5013_v32 = vmul.f32 1.442695, %v4811_v17  ;;  %vm8187_vm11 = vcmp.eq.s32.totalorder %v13834_v34, %v19425_v42 }
 0x3e6   :  { %19423 = vst [vmem:[#allocation175_spill] sm:$0xff] %v16781_v60  ;;  %v5194_v2 = vpop.xlane.xlu0 %5193  ;;  %v3744_v13 = vpop.f32.mrb[225].mxu1  ;;  %v7359_v43 = vsel %vm7297_vm7, %v7200_v61, 0.0  ;;  %v19426_v56 = vld [vmem:[#allocation190_spill] sm:$0xff]  ;;  %v8312_v57 = vsel %vm8184_vm8, %v10327_v18, 0.0  ;;  %v8313_v54 = vsel %vm8185_vm9, %v10329_v22, 0.0  ;;  %5263 = vadd.xlane.f32.xlu1 %v16781_v60 }
 0x3e7   :  { %v11529_v11 = vpop.eup %11528  ;;  %v3745_v12 = vpop.f32.mrb[226].mxu1  ;;  %v7360_v7 = vadd.f32 %v7359_v43, %v7358_v26  ;;  %v7073_v31 = vadd.f32 %v6850_v25, %v19426_v56  ;;  %v8439_v17 = vadd.f32 %v8438_v21, %v8312_v57  ;;  %11544 = vpow2.f32 %v5013_v32  ;;  %v19427_v26 = vld [vmem:[#allocation23_spill] sm:$0xff]  ;;  %v19429_v43 = vld [vmem:[#allocation77_spill] sm:$0xff] }
 0x3e8   :  { %v4287_v49 = vpop.f32.mrb[224].mxu0  ;;  %v11531_v0 = vpop.eup %11530  ;;  %v5538_v38 = vmul.f32 %v11529_v11, %v15874_v3  ;;  %v4812_v3 = vsub.f32 %v15939_v24, %v16775_v15  ;;  %v16803_v28 = vsel %vm4352_vm0, %v10327_v18, -1e+30  ;;  %11546 = vrcp.f32 %v5194_v2  ;;  %v19436_v15 = vld [vmem:[#allocation194_spill] sm:$0xff] }
 0x3e9   :  { %v5196_v37 = vpop.xlane.xlu1 %5195  ;;  %v3747_v14 = vpop.f32.mrb[227].mxu1  ;;  %v6852_v61 = vmul.f32 0.6931472, %v11531_v0  ;;  %v7201_v25 = vmul.f32 %v19427_v26, %v7073_v31  ;;  %v8440_v59 = vadd.f32 %v8439_v17, %v8313_v54  ;;  %4701 = vmax.xlane.f32.xlu0 %v16803_v28  ;;  %11548 = vlog2.f32 %v5194_v2  ;;  %v19433_v17 = vld [vmem:[#allocation24_spill] sm:$0xff] }
 0x3ea   :  { %v4289_v33 = vpop.f32.mrb[225].mxu0  ;;  %v9774_v13 = vpack.c.bf16 %v5538_v38, %v5537_v46  ;;  %v16805_v11 = vpop.xlane.xlu0 %4633  ;;  %v16812_v46 = vld [vmem:[%s18431_s2] ss:$0 sm:$0xff]  ;;  %v5015_v31 = vmul.f32 1.442695, %v4812_v3 }
 0x3eb   :  { %19428 = vst [vmem:[#allocation171_spill] sm:$0xff] %v16805_v11  ;;  %v4290_v21 = vpop.f32.mrb[226].mxu0  ;;  %v7074_v32 = vadd.f32 %v6852_v61, %v19429_v43  ;;  %v10330_v24 = vadd.f32 %v16812_v46, %v3742_v6  ;;  %v16815_v56 = vpop.eup %11532  ;;  %v7361_v18 = vsel %vm7297_vm7, %v7201_v25, 0.0  ;;  %v10332_v38 = vadd.f32 %v16812_v46, %v3745_v12  ;;  %v19434_v43 = vld [vmem:[#allocation5_spill] sm:$0xff] }
 0x3ec   :  { %v4292_v0 = vpop.f32.mrb[227].mxu0  ;;  %19430 = vst [vmem:[#allocation71_spill] sm:$0xff] %v16815_v56  ;;  %10026 = vst [vmem:[%s18432_s4 + $0x80] sm:$0xff] %v9774_v13   ;;  %v16824_v14 = vpop.eup %11534  ;;  %v7362_v61 = vadd.f32 %v7361_v18, %v7360_v7  ;;  %v16829_v33 = vsel %vm4352_vm0, %v10329_v22, -1e+30  ;;  %vm8188_vm12 = vcmp.eq.s32.totalorder %v13834_v34, %v19434_v43  ;;  %11550 = vpow2.f32 %v5015_v31  ;;  %v19435_v18 = vld [vmem:[#allocation12_spill] sm:$0xff] }
 0x3ed   :  { %v16822_v57 = vpop.xlane.xlu1 %4635  ;;  %19432 = vst [vmem:[#allocation139_spill] sm:$0xff] %v16824_v14  ;;  %v7202_v6 = vmul.f32 %v19433_v17, %v7074_v32  ;;  %v10331_v54 = vadd.f32 %v10330_v24, %v4287_v49  ;;  %v3750_v26 = vpop.f32.mrb[228].mxu1  ;;  %4703 = vmax.xlane.f32.xlu1 %v16829_v33  ;;  %v4813_v2 = vsub.f32 %v15971_v30, %v16805_v11  ;;  %11552 = vrcp.f32 %v5196_v37 }
 0x3ee   :  { %19431 = vst [vmem:[#allocation134_spill] sm:$0xff] %v16822_v57  ;;  %v11537_v25 = vpop.eup %11536  ;;  %v10333_v12 = vadd.f32 %v10332_v38, %v4290_v21  ;;  %v4814_v7 = vsub.f32 %v15988_v44, %v16822_v57  ;;  %v5198_v49 = vpop.xlane.xlu0 %5197  ;;  %5265 = vadd.xlane.f32.xlu0 %v16815_v56  ;;  %vm8189_vm13 = vcmp.eq.s32.totalorder %v13834_v34, %v19435_v18  ;;  %11554 = vlog2.f32 %v5196_v37 }
 0x3ef   :  { %v3752_v13 = vpop.f32.mrb[229].mxu1  ;;  %v11539_v3 = vpop.eup %11538  ;;  %v7363_v22 = vsel %vm7297_vm7, %v7202_v6, 0.0  ;;  %v5539_v32 = vmul.f32 %v11537_v25, %v15890_v62  ;;  %v8314_v24 = vsel %vm8186_vm10, %v10331_v54, 0.0  ;;  %v5017_v10 = vmul.f32 1.442695, %v4813_v2 }
 0x3f0   :  { %v3753_v0 = vpop.f32.mrb[230].mxu1  ;;  %v4295_v30 = vpop.f32.mrb[228].mxu0  ;;  %v7364_v44 = vadd.f32 %v7363_v22, %v7362_v61  ;;  %v6854_v31 = vmul.f32 0.6931472, %v11539_v3  ;;  %v8441_v38 = vadd.f32 %v8440_v59, %v8314_v24  ;;  %v8315_v13 = vsel %vm8187_vm11, %v10333_v12, 0.0  ;;  %v19440_v22 = vld [vmem:[#allocation81_spill] sm:$0xff] }
 0x3f1   :  { %v11541_v21 = vpop.eup %11540  ;;  %v5200_v17 = vpop.xlane.xlu1 %5199  ;;  %v5019_v57 = vmul.f32 1.442695, %v4814_v7  ;;  %5267 = vadd.xlane.f32.xlu1 %v16824_v14  ;;  %v16854_v37 = vsel %vm4352_vm0, %v10331_v54, -1e+30  ;;  %11556 = vpow2.f32 %v5017_v10  ;;  %v10334_v42 = vadd.f32 %v16812_v46, %v3750_v26  ;;  %v19439_v7 = vld [vmem:[#allocation27_spill] sm:$0xff] }
 0x3f2   :  { %v3755_v6 = vpop.f32.mrb[231].mxu1  ;;  %v11543_v62 = vpop.eup %11542  ;;  %v5540_v25 = vmul.f32 %v11541_v21, %v15925_v23  ;;  %v7075_v4 = vadd.f32 %v6854_v31, %v19436_v15  ;;  %v8442_v60 = vadd.f32 %v8441_v38, %v8315_v13  ;;  %4705 = vmax.xlane.f32.xlu0 %v16854_v37  ;;  %v10336_v15 = vadd.f32 %v16812_v46, %v3753_v0  ;;  %v19442_v38 = vld [vmem:[#allocation29_spill] sm:$0xff]  ;;  %v19444_v13 = vld [vmem:[#allocation8_spill] sm:$0xff] }
 0x3f3   :  { %v4297_v11 = vpop.f32.mrb[229].mxu0  ;;  %v6856_v56 = vmul.f32 0.6931472, %v11543_v62  ;;  %v16856_v59 = vpop.xlane.xlu0 %4637  ;;  %11558 = vpow2.f32 %v5019_v57  ;;  %v16867_v54 = vsel %vm4352_vm0, %v10333_v12, -1e+30  ;;  %v10335_v26 = vadd.f32 %v10334_v42, %v4295_v30  ;;  %v19443_v6 = vld [vmem:[#allocation93_spill] sm:$0xff] }
 0x3f4   :  { %19437 = vst [vmem:[#allocation53_spill] sm:$0xff] %v16856_v59  ;;  %v4298_v23 = vpop.f32.mrb[230].mxu0  ;;  %v16858_v61 = vpop.eup %11544  ;;  %v9779_v2 = vpack.c.bf16 %v5540_v25, %v5539_v32  ;;  %v7203_v3 = vmul.f32 %v19439_v7, %v7075_v4  ;;  %11560 = vrcp.f32 %v5198_v49  ;;  %v4815_v0 = vsub.f32 %v16032_v27, %v16856_v59  ;;  %v19462_v59 = vld [vmem:[#allocation98_spill] sm:$0xff] }
 0x3f5   :  { %19438 = vst [vmem:[#allocation176_spill] sm:$0xff] %v16858_v61  ;;  %v4300_v11 = vpop.f32.mrb[231].mxu0  ;;  %v7076_v24 = vadd.f32 %v6856_v56, %v19440_v22  ;;  %v16869_v21 = vpop.xlane.xlu1 %4639  ;;  %v10337_v4 = vadd.f32 %v10336_v15, %v4298_v23  ;;  %11562 = vlog2.f32 %v5198_v49  ;;  %4707 = vmax.xlane.f32.xlu1 %v16867_v54  ;;  %vm8190_vm14 = vcmp.eq.s32.totalorder %v13834_v34, %v19444_v13 }
 0x3f6   :  { %19441 = vst [vmem:[#allocation142_spill] sm:$0xff] %v16869_v21  ;;  %v11547_v32 = vpop.eup %11546  ;;  %10027 = vst [vmem:[%s18432_s4 + $0x88] sm:$0xff] %v9779_v2   ;;  %v3758_v31 = vpop.f32.mrb[232].mxu1  ;;  %v7365_v57 = vsel %vm7297_vm7, %v7203_v3, 0.0  ;;  %v8316_v27 = vsel %vm8188_vm12, %v10335_v26, 0.0  ;;  %11564 = vrcp.f32 %v5200_v17  ;;  %5269 = vadd.xlane.f32.xlu0 %v16858_v61 }
 0x3f7   :  { %v11549_v56 = vpop.eup %11548  ;;  %v7204_v12 = vmul.f32 %v19442_v38, %v7076_v24  ;;  %v5541_v62 = vmul.f32 %v11547_v32, %v19443_v6  ;;  %v5202_v25 = vpop.xlane.xlu0 %5201  ;;  %v7366_v30 = vadd.f32 %v7365_v57, %v7364_v44  ;;  %v8443_v11 = vadd.f32 %v8442_v60, %v8316_v27  ;;  %v19446_v32 = vld [vmem:[#allocation196_spill] sm:$0xff] }
 0x3f8   :  { %v3760_v10 = vpop.f32.mrb[233].mxu1  ;;  %v6858_v2 = vmul.f32 0.6931472, %v11549_v56  ;;  %v4303_v42 = vpop.f32.mrb[232].mxu0  ;;  %11566 = vlog2.f32 %v5200_v17  ;;  %v5021_v7 = vmul.f32 1.442695, %v4815_v0  ;;  %v4816_v57 = vsub.f32 %v16044_v50, %v16869_v21 }
 0x3f9   :  { %v3761_v23 = vpop.f32.mrb[234].mxu1  ;;  %v16886_v15 = vpop.eup %11550  ;;  %v7367_v49 = vsel %vm7297_vm7, %v7204_v12, 0.0  ;;  %v8317_v43 = vsel %vm8189_vm13, %v10337_v4, 0.0  ;;  %v19447_v12 = vld [vmem:[#allocation91_spill] sm:$0xff]  ;;  %v16899_v0 = vsel %vm4352_vm0, %v10335_v26, -1e+30 }
 0x3fa   :  { %19445 = vst [vmem:[#allocation64_spill] sm:$0xff] %v16886_v15  ;;  %v3763_v3 = vpop.f32.mrb[235].mxu1  ;;  %v4305_v22 = vpop.f32.mrb[233].mxu0  ;;  %v7368_v24 = vadd.f32 %v7367_v49, %v7366_v30  ;;  %v7077_v56 = vadd.f32 %v6858_v2, %v19446_v32  ;;  %11568 = vpow2.f32 %v5021_v7  ;;  %v8444_v17 = vadd.f32 %v8443_v11, %v8317_v43  ;;  %5271 = vadd.xlane.f32.xlu1 %v16886_v15  ;;  %v19450_v2 = vld [vmem:[#allocation26_spill] sm:$0xff]  ;;  %v19464_v15 = vld [vmem:[#allocation197_spill] sm:$0xff] }
 0x3fb   :  { %v11553_v44 = vpop.eup %11552  ;;  %v5204_v38 = vpop.xlane.xlu1 %5203  ;;  %19448 = vst [vmem:[#allocation133_spill] sm:$0xff] %v16899_v0  ;;  %v5023_v50 = vmul.f32 1.442695, %v4816_v57  ;;  %4709 = vmax.xlane.f32.xlu0 %v16899_v0  ;;  %11570 = vrcp.f32 %v5202_v25  ;;  %v10338_v11 = vadd.f32 %v16812_v46, %v3758_v31  ;;  %v10340_v7 = vadd.f32 %v16812_v46, %v3761_v23  ;;  %v19461_v21 = vld [vmem:[#allocation202_spill] sm:$0xff] }
 0x3fc   :  { %v4306_v6 = vpop.f32.mrb[234].mxu0  ;;  %v11555_v10 = vpop.eup %11554  ;;  %v5542_v60 = vmul.f32 %v11553_v44, %v19447_v12  ;;  %v7205_v27 = vmul.f32 %v19450_v2, %v7077_v56  ;;  %11572 = vlog2.f32 %v5202_v25  ;;  %v19452_v44 = vld [vmem:[#allocation84_spill] sm:$0xff]  ;;  %v16913_v56 = vsel %vm4352_vm0, %v10337_v4, -1e+30 }
 0x3fd   :  { %v16901_v30 = vpop.xlane.xlu0 %4641  ;;  %v4308_v18 = vpop.f32.mrb[235].mxu0  ;;  %v6860_v49 = vmul.f32 0.6931472, %v11555_v10  ;;  %11574 = vpow2.f32 %v5023_v50  ;;  %19453 = vst [vmem:[#allocation76_spill] sm:$0xff] %v16913_v56  ;;  %v10339_v31 = vadd.f32 %v10338_v11, %v4303_v42  ;;  %v10341_v2 = vadd.f32 %v10340_v7, %v4306_v6  ;;  %v19458_v42 = vld [vmem:[#allocation28_spill] sm:$0xff] }
 0x3fe   :  { %19449 = vst [vmem:[#allocation138_spill] sm:$0xff] %v16901_v30  ;;  %v9784_v3 = vpack.c.bf16 %v5542_v60, %v5541_v62  ;;  %v16907_v22 = vpop.eup %11556  ;;  %v7369_v26 = vsel %vm7297_vm7, %v7205_v27, 0.0  ;;  %v3766_v57 = vpop.f32.mrb[236].mxu1  ;;  %4711 = vmax.xlane.f32.xlu1 %v16913_v56  ;;  %11576 = vrcp.f32 %v5204_v38  ;;  %v4817_v23 = vsub.f32 %v16087_v53, %v16901_v30  ;;  %v19456_v60 = vld [vmem:[#allocation15_spill] sm:$0xff]  ;;  %v19457_v18 = vld [vmem:[#allocation32_spill] sm:$0xff] }
 0x3ff   :  { %19451 = vst [vmem:[#allocation180_spill] sm:$0xff] %v16907_v22  ;;  %v7078_v32 = vadd.f32 %v6860_v49, %v19452_v44  ;;  %v16915_v43 = vpop.xlane.xlu1 %4643  ;;  %v16917_v62 = vpop.eup %11558  ;;  %v7370_v25 = vadd.f32 %v7369_v26, %v7368_v24  ;;  %vm8192_vm15 = vcmp.eq.s32.totalorder %v13834_v34, %v19456_v60  ;;  %11578 = vlog2.f32 %v5204_v38  ;;  %5273 = vadd.xlane.f32.xlu0 %v16907_v22  ;;  %v19459_v53 = vld [vmem:[#allocation16_spill] sm:$0xff] }
 0x400   :  { %19454 = vst [vmem:[#allocation173_spill] sm:$0xff] %v16915_v43  ;;  %19455 = vst [vmem:[#allocation144_spill] sm:$0xff] %v16917_v62  ;;  %v3768_v4 = vpop.f32.mrb[237].mxu1  ;;  %v11561_v12 = vpop.eup %11560  ;;  %v4818_v27 = vsub.f32 %v19458_v42, %v16915_v43  ;;  %vm8191_vm1 = vcmp.eq.s32.totalorder %v13834_v34, %v19459_v53  ;;  %v8318_v11 = vsel %vm8190_vm14, %v10339_v31, 0.0  ;;  %v5025_v26 = vmul.f32 1.442695, %v4817_v23 }
 0x401   :  { %10028 = vst [vmem:[%s18432_s4 + $0x90] sm:$0xff] %v9784_v3   ;;  %v16925_v10 = vpop.xlane.xlu0 %5205  ;;  %v7206_v24 = vmul.f32 %v19457_v18, %v7078_v32  ;;  %v3769_v49 = vpop.f32.mrb[238].mxu1  ;;  %v16940_v38 = vsel %vm4352_vm0, %v10339_v31, -1e+30  ;;  %v8445_v4 = vadd.f32 %v8444_v17, %v8318_v11  ;;  %v8319_v18 = vsel %vm8191_vm1, %v10341_v2, 0.0 }
 0x402   :  { %v4311_v50 = vpop.f32.mrb[236].mxu0  ;;  %v11563_v3 = vpop.eup %11562  ;;  %19460 = vst [vmem:[#allocation56_spill] sm:$0xff] %v16940_v38  ;;  %v5543_v13 = vmul.f32 %v11561_v12, %v19461_v21  ;;  %5275 = vadd.xlane.f32.xlu1 %v16917_v62  ;;  %v5027_v31 = vmul.f32 1.442695, %v4818_v27  ;;  %11580 = vpow2.f32 %v5025_v26  ;;  %v10344_v21 = vadd.f32 %v16812_v46, %v3769_v49  ;;  %v19466_v27 = vld [vmem:[#allocation30_spill] sm:$0xff] }
 0x403   :  { %v3771_v44 = vpop.f32.mrb[239].mxu1  ;;  %v11565_v6 = vpop.eup %11564  ;;  %v7371_v7 = vsel %vm7297_vm7, %v7206_v24, 0.0  ;;  %v6862_v32 = vmul.f32 0.6931472, %v11563_v3  ;;  %v8446_v17 = vadd.f32 %v8445_v4, %v8319_v18  ;;  %4713 = vmax.xlane.f32.xlu0 %v16940_v38  ;;  %11582 = vrcp.f32 %v16925_v10 }
 0x404   :  { %v4313_v42 = vpop.f32.mrb[237].mxu0  ;;  %v16943_v43 = vpop.xlane.xlu1 %5207  ;;  %v7372_v30 = vadd.f32 %v7371_v7, %v7370_v25  ;;  %v5544_v23 = vmul.f32 %v11565_v6, %v19462_v59  ;;  %v10342_v59 = vadd.f32 %v16812_v46, %v3766_v57  ;;  %v19467_v7 = vld [vmem:[#allocation87_spill] sm:$0xff]  ;;  %11584 = vpow2.f32 %v5027_v31  ;;  %v16981_v31 = vld [vmem:[%s18428_s3 + $0x278] sm:$0xff] }
 0x405   :  { %v11567_v53 = vpop.eup %11566  ;;  %v16948_v22 = vpop.xlane.xlu0 %4645  ;;  %v7079_v24 = vadd.f32 %v6862_v32, %v19464_v15  ;;  %v16961_v26 = vsel %vm4352_vm0, %v10341_v2, -1e+30  ;;  %11586 = vrcp.f32 %v16943_v43  ;;  %vm6480_vm3 = vcmp.gt.s32.totalorder %v16981_v31, 0 }
 0x406   :  { %19463 = vst [vmem:[#allocation88_spill] sm:$0xff] %v16948_v22  ;;  %v4314_v44 = vpop.f32.mrb[238].mxu0  ;;  %v6864_v3 = vmul.f32 0.6931472, %v11567_v53  ;;  %v16952_v42 = vpop.eup %11568  ;;  %v9789_v25 = vpack.c.bf16 %v5544_v23, %v5543_v13  ;;  %19468 = vst [vmem:[#allocation136_spill] sm:$0xff] %v16961_v26  ;;  %v19470_v53 = vld [vmem:[#allocation20_spill] sm:$0xff]  ;;  %v10343_v57 = vadd.f32 %v10342_v59, %v4311_v50  ;;  %4715 = vmax.xlane.f32.xlu1 %v16961_v26 }
 0x407   :  { %v4316_v11 = vpop.f32.mrb[239].mxu0  ;;  %19465 = vst [vmem:[#allocation146_spill] sm:$0xff] %v16952_v42  ;;  %v11571_v12 = vpop.eup %11570  ;;  %v7207_v6 = vmul.f32 %v19466_v27, %v7079_v24  ;;  %vm8193_vm2 = vcmp.eq.s32.totalorder %v13834_v34, %v19470_v53  ;;  %v4819_v2 = vsub.f32 %v16133_v5, %v16948_v22  ;;  %v19472_v24 = vld [vmem:[#allocation25_spill] sm:$0xff]  ;;  %5277 = vadd.xlane.f32.xlu0 %v16952_v42 }
 0x408   :  { %v7080_v15 = vadd.f32 %v6864_v3, %v19467_v7  ;;  %v16963_v32 = vpop.xlane.xlu1 %4647  ;;  %v3774_v4 = vpop.f32.mrb[240].mxu1  ;;  %10029 = vst [vmem:[%s18432_s4 + $0x98] sm:$0xff] %v9789_v25   ;;  %v19473_v11 = vld [vmem:[#allocation99_spill] sm:$0xff]  ;;  %v8320_v22 = vsel %vm8192_vm15, %v10343_v57, 0.0  ;;  %v10345_v26 = vadd.f32 %v10344_v21, %v4314_v44  ;;  %v19479_v21 = vld [vmem:[#allocation41_spill] sm:$0xff] }
 0x409   :  { %19469 = vst [vmem:[#allocation141_spill] sm:$0xff] %v16963_v32  ;;  %v11573_v18 = vpop.eup %11572  ;;  %v16974_v49 = vpop.xlane.xlu0 %5209  ;;  %v7373_v50 = vsel %vm7297_vm7, %v7207_v6, 0.0  ;;  %v5545_v25 = vmul.f32 %v11571_v12, %v19473_v11  ;;  %v5029_v62 = vmul.f32 1.442695, %v4819_v2  ;;  %v8447_v42 = vadd.f32 %v8446_v17, %v8320_v22 }
 0x40a   :  { %v3776_v13 = vpop.f32.mrb[241].mxu1  ;;  %v16976_v23 = vpop.eup %11574  ;;  %v7208_v3 = vmul.f32 %v19472_v24, %v7080_v15  ;;  %v6866_v59 = vmul.f32 0.6931472, %v11573_v18  ;;  %v19474_v24 = vld [vmem:[#allocation200_spill] sm:$0xff]  ;;  %v19475_v18 = vld [vmem:[#allocation103_spill] sm:$0xff]  ;;  %v10346_v53 = vadd.f32 %v16812_v46, %v3774_v4 }
 0x40b   :  { %19471 = vst [vmem:[#allocation177_spill] sm:$0xff] %v16976_v23  ;;  %v3777_v5 = vpop.f32.mrb[242].mxu1  ;;  %v4319_v27 = vpop.f32.mrb[240].mxu0  ;;  %v7374_v13 = vadd.f32 %v7373_v50, %v7372_v30  ;;  %v19476_v30 = vld [vmem:[#allocation207_spill] sm:$0xff]  ;;  %v19477_v50 = vld [vmem:[#allocation206_spill] sm:$0xff]  ;;  %5279 = vadd.xlane.f32.xlu1 %v16976_v23  ;;  %11588 = vpow2.f32 %v5029_v62 }
 0x40c   :  { %v11577_v7 = vpop.eup %11576  ;;  %v3779_v61 = vpop.f32.mrb[243].mxu1  ;;  %v7375_v15 = vsel %vm7297_vm7, %v7208_v3, 0.0  ;;  %v7081_v12 = vadd.f32 %v6866_v59, %v19474_v24  ;;  %v16998_v0 = vadd.f32 %v19477_v50, %v19476_v30  ;;  %v19480_v59 = vld [vmem:[#allocation106_spill] sm:$0xff]  ;;  %v19481_v24 = vld [vmem:[#allocation201_spill] sm:$0xff]  ;;  %v10348_v62 = vadd.f32 %v16812_v46, %v3777_v5 }
 0x40d   :  { %v4321_v38 = vpop.f32.mrb[241].mxu0  ;;  %v11579_v6 = vpop.eup %11578  ;;  %v5546_v11 = vmul.f32 %v11577_v7, %v19475_v18  ;;  %v7376_v60 = vadd.f32 %v7375_v15, %v7374_v13  ;;  %v8321_v61 = vsel %vm8193_vm2, %v10345_v26, 0.0  ;;  %v4820_v7 = vsub.f32 %v19480_v59, %v16963_v32  ;;  %v19483_v15 = vld [vmem:[#allocation153_spill] sm:$0xff] }
 0x40e   :  { %v16994_v56 = vpop.xlane.xlu1 %5211  ;;  %v4322_v14 = vpop.f32.mrb[242].mxu0  ;;  %v6868_v2 = vmul.f32 0.6931472, %v11579_v6  ;;  %v7209_v22 = vmul.f32 %v19479_v21, %v7081_v12  ;;  %v8448_v3 = vadd.f32 %v8447_v42, %v8321_v61  ;;  %v17012_v13 = vsel %vm4352_vm0, %v10343_v57, -1e+30  ;;  %v19485_v30 = vld [vmem:[#allocation33_spill] sm:$0xff] }
 0x40f   :  { %v17004_v38 = vpop.xlane.xlu0 %4649  ;;  %v4324_v44 = vpop.f32.mrb[243].mxu0  ;;  %v9794_v17 = vpack.c.bf16 %v5546_v11, %v5545_v25  ;;  %vm8194_vm4 = vcmp.eq.s32.totalorder %v13834_v34, %v19483_v15  ;;  %v5031_v42 = vmul.f32 1.442695, %v4820_v7  ;;  %4717 = vmax.xlane.f32.xlu0 %v17012_v13  ;;  %11590 = vrcp.f32 %v16974_v49 }
 0x410   :  { %19478 = vst [vmem:[#allocation80_spill] sm:$0xff] %v17004_v38  ;;  %v7082_v18 = vadd.f32 %v6868_v2, %v19481_v24  ;;  %v17015_v6 = vpop.eup %11580  ;;  %v7377_v25 = vsel %vm7297_vm7, %v7209_v22, 0.0  ;;  %v3782_v12 = vpop.f32.mrb[244].mxu1  ;;  %v10347_v2 = vadd.f32 %v10346_v53, %v4319_v27  ;;  %v17035_v22 = vsel %vm4352_vm0, %v10345_v26, -1e+30  ;;  %v19488_v24 = vld [vmem:[#allocation154_spill] sm:$0xff] }
 0x411   :  { %19482 = vst [vmem:[#allocation149_spill] sm:$0xff] %v17015_v6  ;;  %10030 = vst [vmem:[%s18432_s4 + $0xa0] sm:$0xff] %v9794_v17   ;;  %v11583_v4 = vpop.eup %11582  ;;  %v7378_v11 = vadd.f32 %v7377_v25, %v7376_v60  ;;  %v3784_v44 = vpop.f32.mrb[245].mxu1  ;;  %11592 = vpow2.f32 %v5031_v42  ;;  %v4821_v5 = vsub.f32 %v16173_v36, %v17004_v38  ;;  %v10349_v17 = vadd.f32 %v10348_v62, %v4322_v14  ;;  %v19489_v14 = vld [vmem:[#allocation100_spill] sm:$0xff]  ;;  %v19490_v42 = vld [vmem:[#allocation155_spill] sm:$0xff] }
 0x412   :  { %v17025_v57 = vpop.xlane.xlu1 %4651  ;;  %v7210_v50 = vmul.f32 %v19485_v30, %v7082_v18  ;;  %v17031_v21 = vpop.eup %11584  ;;  %19487 = vst [vmem:[#allocation3_spill] sm:$0xff] %v17035_v22  ;;  %vm8195_vm5 = vcmp.eq.s32.totalorder %v13834_v34, %v19488_v24  ;;  %v8322_v18 = vsel %vm8194_vm4, %v10347_v2, 0.0  ;;  %4719 = vmax.xlane.f32.xlu1 %v17035_v22  ;;  %11594 = vrcp.f32 %v16994_v56 }
 0x413   :  { %19484 = vst [vmem:[#allocation59_spill] sm:$0xff] %v17025_v57  ;;  %v17029_v61 = vpop.xlane.xlu0 %5213  ;;  %19486 = vst [vmem:[#allocation179_spill] sm:$0xff] %v17031_v21  ;;  %v3785_v60 = vpop.f32.mrb[246].mxu1  ;;  %v5547_v25 = vmul.f32 %v11583_v4, %v19489_v14  ;;  %v8449_v30 = vadd.f32 %v8448_v3, %v8322_v18  ;;  %5281 = vadd.xlane.f32.xlu0 %v17015_v6  ;;  %v19491_v44 = vmov 0.0   ;;  %v8323_v4 = vsel %vm8195_vm5, %v10349_v17, 0.0 }
 0x414   :  { %v4327_v59 = vpop.f32.mrb[244].mxu0  ;;  %v11587_v7 = vpop.eup %11586  ;;  %v7379_v27 = vsel %vm7297_vm7, %v7210_v50, 0.0  ;;  %v17055_v15 = vsel %vm6480_vm3, 1.0, %v19491_v44  ;;  %v4822_v31 = vsub.f32 %v16195_v35, %v17025_v57  ;;  %v10350_v24 = vadd.f32 %v16812_v46, %v3782_v12 }
 0x415   :  { %v3787_v26 = vpop.f32.mrb[247].mxu1  ;;  %v4329_v53 = vpop.f32.mrb[245].mxu0  ;;  %v17047_v36 = vadd.f32 %v7379_v27, %v7378_v11  ;;  %v5548_v62 = vmul.f32 %v11587_v7, %v19490_v42  ;;  %19492 = vst [vmem:[#allocation140_spill] sm:$0xff] %v17055_v15  ;;  %v5033_v11 = vmul.f32 1.442695, %v4821_v5  ;;  %v8450_v18 = vadd.f32 %v8449_v30, %v8323_v4  ;;  %v12105_v5 = vld [vmem:[%s18428_s3 + $0x288] sm:$0xff] }
 0x416   :  { %v4330_v50 = vpop.f32.mrb[246].mxu0  ;;  %v12104_v26 = vld [vmem:[%s18428_s3 + $0x270] sm:$0xff]  ;;  %v17063_v7 = vpop.xlane.xlu1 %5215  ;;  %v17069_v53 = vsel %vm4352_vm0, %v10347_v2, -1e+30  ;;  %v17073_v14 = vsel %vm7297_vm7, %v17055_v15, 0.0  ;;  %vm6482_vm8 = vcmp.gt.s32.totalorder %v12105_v5, 0  ;;  %5283 = vadd.xlane.f32.xlu1 %v17031_v21 }
 0x417   :  { %vm6479_vm6 = vcmp.gt.s32.totalorder %v12104_v26, 0  ;;  %v4332_v3 = vpop.f32.mrb[247].mxu0  ;;  %v9799_v27 = vpack.c.bf16 %v5548_v62, %v5547_v25  ;;  %19493 = vst [vmem:[#allocation85_spill] sm:$0xff] %v17069_v53  ;;  %11596 = vpow2.f32 %v5033_v11  ;;  %v17080_v25 = vpop.xlane.xlu0 %4653  ;;  %v19496_v2 = vld [vmem:[#allocation205_spill] sm:$0xff]  ;;  %v5035_v62 = vmul.f32 1.442695, %v4822_v31  ;;  %4721 = vmax.xlane.f32.xlu0 %v17069_v53 }
 0x418   :  { %19494 = vst [vmem:[#allocation145_spill] sm:$0xff] %v17080_v25  ;;  %v17084_v35 = vsel %vm6479_vm6, 1.0, %v19491_v44  ;;  %v8621_v42 = vadd.f32 %v19496_v2, %v16998_v0  ;;  %11598 = vlog2.f32 %v16925_v10  ;;  %v3790_v30 = vpop.f32.mrb[248].mxu1  ;;  %v17093_v12 = vpop.eup %11588  ;;  %v10352_v11 = vadd.f32 %v16812_v46, %v3785_v60  ;;  %v19498_v10 = vld [vmem:[#allocation19_spill] sm:$0xff] }
 0x419   :  { %19495 = vst [vmem:[#allocation183_spill] sm:$0xff] %v17084_v35  ;;  %10031 = vst [vmem:[%s18432_s4 + $0xa8] sm:$0xff] %v9799_v27   ;;  %v8622_v26 = vsel %vm7297_vm7, %v17084_v35, 0.0  ;;  %11600 = vrcp.f32 %v17029_v61  ;;  %v10351_v0 = vadd.f32 %v10350_v24, %v4327_v59  ;;  %v3792_v4 = vpop.f32.mrb[249].mxu1  ;;  %vm8196_vm9 = vcmp.eq.s32.totalorder %v13834_v34, %v19498_v10  ;;  %v19500_v27 = vld [vmem:[#allocation38_spill] sm:$0xff]  ;;  %v11591_v38 = vpop.eup %11590 }
 0x41a   :  { %19497 = vst [vmem:[#allocation6_spill] sm:$0xff] %v17093_v12  ;;  %11602 = vpow2.f32 %v5035_v62  ;;  %v17103_v3 = vsel %vm4352_vm0, %v10349_v17, -1e+30  ;;  %v4823_v31 = vsub.f32 %v19500_v27, %v17080_v25  ;;  %v17107_v2 = vpop.xlane.xlu1 %4655  ;;  %v3793_v57 = vpop.f32.mrb[250].mxu1  ;;  %v17111_v60 = vsel %vm6482_vm8, 1.0, %v19491_v44  ;;  %v12106_v59 = vld [vmem:[%s18428_s3 + $0x280] sm:$0xff] }
 0x41b   :  { %19499 = vst [vmem:[#allocation63_spill] sm:$0xff] %v17103_v3  ;;  %19501 = vst [vmem:[#allocation4_spill] sm:$0xff] %v17107_v2  ;;  %vm6481_vm10 = vcmp.gt.s32.totalorder %v12106_v59, 0  ;;  %v8324_v24 = vsel %vm8196_vm9, %v10351_v0, 0.0  ;;  %4723 = vmax.xlane.f32.xlu1 %v17103_v3  ;;  %11604 = vrcp.f32 %v17063_v7  ;;  %v17118_v17 = vpop.xlane.xlu0 %5217  ;;  %v4335_v62 = vpop.f32.mrb[248].mxu0  ;;  %v8623_v10 = vadd.f32 %v8622_v26, %v8621_v42  ;;  %v19504_v27 = vld [vmem:[#allocation22_spill] sm:$0xff]  ;;  %5285 = vadd.xlane.f32.xlu0 %v17093_v12 }
 0x41c   :  { %19502 = vst [vmem:[#allocation143_spill] sm:$0xff] %v17111_v60  ;;  %v17120_v4 = vpop.eup %11592  ;;  %vm8197_vm11 = vcmp.eq.s32.totalorder %v13834_v34, %v19504_v27  ;;  %v8451_v5 = vadd.f32 %v8450_v18, %v8324_v24  ;;  %v5037_v25 = vmul.f32 1.442695, %v4823_v31  ;;  %v3795_v32 = vpop.f32.mrb[251].mxu1  ;;  %11606 = vlog2.f32 %v16943_v43  ;;  %v19505_v3 = vld [vmem:[#allocation109_spill] sm:$0xff]  ;;  %v19507_v26 = vld [vmem:[#allocation34_spill] sm:$0xff] }
 0x41d   :  { %19503 = vst [vmem:[#allocation75_spill] sm:$0xff] %v17120_v4  ;;  %v4337_v21 = vpop.f32.mrb[249].mxu0  ;;  %v11595_v6 = vpop.eup %11594  ;;  %v10353_v15 = vadd.f32 %v10352_v11, %v4330_v50  ;;  %v4824_v35 = vsub.f32 %v19505_v3, %v17107_v2  ;;  %v17130_v53 = vsel %vm4352_vm0, %v10351_v0, -1e+30  ;;  %v5549_v23 = vmul.f32 %v11591_v38, %v19507_v26  ;;  %v19508_v18 = vld [vmem:[#allocation104_spill] sm:$0xff]  ;;  %v19512_v26 = vld [vmem:[#allocation17_spill] sm:$0xff] }
 0x41e   :  { %19506 = vst [vmem:[#allocation187_spill] sm:$0xff] %v17130_v53  ;;  %v4338_v42 = vpop.f32.mrb[250].mxu0  ;;  %11608 = vlog2.f32 %v16974_v49  ;;  %v5550_v31 = vmul.f32 %v11595_v6, %v19508_v18  ;;  %v10354_v32 = vadd.f32 %v16812_v46, %v3790_v30  ;;  %v17136_v21 = vpop.xlane.xlu1 %5219  ;;  %v17140_v50 = vsel %vm6481_vm10, 1.0, %v19491_v44 }
 0x41f   :  { %v4340_v43 = vpop.f32.mrb[251].mxu0  ;;  %19509 = vst [vmem:[#allocation148_spill] sm:$0xff] %v17140_v50  ;;  %11610 = vpow2.f32 %v5037_v25  ;;  %v8325_v11 = vsel %vm8197_vm11, %v10353_v15, 0.0  ;;  %5287 = vadd.xlane.f32.xlu1 %v17120_v4  ;;  %v5039_v38 = vmul.f32 1.442695, %v4824_v35  ;;  %4725 = vmax.xlane.f32.xlu0 %v17130_v53  ;;  %v10356_v6 = vadd.f32 %v16812_v46, %v3793_v57  ;;  %v17148_v3 = vpop.xlane.xlu0 %4657  ;;  %v19516_v4 = vld [vmem:[#allocation31_spill] sm:$0xff] }
 0x420   :  { %v9804_v49 = vpack.c.bf16 %v5550_v31, %v5549_v23  ;;  %v8452_v0 = vadd.f32 %v8451_v5, %v8325_v11  ;;  %v10355_v30 = vadd.f32 %v10354_v32, %v4335_v62  ;;  %19510 = vst [vmem:[#allocation90_spill] sm:$0xff] %v17148_v3  ;;  %v3798_v59 = vpop.f32.mrb[252].mxu1  ;;  %v8626_v25 = vsel %vm7297_vm7, %v17140_v50, 0.0  ;;  %v19514_v5 = vld [vmem:[#allocation159_spill] sm:$0xff]  ;;  %v12107_v43 = vld [vmem:[%s18428_s3 + $0x298] sm:$0xff] }
 0x421   :  { %v17150_v24 = vpop.eup %11596  ;;  %v8625_v27 = vadd.f32 %v17073_v14, %v8623_v10  ;;  %vm8198_vm12 = vcmp.eq.s32.totalorder %v13834_v34, %v19512_v26  ;;  %11612 = vrcp.f32 %v17118_v17  ;;  %v3800_v23 = vpop.f32.mrb[253].mxu1  ;;  %v17163_v62 = vsel %vm4352_vm0, %v10353_v15, -1e+30  ;;  %v12108_v26 = vld [vmem:[%s18428_s3 + $0x2a8] sm:$0xff] }
 0x422   :  { %19511 = vst [vmem:[#allocation9_spill] sm:$0xff] %v17150_v24  ;;  %v11599_v35 = vpop.eup %11598  ;;  %10032 = vst [vmem:[%s18432_s4 + $0xb0] sm:$0xff] %v9804_v49   ;;  %11614 = vpow2.f32 %v5039_v38  ;;  %v8326_v57 = vsel %vm8198_vm12, %v10355_v30, 0.0  ;;  %v4825_v14 = vsub.f32 %v19514_v5, %v17148_v3  ;;  %v17167_v10 = vpop.xlane.xlu1 %4659  ;;  %v8628_v32 = vsel %vm7297_vm7, %v17111_v60, 0.0  ;;  %v12109_v23 = vld [vmem:[%s18428_s3 + $0x290] sm:$0xff] }
 0x423   :  { %19513 = vst [vmem:[#allocation67_spill] sm:$0xff] %v17163_v62  ;;  %19515 = vst [vmem:[#allocation10_spill] sm:$0xff] %v17167_v10  ;;  %v3801_v18 = vpop.f32.mrb[254].mxu1  ;;  %v11601_v31 = vpop.eup %11600  ;;  %vm6484_vm13 = vcmp.gt.s32.totalorder %v12107_v43, 0  ;;  %v8453_v11 = vadd.f32 %v8452_v0, %v8326_v57  ;;  %4727 = vmax.xlane.f32.xlu1 %v17163_v62  ;;  %11616 = vrcp.f32 %v17136_v21  ;;  %vm6486_vm14 = vcmp.gt.s32.totalorder %v12108_v26, 0  ;;  %5289 = vadd.xlane.f32.xlu0 %v17150_v24  ;;  %v19517_v62 = vld [vmem:[#allocation21_spill] sm:$0xff] }
 0x424   :  { %v4343_v15 = vpop.f32.mrb[252].mxu0  ;;  %v3803_v38 = vpop.f32.mrb[255].mxu1  ;;  %vm6483_vm15 = vcmp.gt.s32.totalorder %v12109_v23, 0  ;;  %v5041_v0 = vmul.f32 1.442695, %v4825_v14  ;;  %v10357_v57 = vadd.f32 %v10356_v6, %v4338_v42  ;;  %v8627_v2 = vadd.f32 %v8626_v25, %v8625_v27  ;;  %v19518_v14 = vld [vmem:[#allocation36_spill] sm:$0xff] }
 0x425   :  { %v17176_v49 = vpop.eup %11602  ;;  %v17185_v5 = vpop.xlane.xlu0 %5221  ;;  %11618 = vlog2.f32 %v16994_v56  ;;  %v4826_v12 = vsub.f32 %v19516_v4, %v17167_v10  ;;  %v17192_v60 = vsel %vm4352_vm0, %v10355_v30, -1e+30  ;;  %vm8199_vm1 = vcmp.eq.s32.totalorder %v13834_v34, %v19517_v62  ;;  %v19519_v6 = vld [vmem:[#allocation157_spill] sm:$0xff] }
 0x426   :  { %v4345_v3 = vpop.f32.mrb[253].mxu0  ;;  %v11605_v38 = vpop.eup %11604  ;;  %v5551_v42 = vmul.f32 %v11601_v31, %v19518_v14  ;;  %11620 = vlog2.f32 %v17029_v61  ;;  %v6870_v24 = vmul.f32 0.6931472, %v11599_v35  ;;  %v8327_v4 = vsel %vm8199_vm1, %v10357_v57, 0.0 }
 0x427   :  { %v4346_v50 = vpop.f32.mrb[254].mxu0  ;;  %v5552_v3 = vmul.f32 %v11605_v38, %v19519_v6  ;;  %v17199_v25 = vpop.xlane.xlu1 %5223  ;;  %11622 = vpow2.f32 %v5041_v0  ;;  %5291 = vadd.xlane.f32.xlu1 %v17176_v49  ;;  %v5043_v30 = vmul.f32 1.442695, %v4826_v12  ;;  %v17202_v22 = vadd.f32 %v8453_v11, %v8327_v4  ;;  %4729 = vmax.xlane.f32.xlu0 %v17192_v60  ;;  %v19526_v38 = vld [vmem:[#allocation94_spill] sm:$0xff] }
 0x428   :  { %v4348_v56 = vpop.f32.mrb[255].mxu0  ;;  %v11607_v27 = vpop.eup %11606  ;;  %11624 = vrcp.f32 %v17185_v5  ;;  %v10358_v61 = vadd.f32 %v16812_v46, %v3798_v59  ;;  %v17211_v35 = vsel %vm6484_vm13, 1.0, %v19491_v44  ;;  %v17215_v31 = vsel %vm6483_vm15, 1.0, %v19491_v44 }
 0x429   :  { %v11609_v10 = vpop.eup %11608  ;;  %v9809_v53 = vpack.c.bf16 %v5552_v3, %v5551_v42  ;;  %19520 = vst [vmem:[#allocation78_spill] sm:$0xff] %v17202_v22  ;;  %11626 = vpow2.f32 %v5043_v30  ;;  %v10360_v12 = vadd.f32 %v16812_v46, %v3801_v18  ;;  %v17218_v11 = vpop.xlane.xlu0 %4661  ;;  %v17227_v43 = vsel %vm4352_vm0, %v10357_v57, -1e+30 }
 0x42a   :  { %v17207_v62 = vpop.eup %11610  ;;  %19522 = vst [vmem:[#allocation191_spill] sm:$0xff] %v17218_v11  ;;  %v17223_v59 = vadd.f32 %v10358_v61, %v4343_v15  ;;  %11628 = vrcp.f32 %v17199_v25  ;;  %v4827_v23 = vsub.f32 %v16331_v40, %v17218_v11  ;;  %v8632_v46 = vsel %vm7297_vm7, %v17211_v35, 0.0  ;;  %v19539_v11 = vld [vmem:[#allocation46_spill] sm:$0xff] }
 0x42b   :  { %19521 = vst [vmem:[#allocation147_spill] sm:$0xff] %v17207_v62  ;;  %10033 = vst [vmem:[%s18432_s4 + $0xb8] sm:$0xff] %v9809_v53   ;;  %v11613_v0 = vpop.eup %11612  ;;  %v17236_v18 = vsel %vm6486_vm14, 1.0, %v19491_v44  ;;  %v8630_v53 = vsel %vm7297_vm7, %v17215_v31, 0.0  ;;  %11630 = vlog2.f32 %v17063_v7  ;;  %4731 = vmax.xlane.f32.xlu1 %v17227_v43  ;;  %v8629_v57 = vadd.f32 %v8628_v32, %v8627_v2  ;;  %5293 = vadd.xlane.f32.xlu0 %v17207_v62  ;;  %v17248_v26 = vpop.xlane.xlu1 %4663  ;;  %v19529_v32 = vld [vmem:[#allocation108_spill] sm:$0xff]  ;;  %v19541_v62 = vld [vmem:[#allocation158_spill] sm:$0xff] }
 0x42c   :  { %19523 = vst [vmem:[#allocation150_spill] sm:$0xff] %v17223_v59  ;;  %19524 = vst [vmem:[#allocation182_spill] sm:$0xff] %v17236_v18  ;;  %v17242_v15 = vpop.eup %11614  ;;  %v7083_v40 = vadd.f32 %v6870_v24, %v19526_v38  ;;  %v5045_v14 = vmul.f32 1.442695, %v4827_v23  ;;  %v17246_v42 = vadd.f32 %v10360_v12, %v4346_v50  ;;  %v6872_v3 = vmul.f32 0.6931472, %v11607_v27 }
 0x42d   :  { %19525 = vst [vmem:[#allocation13_spill] sm:$0xff] %v17242_v15  ;;  %19528 = vst [vmem:[#allocation11_spill] sm:$0xff] %v17248_v26  ;;  %v11617_v6 = vpop.eup %11616  ;;  %11632 = vlog2.f32 %v17118_v17  ;;  %v4828_v7 = vsub.f32 %v16350_v16, %v17248_v26  ;;  %v17256_v2 = vsel %vm4352_vm0, %v17223_v59, -1e+30  ;;  %v17258_v24 = vpop.xlane.xlu0 %5225  ;;  %v12110_v50 = vld [vmem:[%s18428_s3 + $0x2a0] sm:$0xff]  ;;  %v5553_v56 = vmul.f32 %v11613_v0, %v19529_v32  ;;  %v19530_v27 = vld [vmem:[#allocation113_spill] sm:$0xff] }
 0x42e   :  { %19527 = vst [vmem:[#allocation70_spill] sm:$0xff] %v17246_v42  ;;  %vm6485_vm2 = vcmp.gt.s32.totalorder %v12110_v50, 0  ;;  %v5554_v4 = vmul.f32 %v11617_v6, %v19530_v27  ;;  %11634 = vpow2.f32 %v5045_v14  ;;  %v12111_v16 = vld [vmem:[%s18428_s3 + $0x2b8] sm:$0xff]  ;;  %v6874_v30 = vmul.f32 0.6931472, %v11609_v10  ;;  %v19533_v10 = vld [vmem:[#allocation156_spill] sm:$0xff] }
 0x42f   :  { %v11619_v17 = vpop.eup %11618  ;;  %vm6488_vm3 = vcmp.gt.s32.totalorder %v12111_v16, 0  ;;  %11636 = vlog2.f32 %v17136_v21  ;;  %5295 = vadd.xlane.f32.xlu1 %v17242_v15  ;;  %v5047_v61 = vmul.f32 1.442695, %v4828_v7  ;;  %v17272_v23 = vsel %vm7297_vm7, %v17236_v18, 0.0  ;;  %4733 = vmax.xlane.f32.xlu0 %v17256_v2  ;;  %v17276_v14 = vpop.xlane.xlu1 %5227  ;;  %v19534_v32 = vld [vmem:[#allocation208_spill] sm:$0xff]  ;;  %v19540_v15 = vld [vmem:[#allocation101_spill] sm:$0xff] }
 0x430   :  { %v11621_v12 = vpop.eup %11620  ;;  %v8631_v0 = vadd.f32 %v8630_v53, %v8629_v57  ;;  %v9814_v38 = vpack.c.bf16 %v5554_v4, %v5553_v56  ;;  %11638 = vrcp.f32 %v17258_v24  ;;  %v17282_v21 = vsel %vm6485_vm2, 1.0, %v19491_v44  ;;  %v12113_v16 = vld [vmem:[%s18428_s3 + $0x2b0] sm:$0xff] }
 0x431   :  { %v17278_v6 = vpop.eup %11622  ;;  %19532 = vst [vmem:[#allocation2_spill] sm:$0xff] %v17282_v21  ;;  %v7211_v7 = vmul.f32 %v19533_v10, %v7083_v40  ;;  %v7084_v27 = vadd.f32 %v6872_v3, %v19534_v32  ;;  %11640 = vpow2.f32 %v5047_v61  ;;  %v17286_v22 = vpop.xlane.xlu0 %4665  ;;  %v6876_v57 = vmul.f32 0.6931472, %v11619_v17  ;;  %v12112_v17 = vld [vmem:[%s18428_s3 + $0x2c8] sm:$0xff]  ;;  %v19536_v61 = vld [vmem:[#allocation97_spill] sm:$0xff] }
 0x432   :  { %19531 = vst [vmem:[#allocation82_spill] sm:$0xff] %v17278_v6  ;;  %19535 = vst [vmem:[#allocation7_spill] sm:$0xff] %v17286_v22  ;;  %v11625_v53 = vpop.eup %11624  ;;  %v17294_v56 = vsel %vm4352_vm0, %v17246_v42, -1e+30  ;;  %11642 = vrcp.f32 %v17276_v14  ;;  %v4829_v40 = vsub.f32 %v16373_v47, %v17286_v22  ;;  %v17303_v50 = vsel %vm6488_vm3, 1.0, %v19491_v44  ;;  %v19538_v22 = vld [vmem:[#allocation111_spill] sm:$0xff] }
 0x433   :  { %10034 = vst [vmem:[%s18432_s4 + $0xc0] sm:$0xff] %v9814_v38   ;;  %v17299_v3 = vpop.eup %11626  ;;  %v8634_v4 = vsel %vm7297_vm7, %v17282_v21, 0.0  ;;  %vm6490_vm0 = vcmp.gt.s32.totalorder %v12112_v17, 0  ;;  %v7085_v38 = vadd.f32 %v6874_v30, %v19536_v61  ;;  %4735 = vmax.xlane.f32.xlu1 %v17294_v56  ;;  %v8633_v47 = vadd.f32 %v8632_v46, %v8631_v0  ;;  %5297 = vadd.xlane.f32.xlu0 %v17278_v6  ;;  %v17316_v59 = vpop.xlane.xlu1 %4667  ;;  %v19546_v17 = vld [vmem:[#allocation47_spill] sm:$0xff] }
 0x434   :  { %v11629_v10 = vpop.eup %11628  ;;  %vm6487_vm4 = vcmp.gt.s32.totalorder %v12113_v16, 0  ;;  %v6878_v32 = vmul.f32 0.6931472, %v11621_v12  ;;  %v5049_v42 = vmul.f32 1.442695, %v4829_v40  ;;  %19537 = vst [vmem:[#allocation186_spill] sm:$0xff] %v17316_v59  ;;  %v5555_v26 = vmul.f32 %v11625_v53, %v19538_v22 }
 0x435   :  { %v11631_v34 = vpop.eup %11630  ;;  %11644 = vlog2.f32 %v17185_v5  ;;  %v5556_v30 = vmul.f32 %v11629_v10, %v16301_v48  ;;  %v4830_v46 = vsub.f32 %v16395_v9, %v17316_v59  ;;  %v5230_v0 = vpop.xlane.xlu0 %5229  ;;  %v7381_v61 = vsel %vm7297_vm7, %v7211_v7, 0.0  ;;  %v19542_v5 = vld [vmem:[#allocation96_spill] sm:$0xff] }
 0x436   :  { %v7212_v12 = vmul.f32 %v19539_v11, %v7084_v27  ;;  %v7086_v6 = vadd.f32 %v6876_v57, %v19540_v15  ;;  %11646 = vpow2.f32 %v5049_v42  ;;  %v7213_v18 = vmul.f32 %v19541_v62, %v7085_v38  ;;  %v19545_v57 = vld [vmem:[#allocation51_spill] sm:$0xff] }
 0x437   :  { %v11633_v40 = vpop.eup %11632  ;;  %v9819_v21 = vpack.c.bf16 %v5556_v30, %v5555_v26  ;;  %11648 = vlog2.f32 %v17199_v25  ;;  %5299 = vadd.xlane.f32.xlu1 %v17299_v3  ;;  %v5051_v48 = vmul.f32 1.442695, %v4830_v46  ;;  %v17333_v9 = vsel %vm7297_vm7, %v17303_v50, 0.0  ;;  %v5232_v15 = vpop.xlane.xlu1 %5231  ;;  %v19548_v30 = vld [vmem:[#allocation160_spill] sm:$0xff] }
 0x438   :  { %v17329_v22 = vpop.eup %11634  ;;  %v7087_v11 = vadd.f32 %v6878_v32, %v19542_v5  ;;  %v6880_v7 = vmul.f32 0.6931472, %v11631_v34  ;;  %11650 = vrcp.f32 %v5230_v0  ;;  %v8635_v27 = vadd.f32 %v8634_v4, %v8633_v47  ;;  %v19551_v5 = vld [vmem:[#allocation112_spill] sm:$0xff] }
 0x439   :  { %v11637_v42 = vpop.eup %11636  ;;  %v17338_v62 = vsel %vm6490_vm0, 1.0, %v19491_v44  ;;  %v17342_v25 = vsel %vm6487_vm4, 1.0, %v19491_v44  ;;  %10035 = vst [vmem:[%s18432_s4 + $0xc8] sm:$0xff] %v9819_v21   ;;  %11652 = vpow2.f32 %v5051_v48  ;;  %5301 = vadd.xlane.f32.xlu0 %v17329_v22  ;;  %v17348_v34 = vpop.xlane.xlu0 %4669  ;;  %v7382_v53 = vadd.f32 %v7381_v61, %v17047_v36  ;;  %v19549_v48 = vld [vmem:[#allocation102_spill] sm:$0xff] }
 0x43a   :  { %19543 = vst [vmem:[#allocation18_spill] sm:$0xff] %v17338_v62  ;;  %19544 = vst [vmem:[#allocation73_spill] sm:$0xff] %v17348_v34  ;;  %v11639_v26 = vpop.eup %11638  ;;  %v7214_v4 = vmul.f32 %v19545_v57, %v7086_v6  ;;  %11654 = vrcp.f32 %v5232_v15  ;;  %v4831_v38 = vsub.f32 %v19546_v17, %v17348_v34  ;;  %v7383_v47 = vsel %vm7297_vm7, %v7212_v12, 0.0  ;;  %v19552_v12 = vld [vmem:[#allocation161_spill] sm:$0xff] }
 0x43b   :  { %v17354_v10 = vpop.eup %11640  ;;  %v7385_v21 = vsel %vm7297_vm7, %v7213_v18, 0.0  ;;  %v6882_v16 = vmul.f32 0.6931472, %v11633_v40  ;;  %11656 = vlog2.f32 %v17258_v24  ;;  %v7215_v46 = vmul.f32 %v19548_v30, %v7087_v11  ;;  %v17363_v61 = vpop.xlane.xlu1 %4671  ;;  %v19553_v18 = vld [vmem:[#allocation163_spill] sm:$0xff] }
 0x43c   :  { %19547 = vst [vmem:[#allocation14_spill] sm:$0xff] %v17354_v10  ;;  %v11643_v32 = vpop.eup %11642  ;;  %v7088_v36 = vadd.f32 %v6880_v7, %v19549_v48  ;;  %11658 = vlog2.f32 %v17276_v14  ;;  %v5053_v6 = vmul.f32 1.442695, %v4831_v38  ;;  %5303 = vadd.xlane.f32.xlu1 %v17354_v10  ;;  %19550 = vst [vmem:[#allocation151_spill] sm:$0xff] %v17363_v61  ;;  %v5557_v57 = vmul.f32 %v11639_v26, %v19551_v5  ;;  %v19554_v38 = vld [vmem:[#allocation105_spill] sm:$0xff] }
 0x43d   :  { %v5558_v17 = vmul.f32 %v11643_v32, %v19552_v12  ;;  %11660 = vlog2.f32 %v5230_v0  ;;  %v4832_v24 = vsub.f32 %v19553_v18, %v17363_v61  ;;  %v5234_v40 = vpop.xlane.xlu0 %5233  ;;  %v7384_v34 = vadd.f32 %v7383_v47, %v7382_v53  ;;  %v19556_v32 = vld [vmem:[#allocation55_spill] sm:$0xff]  ;;  %v19558_v47 = vld [vmem:[#allocation110_spill] sm:$0xff] }
 0x43e   :  { %v7387_v11 = vsel %vm7297_vm7, %v7214_v4, 0.0  ;;  %v6884_v7 = vmul.f32 0.6931472, %v11637_v42  ;;  %11662 = vpow2.f32 %v5053_v6  ;;  %v7089_v30 = vadd.f32 %v6882_v16, %v19554_v38  ;;  %v19560_v6 = vld [vmem:[#allocation162_spill] sm:$0xff] }
 0x43f   :  { %v11645_v14 = vpop.eup %11644  ;;  %v9824_v48 = vpack.c.bf16 %v5558_v17, %v5557_v57  ;;  %11664 = vlog2.f32 %v5232_v15  ;;  %v5055_v59 = vmul.f32 1.442695, %v4832_v24  ;;  %v8637_v26 = vadd.f32 %v17272_v23, %v8635_v27  ;;  %v5236_v12 = vpop.xlane.xlu1 %5235  ;;  %v19561_v17 = vld [vmem:[#allocation50_spill] sm:$0xff] }
 0x440   :  { %v17371_v10 = vpop.eup %11646  ;;  %v7386_v0 = vadd.f32 %v7385_v21, %v7384_v34  ;;  %v7216_v5 = vmul.f32 %v19556_v32, %v7088_v36  ;;  %11666 = vrcp.f32 %v5234_v40  ;;  %v17377_v42 = vsel %vm7297_vm7, %v17338_v62, 0.0 }
 0x441   :  { %19555 = vst [vmem:[#allocation152_spill] sm:$0xff] %v17371_v10  ;;  %v11649_v53 = vpop.eup %11648  ;;  %v8638_v4 = vsel %vm7297_vm7, %v17342_v25, 0.0  ;;  %v7389_v15 = vsel %vm7297_vm7, %v7215_v46, 0.0  ;;  %10036 = vst [vmem:[%s18432_s4 + $0xd0] sm:$0xff] %v9824_v48   ;;  %11668 = vpow2.f32 %v5055_v59  ;;  %5305 = vadd.xlane.f32.xlu0 %v17371_v10  ;;  %v17386_v23 = vpop.xlane.xlu0 %4673  ;;  %v7090_v21 = vadd.f32 %v6884_v7, %v19558_v47  ;;  %v12114_v46 = vld [vmem:[%s18428_s3 + $0x2d8] sm:$0xff]  ;;  %v12115_v59 = vld [vmem:[%s18428_s3 + $0x2c0] sm:$0xff] }
 0x442   :  { %19557 = vst [vmem:[#allocation190_spill] sm:$0xff] %v17386_v23  ;;  %v11651_v27 = vpop.eup %11650  ;;  %v7388_v34 = vadd.f32 %v7387_v11, %v7386_v0  ;;  %v6886_v16 = vmul.f32 0.6931472, %v11645_v14  ;;  %11670 = vrcp.f32 %v5236_v12  ;;  %vm6492_vm5 = vcmp.gt.s32.totalorder %v12114_v46, 0  ;;  %v19563_v0 = vld [vmem:[#allocation117_spill] sm:$0xff]  ;;  %v19564_v47 = vld [vmem:[#allocation118_spill] sm:$0xff] }
 0x443   :  { %v17389_v36 = vpop.eup %11652  ;;  %vm6489_vm6 = vcmp.gt.s32.totalorder %v12115_v59, 0  ;;  %v7217_v57 = vmul.f32 %v19560_v6, %v7089_v30  ;;  %v4833_v18 = vsub.f32 %v19561_v17, %v17386_v23  ;;  %v8639_v11 = vadd.f32 %v8638_v4, %v8637_v26  ;;  %v17402_v38 = vpop.xlane.xlu1 %4675  ;;  %v19565_v17 = vld [vmem:[#allocation60_spill] sm:$0xff]  ;;  %v19566_v26 = vld [vmem:[#allocation37_spill] sm:$0xff] }
 0x444   :  { %19559 = vst [vmem:[#allocation23_spill] sm:$0xff] %v17389_v36  ;;  %v11655_v24 = vpop.eup %11654  ;;  %v7390_v7 = vadd.f32 %v7389_v15, %v7388_v34  ;;  %v7391_v14 = vsel %vm7297_vm7, %v7216_v5, 0.0  ;;  %11672 = vlog2.f32 %v5234_v40  ;;  %5307 = vadd.xlane.f32.xlu1 %v17389_v36  ;;  %19562 = vst [vmem:[#allocation77_spill] sm:$0xff] %v17402_v38  ;;  %v5559_v32 = vmul.f32 %v11651_v27, %v19563_v0  ;;  %v19567_v5 = vld [vmem:[#allocation124_spill] sm:$0xff] }
 0x445   :  { %v11657_v48 = vpop.eup %11656  ;;  %v5560_v61 = vmul.f32 %v11655_v24, %v19564_v47  ;;  %11674 = vlog2.f32 %v5236_v12  ;;  %v5057_v30 = vmul.f32 1.442695, %v4833_v18  ;;  %v5238_v6 = vpop.xlane.xlu0 %5237  ;;  %v7218_v23 = vmul.f32 %v19565_v17, %v7090_v21 }
 0x446   :  { %v11659_v10 = vpop.eup %11658  ;;  %v7091_v4 = vadd.f32 %v6886_v16, %v19566_v26  ;;  %v4834_v40 = vsub.f32 %v19567_v5, %v17402_v38  ;;  %11676 = vrcp.f32 %v5238_v6  ;;  %v7393_v34 = vsel %vm7297_vm7, %v7217_v57, 0.0 }
 0x447   :  { %v11661_v15 = vpop.eup %11660  ;;  %v6888_v36 = vmul.f32 0.6931472, %v11649_v53  ;;  %v9829_v62 = vpack.c.bf16 %v5560_v61, %v5559_v32  ;;  %11678 = vpow2.f32 %v5057_v30  ;;  %v7392_v12 = vadd.f32 %v7391_v14, %v7390_v7  ;;  %v5240_v0 = vpop.xlane.xlu1 %5239  ;;  %v12116_v61 = vld [vmem:[%s18428_s3 + $0x2d0] sm:$0xff]  ;;  %v19572_v32 = vld [vmem:[#allocation107_spill] sm:$0xff] }
 0x448   :  { %v17411_v27 = vpop.eup %11662  ;;  %v6890_v18 = vmul.f32 0.6931472, %v11657_v48  ;;  %v5059_v24 = vmul.f32 1.442695, %v4834_v40  ;;  %11680 = vlog2.f32 %v5238_v6  ;;  %v17415_v16 = vsel %vm6492_vm5, 1.0, %v19491_v44  ;;  %v19570_v7 = vld [vmem:[#allocation164_spill] sm:$0xff] }
 0x449   :  { %19568 = vst [vmem:[#allocation24_spill] sm:$0xff] %v17411_v27  ;;  %v11665_v21 = vpop.eup %11664  ;;  %v17419_v47 = vsel %vm6489_vm6, 1.0, %v19491_v44  ;;  %vm6491_vm8 = vcmp.gt.s32.totalorder %v12116_v61, 0  ;;  %10037 = vst [vmem:[%s18432_s4 + $0xd8] sm:$0xff] %v9829_v62   ;;  %11682 = vrcp.f32 %v5240_v0  ;;  %5309 = vadd.xlane.f32.xlu0 %v17411_v27  ;;  %v17428_v53 = vpop.xlane.xlu0 %4677  ;;  %v7394_v57 = vadd.f32 %v7393_v34, %v7392_v12  ;;  %v19573_v40 = vld [vmem:[#allocation40_spill] sm:$0xff] }
 0x44a   :  { %19569 = vst [vmem:[#allocation5_spill] sm:$0xff] %v17428_v53  ;;  %v11667_v46 = vpop.eup %11666  ;;  %v7395_v59 = vsel %vm7297_vm7, %v7218_v23, 0.0  ;;  %v7219_v14 = vmul.f32 %v19570_v7, %v7091_v4  ;;  %11684 = vpow2.f32 %v5059_v24  ;;  %v7092_v30 = vadd.f32 %v6888_v36, %v19572_v32  ;;  %v19575_v36 = vld [vmem:[#allocation52_spill] sm:$0xff]  ;;  %v19576_v24 = vld [vmem:[#allocation121_spill] sm:$0xff] }
 0x44b   :  { %v17432_v48 = vpop.eup %11668  ;;  %v6892_v6 = vmul.f32 0.6931472, %v11659_v10  ;;  %11686 = vlog2.f32 %v5240_v0  ;;  %v4835_v62 = vsub.f32 %v16514_v58, %v17428_v53  ;;  %v8642_v26 = vsel %vm7297_vm7, %v17419_v47, 0.0  ;;  %v17442_v4 = vpop.xlane.xlu1 %4679 }
 0x44c   :  { %19571 = vst [vmem:[#allocation12_spill] sm:$0xff] %v17432_v48  ;;  %v11671_v17 = vpop.eup %11670  ;;  %v8641_v5 = vadd.f32 %v17333_v9, %v8639_v11  ;;  %v7093_v23 = vadd.f32 %v6890_v18, %v19573_v40  ;;  %v6894_v34 = vmul.f32 0.6931472, %v11661_v15  ;;  %5311 = vadd.xlane.f32.xlu1 %v17432_v48  ;;  %19574 = vst [vmem:[#allocation194_spill] sm:$0xff] %v17442_v4  ;;  %v7397_v53 = vsel %vm7297_vm7, %v7219_v14, 0.0  ;;  %v19577_v15 = vld [vmem:[#allocation65_spill] sm:$0xff] }
 0x44d   :  { %v7396_v12 = vadd.f32 %v7395_v59, %v7394_v57  ;;  %v5561_v10 = vmul.f32 %v11667_v46, %v19575_v36  ;;  %v5562_v0 = vmul.f32 %v11671_v17, %v19576_v24  ;;  %v5061_v7 = vmul.f32 1.442695, %v4835_v62  ;;  %v5242_v58 = vpop.xlane.xlu0 %5241  ;;  %v19578_v40 = vld [vmem:[#allocation43_spill] sm:$0xff]  ;;  %v19579_v59 = vld [vmem:[#allocation166_spill] sm:$0xff] }
 0x44e   :  { %v11673_v32 = vpop.eup %11672  ;;  %v6896_v38 = vmul.f32 0.6931472, %v11665_v21  ;;  %v4836_v9 = vsub.f32 %v16533_v55, %v17442_v4  ;;  %11688 = vrcp.f32 %v5242_v58  ;;  %v7220_v18 = vmul.f32 %v19577_v15, %v7092_v30  ;;  %v19580_v62 = vld [vmem:[#allocation114_spill] sm:$0xff] }
 0x44f   :  { %v11675_v11 = vpop.eup %11674  ;;  %v7094_v48 = vadd.f32 %v6892_v6, %v19578_v40  ;;  %v9834_v57 = vpack.c.bf16 %v5562_v0, %v5561_v10  ;;  %11690 = vpow2.f32 %v5061_v7  ;;  %v7221_v17 = vmul.f32 %v19579_v59, %v7093_v23  ;;  %v5244_v14 = vpop.xlane.xlu1 %5243  ;;  %v19581_v10 = vld [vmem:[#allocation44_spill] sm:$0xff]  ;;  %v19586_v40 = vld [vmem:[#allocation57_spill] sm:$0xff] }
 0x450   :  { %v11677_v46 = vpop.eup %11676  ;;  %v7095_v36 = vadd.f32 %v6894_v34, %v19580_v62  ;;  %v5063_v24 = vmul.f32 1.442695, %v4836_v9  ;;  %11692 = vlog2.f32 %v5242_v58  ;;  %v8643_v27 = vadd.f32 %v8642_v26, %v8641_v5  ;;  %v19583_v5 = vld [vmem:[#allocation69_spill] sm:$0xff] }
 0x451   :  { %v17453_v21 = vpop.eup %11678  ;;  %v17457_v55 = vsel %vm6491_vm8, 1.0, %v19491_v44  ;;  %v6898_v30 = vmul.f32 0.6931472, %v11673_v32  ;;  %10038 = vst [vmem:[%s18432_s4 + $0xe0] sm:$0xff] %v9834_v57   ;;  %11694 = vrcp.f32 %v5244_v14  ;;  %v7398_v23 = vadd.f32 %v7397_v53, %v7396_v12  ;;  %v17464_v7 = vpop.xlane.xlu0 %4681 }
 0x452   :  { %v11681_v6 = vpop.eup %11680  ;;  %v7096_v34 = vadd.f32 %v6896_v38, %v19581_v10  ;;  %v6900_v0 = vmul.f32 0.6931472, %v11675_v11  ;;  %11696 = vpow2.f32 %v5063_v24  ;;  %5313 = vadd.xlane.f32.xlu0 %v17453_v21  ;;  %19582 = vst [vmem:[#allocation27_spill] sm:$0xff] %v17464_v7  ;;  %v7399_v61 = vsel %vm7297_vm7, %v7220_v18, 0.0  ;;  %v19584_v38 = vld [vmem:[#allocation168_spill] sm:$0xff]  ;;  %v19585_v11 = vld [vmem:[#allocation123_spill] sm:$0xff] }
 0x453   :  { %v11683_v26 = vpop.eup %11682  ;;  %v7222_v58 = vmul.f32 %v19583_v5, %v7094_v48  ;;  %11698 = vlog2.f32 %v5244_v14  ;;  %v4837_v32 = vsub.f32 %v16569_v41, %v17464_v7  ;;  %v7401_v53 = vsel %vm7297_vm7, %v7221_v17, 0.0  ;;  %v17476_v59 = vpop.xlane.xlu1 %4683  ;;  %v19588_v18 = vld [vmem:[#allocation48_spill] sm:$0xff]  ;;  %v19589_v41 = vld [vmem:[#allocation167_spill] sm:$0xff]  ;;  %v19590_v17 = vld [vmem:[#allocation74_spill] sm:$0xff] }
 0x454   :  { %v17470_v9 = vpop.eup %11684  ;;  %v7223_v12 = vmul.f32 %v19584_v38, %v7095_v36  ;;  %v5563_v15 = vmul.f32 %v11677_v46, %v19585_v11  ;;  %v5564_v57 = vmul.f32 %v11683_v26, %v19586_v40  ;;  %19587 = vst [vmem:[#allocation81_spill] sm:$0xff] %v17476_v59  ;;  %v7097_v24 = vadd.f32 %v6898_v30, %v19588_v18  ;;  %v19591_v36 = vld [vmem:[#allocation116_spill] sm:$0xff] }
 0x455   :  { %v11687_v62 = vpop.eup %11686  ;;  %v6902_v48 = vmul.f32 0.6931472, %v11681_v6  ;;  %v5065_v14 = vmul.f32 1.442695, %v4837_v32  ;;  %5315 = vadd.xlane.f32.xlu1 %v17470_v9  ;;  %v4838_v10 = vsub.f32 %v19589_v41, %v17476_v59  ;;  %v7400_v5 = vadd.f32 %v7399_v61, %v7398_v23  ;;  %v5246_v11 = vpop.xlane.xlu0 %5245  ;;  %v19592_v61 = vld [vmem:[#allocation170_spill] sm:$0xff] }
 0x456   :  { %v7224_v7 = vmul.f32 %v19590_v17, %v7096_v34  ;;  %v7098_v38 = vadd.f32 %v6900_v0, %v19591_v36  ;;  %v9839_v46 = vpack.c.bf16 %v5564_v57, %v5563_v15  ;;  %v7403_v26 = vsel %vm7297_vm7, %v7222_v58, 0.0  ;;  %v19593_v15 = vld [vmem:[#allocation35_spill] sm:$0xff]  ;;  %v19597_v36 = vld [vmem:[#allocation125_spill] sm:$0xff] }
 0x457   :  { %v6904_v40 = vmul.f32 0.6931472, %v11687_v62  ;;  %11700 = vpow2.f32 %v5065_v14  ;;  %v5067_v4 = vmul.f32 1.442695, %v4838_v10  ;;  %v8646_v6 = vsel %vm7297_vm7, %v17457_v55, 0.0  ;;  %v5248_v23 = vpop.xlane.xlu1 %5247 }
 0x458   :  { %v11689_v30 = vpop.eup %11688  ;;  %v8645_v32 = vadd.f32 %v17377_v42, %v8643_v27  ;;  %v7402_v18 = vadd.f32 %v7401_v53, %v7400_v5  ;;  %10039 = vst [vmem:[%s18432_s4 + $0xe8] sm:$0xff] %v9839_v46   ;;  %11702 = vrcp.f32 %v5246_v11  ;;  %v7405_v0 = vsel %vm7297_vm7, %v7223_v12, 0.0  ;;  %v19594_v27 = vld [vmem:[#allocation79_spill] sm:$0xff]  ;;  %v19598_v46 = vld [vmem:[#allocation128_spill] sm:$0xff] }
 0x459   :  { %v17491_v34 = vpop.eup %11690  ;;  %v7225_v58 = vmul.f32 %v19592_v61, %v7097_v24  ;;  %v7099_v57 = vadd.f32 %v6902_v48, %v19593_v15  ;;  %11704 = vpow2.f32 %v5067_v4  ;;  %v7407_v42 = vsel %vm7297_vm7, %v7224_v7, 0.0  ;;  %v17499_v41 = vpop.xlane.xlu0 %4685  ;;  %v19596_v5 = vld [vmem:[#allocation115_spill] sm:$0xff]  ;;  %v19600_v15 = vld [vmem:[#allocation120_spill] sm:$0xff] }
 0x45a   :  { %v11693_v62 = vpop.eup %11692  ;;  %v7404_v14 = vadd.f32 %v7403_v26, %v7402_v18  ;;  %v7226_v53 = vmul.f32 %v19594_v27, %v7098_v38  ;;  %11706 = vlog2.f32 %v5246_v11  ;;  %5317 = vadd.xlane.f32.xlu0 %v17491_v34  ;;  %19595 = vst [vmem:[#allocation29_spill] sm:$0xff] %v17499_v41  ;;  %v7100_v17 = vadd.f32 %v6904_v40, %v19596_v5  ;;  %v19599_v18 = vld [vmem:[#allocation83_spill] sm:$0xff] }
 0x45b   :  { %v11695_v10 = vpop.eup %11694  ;;  %v6906_v12 = vmul.f32 0.6931472, %v11693_v62  ;;  %11708 = vrcp.f32 %v5248_v23  ;;  %v4839_v24 = vsub.f32 %v16617_v63, %v17499_v41  ;;  %v5565_v7 = vmul.f32 %v11689_v30, %v19597_v36  ;;  %v17512_v27 = vpop.xlane.xlu1 %4687  ;;  %v19612_v41 = vld [vmem:[#allocation119_spill] sm:$0xff] }
 0x45c   :  { %v17504_v4 = vpop.eup %11696  ;;  %v7406_v48 = vadd.f32 %v7405_v0, %v7404_v14  ;;  %v5566_v38 = vmul.f32 %v11695_v10, %v19598_v46  ;;  %11710 = vlog2.f32 %v5248_v23  ;;  %v7409_v26 = vsel %vm7297_vm7, %v7225_v58, 0.0  ;;  %19601 = vst [vmem:[#allocation93_spill] sm:$0xff] %v17512_v27  ;;  %v12117_v23 = vld [vmem:[%s18428_s3 + $0x2e0] sm:$0xff] }
 0x45d   :  { %v11699_v11 = vpop.eup %11698  ;;  %v7227_v61 = vmul.f32 %v19599_v18, %v7099_v57  ;;  %v7101_v40 = vadd.f32 %v6906_v12, %v19600_v15  ;;  %v5069_v62 = vmul.f32 1.442695, %v4839_v24  ;;  %5319 = vadd.xlane.f32.xlu1 %v17504_v4  ;;  %v4840_v30 = vsub.f32 %v16632_v52, %v17512_v27  ;;  %v5250_v14 = vpop.xlane.xlu0 %5249  ;;  %v19602_v57 = vld [vmem:[#allocation68_spill] sm:$0xff]  ;;  %v19604_v46 = vld [vmem:[#allocation174_spill] sm:$0xff]  ;;  %v19611_v27 = vld [vmem:[#allocation135_spill] sm:$0xff] }
 0x45e   :  { %v7408_v63 = vadd.f32 %v7407_v42, %v7406_v48  ;;  %v9844_v5 = vpack.c.bf16 %v5566_v38, %v5565_v7  ;;  %v6908_v0 = vmul.f32 0.6931472, %v11699_v11  ;;  %vm6493_vm9 = vcmp.gt.s32.totalorder %v12117_v23, 0  ;;  %v19603_v42 = vld [vmem:[#allocation39_spill] sm:$0xff] }
 0x45f   :  { %v7411_v58 = vsel %vm7297_vm7, %v7226_v53, 0.0  ;;  %v7228_v10 = vmul.f32 %v19602_v57, %v7100_v17  ;;  %11712 = vpow2.f32 %v5069_v62  ;;  %v5071_v48 = vmul.f32 1.442695, %v4840_v30  ;;  %v5252_v53 = vpop.xlane.xlu1 %5251  ;;  %v19607_v62 = vld [vmem:[#allocation58_spill] sm:$0xff] }
 0x460   :  { %v7410_v12 = vadd.f32 %v7409_v26, %v7408_v63  ;;  %10040 = vst [vmem:[%s18432_s4 + $0xf0] sm:$0xff] %v9844_v5   ;;  %v7102_v24 = vadd.f32 %v6908_v0, %v19603_v42  ;;  %11714 = vrcp.f32 %v5250_v14  ;;  %v8647_v36 = vadd.f32 %v8646_v6, %v8645_v32  ;;  %v12118_v0 = vld [vmem:[%s18428_s3 + $0x2e8] sm:$0xff] }
 0x461   :  { %v17525_v52 = vpop.eup %11700  ;;  %v7413_v7 = vsel %vm7297_vm7, %v7227_v61, 0.0  ;;  %v7229_v38 = vmul.f32 %v19604_v46, %v7101_v40  ;;  %11716 = vlog2.f32 %v5250_v14  ;;  %v8648_v11 = vsel %vm7297_vm7, %v17415_v16, 0.0  ;;  %v17536_v15 = vpop.xlane.xlu0 %4689  ;;  %v19606_v61 = vld [vmem:[#allocation72_spill] sm:$0xff]  ;;  %v19609_v46 = vld [vmem:[#allocation54_spill] sm:$0xff] }
 0x462   :  { %v11703_v17 = vpop.eup %11702  ;;  %v17533_v26 = vsel %vm6493_vm9, 1.0, %v19491_v44  ;;  %v7412_v18 = vadd.f32 %v7411_v58, %v7410_v12  ;;  %11718 = vpow2.f32 %v5071_v48  ;;  %5321 = vadd.xlane.f32.xlu0 %v17525_v52  ;;  %19605 = vst [vmem:[#allocation8_spill] sm:$0xff] %v17536_v15  ;;  %v7415_v32 = vsel %vm7297_vm7, %v7228_v10, 0.0 }
 0x463   :  { %v17538_v6 = vpop.eup %11704  ;;  %v7230_v40 = vmul.f32 %v19606_v61, %v7102_v24  ;;  %11720 = vrcp.f32 %v5252_v53  ;;  %v4841_v63 = vsub.f32 %v19607_v62, %v17536_v15  ;;  %vm6494_vm10 = vcmp.gt.s32.totalorder %v12118_v0, 0  ;;  %v17551_v42 = vpop.xlane.xlu1 %4691  ;;  %v19610_v62 = vld [vmem:[#allocation130_spill] sm:$0xff] }
 0x464   :  { %v11707_v5 = vpop.eup %11706  ;;  %v8650_v30 = vsel %vm7297_vm7, %v17533_v26, 0.0  ;;  %v7414_v14 = vadd.f32 %v7413_v7, %v7412_v18  ;;  %11722 = vlog2.f32 %v5252_v53  ;;  %5323 = vadd.xlane.f32.xlu1 %v17538_v6  ;;  %v8649_v58 = vadd.f32 %v8648_v11, %v8647_v36  ;;  %19608 = vst [vmem:[#allocation196_spill] sm:$0xff] %v17551_v42 }
 0x465   :  { %v11709_v23 = vpop.eup %11708  ;;  %v7417_v57 = vsel %vm7297_vm7, %v7229_v38, 0.0  ;;  %v6910_v10 = vmul.f32 0.6931472, %v11707_v5  ;;  %v5073_v12 = vmul.f32 1.442695, %v4841_v63  ;;  %v5567_v61 = vmul.f32 %v11703_v17, %v19609_v46  ;;  %v5254_v53 = vpop.xlane.xlu0 %5253 }
 0x466   :  { %v11711_v24 = vpop.eup %11710  ;;  %v7416_v48 = vadd.f32 %v7415_v32, %v7414_v14  ;;  %v5568_v15 = vmul.f32 %v11709_v23, %v19610_v62  ;;  %v4842_v7 = vsub.f32 %v19611_v27, %v17551_v42  ;;  %v7419_v18 = vsel %vm7297_vm7, %v7230_v40, 0.0  ;;  %v19613_v32 = vld [vmem:[#allocation178_spill] sm:$0xff]  ;;  %v19614_v14 = vld [vmem:[#allocation165_spill] sm:$0xff] }
 0x467   :  { %v7103_v36 = vadd.f32 %v6910_v10, %v19612_v41  ;;  %v6912_v11 = vmul.f32 0.6931472, %v11711_v24  ;;  %11724 = vpow2.f32 %v5073_v12  ;;  %v5256_v46 = vpop.xlane.xlu1 %5255  ;;  %v17565_v40 = vsel %vm6494_vm10, 1.0, %v19491_v44  ;;  %v12119_v41 = vld [vmem:[%s18428_s3 + $0x2f0] sm:$0xff]  ;;  %v19616_v24 = vld [vmem:[#allocation181_spill] sm:$0xff] }
 0x468   :  { %v7418_v38 = vadd.f32 %v7417_v57, %v7416_v48  ;;  %v9849_v63 = vpack.c.bf16 %v5568_v15, %v5567_v61  ;;  %v5075_v5 = vmul.f32 1.442695, %v4842_v7  ;;  %11726 = vrcp.f32 %v5254_v53 }
 0x469   :  { %v17559_v59 = vpop.eup %11712  ;;  %v7231_v17 = vmul.f32 %v19613_v32, %v7103_v36  ;;  %v7104_v23 = vadd.f32 %v6912_v11, %v19614_v14  ;;  %11728 = vlog2.f32 %v5254_v53  ;;  %vm6495_vm11 = vcmp.gt.s32.totalorder %v12119_v41, 0  ;;  %v17574_v57 = vpop.xlane.xlu0 %4693  ;;  %v19617_v11 = vld [vmem:[#allocation45_spill] sm:$0xff]  ;;  %v19620_v14 = vld [vmem:[#allocation131_spill] sm:$0xff] }
 0x46a   :  { %v11715_v27 = vpop.eup %11714  ;;  %v7420_v15 = vadd.f32 %v7419_v18, %v7418_v38  ;;  %10041 = vst [vmem:[%s18432_s4 + $0xf8] sm:$0xff] %v9849_v63   ;;  %11730 = vpow2.f32 %v5075_v5  ;;  %5325 = vadd.xlane.f32.xlu0 %v17559_v59  ;;  %19615 = vst [vmem:[#allocation91_spill] sm:$0xff] %v17574_v57  ;;  %v8651_v12 = vadd.f32 %v8650_v30, %v8649_v58  ;;  %v8652_v36 = vsel %vm7297_vm7, %v17565_v40, 0.0  ;;  %v12120_v30 = vld [vmem:[%s18428_s3 + $0x2f8] sm:$0xff] }
 0x46b   :  { %v11717_v10 = vpop.eup %11716  ;;  %v7421_v0 = vsel %vm7297_vm7, %v7231_v17, 0.0  ;;  %v7232_v48 = vmul.f32 %v19616_v24, %v7104_v23  ;;  %11732 = vrcp.f32 %v5256_v46  ;;  %v4843_v53 = vsub.f32 %v16705_v39, %v17574_v57  ;;  %v17590_v63 = vpop.xlane.xlu1 %4695  ;;  %v19619_v39 = vld [vmem:[#allocation42_spill] sm:$0xff] }
 0x46c   :  { %v17578_v61 = vpop.eup %11718  ;;  %v7422_v62 = vadd.f32 %v7421_v0, %v7420_v15  ;;  %v6914_v7 = vmul.f32 0.6931472, %v11717_v10  ;;  %11734 = vlog2.f32 %v5256_v46  ;;  %vm6496_vm12 = vcmp.gt.s32.totalorder %v12120_v30, 0  ;;  %19618 = vst [vmem:[#allocation26_spill] sm:$0xff] %v17590_v63  ;;  %v12122_v30 = vld [vmem:[%s18428_s3 + $0x300] sm:$0xff] }
 0x46d   :  { %v11721_v18 = vpop.eup %11720  ;;  %v7423_v58 = vsel %vm7297_vm7, %v7232_v48, 0.0  ;;  %v5569_v38 = vmul.f32 %v11715_v27, %v19617_v11  ;;  %5327 = vadd.xlane.f32.xlu1 %v17578_v61  ;;  %v5077_v46 = vmul.f32 1.442695, %v4843_v53  ;;  %v5258_v15 = vpop.xlane.xlu0 %5257  ;;  %v17596_v10 = vsel %vm6495_vm11, 1.0, %v19491_v44  ;;  %v19621_v48 = vld [vmem:[#allocation184_spill] sm:$0xff]  ;;  %v19622_v53 = vld [vmem:[#allocation122_spill] sm:$0xff] }
 0x46e   :  { %v11723_v5 = vpop.eup %11722  ;;  %v7424_v32 = vadd.f32 %v7423_v58, %v7422_v62  ;;  %v7105_v17 = vadd.f32 %v6914_v7, %v19619_v39  ;;  %v5570_v23 = vmul.f32 %v11721_v18, %v19620_v14  ;;  %v4844_v27 = vsub.f32 %v16727_v8, %v17590_v63 }
 0x46f   :  { %v6916_v0 = vmul.f32 0.6931472, %v11723_v5  ;;  %11736 = vrcp.f32 %v5258_v15  ;;  %v8653_v24 = vadd.f32 %v8652_v36, %v8651_v12  ;;  %v8654_v7 = vsel %vm7297_vm7, %v17596_v10, 0.0  ;;  %v5260_v58 = vpop.xlane.xlu1 %5259  ;;  %v12121_v12 = vld [vmem:[%s18428_s3 + $0x308] sm:$0xff] }
 0x470   :  { %v7233_v11 = vmul.f32 %v19621_v48, %v7105_v17  ;;  %v9854_v57 = vpack.c.bf16 %v5570_v23, %v5569_v38  ;;  %11738 = vpow2.f32 %v5077_v46  ;;  %v5079_v41 = vmul.f32 1.442695, %v4844_v27  ;;  %v19623_v17 = vld [vmem:[#allocation185_spill] sm:$0xff] }
 0x471   :  { %v17601_v62 = vpop.eup %11724  ;;  %v7106_v18 = vadd.f32 %v6916_v0, %v19622_v53  ;;  %11740 = vlog2.f32 %v5258_v15  ;;  %v17608_v8 = vsel %vm6496_vm12, 1.0, %v19491_v44  ;;  %vm6498_vm13 = vcmp.gt.s32.totalorder %v12121_v12, 0  ;;  %v17622_v23 = vpop.xlane.xlu0 %4697 }
 0x472   :  { %v11727_v5 = vpop.eup %11726  ;;  %v7425_v36 = vsel %vm7297_vm7, %v7233_v11, 0.0  ;;  %10042 = vst [vmem:[%s18432_s4 + $0x100] sm:$0xff] %v9854_v57   ;;  %11742 = vrcp.f32 %v5260_v58  ;;  %5329 = vadd.xlane.f32.xlu0 %v17601_v62  ;;  %vm6497_vm14 = vcmp.gt.s32.totalorder %v12122_v30, 0  ;;  %19624 = vst [vmem:[#allocation84_spill] sm:$0xff] %v17622_v23  ;;  %v8655_v15 = vadd.f32 %v8654_v7, %v8653_v24  ;;  %v19627_v24 = vld [vmem:[#allocation127_spill] sm:$0xff] }
 0x473   :  { %v11729_v38 = vpop.eup %11728  ;;  %v7426_v39 = vadd.f32 %v7425_v36, %v7424_v32  ;;  %v7234_v14 = vmul.f32 %v19623_v17, %v7106_v18  ;;  %11744 = vpow2.f32 %v5079_v41  ;;  %v4845_v57 = vsub.f32 %v16755_v19, %v17622_v23  ;;  %v19625_v32 = vld [vmem:[#allocation169_spill] sm:$0xff]  ;;  %v17633_v18 = vpop.xlane.xlu1 %4699 }
 0x474   :  { %v17624_v46 = vpop.eup %11730  ;;  %v6918_v0 = vmul.f32 0.6931472, %v11729_v38  ;;  %11746 = vlog2.f32 %v5260_v58  ;;  %v8656_v48 = vsel %vm7297_vm7, %v17608_v8, 0.0  ;;  %v5571_v53 = vmul.f32 %v11727_v5, %v19625_v32  ;;  %19626 = vst [vmem:[#allocation15_spill] sm:$0xff] %v17633_v18 }
 0x475   :  { %v11733_v27 = vpop.eup %11732  ;;  %v7427_v11 = vsel %vm7297_vm7, %v7234_v14, 0.0  ;;  %5331 = vadd.xlane.f32.xlu1 %v17624_v46  ;;  %v5081_v38 = vmul.f32 1.442695, %v4845_v57  ;;  %v17639_v19 = vsel %vm6498_vm13, 1.0, %v19491_v44  ;;  %v17643_v17 = vsel %vm6497_vm14, 1.0, %v19491_v44  ;;  %v5262_v32 = vpop.xlane.xlu0 %5261  ;;  %v19629_v57 = vld [vmem:[#allocation62_spill] sm:$0xff] }
 0x476   :  { %v11735_v41 = vpop.eup %11734  ;;  %v7428_v36 = vadd.f32 %v7427_v11, %v7426_v39  ;;  %v7107_v7 = vadd.f32 %v6918_v0, %v19627_v24  ;;  %v5572_v58 = vmul.f32 %v11733_v27, %v16693_v51  ;;  %v4846_v14 = vsub.f32 %v16771_v45, %v17633_v18  ;;  %v19628_v39 = vld [vmem:[#allocation188_spill] sm:$0xff] }
 0x477   :  { %v6920_v5 = vmul.f32 0.6931472, %v11735_v41  ;;  %v8657_v23 = vadd.f32 %v8656_v48, %v8655_v15  ;;  %11748 = vpow2.f32 %v5081_v38  ;;  %v8658_v12 = vsel %vm7297_vm7, %v17643_v17, 0.0  ;;  %v5264_v30 = vpop.xlane.xlu1 %5263 }
 0x478   :  { %v7235_v11 = vmul.f32 %v19628_v39, %v7107_v7  ;;  %v9859_v0 = vpack.c.bf16 %v5572_v58, %v5571_v53  ;;  %v5083_v24 = vmul.f32 1.442695, %v4846_v14  ;;  %11750 = vrcp.f32 %v5262_v32  ;;  %v12123_v53 = vld [vmem:[%s18428_s3 + $0x310] sm:$0xff]  ;;  %v19630_v7 = vld [vmem:[#allocation189_spill] sm:$0xff] }
 0x479   :  { %v11737_v51 = vpop.eup %11736  ;;  %v7108_v27 = vadd.f32 %v6920_v5, %v19629_v57  ;;  %v8660_v45 = vsel %vm7297_vm7, %v17639_v19, 0.0  ;;  %11752 = vlog2.f32 %v5262_v32  ;;  %vm6499_vm15 = vcmp.gt.s32.totalorder %v12123_v53, 0  ;;  %v17664_v38 = vpop.xlane.xlu0 %4701 }
 0x47a   :  { %v17651_v63 = vpop.eup %11738  ;;  %v7429_v15 = vsel %vm7297_vm7, %v7235_v11, 0.0  ;;  %10043 = vst [vmem:[%s18432_s4 + $0x108] sm:$0xff] %v9859_v0   ;;  %11754 = vpow2.f32 %v5083_v24  ;;  %19631 = vst [vmem:[#allocation32_spill] sm:$0xff] %v17664_v38  ;;  %v8659_v14 = vadd.f32 %v8658_v12, %v8657_v23  ;;  %v4847_v32 = vsub.f32 %v16803_v28, %v17664_v38  ;;  %v12124_v28 = vld [vmem:[%s18428_s3 + $0x318] sm:$0xff] }
 0x47b   :  { %v11741_v48 = vpop.eup %11740  ;;  %v7430_v41 = vadd.f32 %v7429_v15, %v7428_v36  ;;  %v7236_v58 = vmul.f32 %v19630_v7, %v7108_v27  ;;  %5333 = vadd.xlane.f32.xlu0 %v17651_v63  ;;  %11756 = vrcp.f32 %v5264_v30  ;;  %v5573_v36 = vmul.f32 %v11737_v51, %v16714_v29  ;;  %v19632_v15 = vld [vmem:[#allocation126_spill] sm:$0xff]  ;;  %v17675_v23 = vpop.xlane.xlu1 %4703 }
 0x47c   :  { %v11743_v5 = vpop.eup %11742  ;;  %v6922_v39 = vmul.f32 0.6931472, %v11741_v48  ;;  %11758 = vlog2.f32 %v5264_v30  ;;  %v5085_v18 = vmul.f32 1.442695, %v4847_v32  ;;  %19633 = vst [vmem:[#allocation28_spill] sm:$0xff] %v17675_v23  ;;  %vm6500_vm1 = vcmp.gt.s32.totalorder %v12124_v28, 0 }
 0x47d   :  { %v17668_v11 = vpop.eup %11744  ;;  %v7431_v0 = vsel %vm7297_vm7, %v7236_v58, 0.0  ;;  %v5574_v57 = vmul.f32 %v11743_v5, %v16721_v1  ;;  %v4848_v29 = vsub.f32 %v16829_v33, %v17675_v23  ;;  %v5266_v1 = vpop.xlane.xlu0 %5265  ;;  %v17684_v51 = vsel %vm6499_vm15, 1.0, %v19491_v44 }
 0x47e   :  { %v11747_v27 = vpop.eup %11746  ;;  %v7432_v24 = vadd.f32 %v7431_v0, %v7430_v41  ;;  %v7109_v7 = vadd.f32 %v6922_v39, %v19632_v15  ;;  %5335 = vadd.xlane.f32.xlu1 %v17668_v11  ;;  %v8661_v30 = vadd.f32 %v8660_v45, %v8659_v14  ;;  %v19634_v41 = vld [vmem:[#allocation192_spill] sm:$0xff]  ;;  %11760 = vpow2.f32 %v5085_v18 }
 0x47f   :  { %v9864_v12 = vpack.c.bf16 %v5574_v57, %v5573_v36  ;;  %v6924_v48 = vmul.f32 0.6931472, %v11747_v27  ;;  %v8662_v5 = vsel %vm7297_vm7, %v17684_v51, 0.0  ;;  %v19635_v39 = vld [vmem:[#allocation132_spill] sm:$0xff]  ;;  %v5087_v0 = vmul.f32 1.442695, %v4848_v29  ;;  %v5268_v45 = vpop.xlane.xlu1 %5267 }
 0x480   :  { %v7237_v58 = vmul.f32 %v19634_v41, %v7109_v7  ;;  %11762 = vrcp.f32 %v5266_v1  ;;  %v17698_v18 = vsel %vm6500_vm1, 1.0, %v19491_v44  ;;  %v19637_v57 = vld [vmem:[#allocation193_spill] sm:$0xff] }
 0x481   :  { %10044 = vst [vmem:[%s18432_s4 + $0x110] sm:$0xff] %v9864_v12   ;;  %v7110_v32 = vadd.f32 %v6924_v48, %v19635_v39  ;;  %v17693_v33 = vpop.eup %11748  ;;  %11764 = vlog2.f32 %v5266_v1  ;;  %19636 = vst [vmem:[#allocation16_spill] sm:$0xff] %v17698_v18  ;;  %v17702_v15 = vpop.xlane.xlu0 %4705  ;;  %v8664_v12 = vsel %vm7297_vm7, %v17698_v18, 0.0  ;;  %v8663_v48 = vadd.f32 %v8662_v5, %v8661_v30  ;;  %v12126_v30 = vld [vmem:[%s18428_s3 + $0x328] sm:$0xff] }
 0x482   :  { %v7433_v53 = vsel %vm7297_vm7, %v7237_v58, 0.0  ;;  %v11751_v14 = vpop.eup %11750  ;;  %11766 = vpow2.f32 %v5087_v0  ;;  %5337 = vadd.xlane.f32.xlu0 %v17693_v33  ;;  %19638 = vst [vmem:[#allocation202_spill] sm:$0xff] %v17702_v15  ;;  %v4849_v29 = vsub.f32 %v16854_v37, %v17702_v15  ;;  %vm6502_vm3 = vcmp.gt.s32.totalorder %v12126_v30, 0 }
 0x483   :  { %v7434_v36 = vadd.f32 %v7433_v53, %v7432_v24  ;;  %v7238_v27 = vmul.f32 %v19637_v57, %v7110_v32  ;;  %v11753_v7 = vpop.eup %11752  ;;  %11768 = vrcp.f32 %v5268_v45  ;;  %v12125_v24 = vld [vmem:[%s18428_s3 + $0x320] sm:$0xff]  ;;  %v17718_v37 = vpop.xlane.xlu1 %4707  ;;  %v5575_v0 = vmul.f32 %v11751_v14, %v16759_v20 }
 0x484   :  { %v17708_v28 = vpop.eup %11754  ;;  %vm6501_vm2 = vcmp.gt.s32.totalorder %v12125_v24, 0  ;;  %v6926_v41 = vmul.f32 0.6931472, %v11753_v7  ;;  %11770 = vlog2.f32 %v5268_v45  ;;  %v5089_v39 = vmul.f32 1.442695, %v4849_v29  ;;  %19639 = vst [vmem:[#allocation98_spill] sm:$0xff] %v17718_v37 }
 0x485   :  { %v7435_v1 = vsel %vm7297_vm7, %v7238_v27, 0.0  ;;  %v11757_v58 = vpop.eup %11756  ;;  %5339 = vadd.xlane.f32.xlu1 %v17708_v28  ;;  %v19640_v53 = vld [vmem:[#allocation66_spill] sm:$0xff]  ;;  %v19641_v27 = vld [vmem:[#allocation175_spill] sm:$0xff]  ;;  %v4850_v45 = vsub.f32 %v16867_v54, %v17718_v37  ;;  %v5270_v15 = vpop.xlane.xlu0 %5269  ;;  %v17727_v23 = vsel %vm6501_vm2, 1.0, %v19491_v44 }
 0x486   :  { %v7436_v5 = vadd.f32 %v7435_v1, %v7434_v36  ;;  %v11759_v32 = vpop.eup %11758  ;;  %v7111_v57 = vadd.f32 %v6926_v41, %v19640_v53  ;;  %v5576_v7 = vmul.f32 %v11757_v58, %v19641_v27  ;;  %19642 = vst [vmem:[#allocation197_spill] sm:$0xff] %v17727_v23  ;;  %v8665_v36 = vadd.f32 %v8664_v12, %v8663_v48  ;;  %v19643_v1 = vld [vmem:[#allocation86_spill] sm:$0xff]  ;;  %v19645_v41 = vld [vmem:[#allocation49_spill] sm:$0xff] }
 0x487   :  { %v6928_v29 = vmul.f32 0.6931472, %v11759_v32  ;;  %11772 = vpow2.f32 %v5089_v39  ;;  %v5091_v18 = vmul.f32 1.442695, %v4850_v45  ;;  %v8666_v14 = vsel %vm7297_vm7, %v17727_v23, 0.0  ;;  %v5272_v58 = vpop.xlane.xlu1 %5271 }
 0x488   :  { %v7239_v38 = vmul.f32 %v19643_v1, %v7111_v57  ;;  %v9869_v42 = vpack.c.bf16 %v5576_v7, %v5575_v0  ;;  %11774 = vrcp.f32 %v5270_v15  ;;  %v17730_v20 = vpop.eup %11760  ;;  %v17737_v12 = vsel %vm6502_vm3, 1.0, %v19491_v44  ;;  %v19648_v0 = vld [vmem:[#allocation195_spill] sm:$0xff] }
 0x489   :  { %19644 = vst [vmem:[#allocation30_spill] sm:$0xff] %v17730_v20  ;;  %v7112_v54 = vadd.f32 %v6928_v29, %v19645_v41  ;;  %11776 = vlog2.f32 %v5270_v15  ;;  %19646 = vst [vmem:[#allocation87_spill] sm:$0xff] %v17737_v12  ;;  %5341 = vadd.xlane.f32.xlu0 %v17730_v20  ;;  %v17744_v39 = vpop.xlane.xlu0 %4709  ;;  %v12127_v15 = vld [vmem:[%s18428_s3 + $0x330] sm:$0xff]  ;;  %v8667_v57 = vadd.f32 %v8666_v14, %v8665_v36  ;;  %v8668_v45 = vsel %vm7297_vm7, %v17737_v12, 0.0  ;;  %v12128_v29 = vld [vmem:[%s18428_s3 + $0x338] sm:$0xff] }
 0x48a   :  { %v11763_v24 = vpop.eup %11762  ;;  %v7437_v48 = vsel %vm7297_vm7, %v7239_v38, 0.0  ;;  %10045 = vst [vmem:[%s18432_s4 + $0x118] sm:$0xff] %v9869_v42   ;;  %11778 = vpow2.f32 %v5091_v18  ;;  %19647 = vst [vmem:[#allocation20_spill] sm:$0xff] %v17744_v39  ;;  %vm6503_vm0 = vcmp.gt.s32.totalorder %v12127_v15, 0  ;;  %v19650_v42 = vld [vmem:[#allocation133_spill] sm:$0xff]  ;;  %vm6504_vm4 = vcmp.gt.s32.totalorder %v12128_v29, 0 }
 0x48b   :  { %v11765_v32 = vpop.eup %11764  ;;  %v7438_v30 = vadd.f32 %v7437_v48, %v7436_v5  ;;  %v7240_v53 = vmul.f32 %v19648_v0, %v7112_v54  ;;  %11780 = vrcp.f32 %v5272_v58  ;;  %v4851_v18 = vsub.f32 %v19650_v42, %v17744_v39  ;;  %v19651_v1 = vld [vmem:[#allocation71_spill] sm:$0xff]  ;;  %v17762_v36 = vpop.xlane.xlu1 %4711  ;;  %v19662_v29 = vld [vmem:[#allocation198_spill] sm:$0xff] }
 0x48c   :  { %v17750_v38 = vpop.eup %11766  ;;  %v6930_v27 = vmul.f32 0.6931472, %v11765_v32  ;;  %11782 = vlog2.f32 %v5272_v58  ;;  %v5577_v41 = vmul.f32 %v11763_v24, %v19651_v1  ;;  %19652 = vst [vmem:[#allocation99_spill] sm:$0xff] %v17762_v36  ;;  %v19653_v58 = vld [vmem:[#allocation172_spill] sm:$0xff]  ;;  %v19654_v32 = vld [vmem:[#allocation139_spill] sm:$0xff]  ;;  %v17768_v37 = vsel %vm6503_vm0, 1.0, %v19491_v44 }
 0x48d   :  { %19649 = vst [vmem:[#allocation25_spill] sm:$0xff] %v17750_v38  ;;  %v11769_v7 = vpop.eup %11768  ;;  %v7439_v5 = vsel %vm7297_vm7, %v7240_v53, 0.0  ;;  %5343 = vadd.xlane.f32.xlu1 %v17750_v38  ;;  %v5093_v42 = vmul.f32 1.442695, %v4851_v18  ;;  %v5274_v39 = vpop.xlane.xlu0 %5273  ;;  %19655 = vst [vmem:[#allocation200_spill] sm:$0xff] %v17768_v37  ;;  %v19656_v53 = vld [vmem:[#allocation76_spill] sm:$0xff]  ;;  %v8669_v1 = vadd.f32 %v8668_v45, %v8667_v57 }
 0x48e   :  { %v11771_v14 = vpop.eup %11770  ;;  %v7440_v54 = vadd.f32 %v7439_v5, %v7438_v30  ;;  %v7113_v48 = vadd.f32 %v6930_v27, %v19653_v58  ;;  %v5578_v0 = vmul.f32 %v11769_v7, %v19654_v32  ;;  %v4852_v24 = vsub.f32 %v19656_v53, %v17762_v36  ;;  %v19657_v38 = vld [vmem:[#allocation89_spill] sm:$0xff] }
 0x48f   :  { %v6932_v20 = vmul.f32 0.6931472, %v11771_v14  ;;  %11784 = vrcp.f32 %v5274_v39  ;;  %v8670_v27 = vsel %vm7297_vm7, %v17768_v37, 0.0  ;;  %v19659_v18 = vld [vmem:[#allocation129_spill] sm:$0xff]  ;;  %v5276_v5 = vpop.xlane.xlu1 %5275  ;;  %v17780_v58 = vsel %vm6504_vm4, 1.0, %v19491_v44 }
 0x490   :  { %v7241_v12 = vmul.f32 %v19657_v38, %v7113_v48  ;;  %v9874_v23 = vpack.c.bf16 %v5578_v0, %v5577_v41  ;;  %11786 = vpow2.f32 %v5093_v42  ;;  %v5095_v15 = vmul.f32 1.442695, %v4852_v24  ;;  %19660 = vst [vmem:[#allocation207_spill] sm:$0xff] %v17780_v58  ;;  %v12130_v24 = vld [vmem:[%s18428_s3 + $0x348] sm:$0xff] }
 0x491   :  { %v17773_v30 = vpop.eup %11772  ;;  %v7114_v7 = vadd.f32 %v6932_v20, %v19659_v18  ;;  %11788 = vlog2.f32 %v5274_v39  ;;  %v17787_v38 = vpop.xlane.xlu0 %4713  ;;  %v12129_v39 = vld [vmem:[%s18428_s3 + $0x340] sm:$0xff]  ;;  %v8671_v48 = vadd.f32 %v8670_v27, %v8669_v1  ;;  %v8672_v53 = vsel %vm7297_vm7, %v17780_v58, 0.0  ;;  %v19665_v18 = vld [vmem:[#allocation176_spill] sm:$0xff] }
 0x492   :  { %19658 = vst [vmem:[#allocation103_spill] sm:$0xff] %v17773_v30  ;;  %v11775_v14 = vpop.eup %11774  ;;  %v7441_v57 = vsel %vm7297_vm7, %v7241_v12, 0.0  ;;  %10046 = vst [vmem:[%s18432_s4 + $0x120] sm:$0xff] %v9874_v23   ;;  %11790 = vrcp.f32 %v5276_v5  ;;  %5345 = vadd.xlane.f32.xlu0 %v17773_v30  ;;  %vm6505_vm5 = vcmp.gt.s32.totalorder %v12129_v39, 0  ;;  %v19664_v23 = vld [vmem:[#allocation56_spill] sm:$0xff]  ;;  %vm6506_vm6 = vcmp.gt.s32.totalorder %v12130_v24, 0 }
 0x493   :  { %19661 = vst [vmem:[#allocation206_spill] sm:$0xff] %v17787_v38  ;;  %v11777_v20 = vpop.eup %11776  ;;  %v7442_v45 = vadd.f32 %v7441_v57, %v7440_v54  ;;  %v7242_v41 = vmul.f32 %v19662_v29, %v7114_v7  ;;  %11792 = vpow2.f32 %v5095_v15  ;;  %v4853_v0 = vsub.f32 %v19664_v23, %v17787_v38  ;;  %v17805_v1 = vpop.xlane.xlu1 %4715 }
 0x494   :  { %v17793_v12 = vpop.eup %11778  ;;  %v6934_v32 = vmul.f32 0.6931472, %v11777_v20  ;;  %11794 = vlog2.f32 %v5276_v5  ;;  %v5579_v7 = vmul.f32 %v11775_v14, %v19665_v18  ;;  %19666 = vst [vmem:[#allocation106_spill] sm:$0xff] %v17805_v1  ;;  %v19667_v5 = vld [vmem:[#allocation137_spill] sm:$0xff]  ;;  %v19668_v20 = vld [vmem:[#allocation64_spill] sm:$0xff]  ;;  %v17811_v36 = vsel %vm6505_vm5, 1.0, %v19491_v44 }
 0x495   :  { %19663 = vst [vmem:[#allocation41_spill] sm:$0xff] %v17793_v12  ;;  %v11781_v42 = vpop.eup %11780  ;;  %v7443_v54 = vsel %vm7297_vm7, %v7242_v41, 0.0  ;;  %5347 = vadd.xlane.f32.xlu1 %v17793_v12  ;;  %v5097_v23 = vmul.f32 1.442695, %v4853_v0  ;;  %v5278_v38 = vpop.xlane.xlu0 %5277  ;;  %v19669_v41 = vld [vmem:[#allocation136_spill] sm:$0xff]  ;;  %v8673_v18 = vadd.f32 %v8672_v53, %v8671_v48  ;;  %v19670_v12 = vld [vmem:[#allocation199_spill] sm:$0xff] }
 0x496   :  { %v11783_v27 = vpop.eup %11782  ;;  %v7444_v15 = vadd.f32 %v7443_v54, %v7442_v45  ;;  %v7115_v57 = vadd.f32 %v6934_v32, %v19667_v5  ;;  %v5580_v29 = vmul.f32 %v11781_v42, %v19668_v20  ;;  %v4854_v14 = vsub.f32 %v19669_v41, %v17805_v1  ;;  %v19671_v0 = vld [vmem:[#allocation61_spill] sm:$0xff]  ;;  %v19677_v41 = vld [vmem:[#allocation180_spill] sm:$0xff] }
 0x497   :  { %v6936_v30 = vmul.f32 0.6931472, %v11783_v27  ;;  %11796 = vrcp.f32 %v5278_v38  ;;  %v8674_v32 = vsel %vm7297_vm7, %v17811_v36, 0.0  ;;  %v12131_v27 = vld [vmem:[%s18428_s3 + $0x350] sm:$0xff] }
 0x498   :  { %v7243_v58 = vmul.f32 %v19670_v12, %v7115_v57  ;;  %v9879_v37 = vpack.c.bf16 %v5580_v29, %v5579_v7  ;;  %11798 = vpow2.f32 %v5097_v23  ;;  %v5099_v54 = vmul.f32 1.442695, %v4854_v14  ;;  %v5280_v39 = vpop.xlane.xlu1 %5279 }
 0x499   :  { %v11785_v45 = vpop.eup %11784  ;;  %v7116_v42 = vadd.f32 %v6936_v30, %v19671_v0  ;;  %11800 = vlog2.f32 %v5278_v38  ;;  %vm6507_vm8 = vcmp.gt.s32.totalorder %v12131_v27, 0  ;;  %v19673_v30 = vld [vmem:[#allocation95_spill] sm:$0xff]  ;;  %v17832_v38 = vsel %vm6506_vm6, 1.0, %v19491_v44  ;;  %v19678_v0 = vld [vmem:[#allocation144_spill] sm:$0xff] }
 0x49a   :  { %v17819_v5 = vpop.eup %11786  ;;  %v7445_v12 = vsel %vm7297_vm7, %v7243_v58, 0.0  ;;  %10047 = vst [vmem:[%s18432_s4 + $0x128] sm:$0xff] %v9879_v37   ;;  %11802 = vrcp.f32 %v5280_v39  ;;  %19674 = vst [vmem:[#allocation153_spill] sm:$0xff] %v17832_v38  ;;  %v8675_v20 = vadd.f32 %v8674_v32, %v8673_v18  ;;  %v8676_v37 = vsel %vm7297_vm7, %v17832_v38, 0.0  ;;  %v19679_v32 = vld [vmem:[#allocation171_spill] sm:$0xff] }
 0x49b   :  { %19672 = vst [vmem:[#allocation201_spill] sm:$0xff] %v17819_v5  ;;  %v11789_v48 = vpop.eup %11788  ;;  %v7446_v53 = vadd.f32 %v7445_v12, %v7444_v15  ;;  %v7244_v7 = vmul.f32 %v19673_v30, %v7116_v42  ;;  %11804 = vpow2.f32 %v5099_v54  ;;  %5349 = vadd.xlane.f32.xlu0 %v17819_v5  ;;  %v5581_v14 = vmul.f32 %v11785_v45, %v19677_v41  ;;  %v19681_v5 = vld [vmem:[#allocation204_spill] sm:$0xff]  ;;  %v19682_v45 = vld [vmem:[#allocation3_spill] sm:$0xff] }
 0x49c   :  { %v11791_v57 = vpop.eup %11790  ;;  %v6938_v29 = vmul.f32 0.6931472, %v11789_v48  ;;  %11806 = vlog2.f32 %v5280_v39  ;;  %v17834_v58 = vpop.xlane.xlu0 %4717 }
 0x49d   :  { %19675 = vst [vmem:[#allocation33_spill] sm:$0xff] %v17834_v58  ;;  %v17838_v23 = vpop.eup %11792  ;;  %v7447_v15 = vsel %vm7297_vm7, %v7244_v7, 0.0  ;;  %v5582_v42 = vmul.f32 %v11791_v57, %v19678_v0  ;;  %v4855_v24 = vsub.f32 %v17012_v13, %v17834_v58  ;;  %v8677_v0 = vadd.f32 %v8676_v37, %v8675_v20  ;;  %v12132_v37 = vld [vmem:[%s18428_s3 + $0x358] sm:$0xff] }
 0x49e   :  { %19676 = vst [vmem:[#allocation154_spill] sm:$0xff] %v17838_v23  ;;  %v11795_v54 = vpop.eup %11794  ;;  %v7448_v18 = vadd.f32 %v7447_v15, %v7446_v53  ;;  %v7117_v39 = vadd.f32 %v6938_v29, %v19679_v32  ;;  %5351 = vadd.xlane.f32.xlu1 %v17838_v23  ;;  %v17854_v13 = vsel %vm6507_vm8, 1.0, %v19491_v44  ;;  %v19684_v29 = vld [vmem:[#allocation134_spill] sm:$0xff]  ;;  %vm6508_vm9 = vcmp.gt.s32.totalorder %v12132_v37, 0  ;;  %v19690_v58 = vld [vmem:[#allocation177_spill] sm:$0xff] }
 0x49f   :  { %v9884_v12 = vpack.c.bf16 %v5582_v42, %v5581_v14  ;;  %v6940_v48 = vmul.f32 0.6931472, %v11795_v54  ;;  %v5101_v30 = vmul.f32 1.442695, %v4855_v24  ;;  %v17847_v1 = vpop.xlane.xlu1 %4719  ;;  %19683 = vst [vmem:[#allocation155_spill] sm:$0xff] %v17854_v13  ;;  %v19686_v54 = vld [vmem:[#allocation203_spill] sm:$0xff] }
 0x4a0   :  { %19680 = vst [vmem:[#allocation100_spill] sm:$0xff] %v17847_v1  ;;  %v7245_v7 = vmul.f32 %v19681_v5, %v7117_v39  ;;  %v4856_v41 = vsub.f32 %v19682_v45, %v17847_v1  ;;  %v5282_v57 = vpop.xlane.xlu0 %5281  ;;  %v8678_v5 = vsel %vm7297_vm7, %v17854_v13, 0.0 }
 0x4a1   :  { %v11797_v53 = vpop.eup %11796  ;;  %10048 = vst [vmem:[%s18432_s4 + $0x130] sm:$0xff] %v9884_v12   ;;  %v7118_v15 = vadd.f32 %v6940_v48, %v19684_v29  ;;  %11808 = vpow2.f32 %v5101_v30  ;;  %v19687_v48 = vld [vmem:[#allocation146_spill] sm:$0xff] }
 0x4a2   :  { %v17862_v14 = vpop.eup %11798  ;;  %v7449_v42 = vsel %vm7297_vm7, %v7245_v7, 0.0  ;;  %v5103_v20 = vmul.f32 1.442695, %v4856_v41  ;;  %11810 = vrcp.f32 %v5282_v57  ;;  %v5583_v30 = vmul.f32 %v11797_v53, %v19687_v48  ;;  %v19697_v48 = vld [vmem:[#allocation142_spill] sm:$0xff] }
 0x4a3   :  { %19685 = vst [vmem:[#allocation205_spill] sm:$0xff] %v17862_v14  ;;  %v11801_v27 = vpop.eup %11800  ;;  %v7450_v24 = vadd.f32 %v7449_v42, %v7448_v18  ;;  %v7246_v32 = vmul.f32 %v19686_v54, %v7118_v15  ;;  %11812 = vlog2.f32 %v5282_v57  ;;  %v5284_v39 = vpop.xlane.xlu1 %5283  ;;  %5353 = vadd.xlane.f32.xlu0 %v17862_v14  ;;  %v8679_v41 = vadd.f32 %v8678_v5, %v8677_v0  ;;  %v19691_v57 = vld [vmem:[#allocation85_spill] sm:$0xff] }
 0x4a4   :  { %v11803_v12 = vpop.eup %11802  ;;  %v6942_v45 = vmul.f32 0.6931472, %v11801_v27  ;;  %11814 = vpow2.f32 %v5103_v20  ;;  %v17871_v7 = vpop.xlane.xlu0 %4721  ;;  %v19692_v14 = vld [vmem:[#allocation53_spill] sm:$0xff]  ;;  %v17883_v0 = vsel %vm6508_vm9, 1.0, %v19491_v44 }
 0x4a5   :  { %19688 = vst [vmem:[#allocation19_spill] sm:$0xff] %v17871_v7  ;;  %v17873_v29 = vpop.eup %11804  ;;  %v7451_v1 = vsel %vm7297_vm7, %v7246_v32, 0.0  ;;  %v5584_v18 = vmul.f32 %v11803_v12, %v19690_v58  ;;  %11816 = vrcp.f32 %v5284_v39  ;;  %v4857_v15 = vsub.f32 %v19691_v57, %v17871_v7  ;;  %19693 = vst [vmem:[#allocation22_spill] sm:$0xff] %v17883_v0  ;;  %v19696_v32 = vld [vmem:[#allocation63_spill] sm:$0xff] }
 0x4a6   :  { %19689 = vst [vmem:[#allocation38_spill] sm:$0xff] %v17873_v29  ;;  %v11807_v42 = vpop.eup %11806  ;;  %v7452_v54 = vadd.f32 %v7451_v1, %v7450_v24  ;;  %v7119_v23 = vadd.f32 %v6942_v45, %v19692_v14  ;;  %11818 = vlog2.f32 %v5284_v39  ;;  %5355 = vadd.xlane.f32.xlu1 %v17873_v29  ;;  %v8680_v58 = vsel %vm7297_vm7, %v17883_v0, 0.0  ;;  %v12133_v1 = vld [vmem:[%s18428_s3 + $0x360] sm:$0xff]  ;;  %v19695_v14 = vld [vmem:[#allocation183_spill] sm:$0xff] }
 0x4a7   :  { %v9889_v53 = vpack.c.bf16 %v5584_v18, %v5583_v30  ;;  %v6944_v5 = vmul.f32 0.6931472, %v11807_v42  ;;  %v5105_v20 = vmul.f32 1.442695, %v4857_v15  ;;  %vm6509_vm10 = vcmp.gt.s32.totalorder %v12133_v1, 0  ;;  %v12134_v12 = vld [vmem:[%s18428_s3 + $0x368] sm:$0xff] }
 0x4a8   :  { %v17885_v27 = vpop.xlane.xlu1 %4723  ;;  %v7247_v24 = vmul.f32 %v19695_v14, %v7119_v23  ;;  %v5286_v39 = vpop.xlane.xlu0 %5285  ;;  %vm6510_vm11 = vcmp.gt.s32.totalorder %v12134_v12, 0  ;;  %v8681_v23 = vadd.f32 %v8680_v58, %v8679_v41  ;;  %v19699_v42 = vld [vmem:[#allocation140_spill] sm:$0xff]  ;;  %v19702_v58 = vld [vmem:[#allocation187_spill] sm:$0xff] }
 0x4a9   :  { %19694 = vst [vmem:[#allocation109_spill] sm:$0xff] %v17885_v27  ;;  %v4858_v37 = vsub.f32 %v19696_v32, %v17885_v27  ;;  %10049 = vst [vmem:[%s18432_s4 + $0x138] sm:$0xff] %v9889_v53   ;;  %v7120_v30 = vadd.f32 %v6944_v5, %v19697_v48  ;;  %11820 = vpow2.f32 %v5105_v20  ;;  %v17908_v27 = vsel %vm6509_vm10, 1.0, %v19491_v44 }
 0x4aa   :  { %v7453_v45 = vsel %vm7297_vm7, %v7247_v24, 0.0  ;;  %11822 = vrcp.f32 %v5286_v39  ;;  %19700 = vst [vmem:[#allocation104_spill] sm:$0xff] %v17908_v27  ;;  %v8682_v41 = vsel %vm7297_vm7, %v17908_v27, 0.0  ;;  %v17922_v48 = vsel %vm6510_vm11, 1.0, %v19491_v44 }
 0x4ab   :  { %v5107_v18 = vmul.f32 1.442695, %v4858_v37  ;;  %v17903_v57 = vpop.eup %11808  ;;  %v7454_v15 = vadd.f32 %v7453_v45, %v7452_v54  ;;  %v7248_v14 = vmul.f32 %v19699_v42, %v7120_v30  ;;  %11824 = vlog2.f32 %v5286_v39  ;;  %19704 = vst [vmem:[#allocation31_spill] sm:$0xff] %v17922_v48  ;;  %v12135_v45 = vld [vmem:[%s18428_s3 + $0x370] sm:$0xff] }
 0x4ac   :  { %19698 = vst [vmem:[#allocation34_spill] sm:$0xff] %v17903_v57  ;;  %v5288_v32 = vpop.xlane.xlu1 %5287  ;;  %v11811_v53 = vpop.eup %11810  ;;  %5357 = vadd.xlane.f32.xlu0 %v17903_v57  ;;  %vm6511_vm12 = vcmp.gt.s32.totalorder %v12135_v45, 0  ;;  %v19709_v57 = vld [vmem:[#allocation67_spill] sm:$0xff] }
 0x4ad   :  { %11826 = vpow2.f32 %v5107_v18  ;;  %v17911_v5 = vpop.xlane.xlu0 %4725  ;;  %v11813_v20 = vpop.eup %11812  ;;  %v7455_v54 = vsel %vm7297_vm7, %v7248_v14, 0.0  ;;  %v8683_v14 = vadd.f32 %v8682_v41, %v8681_v23  ;;  %v19713_v45 = vld [vmem:[#allocation143_spill] sm:$0xff] }
 0x4ae   :  { %19701 = vst [vmem:[#allocation17_spill] sm:$0xff] %v17911_v5  ;;  %11828 = vrcp.f32 %v5288_v32  ;;  %v4859_v24 = vsub.f32 %v19702_v58, %v17911_v5  ;;  %v17918_v37 = vpop.eup %11814  ;;  %v7456_v1 = vadd.f32 %v7455_v54, %v7454_v15  ;;  %v6946_v39 = vmul.f32 0.6931472, %v11813_v20  ;;  %v19706_v20 = vld [vmem:[#allocation149_spill] sm:$0xff]  ;;  %v19707_v54 = vld [vmem:[#allocation138_spill] sm:$0xff]  ;;  %v19708_v5 = vld [vmem:[#allocation179_spill] sm:$0xff] }
 0x4af   :  { %19703 = vst [vmem:[#allocation159_spill] sm:$0xff] %v17918_v37  ;;  %11830 = vlog2.f32 %v5288_v32  ;;  %v11817_v30 = vpop.eup %11816  ;;  %5359 = vadd.xlane.f32.xlu1 %v17918_v37  ;;  %v8684_v15 = vsel %vm7297_vm7, %v17922_v48, 0.0  ;;  %v5585_v12 = vmul.f32 %v11811_v53, %v19706_v20  ;;  %v19710_v37 = vld [vmem:[#allocation148_spill] sm:$0xff]  ;;  %v19711_v48 = vld [vmem:[#allocation173_spill] sm:$0xff]  ;;  %v19714_v20 = vld [vmem:[#allocation6_spill] sm:$0xff] }
 0x4b0   :  { %v5109_v18 = vmul.f32 1.442695, %v4859_v24  ;;  %v17928_v42 = vpop.xlane.xlu1 %4727  ;;  %v11819_v32 = vpop.eup %11818  ;;  %v7121_v58 = vadd.f32 %v6946_v39, %v19707_v54  ;;  %v5586_v7 = vmul.f32 %v11817_v30, %v19708_v5  ;;  %v8685_v39 = vadd.f32 %v8684_v15, %v8683_v14  ;;  %v12136_v30 = vld [vmem:[%s18428_s3 + $0x378] sm:$0xff] }
 0x4b1   :  { %19705 = vst [vmem:[#allocation21_spill] sm:$0xff] %v17928_v42  ;;  %v4860_v29 = vsub.f32 %v19709_v57, %v17928_v42  ;;  %v5290_v27 = vpop.xlane.xlu0 %5289  ;;  %v6948_v24 = vmul.f32 0.6931472, %v11819_v32  ;;  %v17943_v5 = vsel %vm6511_vm12, 1.0, %v19491_v44  ;;  %vm6512_vm13 = vcmp.gt.s32.totalorder %v12136_v30, 0  ;;  %v12137_v30 = vld [vmem:[%s18428_s3 + $0x380] sm:$0xff] }
 0x4b2   :  { %11832 = vpow2.f32 %v5109_v18  ;;  %v7249_v0 = vmul.f32 %v19710_v37, %v7121_v58  ;;  %v9894_v13 = vpack.c.bf16 %v5586_v7, %v5585_v12  ;;  %vm6513_vm14 = vcmp.gt.s32.totalorder %v12137_v30, 0  ;;  %v19720_v30 = vld [vmem:[#allocation9_spill] sm:$0xff] }
 0x4b3   :  { %v5111_v23 = vmul.f32 1.442695, %v4860_v29  ;;  %11834 = vrcp.f32 %v5290_v27  ;;  %v17938_v41 = vpop.eup %11820  ;;  %v7122_v38 = vadd.f32 %v6948_v24, %v19711_v48 }
 0x4b4   :  { %11836 = vlog2.f32 %v5290_v27  ;;  %v5292_v53 = vpop.xlane.xlu1 %5291  ;;  %v11823_v57 = vpop.eup %11822  ;;  %v7457_v7 = vsel %vm7297_vm7, %v7249_v0, 0.0  ;;  %10050 = vst [vmem:[%s18432_s4 + $0x140] sm:$0xff] %v9894_v13   ;;  %5361 = vadd.xlane.f32.xlu0 %v17938_v41  ;;  %v8686_v27 = vsel %vm7297_vm7, %v17943_v5, 0.0 }
 0x4b5   :  { %11838 = vpow2.f32 %v5111_v23  ;;  %v17953_v29 = vpop.xlane.xlu0 %4729  ;;  %v11825_v37 = vpop.eup %11824  ;;  %v7458_v48 = vadd.f32 %v7457_v7, %v7456_v1  ;;  %v7250_v18 = vmul.f32 %v19713_v45, %v7122_v38  ;;  %v5587_v12 = vmul.f32 %v11823_v57, %v19714_v20  ;;  %v19716_v23 = vld [vmem:[#allocation88_spill] sm:$0xff]  ;;  %v19717_v7 = vld [vmem:[#allocation75_spill] sm:$0xff] }
 0x4b6   :  { %19712 = vst [vmem:[#allocation36_spill] sm:$0xff] %v17953_v29  ;;  %11840 = vrcp.f32 %v5292_v53  ;;  %v6950_v0 = vmul.f32 0.6931472, %v11825_v37  ;;  %v4861_v13 = vsub.f32 %v17192_v60, %v17953_v29  ;;  %v8687_v1 = vadd.f32 %v8686_v27, %v8685_v39  ;;  %v19723_v29 = vld [vmem:[#allocation2_spill] sm:$0xff] }
 0x4b7   :  { %v17958_v14 = vpop.eup %11826  ;;  %11842 = vlog2.f32 %v5292_v53  ;;  %v7459_v32 = vsel %vm7297_vm7, %v7250_v18, 0.0  ;;  %v17969_v38 = vsel %vm6512_vm13, 1.0, %v19491_v44 }
 0x4b8   :  { %v11829_v15 = vpop.eup %11828  ;;  %5363 = vadd.xlane.f32.xlu1 %v17958_v14  ;;  %v17965_v54 = vpop.xlane.xlu1 %4731  ;;  %v7460_v24 = vadd.f32 %v7459_v32, %v7458_v48  ;;  %v7123_v53 = vadd.f32 %v6950_v0, %v19716_v23  ;;  %v5113_v37 = vmul.f32 1.442695, %v4861_v13  ;;  %v8688_v39 = vsel %vm7297_vm7, %v17969_v38, 0.0  ;;  %v19718_v13 = vld [vmem:[#allocation141_spill] sm:$0xff] }
 0x4b9   :  { %19715 = vst [vmem:[#allocation157_spill] sm:$0xff] %v17965_v54  ;;  %v11831_v58 = vpop.eup %11830  ;;  %v5588_v60 = vmul.f32 %v11829_v15, %v19717_v7  ;;  %v5294_v45 = vpop.xlane.xlu0 %5293  ;;  %v4862_v57 = vsub.f32 %v17227_v43, %v17965_v54 }
 0x4ba   :  { %v6952_v18 = vmul.f32 0.6931472, %v11831_v58  ;;  %11844 = vrcp.f32 %v5294_v45  ;;  %v7251_v27 = vmul.f32 %v17215_v31, %v7123_v53 }
 0x4bb   :  { %v9899_v48 = vpack.c.bf16 %v5588_v60, %v5587_v12  ;;  %11846 = vpow2.f32 %v5113_v37  ;;  %v5115_v32 = vmul.f32 1.442695, %v4862_v57  ;;  %v8689_v12 = vadd.f32 %v8688_v39, %v8687_v1 }
 0x4bc   :  { %v17981_v0 = vpop.eup %11832  ;;  %v7124_v15 = vadd.f32 %v6952_v18, %v19718_v13  ;;  %11848 = vlog2.f32 %v5294_v45  ;;  %v5296_v43 = vpop.xlane.xlu1 %5295  ;;  %v7461_v58 = vsel %vm7297_vm7, %v7251_v27, 0.0  ;;  %v17994_v60 = vsel %vm6513_vm14, 1.0, %v19491_v44 }
 0x4bd   :  { %v11835_v20 = vpop.eup %11834  ;;  %10051 = vst [vmem:[%s18432_s4 + $0x148] sm:$0xff] %v9899_v48   ;;  %11850 = vrcp.f32 %v5296_v43  ;;  %5365 = vadd.xlane.f32.xlu0 %v17981_v0  ;;  %v17989_v31 = vpop.xlane.xlu0 %4733  ;;  %v7462_v53 = vadd.f32 %v7461_v58, %v7460_v24  ;;  %v8690_v57 = vsel %vm7297_vm7, %v17994_v60, 0.0  ;;  %v12139_v24 = vld [vmem:[%s18428_s3 + $0x390] sm:$0xff] }
 0x4be   :  { %19719 = vst [vmem:[#allocation94_spill] sm:$0xff] %v17989_v31  ;;  %v11837_v23 = vpop.eup %11836  ;;  %v7252_v7 = vmul.f32 %v17211_v35, %v7124_v15  ;;  %11852 = vpow2.f32 %v5115_v32  ;;  %v4863_v18 = vsub.f32 %v17256_v2, %v17989_v31  ;;  %v12138_v35 = vld [vmem:[%s18428_s3 + $0x388] sm:$0xff]  ;;  %vm6515_vm1 = vcmp.gt.s32.totalorder %v12139_v24, 0  ;;  %v19722_v15 = vld [vmem:[#allocation80_spill] sm:$0xff] }
 0x4bf   :  { %v17996_v37 = vpop.eup %11838  ;;  %v6954_v45 = vmul.f32 0.6931472, %v11837_v23  ;;  %11854 = vlog2.f32 %v5296_v43  ;;  %vm6514_vm15 = vcmp.gt.s32.totalorder %v12138_v35, 0  ;;  %v5589_v27 = vmul.f32 %v11835_v20, %v19720_v30 }
 0x4c0   :  { %v11841_v1 = vpop.eup %11840  ;;  %v7463_v39 = vsel %vm7297_vm7, %v7252_v7, 0.0  ;;  %5367 = vadd.xlane.f32.xlu1 %v17996_v37  ;;  %v18011_v2 = vpop.xlane.xlu1 %4735  ;;  %v5117_v58 = vmul.f32 1.442695, %v4863_v18  ;;  %v8691_v7 = vadd.f32 %v8690_v57, %v8689_v12  ;;  %v18020_v42 = vsel %vm6514_vm15, 1.0, %v19491_v44  ;;  %v19726_v57 = vld [vmem:[#allocation182_spill] sm:$0xff] }
 0x4c1   :  { %19721 = vst [vmem:[#allocation108_spill] sm:$0xff] %v18011_v2  ;;  %v11843_v48 = vpop.eup %11842  ;;  %v7464_v13 = vadd.f32 %v7463_v39, %v7462_v53  ;;  %v7125_v32 = vadd.f32 %v6954_v45, %v19722_v15  ;;  %v5590_v43 = vmul.f32 %v11841_v1, %v17176_v49  ;;  %v5298_v23 = vpop.xlane.xlu0 %5297  ;;  %v4864_v54 = vsub.f32 %v17294_v56, %v18011_v2  ;;  %v19724_v45 = vld [vmem:[#allocation59_spill] sm:$0xff] }
 0x4c2   :  { %v6956_v31 = vmul.f32 0.6931472, %v11843_v48  ;;  %11856 = vrcp.f32 %v5298_v23  ;;  %v8692_v1 = vsel %vm7297_vm7, %v18020_v42, 0.0  ;;  %v18038_v48 = vsel %vm6515_vm1, 1.0, %v19491_v44 }
 0x4c3   :  { %v7253_v20 = vmul.f32 %v19723_v29, %v7125_v32  ;;  %v9904_v30 = vpack.c.bf16 %v5590_v43, %v5589_v27  ;;  %11858 = vpow2.f32 %v5117_v58  ;;  %v5119_v49 = vmul.f32 1.442695, %v4864_v54  ;;  %v12140_v29 = vld [vmem:[%s18428_s3 + $0x398] sm:$0xff] }
 0x4c4   :  { %v11845_v53 = vpop.eup %11844  ;;  %v7126_v39 = vadd.f32 %v6956_v31, %v19724_v45  ;;  %11860 = vlog2.f32 %v5298_v23  ;;  %v5300_v18 = vpop.xlane.xlu1 %5299  ;;  %vm6516_vm2 = vcmp.gt.s32.totalorder %v12140_v29, 0  ;;  %v8693_v43 = vadd.f32 %v8692_v1, %v8691_v7  ;;  %v19729_v45 = vld [vmem:[#allocation13_spill] sm:$0xff]  ;;  %v12142_v29 = vld [vmem:[%s18428_s3 + $0x3a8] sm:$0xff] }
 0x4c5   :  { %v18025_v56 = vpop.eup %11846  ;;  %v7465_v12 = vsel %vm7297_vm7, %v7253_v20, 0.0  ;;  %10052 = vst [vmem:[%s18432_s4 + $0x150] sm:$0xff] %v9904_v30   ;;  %11862 = vrcp.f32 %v5300_v18  ;;  %v8694_v58 = vsel %vm7297_vm7, %v18038_v48, 0.0  ;;  %v19728_v20 = vld [vmem:[#allocation147_spill] sm:$0xff]  ;;  %vm6518_vm0 = vcmp.gt.s32.totalorder %v12142_v29, 0  ;;  %v12144_v29 = vld [vmem:[%s18428_s3 + $0x3b8] sm:$0xff] }
 0x4c6   :  { %19725 = vst [vmem:[#allocation113_spill] sm:$0xff] %v18025_v56  ;;  %v11849_v54 = vpop.eup %11848  ;;  %v7466_v31 = vadd.f32 %v7465_v12, %v7464_v13  ;;  %v7254_v35 = vmul.f32 %v19726_v57, %v7126_v39  ;;  %11864 = vpow2.f32 %v5119_v49  ;;  %5369 = vadd.xlane.f32.xlu0 %v18025_v56  ;;  %v5302_v27 = vpop.xlane.xlu0 %5301  ;;  %v5591_v30 = vmul.f32 %v11845_v53, %v19728_v20  ;;  %v19730_v12 = vld [vmem:[#allocation145_spill] sm:$0xff] }
 0x4c7   :  { %v11851_v15 = vpop.eup %11850  ;;  %v6958_v32 = vmul.f32 0.6931472, %v11849_v54  ;;  %11866 = vlog2.f32 %v5300_v18  ;;  %v12141_v18 = vld [vmem:[%s18428_s3 + $0x3a0] sm:$0xff]  ;;  %vm6520_vm5 = vcmp.gt.s32.totalorder %v12144_v29, 0 }
 0x4c8   :  { %v18042_v23 = vpop.eup %11852  ;;  %v7467_v13 = vsel %vm7297_vm7, %v7254_v35, 0.0  ;;  %v5592_v39 = vmul.f32 %v11851_v15, %v19729_v45  ;;  %11868 = vrcp.f32 %v5302_v27  ;;  %vm6517_vm3 = vcmp.gt.s32.totalorder %v12141_v18, 0 }
 0x4c9   :  { %19727 = vst [vmem:[#allocation156_spill] sm:$0xff] %v18042_v23  ;;  %v11855_v49 = vpop.eup %11854  ;;  %v7468_v24 = vadd.f32 %v7467_v13, %v7466_v31  ;;  %v7127_v57 = vadd.f32 %v6958_v32, %v19730_v12  ;;  %5371 = vadd.xlane.f32.xlu1 %v18042_v23  ;;  %11870 = vlog2.f32 %v5302_v27  ;;  %v5304_v7 = vpop.xlane.xlu1 %5303  ;;  %v8695_v35 = vadd.f32 %v8694_v58, %v8693_v43  ;;  %v19731_v27 = vld [vmem:[#allocation4_spill] sm:$0xff] }
 0x4ca   :  { %v9909_v1 = vpack.c.bf16 %v5592_v39, %v5591_v30  ;;  %v6960_v54 = vmul.f32 0.6931472, %v11855_v49  ;;  %11872 = vrcp.f32 %v5304_v7  ;;  %v18055_v31 = vsel %vm6516_vm2, 1.0, %v19491_v44 }
 0x4cb   :  { %v7255_v53 = vmul.f32 %v17342_v25, %v7127_v57  ;;  %11874 = vlog2.f32 %v5304_v7  ;;  %v8696_v13 = vsel %vm7297_vm7, %v18055_v31, 0.0  ;;  %v18073_v39 = vsel %vm6517_vm3, 1.0, %v19491_v44 }
 0x4cc   :  { %v11857_v15 = vpop.eup %11856  ;;  %10053 = vst [vmem:[%s18432_s4 + $0x158] sm:$0xff] %v9909_v1   ;;  %v7128_v32 = vadd.f32 %v6960_v54, %v19731_v27  ;;  %v8697_v57 = vadd.f32 %v8696_v13, %v8695_v35  ;;  %v8698_v7 = vsel %vm7297_vm7, %v18073_v39, 0.0  ;;  %v19734_v54 = vld [vmem:[#allocation82_spill] sm:$0xff] }
 0x4cd   :  { %v18063_v20 = vpop.eup %11858  ;;  %v7469_v25 = vsel %vm7297_vm7, %v7255_v53, 0.0 }
 0x4ce   :  { %19732 = vst [vmem:[#allocation208_spill] sm:$0xff] %v18063_v20  ;;  %v11861_v30 = vpop.eup %11860  ;;  %v7470_v43 = vadd.f32 %v7469_v25, %v7468_v24  ;;  %v7256_v58 = vmul.f32 %v17303_v50, %v7128_v32  ;;  %5373 = vadd.xlane.f32.xlu0 %v18063_v20  ;;  %v5306_v45 = vpop.xlane.xlu0 %5305  ;;  %v5593_v50 = vmul.f32 %v11857_v15, %v19734_v54  ;;  %v19735_v32 = vld [vmem:[#allocation90_spill] sm:$0xff] }
 0x4cf   :  { %v11863_v49 = vpop.eup %11862  ;;  %v6962_v12 = vmul.f32 0.6931472, %v11861_v30  ;;  %11876 = vrcp.f32 %v5306_v45  ;;  %v19737_v54 = vld [vmem:[#allocation14_spill] sm:$0xff] }
 0x4d0   :  { %v18077_v1 = vpop.eup %11864  ;;  %v7471_v24 = vsel %vm7297_vm7, %v7256_v58, 0.0  ;;  %v5594_v53 = vmul.f32 %v11863_v49, %v17299_v3  ;;  %11878 = vlog2.f32 %v5306_v45  ;;  %v8699_v58 = vadd.f32 %v8698_v7, %v8697_v57  ;;  %v19736_v45 = vld [vmem:[#allocation10_spill] sm:$0xff] }
 0x4d1   :  { %19733 = vst [vmem:[#allocation97_spill] sm:$0xff] %v18077_v1  ;;  %v11867_v27 = vpop.eup %11866  ;;  %v7472_v18 = vadd.f32 %v7471_v24, %v7470_v43  ;;  %v7129_v25 = vadd.f32 %v6962_v12, %v19735_v32  ;;  %5375 = vadd.xlane.f32.xlu1 %v18077_v1  ;;  %v5308_v30 = vpop.xlane.xlu1 %5307  ;;  %v18087_v3 = vsel %vm6518_vm0, 1.0, %v19491_v44  ;;  %v12143_v43 = vld [vmem:[%s18428_s3 + $0x3b0] sm:$0xff] }
 0x4d2   :  { %v11869_v35 = vpop.eup %11868  ;;  %v9914_v13 = vpack.c.bf16 %v5594_v53, %v5593_v50  ;;  %v6964_v2 = vmul.f32 0.6931472, %v11867_v27  ;;  %11880 = vrcp.f32 %v5308_v30  ;;  %vm6519_vm4 = vcmp.gt.s32.totalorder %v12143_v43, 0  ;;  %v19738_v27 = vld [vmem:[#allocation18_spill] sm:$0xff] }
 0x4d3   :  { %v11871_v20 = vpop.eup %11870  ;;  %v7257_v23 = vmul.f32 %v17419_v47, %v7129_v25  ;;  %11882 = vlog2.f32 %v5308_v30  ;;  %v8700_v47 = vsel %vm7297_vm7, %v18087_v3, 0.0  ;;  %v5595_v24 = vmul.f32 %v11869_v35, %v17329_v22  ;;  %v19740_v35 = vld [vmem:[#allocation11_spill] sm:$0xff] }
 0x4d4   :  { %v11873_v15 = vpop.eup %11872  ;;  %10054 = vst [vmem:[%s18432_s4 + $0x160] sm:$0xff] %v9914_v13   ;;  %v7130_v49 = vadd.f32 %v6964_v2, %v19736_v45  ;;  %v6966_v12 = vmul.f32 0.6931472, %v11871_v20  ;;  %v19739_v2 = vld [vmem:[#allocation191_spill] sm:$0xff]  ;;  %v8701_v45 = vadd.f32 %v8700_v47, %v8699_v58  ;;  %v18108_v1 = vsel %vm6519_vm4, 1.0, %v19491_v44 }
 0x4d5   :  { %v11875_v57 = vpop.eup %11874  ;;  %v7473_v7 = vsel %vm7297_vm7, %v7257_v23, 0.0  ;;  %v5596_v50 = vmul.f32 %v11873_v15, %v19737_v54  ;;  %v8702_v58 = vsel %vm7297_vm7, %v18108_v1, 0.0  ;;  %v18127_v54 = vsel %vm6520_vm5, 1.0, %v19491_v44 }
 0x4d6   :  { %v7474_v53 = vadd.f32 %v7473_v7, %v7472_v18  ;;  %v7258_v32 = vmul.f32 %v19738_v27, %v7130_v49  ;;  %v7131_v20 = vadd.f32 %v6966_v12, %v19739_v2  ;;  %v6968_v25 = vmul.f32 0.6931472, %v11875_v57  ;;  %v5310_v30 = vpop.xlane.xlu0 %5309  ;;  %v18136_v27 = vld [vmem:[%s18428_s3 + $0x3f0] sm:$0xff] }
 0x4d7   :  { %v9919_v13 = vpack.c.bf16 %v5596_v50, %v5595_v24  ;;  %11884 = vrcp.f32 %v5310_v30  ;;  %v18123_v24 = vld [vmem:[%s18428_s3 + $0x3f8] sm:$0xff]  ;;  %v8704_v2 = vsel %vm7297_vm7, %v18127_v54, 0.0  ;;  %vm6527_vm13 = vcmp.gt.s32.totalorder %v18136_v27, 0 }
 0x4d8   :  { %v7475_v23 = vsel %vm7297_vm7, %v7258_v32, 0.0  ;;  %v7259_v22 = vmul.f32 %v17457_v55, %v7131_v20  ;;  %v7132_v15 = vadd.f32 %v6968_v25, %v19740_v35  ;;  %11886 = vlog2.f32 %v5310_v30  ;;  %v19741_v25 = vld [vmem:[#allocation152_spill] sm:$0xff] }
 0x4d9   :  { %v11877_v18 = vpop.eup %11876  ;;  %v7476_v49 = vadd.f32 %v7475_v23, %v7474_v53  ;;  %10055 = vst [vmem:[%s18432_s4 + $0x168] sm:$0xff] %v9919_v13   ;;  %v5312_v12 = vpop.xlane.xlu1 %5311  ;;  %v12145_v53 = vld [vmem:[%s18428_s3 + $0x3c0] sm:$0xff]  ;;  %v8703_v32 = vadd.f32 %v8702_v58, %v8701_v45  ;;  %v19742_v13 = vld [vmem:[#allocation7_spill] sm:$0xff]  ;;  %v9561_v45 = vadd.s32 4294967295, %v18136_v27  ;;  %vm6528_vm14 = vcmp.gt.s32.totalorder %v18123_v24, 0 }
 0x4da   :  { %v11879_v43 = vpop.eup %11878  ;;  %v7477_v47 = vsel %vm7297_vm7, %v7259_v22, 0.0  ;;  %v7260_v57 = vmul.f32 %v17415_v16, %v7132_v15  ;;  %11888 = vrcp.f32 %v5312_v12  ;;  %vm6521_vm6 = vcmp.gt.s32.totalorder %v12145_v53, 0  ;;  %v19743_v22 = vld [vmem:[#allocation23_spill] sm:$0xff]  ;;  %v19744_v58 = vld [vmem:[#allocation186_spill] sm:$0xff] }
 0x4db   :  { %v7478_v55 = vadd.f32 %v7477_v47, %v7476_v49  ;;  %v6970_v7 = vmul.f32 0.6931472, %v11879_v43  ;;  %11890 = vlog2.f32 %v5312_v12  ;;  %v5597_v30 = vmul.f32 %v11877_v18, %v19741_v25 }
 0x4dc   :  { %v11881_v50 = vpop.eup %11880  ;;  %v7479_v16 = vsel %vm7297_vm7, %v7260_v57, 0.0  ;;  %v9562_v49 = vadd.s32 4294967295, %v18123_v24  ;;  %v8705_v56 = vadd.f32 %v8704_v2, %v8703_v32  ;;  %v18149_v18 = vsel %vm6521_vm6, 1.0, %v19491_v44 }
 0x4dd   :  { %v11883_v29 = vpop.eup %11882  ;;  %v7480_v20 = vadd.f32 %v7479_v16, %v7478_v55  ;;  %v7133_v23 = vadd.f32 %v6970_v7, %v19742_v13  ;;  %v5598_v35 = vmul.f32 %v11881_v50, %v19743_v22  ;;  %v12146_v7 = vld [vmem:[%s18428_s3 + $0x3c8] sm:$0xff]  ;;  %v8706_v50 = vsel %vm7297_vm7, %v18149_v18, 0.0 }
 0x4de   :  { %v6972_v15 = vmul.f32 0.6931472, %v11883_v29  ;;  %vm6522_vm8 = vcmp.gt.s32.totalorder %v12146_v7, 0  ;;  %v8707_v13 = vadd.f32 %v8706_v50, %v8705_v56 }
 0x4df   :  { %v7261_v12 = vmul.f32 %v17533_v26, %v7133_v23  ;;  %v9924_v43 = vpack.c.bf16 %v5598_v35, %v5597_v30  ;;  %v5314_v47 = vpop.xlane.xlu0 %5313  ;;  %v18164_v23 = vsel %vm6522_vm8, 1.0, %v19491_v44 }
 0x4e0   :  { %v7134_v57 = vadd.f32 %v6972_v15, %v19744_v58  ;;  %11892 = vrcp.f32 %v5314_v47  ;;  %v19745_v15 = vld [vmem:[#allocation24_spill] sm:$0xff]  ;;  %v8708_v56 = vsel %vm7297_vm7, %v18164_v23, 0.0 }
 0x4e1   :  { %v11885_v55 = vpop.eup %11884  ;;  %v7481_v26 = vsel %vm7297_vm7, %v7261_v12, 0.0  ;;  %10056 = vst [vmem:[%s18432_s4 + $0x170] sm:$0xff] %v9924_v43   ;;  %11894 = vlog2.f32 %v5314_v47  ;;  %v19746_v12 = vld [vmem:[#allocation73_spill] sm:$0xff]  ;;  %v12147_v47 = vld [vmem:[%s18428_s3 + $0x3d0] sm:$0xff] }
 0x4e2   :  { %v11887_v16 = vpop.eup %11886  ;;  %v7482_v53 = vadd.f32 %v7481_v26, %v7480_v20  ;;  %v7262_v32 = vmul.f32 %v17565_v40, %v7134_v57  ;;  %8072 = vperm.xlu1 %10626, %v9562_v49   ;;  %v5316_v2 = vpop.xlane.xlu1 %5315  ;;  %v5599_v20 = vmul.f32 %v11885_v55, %v19745_v15  ;;  %v19747_v49 = vld [vmem:[#allocation12_spill] sm:$0xff]  ;;  %vm6523_vm9 = vcmp.gt.s32.totalorder %v12147_v47, 0  ;;  %v19748_v26 = vld [vmem:[#allocation151_spill] sm:$0xff] }
 0x4e3   :  { %v6974_v29 = vmul.f32 0.6931472, %v11887_v16  ;;  %11896 = vrcp.f32 %v5316_v2  ;;  %v8709_v16 = vadd.f32 %v8708_v56, %v8707_v13  ;;  %v12149_v56 = vld [vmem:[%s18428_s3 + $0x3e0] sm:$0xff] }
 0x4e4   :  { %v11889_v25 = vpop.eup %11888  ;;  %v7483_v30 = vsel %vm7297_vm7, %v7262_v32, 0.0  ;;  %8069 = vperm.xlu0 %10627, %v9561_v45   ;;  %11898 = vlog2.f32 %v5316_v2  ;;  %vm6525_vm11 = vcmp.gt.s32.totalorder %v12149_v56, 0 }
 0x4e5   :  { %v11891_v22 = vpop.eup %11890  ;;  %v7484_v35 = vadd.f32 %v7483_v30, %v7482_v53  ;;  %v7135_v40 = vadd.f32 %v6974_v29, %v19746_v12  ;;  %v5600_v43 = vmul.f32 %v11889_v25, %v19747_v49  ;;  %v18184_v53 = vsel %vm6523_vm9, 1.0, %v19491_v44  ;;  %v19749_v49 = vld [vmem:[#allocation190_spill] sm:$0xff] }
 0x4e6   :  { %v6976_v45 = vmul.f32 0.6931472, %v11891_v22  ;;  %v8710_v25 = vsel %vm7297_vm7, %v18184_v53, 0.0  ;;  %v12148_v22 = vld [vmem:[%s18428_s3 + $0x3d8] sm:$0xff] }
 0x4e7   :  { %v7263_v58 = vmul.f32 %v17596_v10, %v7135_v40  ;;  %v9929_v57 = vpack.c.bf16 %v5600_v43, %v5599_v20  ;;  %v18175_v7 = vpop.xlane.xlu0 %5317  ;;  %vm6524_vm10 = vcmp.gt.s32.totalorder %v12148_v22, 0  ;;  %v8711_v12 = vadd.f32 %v8710_v25, %v8709_v16 }
 0x4e8   :  { %v7136_v55 = vadd.f32 %v6976_v45, %v19748_v26  ;;  %11900 = vrcp.f32 %v18175_v7  ;;  %v18200_v45 = vsel %vm6524_vm10, 1.0, %v19491_v44 }
 0x4e9   :  { %v7485_v50 = vsel %vm7297_vm7, %v7263_v58, 0.0  ;;  %10057 = vst [vmem:[%s18432_s4 + $0x178] sm:$0xff] %v9929_v57   ;;  %v8712_v26 = vsel %vm7297_vm7, %v18200_v45, 0.0 }
 0x4ea   :  { %v11893_v32 = vpop.eup %11892  ;;  %v7486_v2 = vadd.f32 %v7485_v50, %v7484_v35  ;;  %v7264_v10 = vmul.f32 %v17608_v8, %v7136_v55  ;;  %v18187_v29 = vpop.xlane.xlu1 %5319  ;;  %v19750_v50 = vld [vmem:[#allocation77_spill] sm:$0xff] }
 0x4eb   :  { %v11895_v30 = vpop.eup %11894  ;;  %11902 = vrcp.f32 %v18187_v29  ;;  %v5601_v40 = vmul.f32 %v11893_v32, %v17453_v21 }
 0x4ec   :  { %v7487_v13 = vsel %vm7297_vm7, %v7264_v10, 0.0  ;;  %v6978_v15 = vmul.f32 0.6931472, %v11895_v30  ;;  %v8713_v10 = vadd.f32 %v8712_v26, %v8711_v12 }
 0x4ed   :  { %v11897_v20 = vpop.eup %11896  ;;  %v7488_v35 = vadd.f32 %v7487_v13, %v7486_v2 }
 0x4ee   :  { %v11899_v8 = vpop.eup %11898  ;;  %v7137_v43 = vadd.f32 %v6978_v15, %v19749_v49  ;;  %v5602_v47 = vmul.f32 %v11897_v20, %v17470_v9  ;;  %v12150_v9 = vld [vmem:[%s18428_s3 + $0x3e8] sm:$0xff] }
 0x4ef   :  { %v6980_v58 = vmul.f32 0.6931472, %v11899_v8  ;;  %v18205_v57 = vpop.xlane.xlu0 %5321  ;;  %vm6526_vm12 = vcmp.gt.s32.totalorder %v12150_v9, 0 }
 0x4f0   :  { %v7265_v21 = vmul.f32 %v17643_v17, %v7137_v43  ;;  %v9934_v55 = vpack.c.bf16 %v5602_v47, %v5601_v40  ;;  %11904 = vrcp.f32 %v18205_v57  ;;  %v18220_v17 = vsel %vm6525_vm11, 1.0, %v19491_v44 }
 0x4f1   :  { %v7138_v16 = vadd.f32 %v6980_v58, %v19750_v50  ;;  %v5324_v32 = vpop.xlane.xlu1 %5323  ;;  %v8714_v22 = vsel %vm7297_vm7, %v18220_v17, 0.0  ;;  %v18227_v8 = vsel %vm6526_vm12, 1.0, %v19491_v44 }
 0x4f2   :  { %v7489_v2 = vsel %vm7297_vm7, %v7265_v21, 0.0  ;;  %10058 = vst [vmem:[%s18432_s4 + $0x180] sm:$0xff] %v9934_v55   ;;  %11906 = vrcp.f32 %v5324_v32  ;;  %v11901_v25 = vpop.eup %11900  ;;  %v8715_v43 = vadd.f32 %v8714_v22, %v8713_v10  ;;  %v18246_v21 = vsel %vm6528_vm14, 1.0, %v19491_v44 }
 0x4f3   :  { %v7266_v30 = vmul.f32 %v17639_v19, %v7138_v16  ;;  %v7490_v13 = vadd.f32 %v7489_v2, %v7488_v35  ;;  %v5603_v12 = vmul.f32 %v11901_v25, %v17491_v34  ;;  %v8716_v19 = vsel %vm7297_vm7, %v18227_v8, 0.0 }
 0x4f4   :  { %v18241_v34 = vsel %vm6527_vm13, 1.0, %v19491_v44  ;;  %v8720_v2 = vsel %vm7297_vm7, %v18246_v21, 0.0 }
 0x4f5   :  { %v11903_v15 = vpop.eup %11902  ;;  %v7491_v20 = vsel %vm7297_vm7, %v7266_v30, 0.0  ;;  %v8718_v27 = vsel %vm7297_vm7, %v18241_v34, 0.0 }
 0x4f6   :  { %v18229_v40 = vadd.f32 %v7491_v20, %v7490_v13  ;;  %v5604_v49 = vmul.f32 %v11903_v15, %v17504_v4  ;;  %v8717_v4 = vadd.f32 %v8716_v19, %v8715_v43 }
 0x4f7   :  { %v5326_v47 = vpop.xlane.xlu0 %5325 }
 0x4f8   :  { %v9939_v35 = vpack.c.bf16 %v5604_v49, %v5603_v12  ;;  %11908 = vrcp.f32 %v5326_v47  ;;  %v8719_v9 = vadd.f32 %v8718_v27, %v8717_v4 }
 0x4fa   :  { %v11905_v56 = vpop.eup %11904  ;;  %10059 = vst [vmem:[%s18432_s4 + $0x188] sm:$0xff] %v9939_v35   ;;  %v5328_v58 = vpop.xlane.xlu1 %5327  ;;  %v8721_v25 = vadd.f32 %v8720_v2, %v8719_v9  ;;  %v19752_v2 = vld [vmem:[#allocation194_spill] sm:$0xff] }
 0x4fb   :  { %11910 = vrcp.f32 %v5328_v58  ;;  %v5605_v24 = vmul.f32 %v11905_v56, %v17525_v52 }
 0x4fc   :  { %v11907_v26 = vpop.eup %11906 }
 0x4fd   :  { %v5606_v55 = vmul.f32 %v11907_v26, %v17538_v6 }
 0x4ff   :  { %v9944_v50 = vpack.c.bf16 %v5606_v55, %v5605_v24  ;;  %v5330_v16 = vpop.xlane.xlu0 %5329  ;;  %v19751_v55 = vld [vmem:[#allocation5_spill] sm:$0xff] }
 0x500   :  { %11912 = vrcp.f32 %v5330_v16 }
 0x501   :  { %10060 = vst [vmem:[%s18432_s4 + $0x190] sm:$0xff] %v9944_v50  }
 0x502   :  { %v5332_v10 = vpop.xlane.xlu1 %5331  ;;  %v11909_v30 = vpop.eup %11908 }
 0x503   :  { %11914 = vrcp.f32 %v5332_v10  ;;  %v5607_v52 = vmul.f32 %v11909_v30, %v17559_v59 }
 0x505   :  { %v11911_v44 = vpop.eup %11910 }
 0x506   :  { %v5608_v6 = vmul.f32 %v11911_v44, %v17578_v61  ;;  %8722 = vadd.xlane.f32.xlu1 %v8721_v25 }
 0x508   :  { %v9949_v22 = vpack.c.bf16 %v5608_v6, %v5607_v52  ;;  %v5334_v13 = vpop.xlane.xlu0 %5333  ;;  %v19753_v52 = vld [vmem:[#allocation27_spill] sm:$0xff] }
 0x509   :  { %11916 = vrcp.f32 %v5334_v13 }
 0x50a   :  { %10061 = vst [vmem:[%s18432_s4 + $0x198] sm:$0xff] %v9949_v22   ;;  %v11913_v15 = vpop.eup %11912  ;;  %11918 = vlog2.f32 %v18175_v7 }
 0x50b   :  { %v5336_v20 = vpop.xlane.xlu1 %5335  ;;  %v5609_v59 = vmul.f32 %v11913_v15, %v17601_v62 }
 0x50c   :  { %11920 = vrcp.f32 %v5336_v20 }
 0x50d   :  { %v11915_v12 = vpop.eup %11914  ;;  %11922 = vlog2.f32 %v18187_v29 }
 0x50e   :  { %v5610_v61 = vmul.f32 %v11915_v12, %v17624_v46  ;;  %11924 = vlog2.f32 %v18205_v57 }
 0x50f   :  { %v5338_v43 = vpop.xlane.xlu0 %5337  ;;  %11926 = vlog2.f32 %v5324_v32 }
 0x510   :  { %v9954_v49 = vpack.c.bf16 %v5610_v61, %v5609_v59  ;;  %11928 = vrcp.f32 %v5338_v43 }
 0x511   :  { %11930 = vlog2.f32 %v5326_v47 }
 0x512   :  { %10062 = vst [vmem:[%s18432_s4 + $0x1a0] sm:$0xff] %v9954_v49   ;;  %v5340_v7 = vpop.xlane.xlu1 %5339 }
 0x513   :  { %v11917_v19 = vpop.eup %11916  ;;  %11932 = vrcp.f32 %v5340_v7 }
 0x514   :  { %v11919_v35 = vpop.eup %11918  ;;  %11934 = vlog2.f32 %v5328_v58  ;;  %v5611_v62 = vmul.f32 %v11917_v19, %v17651_v63 }
 0x515   :  { %11936 = vlog2.f32 %v5330_v16  ;;  %v6982_v4 = vmul.f32 0.6931472, %v11919_v35  ;;  %v19755_v35 = vld [vmem:[#allocation81_spill] sm:$0xff] }
 0x516   :  { %v11921_v29 = vpop.eup %11920  ;;  %v5342_v56 = vpop.xlane.xlu0 %5341 }
 0x517   :  { %v5612_v46 = vmul.f32 %v11921_v29, %v17668_v11  ;;  %v11923_v57 = vpop.eup %11922  ;;  %11938 = vrcp.f32 %v5342_v56  ;;  %v7139_v9 = vadd.f32 %v6982_v4, %v19751_v55  ;;  %v19760_v55 = vld [vmem:[#allocation30_spill] sm:$0xff] }
 0x518   :  { %v11925_v32 = vpop.eup %11924  ;;  %v6984_v24 = vmul.f32 0.6931472, %v11923_v57  ;;  %11940 = vlog2.f32 %v5332_v10  ;;  %v19757_v57 = vld [vmem:[#allocation29_spill] sm:$0xff] }
 0x519   :  { %v9959_v27 = vpack.c.bf16 %v5612_v46, %v5611_v62  ;;  %v11927_v26 = vpop.eup %11926  ;;  %v6986_v63 = vmul.f32 0.6931472, %v11925_v32  ;;  %v7267_v15 = vmul.f32 %v17684_v51, %v7139_v9  ;;  %v19756_v62 = vld [vmem:[#allocation197_spill] sm:$0xff] }
 0x51a   :  { %v18273_v47 = vpop.xlane.xlu1 %5343  ;;  %v11929_v58 = vpop.eup %11928  ;;  %v7140_v25 = vadd.f32 %v6984_v24, %v19752_v2  ;;  %v6988_v30 = vmul.f32 0.6931472, %v11927_v26  ;;  %v19758_v26 = vld [vmem:[#allocation93_spill] sm:$0xff] }
 0x51b   :  { %10063 = vst [vmem:[%s18432_s4 + $0x1a8] sm:$0xff] %v9959_v27   ;;  %11942 = vrcp.f32 %v18273_v47  ;;  %v11931_v11 = vpop.eup %11930  ;;  %v5613_v10 = vmul.f32 %v11929_v58, %v17693_v33  ;;  %v7141_v6 = vadd.f32 %v6986_v63, %v19753_v52  ;;  %v19759_v63 = vld [vmem:[#allocation87_spill] sm:$0xff] }
 0x51c   :  { %11944 = vlog2.f32 %v5334_v13  ;;  %v6990_v12 = vmul.f32 0.6931472, %v11931_v11  ;;  %v19754_v13 = vld [vmem:[#allocation16_spill] sm:$0xff]  ;;  %v7142_v29 = vadd.f32 %v6988_v30, %v19755_v35 }
 0x51d   :  { %v11933_v50 = vpop.eup %11932  ;;  %11946 = vlog2.f32 %v5336_v20  ;;  %v7268_v19 = vmul.f32 %v19754_v13, %v7140_v25  ;;  %v7269_v46 = vmul.f32 %v19756_v62, %v7141_v6  ;;  %v7493_v20 = vsel %vm7297_vm7, %v7267_v15, 0.0  ;;  %v19762_v30 = vld [vmem:[#allocation200_spill] sm:$0xff] }
 0x51e   :  { %v11935_v16 = vpop.eup %11934  ;;  %v5614_v44 = vmul.f32 %v11933_v50, %v17708_v28  ;;  %v7143_v32 = vadd.f32 %v6990_v12, %v19757_v57  ;;  %v7270_v11 = vmul.f32 %v19759_v63, %v7142_v29  ;;  %v19761_v50 = vld [vmem:[#allocation25_spill] sm:$0xff]  ;;  %v7494_v2 = vadd.f32 %v7493_v20, %v18229_v40 }
 0x51f   :  { %v5346_v22 = vpop.xlane.xlu0 %5345  ;;  %v11937_v61 = vpop.eup %11936  ;;  %v6992_v49 = vmul.f32 0.6931472, %v11935_v16  ;;  %v7497_v25 = vsel %vm7297_vm7, %v7269_v46, 0.0 }
 0x520   :  { %v9964_v59 = vpack.c.bf16 %v5614_v44, %v5613_v10  ;;  %11948 = vrcp.f32 %v5346_v22  ;;  %v6994_v4 = vmul.f32 0.6931472, %v11937_v61  ;;  %v7271_v10 = vmul.f32 %v19762_v30, %v7143_v32  ;;  %v19763_v44 = vld [vmem:[#allocation8_spill] sm:$0xff]  ;;  %v19764_v61 = vld [vmem:[#allocation207_spill] sm:$0xff] }
 0x521   :  { %11950 = vlog2.f32 %v5338_v43  ;;  %v11939_v28 = vpop.eup %11938  ;;  %v7144_v24 = vadd.f32 %v6992_v49, %v19758_v26  ;;  %v7495_v43 = vsel %vm7297_vm7, %v7268_v19, 0.0  ;;  %v7499_v35 = vsel %vm7297_vm7, %v7270_v11, 0.0 }
 0x522   :  { %10064 = vst [vmem:[%s18432_s4 + $0x1b0] sm:$0xff] %v9964_v59   ;;  %v5348_v33 = vpop.xlane.xlu1 %5347  ;;  %v11941_v51 = vpop.eup %11940  ;;  %v5615_v9 = vmul.f32 %v11939_v28, %v19760_v55  ;;  %v7145_v52 = vadd.f32 %v6994_v4, %v19763_v44  ;;  %v7496_v59 = vadd.f32 %v7495_v43, %v7494_v2  ;;  %v7501_v62 = vsel %vm7297_vm7, %v7271_v10, 0.0  ;;  %v19766_v4 = vld [vmem:[#allocation91_spill] sm:$0xff]  ;;  %v19768_v43 = vld [vmem:[#allocation41_spill] sm:$0xff] }
 0x523   :  { %11952 = vrcp.f32 %v5348_v33  ;;  %v6996_v6 = vmul.f32 0.6931472, %v11941_v51  ;;  %v7272_v49 = vmul.f32 %v19764_v61, %v7144_v24  ;;  %v19765_v51 = vld [vmem:[#allocation196_spill] sm:$0xff]  ;;  %v19767_v24 = vld [vmem:[#allocation103_spill] sm:$0xff]  ;;  %v19769_v55 = vld [vmem:[#allocation153_spill] sm:$0xff] }
 0x524   :  { %11954 = vlog2.f32 %v5340_v7  ;;  %v7498_v7 = vadd.f32 %v7497_v25, %v7496_v59  ;;  %v7273_v46 = vmul.f32 %v17811_v36, %v7145_v52  ;;  %v19770_v10 = vld [vmem:[#allocation155_spill] sm:$0xff]  ;;  %v19771_v52 = vld [vmem:[#allocation26_spill] sm:$0xff] }
 0x525   :  { %v11943_v27 = vpop.eup %11942  ;;  %11956 = vlog2.f32 %v5342_v56  ;;  %v7146_v20 = vadd.f32 %v6996_v6, %v19765_v51  ;;  %v7503_v32 = vsel %vm7297_vm7, %v7272_v49, 0.0  ;;  %v19772_v49 = vld [vmem:[#allocation84_spill] sm:$0xff] }
 0x526   :  { %v11945_v58 = vpop.eup %11944  ;;  %v5616_v16 = vmul.f32 %v11943_v27, %v19761_v50  ;;  %v7500_v57 = vadd.f32 %v7499_v35, %v7498_v7  ;;  %v7505_v36 = vsel %vm7297_vm7, %v7273_v46, 0.0  ;;  %v19773_v7 = vld [vmem:[#allocation22_spill] sm:$0xff] }
 0x527   :  { %v6998_v13 = vmul.f32 0.6931472, %v11945_v58  ;;  %v11947_v19 = vpop.eup %11946 }
 0x528   :  { %v9969_v15 = vpack.c.bf16 %v5616_v16, %v5615_v9  ;;  %v5350_v12 = vpop.xlane.xlu0 %5349  ;;  %v7000_v26 = vmul.f32 0.6931472, %v11947_v19  ;;  %v7502_v11 = vadd.f32 %v7501_v62, %v7500_v57  ;;  %v7274_v9 = vmul.f32 %v19769_v55, %v7146_v20  ;;  %v19774_v20 = vld [vmem:[#allocation201_spill] sm:$0xff] }
 0x529   :  { %11958 = vrcp.f32 %v5350_v12  ;;  %v7147_v27 = vadd.f32 %v6998_v13, %v19766_v4  ;;  %v19776_v4 = vld [vmem:[#allocation104_spill] sm:$0xff] }
 0x52a   :  { %10065 = vst [vmem:[%s18432_s4 + $0x1b8] sm:$0xff] %v9969_v15   ;;  %v11949_v40 = vpop.eup %11948  ;;  %v7504_v30 = vadd.f32 %v7503_v32, %v7502_v11  ;;  %v7507_v61 = vsel %vm7297_vm7, %v7274_v9, 0.0  ;;  %v19778_v11 = vld [vmem:[#allocation32_spill] sm:$0xff] }
 0x52b   :  { %v5352_v29 = vpop.xlane.xlu1 %5351  ;;  %v11951_v28 = vpop.eup %11950  ;;  %v5617_v58 = vmul.f32 %v11949_v40, %v19767_v24  ;;  %v7275_v44 = vmul.f32 %v19770_v10, %v7147_v27 }
 0x52c   :  { %11960 = vrcp.f32 %v5352_v29  ;;  %v7002_v50 = vmul.f32 0.6931472, %v11951_v28  ;;  %v7506_v6 = vadd.f32 %v7505_v36, %v7504_v30 }
 0x52d   :  { %v11953_v56 = vpop.eup %11952  ;;  %11962 = vlog2.f32 %v18273_v47  ;;  %v7148_v47 = vadd.f32 %v7000_v26, %v19771_v52  ;;  %v7509_v40 = vsel %vm7297_vm7, %v7275_v44, 0.0  ;;  %v19777_v26 = vld [vmem:[#allocation15_spill] sm:$0xff] }
 0x52e   :  { %11964 = vlog2.f32 %v5346_v22  ;;  %v5618_v63 = vmul.f32 %v11953_v56, %v19768_v43  ;;  %v11955_v25 = vpop.eup %11954  ;;  %v7149_v13 = vadd.f32 %v7002_v50, %v19772_v49  ;;  %v7508_v51 = vadd.f32 %v7507_v61, %v7506_v6  ;;  %v19781_v61 = vld [vmem:[#allocation202_spill] sm:$0xff] }
 0x52f   :  { %v11957_v22 = vpop.eup %11956  ;;  %v7004_v19 = vmul.f32 0.6931472, %v11955_v25  ;;  %v7276_v28 = vmul.f32 %v19773_v7, %v7148_v47  ;;  %v19779_v25 = vld [vmem:[#allocation31_spill] sm:$0xff] }
 0x530   :  { %v9974_v16 = vpack.c.bf16 %v5618_v63, %v5617_v58  ;;  %v5354_v2 = vpop.xlane.xlu0 %5353  ;;  %v7006_v62 = vmul.f32 0.6931472, %v11957_v22  ;;  %v7277_v27 = vmul.f32 %v19776_v4, %v7149_v13  ;;  %v7510_v58 = vadd.f32 %v7509_v40, %v7508_v51  ;;  %v19780_v22 = vld [vmem:[#allocation28_spill] sm:$0xff]  ;;  %v19782_v13 = vld [vmem:[#allocation205_spill] sm:$0xff] }
 0x531   :  { %11966 = vrcp.f32 %v5354_v2  ;;  %v7150_v24 = vadd.f32 %v7004_v19, %v19777_v26  ;;  %v7511_v63 = vsel %vm7297_vm7, %v7276_v28, 0.0 }
 0x532   :  { %10066 = vst [vmem:[%s18432_s4 + $0x1c0] sm:$0xff] %v9974_v16   ;;  %11968 = vlog2.f32 %v5348_v33  ;;  %v19775_v33 = vld [vmem:[#allocation154_spill] sm:$0xff]  ;;  %v7151_v36 = vadd.f32 %v7006_v62, %v19778_v11  ;;  %v7513_v16 = vsel %vm7297_vm7, %v7277_v27, 0.0  ;;  %v7512_v44 = vadd.f32 %v7511_v63, %v7510_v58  ;;  %v19785_v58 = vld [vmem:[#allocation20_spill] sm:$0xff] }
 0x533   :  { %v5356_v15 = vpop.xlane.xlu1 %5355  ;;  %v11959_v59 = vpop.eup %11958  ;;  %v7278_v30 = vmul.f32 %v19779_v25, %v7150_v24 }
 0x534   :  { %11970 = vrcp.f32 %v5356_v15  ;;  %v5619_v56 = vmul.f32 %v11959_v59, %v19774_v20  ;;  %v7279_v47 = vmul.f32 %v17943_v5, %v7151_v36  ;;  %v7514_v59 = vadd.f32 %v7513_v16, %v7512_v44  ;;  %v19787_v16 = vld [vmem:[#allocation159_spill] sm:$0xff] }
 0x535   :  { %11972 = vlog2.f32 %v5350_v12  ;;  %v7515_v7 = vsel %vm7297_vm7, %v7278_v30, 0.0 }
 0x536   :  { %v11961_v35 = vpop.eup %11960  ;;  %11974 = vlog2.f32 %v5352_v29  ;;  %v7517_v51 = vsel %vm7297_vm7, %v7279_v47, 0.0 }
 0x537   :  { %v11963_v46 = vpop.eup %11962  ;;  %v5620_v57 = vmul.f32 %v11961_v35, %v19775_v33  ;;  %11976 = vlog2.f32 %v5354_v2  ;;  %v19783_v35 = vld [vmem:[#allocation38_spill] sm:$0xff] }
 0x538   :  { %v11965_v32 = vpop.eup %11964  ;;  %v7008_v55 = vmul.f32 0.6931472, %v11963_v46 }
 0x539   :  { %v9979_v43 = vpack.c.bf16 %v5620_v57, %v5619_v56  ;;  %v5358_v12 = vpop.xlane.xlu0 %5357  ;;  %v7010_v9 = vmul.f32 0.6931472, %v11965_v32  ;;  %v7516_v56 = vadd.f32 %v7515_v7, %v7514_v59  ;;  %v19784_v32 = vld [vmem:[#allocation98_spill] sm:$0xff] }
 0x53a   :  { %11978 = vrcp.f32 %v5358_v12  ;;  %v7152_v2 = vadd.f32 %v7008_v55, %v19780_v22  ;;  %v19789_v59 = vld [vmem:[#allocation206_spill] sm:$0xff] }
 0x53b   :  { %10067 = vst [vmem:[%s18432_s4 + $0x1c8] sm:$0xff] %v9979_v43   ;;  %v11967_v50 = vpop.eup %11966  ;;  %v7153_v49 = vadd.f32 %v7010_v9, %v19781_v61  ;;  %v7518_v24 = vadd.f32 %v7517_v51, %v7516_v56  ;;  %v19786_v9 = vld [vmem:[#allocation34_spill] sm:$0xff] }
 0x53c   :  { %v5360_v10 = vpop.xlane.xlu1 %5359  ;;  %v11969_v29 = vpop.eup %11968  ;;  %v5621_v19 = vmul.f32 %v11967_v50, %v19782_v13  ;;  %v7280_v5 = vmul.f32 %v17969_v38, %v7152_v2 }
 0x53d   :  { %11980 = vrcp.f32 %v5360_v10  ;;  %v7012_v28 = vmul.f32 0.6931472, %v11969_v29  ;;  %v7281_v33 = vmul.f32 %v17994_v60, %v7153_v49 }
 0x53e   :  { %v11971_v52 = vpop.eup %11970  ;;  %11982 = vlog2.f32 %v5356_v15  ;;  %v7519_v38 = vsel %vm7297_vm7, %v7280_v5, 0.0 }
 0x53f   :  { %v11973_v6 = vpop.eup %11972  ;;  %v5622_v40 = vmul.f32 %v11971_v52, %v19783_v35  ;;  %11984 = vlog2.f32 %v5358_v12  ;;  %v7154_v4 = vadd.f32 %v7012_v28, %v19784_v32  ;;  %v7521_v60 = vsel %vm7297_vm7, %v7281_v33, 0.0  ;;  %v19788_v52 = vld [vmem:[#allocation99_spill] sm:$0xff]  ;;  %v19791_v33 = vld [vmem:[#allocation33_spill] sm:$0xff] }
 0x540   :  { %v7014_v20 = vmul.f32 0.6931472, %v11973_v6  ;;  %v11975_v15 = vpop.eup %11974  ;;  %v7520_v30 = vadd.f32 %v7519_v38, %v7518_v24 }
 0x541   :  { %v9984_v62 = vpack.c.bf16 %v5622_v40, %v5621_v19  ;;  %v5362_v46 = vpop.xlane.xlu0 %5361  ;;  %v11977_v57 = vpop.eup %11976  ;;  %v7016_v12 = vmul.f32 0.6931472, %v11975_v15  ;;  %v7282_v36 = vmul.f32 %v18020_v42, %v7154_v4 }
 0x542   :  { %11986 = vrcp.f32 %v5362_v46  ;;  %v7155_v43 = vadd.f32 %v7014_v20, %v19785_v58  ;;  %v7018_v55 = vmul.f32 0.6931472, %v11977_v57  ;;  %v7522_v2 = vadd.f32 %v7521_v60, %v7520_v30 }
 0x543   :  { %10068 = vst [vmem:[%s18432_s4 + $0x1d0] sm:$0xff] %v9984_v62   ;;  %11988 = vlog2.f32 %v5360_v10  ;;  %v7156_v47 = vadd.f32 %v7016_v12, %v19788_v52  ;;  %v7523_v42 = vsel %vm7297_vm7, %v7282_v36, 0.0  ;;  %v19790_v62 = vld [vmem:[#allocation106_spill] sm:$0xff] }
 0x544   :  { %v11979_v26 = vpop.eup %11978  ;;  %v7283_v44 = vmul.f32 %v18038_v48, %v7155_v43  ;;  %v7157_v61 = vadd.f32 %v7018_v55, %v19789_v59  ;;  %v7524_v28 = vadd.f32 %v7523_v42, %v7522_v2  ;;  %v19795_v59 = vld [vmem:[#allocation17_spill] sm:$0xff] }
 0x545   :  { %v5364_v27 = vpop.xlane.xlu1 %5363  ;;  %v5623_v50 = vmul.f32 %v11979_v26, %v19786_v9  ;;  %v7284_v40 = vmul.f32 %v18055_v31, %v7156_v47 }
 0x546   :  { %11990 = vrcp.f32 %v5364_v27  ;;  %v7525_v35 = vsel %vm7297_vm7, %v7283_v44, 0.0  ;;  %v7285_v51 = vmul.f32 %v18073_v39, %v7157_v61  ;;  %v19794_v44 = vld [vmem:[#allocation109_spill] sm:$0xff] }
 0x547   :  { %v11981_v63 = vpop.eup %11980  ;;  %11992 = vlog2.f32 %v5362_v46  ;;  %v7526_v56 = vadd.f32 %v7525_v35, %v7524_v28  ;;  %v7527_v32 = vsel %vm7297_vm7, %v7284_v40, 0.0 }
 0x548   :  { %v11983_v11 = vpop.eup %11982  ;;  %v5624_v25 = vmul.f32 %v11981_v63, %v19787_v16  ;;  %11994 = vlog2.f32 %v5364_v27  ;;  %v7529_v39 = vsel %vm7297_vm7, %v7285_v51, 0.0  ;;  %v19792_v63 = vld [vmem:[#allocation100_spill] sm:$0xff]  ;;  %v19797_v51 = vld [vmem:[#allocation113_spill] sm:$0xff] }
 0x549   :  { %v11985_v29 = vpop.eup %11984  ;;  %v7020_v6 = vmul.f32 0.6931472, %v11983_v11 }
 0x54a   :  { %v5366_v10 = vpop.xlane.xlu0 %5365  ;;  %v9989_v22 = vpack.c.bf16 %v5624_v25, %v5623_v50  ;;  %v7022_v19 = vmul.f32 0.6931472, %v11985_v29  ;;  %v19793_v50 = vld [vmem:[#allocation19_spill] sm:$0xff] }
 0x54b   :  { %11996 = vrcp.f32 %v5366_v10  ;;  %v7158_v46 = vadd.f32 %v7020_v6, %v19790_v62 }
 0x54c   :  { %11998 = vlog2.f32 %v5366_v10  ;;  %10069 = vst [vmem:[%s18432_s4 + $0x1d8] sm:$0xff] %v9989_v22   ;;  %v11987_v13 = vpop.eup %11986  ;;  %v7159_v57 = vadd.f32 %v7022_v19, %v19791_v33 }
 0x54d   :  { %v5368_v49 = vpop.xlane.xlu1 %5367  ;;  %v11989_v48 = vpop.eup %11988  ;;  %v5625_v5 = vmul.f32 %v11987_v13, %v17938_v41  ;;  %v7286_v24 = vmul.f32 %v18087_v3, %v7158_v46 }
 0x54e   :  { %12000 = vrcp.f32 %v5368_v49  ;;  %v7024_v4 = vmul.f32 0.6931472, %v11989_v48  ;;  %v7287_v43 = vmul.f32 %v18108_v1, %v7159_v57  ;;  %v19796_v48 = vld [vmem:[#allocation21_spill] sm:$0xff] }
 0x54f   :  { %12002 = vlog2.f32 %v5368_v49  ;;  %v7531_v55 = vsel %vm7297_vm7, %v7286_v24, 0.0 }
 0x550   :  { %v11991_v7 = vpop.eup %11990  ;;  %v7160_v60 = vadd.f32 %v7024_v4, %v19792_v63  ;;  %v7533_v1 = vsel %vm7297_vm7, %v7287_v43, 0.0 }
 0x551   :  { %v5626_v20 = vmul.f32 %v11991_v7, %v17958_v14  ;;  %v11993_v15 = vpop.eup %11992  ;;  %v7528_v14 = vadd.f32 %v7527_v32, %v7526_v56  ;;  %v19799_v56 = vld [vmem:[#allocation156_spill] sm:$0xff] }
 0x552   :  { %v11995_v26 = vpop.eup %11994  ;;  %v7026_v58 = vmul.f32 0.6931472, %v11993_v15  ;;  %v7288_v29 = vmul.f32 %v18127_v54, %v7160_v60 }
 0x553   :  { %v9994_v27 = vpack.c.bf16 %v5626_v20, %v5625_v5  ;;  %v5370_v31 = vpop.xlane.xlu0 %5369  ;;  %v7028_v11 = vmul.f32 0.6931472, %v11995_v26  ;;  %v7530_v36 = vadd.f32 %v7529_v39, %v7528_v14  ;;  %v19798_v20 = vld [vmem:[#allocation36_spill] sm:$0xff] }
 0x554   :  { %12004 = vrcp.f32 %v5370_v31  ;;  %v7161_v16 = vadd.f32 %v7026_v58, %v19793_v50  ;;  %v7535_v13 = vsel %vm7297_vm7, %v7288_v29, 0.0  ;;  %v19803_v50 = vld [vmem:[#allocation97_spill] sm:$0xff] }
 0x555   :  { %v11997_v38 = vpop.eup %11996  ;;  %10070 = vst [vmem:[%s18432_s4 + $0x1e0] sm:$0xff] %v9994_v27   ;;  %12006 = vlog2.f32 %v5370_v31  ;;  %v7162_v52 = vadd.f32 %v7028_v11, %v19794_v44  ;;  %v7532_v6 = vadd.f32 %v7531_v55, %v7530_v36  ;;  %v19802_v55 = vld [vmem:[#allocation94_spill] sm:$0xff]  ;;  %v19805_v44 = vld [vmem:[#allocation108_spill] sm:$0xff] }
 0x556   :  { %v11999_v41 = vpop.eup %11998  ;;  %v5372_v12 = vpop.xlane.xlu1 %5371  ;;  %v5627_v25 = vmul.f32 %v11997_v38, %v17981_v0  ;;  %v7289_v42 = vmul.f32 %v18149_v18, %v7161_v16 }
 0x557   :  { %12008 = vrcp.f32 %v5372_v12  ;;  %v7030_v30 = vmul.f32 0.6931472, %v11999_v41  ;;  %v7290_v19 = vmul.f32 %v18164_v23, %v7162_v52 }
 0x558   :  { %v12001_v3 = vpop.eup %12000  ;;  %12010 = vlog2.f32 %v5372_v12  ;;  %v7537_v7 = vsel %vm7297_vm7, %v7289_v42, 0.0 }
 0x559   :  { %v12003_v9 = vpop.eup %12002  ;;  %v5628_v10 = vmul.f32 %v12001_v3, %v17996_v37  ;;  %v7163_v61 = vadd.f32 %v7030_v30, %v19795_v59  ;;  %v7534_v37 = vadd.f32 %v7533_v1, %v7532_v6  ;;  %v7539_v23 = vsel %vm7297_vm7, %v7290_v19, 0.0  ;;  %v19801_v3 = vld [vmem:[#allocation208_spill] sm:$0xff]  ;;  %v19806_v6 = vld [vmem:[#allocation150_spill] sm:$0xff] }
 0x55a   :  { %v7032_v22 = vmul.f32 0.6931472, %v12003_v9  ;;  %v19804_v1 = vld [vmem:[#allocation92_spill] sm:$0xff] }
 0x55b   :  { %v9999_v47 = vpack.c.bf16 %v5628_v10, %v5627_v25  ;;  %v5374_v2 = vpop.xlane.xlu0 %5373  ;;  %v7291_v28 = vmul.f32 %v18184_v53, %v7163_v61  ;;  %v7536_v46 = vadd.f32 %v7535_v13, %v7534_v37  ;;  %v19800_v53 = vld [vmem:[#allocation157_spill] sm:$0xff]  ;;  %vm8731_vm2 = vcmp.eq.s32.totalorder %v19804_v1, 0 }
 0x55c   :  { %12012 = vrcp.f32 %v5374_v2  ;;  %v7164_v35 = vadd.f32 %v7032_v22, %v19796_v48 }
 0x55d   :  { %10071 = vst [vmem:[%s18432_s4 + $0x1e8] sm:$0xff] %v9999_v47   ;;  %12014 = vlog2.f32 %v5374_v2  ;;  %v7538_v4 = vadd.f32 %v7537_v7, %v7536_v46  ;;  %v7541_v31 = vsel %vm7297_vm7, %v7291_v28, 0.0 }
 0x55e   :  { %v12005_v0 = vpop.eup %12004  ;;  %v5376_v49 = vpop.xlane.xlu1 %5375  ;;  %v7292_v57 = vmul.f32 %v18200_v45, %v7164_v35 }
 0x55f   :  { %v12007_v54 = vpop.eup %12006  ;;  %12016 = vrcp.f32 %v5376_v49  ;;  %v5629_v5 = vmul.f32 %v12005_v0, %v19797_v51  ;;  %v7540_v39 = vadd.f32 %v7539_v23, %v7538_v4 }
 0x560   :  { %v7034_v40 = vmul.f32 0.6931472, %v12007_v54  ;;  %12018 = vlog2.f32 %v5376_v49  ;;  %v7543_v41 = vsel %vm7297_vm7, %v7292_v57, 0.0  ;;  %v19808_v54 = vld [vmem:[#allocation70_spill] sm:$0xff] }
 0x561   :  { %v12009_v18 = vpop.eup %12008  ;;  %v7542_v14 = vadd.f32 %v7541_v31, %v7540_v39 }
 0x562   :  { %v12011_v62 = vpop.eup %12010  ;;  %v7165_v15 = vadd.f32 %v7034_v40, %v19798_v20  ;;  %v5630_v33 = vmul.f32 %v12009_v18, %v19799_v56  ;;  %v8073_v2 = vpop.permute.xlu1 %8072 }
 0x563   :  { %v7036_v32 = vmul.f32 0.6931472, %v12011_v62  ;;  %v8070_v60 = vpop.permute.xlu0 %8069  ;;  %v7544_v11 = vadd.f32 %v7543_v41, %v7542_v14  ;;  %vm8201_vm1 = vcmp.eq.s32.totalorder %v19804_v1, %v8073_v2 }
 0x564   :  { %v10004_v27 = vpack.c.bf16 %v5630_v33, %v5629_v5  ;;  %v7293_v26 = vmul.f32 %v18220_v17, %v7165_v15  ;;  %vm8200_vm15 = vcmp.eq.s32.totalorder %v19804_v1, %v8070_v60  ;;  %v8329_v13 = vsel %vm8201_vm1, %v19808_v54, 0.0 }
 0x565   :  { %v7166_v24 = vadd.f32 %v7036_v32, %v19800_v53  ;;  %v8328_v42 = vsel %vm8200_vm15, %v19806_v6, 0.0 }
 0x566   :  { %v12013_v38 = vpop.eup %12012  ;;  %10072 = vst [vmem:[%s18432_s4 + $0x1f0] sm:$0xff] %v10004_v27   ;;  %v7545_v63 = vsel %vm7297_vm7, %v7293_v26, 0.0 }
 0x567   :  { %v12015_v58 = vpop.eup %12014  ;;  %v7294_v45 = vmul.f32 %v18227_v8, %v7166_v24  ;;  %v5631_v36 = vmul.f32 %v12013_v38, %v19801_v3  ;;  %v7546_v29 = vadd.f32 %v7545_v63, %v7544_v11 }
 0x568   :  { %v7038_v43 = vmul.f32 0.6931472, %v12015_v58 }
 0x569   :  { %v12017_v12 = vpop.eup %12016  ;;  %v7547_v30 = vsel %vm7297_vm7, %v7294_v45, 0.0 }
 0x56a   :  { %v12019_v17 = vpop.eup %12018  ;;  %v7167_v9 = vadd.f32 %v7038_v43, %v19802_v55  ;;  %v5632_v16 = vmul.f32 %v12017_v12, %v19803_v50  ;;  %v7548_v47 = vadd.f32 %v7547_v30, %v7546_v29 }
 0x56b   :  { %v7040_v25 = vmul.f32 0.6931472, %v12019_v17 }
 0x56c   :  { %v10009_v10 = vpack.c.bf16 %v5632_v16, %v5631_v36  ;;  %v7295_v8 = vmul.f32 %v18241_v34, %v7167_v9  ;;  %v19807_v34 = vld [vmem:[#allocation78_spill] sm:$0xff] }
 0x56d   :  { %v7168_v52 = vadd.f32 %v7040_v25, %v19805_v44  ;;  %v8455_v37 = vadd.f32 %v19807_v34, %v8328_v42 }
 0x56e   :  { %10073 = vst [vmem:[%s18432_s4 + $0x1f8] sm:$0xff] %v10009_v10   ;;  %v7549_v22 = vsel %vm7297_vm7, %v7295_v8, 0.0 }
 0x56f   :  { %v7296_v59 = vmul.f32 %v18246_v21, %v7168_v52  ;;  %v7550_v61 = vadd.f32 %v7549_v22, %v7548_v47  ;;  %v8456_v19 = vadd.f32 %v8455_v37, %v8329_v13 }
 0x571   :  { %v7551_v0 = vsel %vm7297_vm7, %v7296_v59, 0.0  ;;  %vm8732_vm7 = vcmp.eq.s32.totalorder %v19804_v1, 1 }
 0x572   :  { %v7552_v49 = vadd.f32 %v7551_v0, %v7550_v61 }
 0x574   :  { %7553 = vadd.xlane.f32.xlu0 %v7552_v49 }
 0x578   :  { %8457 = vadd.xlane.f32.xlu0 %v8456_v19 }
 0x593   :  { %v8723_v48 = vpop.xlane.xlu1 %8722 }
 0x594   :  { %v8724_v35 = vrot.slane %v8723_v48, 4 }
 0x596   :  { %v8725_v40 = vadd.f32 %v8724_v35, %v8723_v48 }
 0x598   :  { %v8726_v21 = vrot.slane %v8725_v40, 2 }
 0x59a   :  { %v8727_v15 = vadd.f32 %v8726_v21, %v8725_v40 }
 0x59c   :  { %v8728_v32 = vrot.slane %v8727_v15, 1 }
 0x59e   :  { %v8729_v31 = vadd.f32 %v8728_v32, %v8727_v15 }
 0x601   :  { %v7554_v18 = vpop.xlane.xlu0 %7553 }
 0x602   :  { %v7555_v7 = vrot.slane %v7554_v18, 4 }
 0x604   :  { %v7556_v28 = vadd.f32 %v7555_v7, %v7554_v18 }
 0x605   :  { %v8458_v62 = vpop.xlane.xlu0 %8457 }
 0x606   :  { %v7557_v46 = vrot.slane %v7556_v28, 2  ;;  %v8459_v51 = vrot.slane %v8458_v62, 4 }
 0x608   :  { %v8460_v5 = vadd.f32 %v8459_v51, %v8458_v62  ;;  %v7558_v20 = vadd.f32 %v7557_v46, %v7556_v28 }
 0x60a   :  { %v8461_v56 = vrot.slane %v8460_v5, 2  ;;  %v7559_v33 = vrot.slane %v7558_v20, 1 }
 0x60c   :  { %v8462_v23 = vadd.f32 %v8461_v56, %v8460_v5  ;;  %v7560_v57 = vadd.f32 %v7559_v33, %v7558_v20 }
 0x60e   :  { %10618 = vpush %v7560_v57  ;;  %v8463_v4 = vrot.slane %v8462_v23, 1 }
 0x610   :  { %v8464_v27 = vadd.f32 %v8463_v4, %v8462_v23 }
 0x612   :  { %10620 = vpush %v8464_v27 }
 0x613   :  { %10622 = vpush %v8729_v31 }
 0x63f   :  { %s10619_s4 = spop %10618 }
 0x643   :  { %s10621_s22 = spop %10620 }
 0x644   :  { %s8466_s23 = ssub.f32 %s10619_s4, %s10621_s22  ;;  %s10623_s24 = spop %10622 }
 0x645   :  { %v8733_v26 = vstv %s10623_s24 }
 0x646   :  { %v8735_v53 = vstv %s8466_s23  ;;  %v8734_v24 = vsel %vm8732_vm7, %v8733_v26, 0.0 }
 0x647   :  { %v8736_v38 = vsel %vm8731_vm2, %v8735_v53, %v8734_v24 }
 0x648   :  { %8737 = vst [vmem:[%s18433_s5] sm:$0x1] %v8736_v38 }

</bundles_post_ra>
